<compile_context>
chip_gen: v6e
topology: v6e:2x2x1
jax: 0.10.0
libtpu: 0.0.40
codegen_flags: <defaults>
</compile_context>

<pallas_src>
import functools
import math

import jax
import jax.numpy as jnp
from jax.experimental import pallas as pl
from jax.experimental.pallas import tpu as pltpu

_WIDTH = 512                      # lane-dense slab width (4 vregs wide, unmasked vst)
_TILE_ROWS = 512                  # (512, 512) f32 block = 1 MiB
_SMALL_N = _TILE_ROWS * _WIDTH    # below one block of work, skip pallas_call


def _sigmoid_f32(x):
    # 1/(1+exp(-x)) is stable in f32: exp overflow -> inf -> 1/inf = 0 (no NaN).
    return 1.0 / (1.0 + jnp.exp(-x))


def _margin_sigmoid_kernel(pos_ref, neg_ref, out_ref, *, margin):
    # Compute in f32 (safe on v5e which lacks bf16 VPU/EUP); store in the I/O dtype.
    p = pos_ref[...].astype(jnp.float32)
    n = neg_ref[...].astype(jnp.float32)
    loss = jnp.maximum(_sigmoid_f32(p) - _sigmoid_f32(n) + margin, 0.0)
    out_ref[...] = loss.astype(out_ref.dtype)


def margin_sigmoid_contrastive_loss(pos_scores, neg_scores, margin, normalizer=None):
    """Elementwise relu(sigmoid(pos) - sigmoid(neg) + margin); same shape as inputs."""
    del normalizer  # MarginSigmoidContrastiveLoss.forward does not use it
    assert pos_scores.shape == neg_scores.shape
    orig_shape = pos_scores.shape
    out_dtype = jnp.result_type(pos_scores.dtype, neg_scores.dtype)
    margin = float(margin)

    n_elem = math.prod(orig_shape) if orig_shape else 1

    # Small-N fast path: pallas_call fixed launch + pipeline prologue dwarfs the work.
    if n_elem < _SMALL_N:
        p = pos_scores.astype(jnp.float32)
        n = neg_scores.astype(jnp.float32)
        out = jnp.maximum(_sigmoid_f32(p) - _sigmoid_f32(n) + margin, 0.0)
        return out.astype(out_dtype)

    # Glue: lane-dense 2D slab [rows, 512] (reshape of a contiguous flat array is free).
    flat_p = pos_scores.reshape(-1)
    flat_n = neg_scores.reshape(-1)
    pad = (-n_elem) % _WIDTH
    if pad:
        # Only the lane-tail is padded; no-op whenever N is already a multiple of 512.
        flat_p = jnp.pad(flat_p, (0, pad))
        flat_n = jnp.pad(flat_n, (0, pad))
    rows = (n_elem + pad) // _WIDTH
    p2 = flat_p.reshape(rows, _WIDTH)
    n2 = flat_n.reshape(rows, _WIDTH)

    kernel = functools.partial(_margin_sigmoid_kernel, margin=margin)

    out2 = pl.pallas_call(
        kernel,
        out_shape=jax.ShapeDtypeStruct((rows, _WIDTH), out_dtype),
        grid_spec=pltpu.PrefetchScalarGridSpec(
            num_scalar_prefetch=0,
            # Ragged final block (rows % _TILE_ROWS != 0) is handled by Pallas masking;
            # no wrapper-side row padding / extra HBM pass.
            grid=(pl.cdiv(rows, _TILE_ROWS),),
            in_specs=[
                pl.BlockSpec((_TILE_ROWS, _WIDTH), lambda i: (i, 0)),
                pl.BlockSpec((_TILE_ROWS, _WIDTH), lambda i: (i, 0)),
            ],
            out_specs=pl.BlockSpec((_TILE_ROWS, _WIDTH), lambda i: (i, 0)),
        ),
        compiler_params=pltpu.CompilerParams(
            dimension_semantics=("parallel",),
        ),
    )(p2, n2)

    return out2.reshape(-1)[:n_elem].reshape(orig_shape)


def _reference(pos_scores, neg_scores, margin):
    p = pos_scores.astype(jnp.float32)
    n = neg_scores.astype(jnp.float32)
    return jnp.maximum(_sigmoid_f32(p) - _sigmoid_f32(n) + margin, 0.0)


if __name__ == "__main__":
    margin = 0.5
    key = jax.random.PRNGKey(0)
    k1, k2, k3, k4 = jax.random.split(key, 4)

    # Case 1: module-consistent small batch of logit scores (fused fast path).
    pos_small = jax.random.normal(k1, (16,), dtype=jnp.float32) * 3.0
    neg_small = jax.random.normal(k2, (16,), dtype=jnp.float32) * 3.0
    loss_small = margin_sigmoid_contrastive_loss(pos_small, neg_small, margin)
    jax.block_until_ready(loss_small)
    assert loss_small.shape == pos_small.shape
    assert jnp.allclose(
        loss_small,
        _reference(pos_small, neg_small, margin).astype(loss_small.dtype),
        atol=1e-6, rtol=1e-6,
    )

    # Case 2: exercises the Pallas kernel path (full block + ragged last grid block
    # + lane-tail pad).
    n_big = _TILE_ROWS * _WIDTH + 1000
    pos_big = jax.random.normal(k3, (n_big,), dtype=jnp.float32) * 3.0
    neg_big = jax.random.normal(k4, (n_big,), dtype=jnp.float32) * 3.0
    loss_big = margin_sigmoid_contrastive_loss(pos_big, neg_big, margin)
    jax.block_until_ready(loss_big)
    assert loss_big.shape == pos_big.shape
    assert jnp.allclose(loss_big, _reference(pos_big, neg_big, margin), atol=1e-6, rtol=1e-6)

    # Case 3: bf16 I/O (kernel computes in f32, stores bf16 -> half the HBM traffic).
    pos_bf = pos_big.astype(jnp.bfloat16)
    neg_bf = neg_big.astype(jnp.bfloat16)
    loss_bf = margin_sigmoid_contrastive_loss(pos_bf, neg_bf, margin)
    jax.block_until_ready(loss_bf)
    assert loss_bf.dtype == jnp.bfloat16 and loss_bf.shape == pos_bf.shape
    assert jnp.allclose(
        loss_bf.astype(jnp.float32),
        _reference(pos_bf, neg_bf, margin),
        atol=2e-2, rtol=2e-2,
    )

    print("KERNEL_OK")
</pallas_src>

<mosaic_0001>
module attributes {stable_mosaic.version = 11 : i64} {
  func.func @_margin_sigmoid_kernel(%arg0: i32, %arg1: memref<512x512xf32, #tpu.memory_space<vmem>>, %arg2: memref<512x512xf32, #tpu.memory_space<vmem>>, %arg3: memref<512x512xf32, #tpu.memory_space<vmem>>) attributes {dimension_semantics = [#tpu.dimension_semantics<parallel>], iteration_bounds = array<i64: 2>, scalar_prefetch = 0 : i64, scratch_operands = 0 : i64, tpu.core_type = #tpu.core_type<tc>, window_params = [{transform_indices = @transform_0, window_bounds = array<i64: 512, 512>}, {transform_indices = @transform_1, window_bounds = array<i64: 512, 512>}, {transform_indices = @transform_2, window_bounds = array<i64: 512, 512>}]} {
    %c0 = arith.constant 0 : index
    %c0_0 = arith.constant 0 : index
    %0 = vector.load %arg1[%c0, %c0_0] : memref<512x512xf32, #tpu.memory_space<vmem>>, vector<512x512xf32>
    %c0_1 = arith.constant 0 : index
    %c0_2 = arith.constant 0 : index
    %1 = vector.load %arg2[%c0_1, %c0_2] : memref<512x512xf32, #tpu.memory_space<vmem>>, vector<512x512xf32>
    %cst = arith.constant 0.000000e+00 : f32
    %2 = vector.broadcast %cst : f32 to vector<512x512xf32>
    %3 = arith.subf %2, %0 : vector<512x512xf32>
    %4 = math.exp %3 : vector<512x512xf32>
    %cst_3 = arith.constant 1.000000e+00 : f32
    %5 = vector.broadcast %cst_3 : f32 to vector<512x512xf32>
    %6 = arith.addf %5, %4 : vector<512x512xf32>
    %cst_4 = arith.constant 1.000000e+00 : f32
    %7 = vector.broadcast %cst_4 : f32 to vector<512x512xf32>
    %8 = arith.divf %7, %6 : vector<512x512xf32>
    %cst_5 = arith.constant 0.000000e+00 : f32
    %9 = vector.broadcast %cst_5 : f32 to vector<512x512xf32>
    %10 = arith.subf %9, %1 : vector<512x512xf32>
    %11 = math.exp %10 : vector<512x512xf32>
    %cst_6 = arith.constant 1.000000e+00 : f32
    %12 = vector.broadcast %cst_6 : f32 to vector<512x512xf32>
    %13 = arith.addf %12, %11 : vector<512x512xf32>
    %cst_7 = arith.constant 1.000000e+00 : f32
    %14 = vector.broadcast %cst_7 : f32 to vector<512x512xf32>
    %15 = arith.divf %14, %13 : vector<512x512xf32>
    %16 = arith.subf %8, %15 : vector<512x512xf32>
    %cst_8 = arith.constant 5.000000e-01 : f32
    %17 = vector.broadcast %cst_8 : f32 to vector<512x512xf32>
    %18 = arith.addf %16, %17 : vector<512x512xf32>
    %cst_9 = arith.constant 0.000000e+00 : f32
    %19 = vector.broadcast %cst_9 : f32 to vector<512x512xf32>
    %20 = arith.maximumf %18, %19 : vector<512x512xf32>
    %c0_10 = arith.constant 0 : index
    %c0_11 = arith.constant 0 : index
    %21 = vector.load %arg3[%c0_10, %c0_11] : memref<512x512xf32, #tpu.memory_space<vmem>>, vector<512x512xf32>
    tpu.vector_store %arg3[%c0_10, %c0_11], %20 {strides = array<i32>} : memref<512x512xf32, #tpu.memory_space<vmem>>, vector<512x512xf32>,
    return
  }
  func.func @transform_0(%arg0: i32) -> (i32, i32) {
    %c0_i32 = arith.constant 0 : i32
    %c0_i32_0 = arith.constant 0 : i32
    return %arg0, %c0_i32 : i32, i32
  }
  func.func @transform_1(%arg0: i32) -> (i32, i32) {
    %c0_i32 = arith.constant 0 : i32
    %c0_i32_0 = arith.constant 0 : i32
    return %arg0, %c0_i32 : i32, i32
  }
  func.func @transform_2(%arg0: i32) -> (i32, i32) {
    %c0_i32 = arith.constant 0 : i32
    %c0_i32_0 = arith.constant 0 : i32
    return %arg0, %c0_i32 : i32, i32
  }
}

</mosaic_0001>

<bundles_post_ra>
// kernel: tpu_custom_call.1
= control target key start
LH: loop header
LB: loop body
LE: loop exit
PB: predicated region body
PF: predicated region fallthrough
CT: control target
= control target key end

     0   :  { %7 = vsyncpa [#allocation3], 0  ;;  %s8249_s0 = inlined_call_operand.hbm [shape: f32[514,512], index: 0, kind: input, shape index: {}]   ;;  %s8250_s1 = inlined_call_operand.hbm [shape: f32[514,512], index: 1, kind: input, shape index: {}]   ;;  %s8251_s2 = inlined_call_operand.hbm [shape: f32[514,512], index: 2, kind: output, shape index: {}]  }
   0x1   :  { %9 = vsyncpa [#allocation3 + $0x1], 0 }
   0x2   :  { %10 = vsyncpa [#allocation6], 0 }
   0x3   :  { %12 = vsyncpa [#allocation6 + $0x1], 0 }
   0x4   :  { %13 = vsyncpa [#allocation4], 0 }
   0x5   :  { %15 = vsyncpa [#allocation4 + $0x1], 0  ;;  %s7247_s9 = smov 0   ;;  %s7249_s10 = smov 0  }
   0x6   :  { %s7251_s11 = smov 0   ;;  %s7253_s12 = smov 0  }
   0x7 LB: > { %s7268_s13 = sadd.s32 4294967295, %s7221_s12   ;;  %s4962_s14 = sadd.s32 4294967294, %s7221_s12   ;;  %s7221_s12 = sphi %s7253_s12, %s8263_s12   ;;  %s7217_s11 = sphi %s7251_s11, %s8262_s11   ;;  %s7213_s10 = sphi %s7249_s10, %s8261_s10   ;;  %s7209_s9 = sphi %s7247_s9, %s8260_s9  }
   0x8   : > { %s7272_s15 = sadd.s32 1, %s7221_s12   ;;  %s28_s16 = sadd.s32 1, %s7217_s11 }
   0x9   : > { %s25_s17 = ssub.s32 %s7221_s12, %s7272_s15  ;;  %p35_p0 = scmp.ne.s32.totalorder %s7217_s11, %s7213_s10 }
   0xa   : > { %p26_p1 = scmp.eq.s32.totalorder %s25_s17, 0  ;;  %p36_p2 = scmp.eq.s32.totalorder %s7221_s12, 0 }
   0xb   : > { %p41_p3 = scmp.ne.s32.totalorder %s7213_s10, %s7209_s9  ;;  %p42_p4 = scmp.eq.s32.totalorder %s7268_s13, 0 }
   0xc   : > { %s7284_s18 = scalar_select %p26_p1, %s7217_s11, %s28_s16  }
   0xd   : > { %p7286_p5 = por %p36_p2, %p35_p0  ;;  %p7290_p6 = por %p42_p4, %p41_p3 }
   0xe   : > { %p91_p7 = scmp.eq.s32.totalorder %s7268_s13, 1  ;;  %p97_p8 = scmp.eq.s32.totalorder %s4962_s14, 1 }
   0xf   : > { %p8252_p11 = scmp.ge.s32.totalorder %s7221_s12, 2 }
  0x10   : > { %p7295_p9 = por %p91_p7, %p35_p0  ;;  %p7299_p10 = por %p97_p8, %p41_p3 }
  0x11   : > { %113 = sbr.rel (%p8252_p11) target bundleno = 86 (0x56), region = 16 }
  0x12   : > { %s8255_s21 = scalar_select %p7295_p9, 1, 0 }
  0x13   : > { %s8256_s22 = scalar_select %p7299_p10, 1, 0 }
  0x16   : > { %116 = sbr.rel (!%p7286_p5) target bundleno = 54 (0x36), region = 20  ;;  %s117_s23 = sand.u32 (%p7286_p5), 1, %s7217_s11  }
  0x17   : > { %s4966_s24 = sshll.u32 (%p7286_p5), %s7221_s12, 6  ;;  %s4965_s25 = sshll.u32 (%p7286_p5), %s117_s23, 11 }
  0x18   : > { %s123_s26 = ssub.s32 (%p7286_p5), 65, %s4966_s24  ;;  %s7313_s29 = scalar_lea.sflag (%p7286_p5), [#allocation3], %s117_s23 }
  0x19   : > { %p124_p12 = scmp.lt.s32.totalorder (%p7286_p5), %s123_s26, 64  ;;  %s121_s30 = scalar_lea.vmem (%p7286_p5), [#allocation2], %s4965_s25 }
  0x1b   : > { %s8265_s26 = smov (!%p124_p12, %s123_s26), 64 }
  0x1c   : > { %s7310_s27 = sshll.u32 %s8265_s26, 9 }
  0x1d   : > { %s129_s28 = ssub.s32 32768, %s7310_s27 }
  0x1e   : > { %130 = vsyncadd %s7313_s29, %s129_s28  ;;  %p4969_p13 = scmp.ne.s32.totalorder %s7310_s27, 0  ;;  %s5000_s3 = sshll.u32 %s7221_s12, 15 }
  0x1f   : > { %s7321_s6 = scalar_lea.hbm %s8249_s0, %s5000_s3  ;;  %s136_s7 = sshll.u32 %s121_s30, 4  ;;  %s7323_s7 = int_to_ptr.vmem [resolvable:$true] %s136_s7 }
  0x20   : > { %s7101_s8 = scalar_lea.hbm %s7321_s6, %s7310_s27  ;;  %s7105_s17 = scalar_lea.hbm %s8249_s0, 33280 }
  0x21   : > { %p7102_p0 = scmp.ne.s32.totalorder %s7321_s6, %s7101_s8  ;;  %p7106_p3 = scmp.lt.s32.totalorder %s7321_s6, %s8249_s0 }
  0x22   : > { %p7107_p4 = scmp.lt.s32.totalorder %s7105_s17, %s7101_s8 }
  0x23   : > { %p7103_p1 = pnand %p7102_p0, %p4969_p13 }
  0x24   : > { %p7108_p7 = por %p7107_p4, %p7106_p3 }
  0x25   : > { %p7104_p2 = pneg %p7103_p1 }
  0x27   : > { %p7109_p8 = pnand %p7108_p7, %p7104_p2 }
  0x29   : > { %7112 = shalt.err (!%p7109_p8)
}
  0x2a   : > { %s7113_s25 = scalar_lea.vmem %s7323_s7, %s7310_s27  ;;  %s7223_s26 = smov [#allocation2]  }
  0x2b   : > { %p7114_p12 = scmp.ne.s32.totalorder %s7323_s7, %s7113_s25  ;;  %s7117_s28 = sshll.u32 %s7223_s26, 4  ;;  %s7118_s28 = int_to_ptr.vmem [resolvable:$false] %s7117_s28 }
  0x2c   : > { %s7119_s30 = scalar_lea.vmem %s7118_s28, 65536  ;;  %p7120_p11 = scmp.lt.s32.totalorder %s7323_s7, %s7118_s28 }
  0x2d   : > { %p7115_p0 = pnand %p7114_p12, %p4969_p13  ;;  %p7121_p10 = scmp.lt.s32.totalorder %s7119_s30, %s7113_s25 }
  0x2f   : > { %p7116_p1 = pneg %p7115_p0  ;;  %p7122_p9 = por %p7121_p10, %p7120_p11 }
  0x31   : > { %p7123_p3 = pnand %p7122_p9, %p7116_p1 }
  0x33   : > { %7126 = shalt.err (!%p7123_p3)
}
  0x34   : > { %s7224_s3 = smov 512   ;;  %s7225_s4 = smov 32  }
  0x35   : > { %142 = dma.hbm_to_vmem [thread:$0]  (%p4969_p13), %s7321_s6, %s7310_s27, %s7323_s7, %s7313_s29, %s7224_s3, %s7224_s3, %s7225_s4  }
  0x36 PF: > { %145 = sbr.rel (!%p7286_p5) target bundleno = 86 (0x56), region = 24  ;;  %s146_s5 = sand.u32 (%p7286_p5), 1, %s7217_s11  }
  0x37   : > { %s4975_s8 = sshll.u32 (%p7286_p5), %s7221_s12, 6  ;;  %s4974_s14 = sshll.u32 (%p7286_p5), %s146_s5, 11 }
  0x38   : > { %s152_s16 = ssub.s32 (%p7286_p5), 65, %s4975_s8  ;;  %s7356_s24 = scalar_lea.sflag (%p7286_p5), [#allocation6], %s146_s5 }
  0x39   : > { %p153_p9 = scmp.lt.s32.totalorder (%p7286_p5), %s152_s16, 64  ;;  %s150_s27 = scalar_lea.vmem (%p7286_p5), [#allocation5], %s4974_s14 }
  0x3b   : > { %s8267_s16 = smov (!%p153_p9, %s152_s16), 64 }
  0x3c   : > { %s7353_s17 = sshll.u32 %s8267_s16, 9 }
  0x3d   : > { %s158_s23 = ssub.s32 32768, %s7353_s17 }
  0x3e   : > { %159 = vsyncadd %s7356_s24, %s158_s23  ;;  %p4978_p5 = scmp.ne.s32.totalorder %s7353_s17, 0  ;;  %s5003_s19 = sshll.u32 %s7221_s12, 15 }
  0x3f   : > { %s7364_s7 = scalar_lea.hbm %s8250_s1, %s5003_s19  ;;  %s165_s25 = sshll.u32 %s150_s27, 4  ;;  %s7366_s25 = int_to_ptr.vmem [resolvable:$true] %s165_s25 }
  0x40   : > { %s7127_s26 = scalar_lea.hbm %s7364_s7, %s7353_s17  ;;  %s7131_s3 = scalar_lea.hbm %s8250_s1, 33280 }
  0x41   : > { %p7128_p10 = scmp.ne.s32.totalorder %s7364_s7, %s7127_s26  ;;  %p7132_p2 = scmp.lt.s32.totalorder %s7364_s7, %s8250_s1 }
  0x42   : > { %p7133_p4 = scmp.lt.s32.totalorder %s7131_s3, %s7127_s26 }
  0x43   : > { %p7129_p11 = pnand %p7128_p10, %p4978_p5 }
  0x44   : > { %p7134_p7 = por %p7133_p4, %p7132_p2 }
  0x45   : > { %p7130_p13 = pneg %p7129_p11 }
  0x47   : > { %p7135_p8 = pnand %p7134_p7, %p7130_p13 }
  0x49   : > { %7138 = shalt.err (!%p7135_p8)
}
  0x4a   : > { %s7139_s8 = scalar_lea.vmem %s7366_s25, %s7353_s17  ;;  %s7226_s14 = smov [#allocation5]  }
  0x4b   : > { %p7140_p12 = scmp.ne.s32.totalorder %s7366_s25, %s7139_s8  ;;  %s7143_s16 = sshll.u32 %s7226_s14, 4  ;;  %s7144_s16 = int_to_ptr.vmem [resolvable:$false] %s7143_s16 }
  0x4c   : > { %s7145_s23 = scalar_lea.vmem %s7144_s16, 65536  ;;  %p7146_p3 = scmp.lt.s32.totalorder %s7366_s25, %s7144_s16 }
  0x4d   : > { %p7141_p0 = pnand %p7140_p12, %p4978_p5  ;;  %p7147_p9 = scmp.lt.s32.totalorder %s7145_s23, %s7139_s8 }
  0x4f   : > { %p7142_p1 = pneg %p7141_p0  ;;  %p7148_p10 = por %p7147_p9, %p7146_p3 }
  0x51   : > { %p7149_p11 = pnand %p7148_p10, %p7142_p1 }
  0x53   : > { %7152 = shalt.err (!%p7149_p11)
}
  0x54   : > { %s7227_s27 = smov 512   ;;  %s7228_s19 = smov 32  }
  0x55   : > { %171 = dma.hbm_to_vmem [thread:$0]  (%p4978_p5), %s7364_s7, %s7353_s17, %s7366_s25, %s7356_s24, %s7227_s27, %s7227_s27, %s7228_s19  }
  0x56 PF: > { %p4983_p13 = scmp.ge.s32.totalorder %s7221_s12, 1  ;;  %p173_p2 = scmp.lt.s32.totalorder %s7221_s12, 3 }
  0x58   : > { %p174_p4 = pnand %p4983_p13, %p173_p2 }
  0x59   : > { %s7395_s29 = sand.u32 (!%p174_p4), 1, %s7213_s10  }
  0x5a   : > { %177 = sbr.rel (%p174_p4) target bundleno = 1174 (0x496), region = 28  ;;  %s7398_s6 = sshll.u32 (!%p174_p4), %s7395_s29, 11 }
  0x5b   : > { %s180_s26 = scalar_lea.sflag (!%p174_p4), [#allocation3], %s7395_s29  ;;  %s7402_s28 = scalar_lea.vmem (!%p174_p4), [#allocation2], %s7398_s6 }
  0x5f   : > { %7196 = dma.done.wait (%p7290_p6), %s180_s26, 32768  }
  0x60   : > { %7198 = vsyncadd (%p7290_p6), %s180_s26, 4294934528  ;;  %s189_s17 = scalar_lea.sflag [#allocation6], %s7395_s29  ;;  %s7410_s24 = scalar_lea.vmem [#allocation5], %s7398_s6 }
  0x61   : > { %7200 = dma.done.wait (%p7290_p6), %s189_s17, 32768  }
  0x62   : > { %7202 = vsyncadd (%p7290_p6), %s189_s17, 4294934528  ;;  %v236_v0 = vld [vmem:[%s7402_s28] sm:$0xff]  ;;  %v237_v2 = vld [vmem:[%s7402_s28 + $0x8] sm:$0xff]  ;;  %s7449_s20 = scalar_lea.vmem [#allocation7], %s7398_s6  ;;  %s4845_s7 = scalar_lea.sflag [#allocation4], %s7395_s29 }
  0x63   : > { %v492_v1 = vld [vmem:[%s7410_s24] sm:$0xff]  ;;  %v748_v3 = vsub.f32 0.0, %v236_v0  ;;  %v493_v5 = vld [vmem:[%s7410_s24 + $0x8] sm:$0xff]  ;;  %v749_v6 = vsub.f32 0.0, %v237_v2  ;;  %v238_v7 = vld [vmem:[%s7402_s28 + $0x10] sm:$0xff]  ;;  %p8257_p6 = scmp.ne.s32.totalorder %s8255_s21, 0 }
  0x64   : > { %v2284_v4 = vsub.f32 0.0, %v492_v1  ;;  %v494_v8 = vld [vmem:[%s7410_s24 + $0x10] sm:$0xff]  ;;  %v2285_v9 = vsub.f32 0.0, %v493_v5  ;;  %v750_v10 = vsub.f32 0.0, %v238_v7  ;;  %v239_v12 = vld [vmem:[%s7402_s28 + $0x18] sm:$0xff]  ;;  %v240_v14 = vld [vmem:[%s7402_s28 + $0x20] sm:$0xff] }
  0x65   : > { %v2286_v11 = vsub.f32 0.0, %v494_v8  ;;  %v495_v13 = vld [vmem:[%s7410_s24 + $0x18] sm:$0xff]  ;;  %v1004_v15 = vmul.f32 1.442695, %v748_v3  ;;  %v1006_v17 = vmul.f32 1.442695, %v749_v6 }
  0x66   : > { %v2540_v16 = vmul.f32 1.442695, %v2284_v4  ;;  %v2542_v18 = vmul.f32 1.442695, %v2285_v9  ;;  %v1008_v19 = vmul.f32 1.442695, %v750_v10 }
  0x67   : > { %5053 = vpow2.f32 %v1004_v15  ;;  %v751_v20 = vsub.f32 0.0, %v239_v12  ;;  %v2287_v21 = vsub.f32 0.0, %v495_v13  ;;  %v496_v22 = vld [vmem:[%s7410_s24 + $0x20] sm:$0xff]  ;;  %v752_v23 = vsub.f32 0.0, %v240_v14  ;;  %v241_v24 = vld [vmem:[%s7402_s28 + $0x28] sm:$0xff]  ;;  %v242_v28 = vld [vmem:[%s7402_s28 + $0x30] sm:$0xff] }
  0x68   : > { %v497_v25 = vld [vmem:[%s7410_s24 + $0x28] sm:$0xff]  ;;  %5055 = vpow2.f32 %v2540_v16  ;;  %v2544_v26 = vmul.f32 1.442695, %v2286_v11  ;;  %v2288_v27 = vsub.f32 0.0, %v496_v22  ;;  %v753_v30 = vsub.f32 0.0, %v241_v24  ;;  %v498_v31 = vld [vmem:[%s7410_s24 + $0x30] sm:$0xff] }
  0x69   : > { %5057 = vpow2.f32 %v1006_v17  ;;  %v1010_v29 = vmul.f32 1.442695, %v751_v20  ;;  %v2546_v32 = vmul.f32 1.442695, %v2287_v21  ;;  %v2289_v33 = vsub.f32 0.0, %v497_v25  ;;  %v243_v34 = vld [vmem:[%s7402_s28 + $0x38] sm:$0xff] }
  0x6a   : > { %5059 = vpow2.f32 %v2542_v18  ;;  %v1012_v35 = vmul.f32 1.442695, %v752_v23  ;;  %v754_v36 = vsub.f32 0.0, %v242_v28  ;;  %v499_v37 = vld [vmem:[%s7410_s24 + $0x38] sm:$0xff]  ;;  %v2548_v38 = vmul.f32 1.442695, %v2288_v27 }
  0x6b   : > { %5061 = vpow2.f32 %v1008_v19  ;;  %v2290_v39 = vsub.f32 0.0, %v498_v31  ;;  %v1014_v40 = vmul.f32 1.442695, %v753_v30  ;;  %v755_v41 = vsub.f32 0.0, %v243_v34  ;;  %v244_v63 = vld [vmem:[%s7402_s28 + $0x40] sm:$0xff]  ;;  %v245_v5 = vld [vmem:[%s7402_s28 + $0x48] sm:$0xff] }
  0x6c   : > { %5063 = vpow2.f32 %v2544_v26  ;;  %v2550_v42 = vmul.f32 1.442695, %v2289_v33  ;;  %v2291_v43 = vsub.f32 0.0, %v499_v37  ;;  %v1016_v44 = vmul.f32 1.442695, %v754_v36  ;;  %v500_v2 = vld [vmem:[%s7410_s24 + $0x40] sm:$0xff] }
  0x6d   : > { %5065 = vpow2.f32 %v1010_v29  ;;  %v2552_v45 = vmul.f32 1.442695, %v2290_v39  ;;  %v1018_v46 = vmul.f32 1.442695, %v755_v41  ;;  %v501_v6 = vld [vmem:[%s7410_s24 + $0x48] sm:$0xff]  ;;  %v756_v9 = vsub.f32 0.0, %v244_v63 }
  0x6e   : > { %5067 = vpow2.f32 %v2546_v32  ;;  %v2554_v47 = vmul.f32 1.442695, %v2291_v43  ;;  %v246_v10 = vld [vmem:[%s7402_s28 + $0x50] sm:$0xff]  ;;  %v2292_v14 = vsub.f32 0.0, %v500_v2  ;;  %v247_v15 = vld [vmem:[%s7402_s28 + $0x58] sm:$0xff]  ;;  %v757_v18 = vsub.f32 0.0, %v245_v5 }
  0x6f   : > { %5069 = vpow2.f32 %v1012_v35  ;;  %v502_v11 = vld [vmem:[%s7410_s24 + $0x50] sm:$0xff]  ;;  %v2293_v19 = vsub.f32 0.0, %v501_v6  ;;  %v503_v20 = vld [vmem:[%s7410_s24 + $0x58] sm:$0xff]  ;;  %v758_v23 = vsub.f32 0.0, %v246_v10  ;;  %v1020_v27 = vmul.f32 1.442695, %v756_v9 }
  0x70   : > { %5071 = vpow2.f32 %v2548_v38  ;;  %v2294_v24 = vsub.f32 0.0, %v502_v11  ;;  %v759_v28 = vsub.f32 0.0, %v247_v15  ;;  %v2556_v31 = vmul.f32 1.442695, %v2292_v14  ;;  %v248_v36 = vld [vmem:[%s7402_s28 + $0x60] sm:$0xff]  ;;  %v249_v38 = vld [vmem:[%s7402_s28 + $0x68] sm:$0xff] }
  0x71   : > { %5073 = vpow2.f32 %v1014_v40  ;;  %v2295_v32 = vsub.f32 0.0, %v503_v20  ;;  %v1022_v35 = vmul.f32 1.442695, %v757_v18  ;;  %v504_v37 = vld [vmem:[%s7410_s24 + $0x60] sm:$0xff]  ;;  %v2558_v40 = vmul.f32 1.442695, %v2293_v19 }
  0x72   : > { %5075 = vpow2.f32 %v2550_v42  ;;  %v1024_v41 = vmul.f32 1.442695, %v758_v23  ;;  %v2560_v42 = vmul.f32 1.442695, %v2294_v24  ;;  %v507_v2 = vld [vmem:[%s7410_s24 + $0x78] sm:$0xff]  ;;  %s4988_s25 = sshll.u32 (%p8257_p6), %s7268_s13, 6 }
  0x73   : > { %5077 = vpow2.f32 %v1016_v44  ;;  %v2299_v14 = vsub.f32 0.0, %v507_v2  ;;  %s4853_s30 = ssub.s32 (%p8257_p6), 65, %s4988_s25 }
  0x74   : > { %v5054_v48 = vpop.eup %5053  ;;  %5079 = vpow2.f32 %v2552_v45  ;;  %v1026_v45 = vmul.f32 1.442695, %v759_v28  ;;  %p4854_p5 = scmp.lt.s32.totalorder (%p8257_p6), %s4853_s30, 64 }
  0x75   : > { %v5056_v49 = vpop.eup %5055  ;;  %v1516_v50 = vadd.f32 1.0, %v5054_v48  ;;  %5081 = vpow2.f32 %v1018_v46  ;;  %v505_v46 = vld [vmem:[%s7410_s24 + $0x68] sm:$0xff]  ;;  %v506_v48 = vld [vmem:[%s7410_s24 + $0x70] sm:$0xff]  ;;  %v2570_v28 = vmul.f32 1.442695, %v2299_v14 }
  0x76   : > { %v5058_v51 = vpop.eup %5057  ;;  %v3052_v52 = vadd.f32 1.0, %v5056_v49  ;;  %5083 = vpow2.f32 %v2554_v47  ;;  %v250_v47 = vld [vmem:[%s7402_s28 + $0x70] sm:$0xff] }
  0x77   : > { %v5060_v53 = vpop.eup %5059  ;;  %5085 = vrcp.f32 %v1516_v50  ;;  %v1517_v54 = vadd.f32 1.0, %v5058_v51  ;;  %v760_v50 = vsub.f32 0.0, %v248_v36  ;;  %v2296_v51 = vsub.f32 0.0, %v504_v37 }
  0x78   : > { %v5062_v55 = vpop.eup %5061  ;;  %5087 = vrcp.f32 %v3052_v52  ;;  %v3053_v56 = vadd.f32 1.0, %v5060_v53  ;;  %v761_v52 = vsub.f32 0.0, %v249_v38 }
  0x79   : > { %v5064_v57 = vpop.eup %5063  ;;  %5089 = vrcp.f32 %v1517_v54  ;;  %v1518_v58 = vadd.f32 1.0, %v5062_v55  ;;  %v2564_v5 = vmul.f32 1.442695, %v2296_v51  ;;  %v252_v51 = vld [vmem:[%s7402_s28 + $0x80] sm:$0xff] }
  0x7a   : > { %v5066_v59 = vpop.eup %5065  ;;  %5091 = vrcp.f32 %v3053_v56  ;;  %v3054_v60 = vadd.f32 1.0, %v5064_v57  ;;  %v2562_v56 = vmul.f32 1.442695, %v2295_v32  ;;  %v1030_v6 = vmul.f32 1.442695, %v761_v52 }
  0x7b   : > { %v5068_v61 = vpop.eup %5067  ;;  %5093 = vrcp.f32 %v1518_v58  ;;  %v1519_v62 = vadd.f32 1.0, %v5066_v59  ;;  %v2297_v58 = vsub.f32 0.0, %v505_v46  ;;  %v762_v59 = vsub.f32 0.0, %v250_v47 }
  0x7c   : > { %v5070_v0 = vpop.eup %5069  ;;  %5095 = vrcp.f32 %v3054_v60  ;;  %v3055_v1 = vadd.f32 1.0, %v5068_v61  ;;  %v2298_v60 = vsub.f32 0.0, %v506_v48 }
  0x7d   : > { %v5072_v3 = vpop.eup %5071  ;;  %5097 = vrcp.f32 %v1519_v62  ;;  %v1520_v4 = vadd.f32 1.0, %v5070_v0  ;;  %v1032_v20 = vmul.f32 1.442695, %v762_v59 }
  0x7e   : > { %v5074_v7 = vpop.eup %5073  ;;  %5099 = vrcp.f32 %v3055_v1  ;;  %v3056_v8 = vadd.f32 1.0, %v5072_v3  ;;  %v251_v1 = vld [vmem:[%s7402_s28 + $0x78] sm:$0xff] }
  0x7f   : > { %v5076_v12 = vpop.eup %5075  ;;  %5101 = vrcp.f32 %v1520_v4  ;;  %v1521_v13 = vadd.f32 1.0, %v5074_v7  ;;  %v1028_v4 = vmul.f32 1.442695, %v760_v50 }
  0x80   : > { %v5078_v16 = vpop.eup %5077  ;;  %5103 = vrcp.f32 %v3056_v8  ;;  %v3057_v17 = vadd.f32 1.0, %v5076_v12  ;;  %v2566_v12 = vmul.f32 1.442695, %v2297_v58  ;;  %v764_v58 = vsub.f32 0.0, %v252_v51 }
  0x81   : > { %v5080_v21 = vpop.eup %5079  ;;  %5105 = vrcp.f32 %v1521_v13  ;;  %v1522_v22 = vadd.f32 1.0, %v5078_v16  ;;  %v763_v13 = vsub.f32 0.0, %v251_v1  ;;  %v509_v1 = vld [vmem:[%s7410_s24 + $0x88] sm:$0xff] }
  0x82   : > { %v5082_v25 = vpop.eup %5081  ;;  %5107 = vrcp.f32 %v3057_v17  ;;  %v3058_v26 = vadd.f32 1.0, %v5080_v21  ;;  %v2568_v21 = vmul.f32 1.442695, %v2298_v60 }
  0x83   : > { %v5084_v29 = vpop.eup %5083  ;;  %5109 = vrcp.f32 %v1522_v22  ;;  %v1523_v30 = vadd.f32 1.0, %v5082_v25 }
  0x84   : > { %v5086_v33 = vpop.eup %5085  ;;  %5111 = vrcp.f32 %v3058_v26  ;;  %v3059_v34 = vadd.f32 1.0, %v5084_v29 }
  0x85   : > { %v5088_v39 = vpop.eup %5087  ;;  %5113 = vrcp.f32 %v1523_v30 }
  0x86   : > { %v5090_v43 = vpop.eup %5089  ;;  %v3820_v44 = vsub.f32 %v5086_v33, %v5088_v39  ;;  %5115 = vrcp.f32 %v3059_v34 }
  0x87   : > { %v5092_v49 = vpop.eup %5091  ;;  %5117 = vpow2.f32 %v1020_v27  ;;  %v1034_v27 = vmul.f32 1.442695, %v763_v13 }
  0x88   : > { %v5094_v53 = vpop.eup %5093  ;;  %v4076_v54 = vadd.f32 0.5, %v3820_v44  ;;  %v3821_v55 = vsub.f32 %v5090_v43, %v5092_v49  ;;  %5119 = vpow2.f32 %v2556_v31 }
  0x89   : > { %v5096_v57 = vpop.eup %5095  ;;  %5121 = vpow2.f32 %v1022_v35 }
  0x8a   : > { %v5098_v61 = vpop.eup %5097  ;;  %v4332_v62 = vmax.f32 %v4076_v54, 0.0  ;;  %v4077_v63 = vadd.f32 0.5, %v3821_v55  ;;  %v3822_v0 = vsub.f32 %v5094_v53, %v5096_v57  ;;  %5123 = vpow2.f32 %v2558_v40 }
  0x8b   : > { %v5100_v3 = vpop.eup %5099  ;;  %5125 = vpow2.f32 %v1024_v41 }
  0x8c   : > { %v5102_v7 = vpop.eup %5101  ;;  %4588 = vst [vmem:[%s7449_s20] sm:$0xff] %v4332_v62  ;;  %v4333_v8 = vmax.f32 %v4077_v63, 0.0  ;;  %v4078_v9 = vadd.f32 0.5, %v3822_v0  ;;  %v3823_v10 = vsub.f32 %v5098_v61, %v5100_v3  ;;  %5127 = vpow2.f32 %v2560_v42  ;;  %v508_v61 = vld [vmem:[%s7410_s24 + $0x80] sm:$0xff]  ;;  %v253_v0 = vld [vmem:[%s7402_s28 + $0x88] sm:$0xff] }
  0x8d   : > { %v5104_v11 = vpop.eup %5103  ;;  %5129 = vpow2.f32 %v1026_v45  ;;  %v765_v14 = vsub.f32 0.0, %v253_v0 }
  0x8e   : > { %v5106_v15 = vpop.eup %5105  ;;  %4589 = vst [vmem:[%s7449_s20 + $0x8] sm:$0xff] %v4333_v8  ;;  %v4334_v16 = vmax.f32 %v4078_v9, 0.0  ;;  %v4079_v17 = vadd.f32 0.5, %v3823_v10  ;;  %v3824_v18 = vsub.f32 %v5102_v7, %v5104_v11  ;;  %5131 = vpow2.f32 %v2562_v56  ;;  %v255_v10 = vld [vmem:[%s7402_s28 + $0x98] sm:$0xff] }
  0x8f   : > { %v5108_v19 = vpop.eup %5107  ;;  %5133 = vpow2.f32 %v1028_v4  ;;  %v254_v4 = vld [vmem:[%s7402_s28 + $0x90] sm:$0xff]  ;;  %v1036_v8 = vmul.f32 1.442695, %v764_v58  ;;  %v2300_v9 = vsub.f32 0.0, %v508_v61  ;;  %v511_v11 = vld [vmem:[%s7410_s24 + $0x98] sm:$0xff] }
  0x90   : > { %v5110_v22 = vpop.eup %5109  ;;  %4590 = vst [vmem:[%s7449_s20 + $0x10] sm:$0xff] %v4334_v16  ;;  %v4335_v23 = vmax.f32 %v4079_v17, 0.0  ;;  %v4080_v24 = vadd.f32 0.5, %v3824_v18  ;;  %v3825_v25 = vsub.f32 %v5106_v15, %v5108_v19  ;;  %5135 = vpow2.f32 %v2564_v5  ;;  %v510_v5 = vld [vmem:[%s7410_s24 + $0x90] sm:$0xff]  ;;  %v256_v16 = vld [vmem:[%s7402_s28 + $0xa0] sm:$0xff]  ;;  %v515_v58 = vld [vmem:[%s7410_s24 + $0xb8] sm:$0xff] }
  0x91   : > { %v5112_v26 = vpop.eup %5111  ;;  %5137 = vpow2.f32 %v1030_v6  ;;  %v2301_v15 = vsub.f32 0.0, %v509_v1  ;;  %v766_v19 = vsub.f32 0.0, %v254_v4 }
  0x92   : > { %v5114_v29 = vpop.eup %5113  ;;  %4591 = vst [vmem:[%s7449_s20 + $0x18] sm:$0xff] %v4335_v23  ;;  %v4336_v30 = vmax.f32 %v4080_v24, 0.0  ;;  %v4081_v31 = vadd.f32 0.5, %v3825_v25  ;;  %v3826_v32 = vsub.f32 %v5110_v22, %v5112_v26  ;;  %5139 = vpow2.f32 %v2566_v12 }
  0x93   : > { %v5116_v33 = vpop.eup %5115  ;;  %5141 = vpow2.f32 %v1032_v20  ;;  %v2302_v20 = vsub.f32 0.0, %v510_v5  ;;  %v767_v24 = vsub.f32 0.0, %v255_v10  ;;  %v2303_v25 = vsub.f32 0.0, %v511_v11 }
  0x94   : > { %v5118_v34 = vpop.eup %5117  ;;  %4592 = vst [vmem:[%s7449_s20 + $0x20] sm:$0xff] %v4336_v30  ;;  %v4337_v35 = vmax.f32 %v4081_v31, 0.0  ;;  %v4082_v36 = vadd.f32 0.5, %v3826_v32  ;;  %v3827_v37 = vsub.f32 %v5114_v29, %v5116_v33  ;;  %5143 = vpow2.f32 %v2568_v21  ;;  %v512_v21 = vld [vmem:[%s7410_s24 + $0xa0] sm:$0xff] }
  0x95   : > { %v5120_v38 = vpop.eup %5119  ;;  %v1524_v39 = vadd.f32 1.0, %v5118_v34  ;;  %5145 = vpow2.f32 %v1034_v27  ;;  %v768_v29 = vsub.f32 0.0, %v256_v16  ;;  %v1038_v31 = vmul.f32 1.442695, %v765_v14 }
  0x96   : > { %v5122_v40 = vpop.eup %5121  ;;  %4593 = vst [vmem:[%s7449_s20 + $0x28] sm:$0xff] %v4337_v35  ;;  %v4338_v41 = vmax.f32 %v4082_v36, 0.0  ;;  %v4083_v42 = vadd.f32 0.5, %v3827_v37  ;;  %v3060_v43 = vadd.f32 1.0, %v5120_v38  ;;  %5147 = vpow2.f32 %v2570_v28  ;;  %v257_v37 = vld [vmem:[%s7402_s28 + $0xa8] sm:$0xff] }
  0x97   : > { %v5124_v44 = vpop.eup %5123  ;;  %5149 = vrcp.f32 %v1524_v39  ;;  %v1525_v45 = vadd.f32 1.0, %v5122_v40  ;;  %v2572_v28 = vmul.f32 1.442695, %v2300_v9  ;;  %v2304_v32 = vsub.f32 0.0, %v512_v21  ;;  %v513_v38 = vld [vmem:[%s7410_s24 + $0xa8] sm:$0xff] }
  0x98   : > { %v5126_v46 = vpop.eup %5125  ;;  %4594 = vst [vmem:[%s7449_s20 + $0x30] sm:$0xff] %v4338_v41  ;;  %v4339_v47 = vmax.f32 %v4083_v42, 0.0  ;;  %5151 = vrcp.f32 %v3060_v43  ;;  %v3061_v48 = vadd.f32 1.0, %v5124_v44  ;;  %v2574_v35 = vmul.f32 1.442695, %v2301_v15 }
  0x99   : > { %v5128_v49 = vpop.eup %5127  ;;  %5153 = vrcp.f32 %v1525_v45  ;;  %v1526_v50 = vadd.f32 1.0, %v5126_v46  ;;  %v1040_v36 = vmul.f32 1.442695, %v766_v19  ;;  %v2576_v40 = vmul.f32 1.442695, %v2302_v20 }
  0x9a   : > { %v5130_v52 = vpop.eup %5129  ;;  %4595 = vst [vmem:[%s7449_s20 + $0x38] sm:$0xff] %v4339_v47  ;;  %5155 = vrcp.f32 %v3061_v48  ;;  %v3062_v53 = vadd.f32 1.0, %v5128_v49  ;;  %v1042_v41 = vmul.f32 1.442695, %v767_v24  ;;  %v2578_v42 = vmul.f32 1.442695, %v2303_v25 }
  0x9b   : > { %v5132_v54 = vpop.eup %5131  ;;  %5157 = vrcp.f32 %v1526_v50  ;;  %v1527_v55 = vadd.f32 1.0, %v5130_v52  ;;  %v1044_v46 = vmul.f32 1.442695, %v768_v29  ;;  %v258_v47 = vld [vmem:[%s7402_s28 + $0xb0] sm:$0xff]  ;;  %v259_v49 = vld [vmem:[%s7402_s28 + $0xb8] sm:$0xff]  ;;  %v769_v52 = vsub.f32 0.0, %v257_v37 }
  0x9c   : > { %v5134_v56 = vpop.eup %5133  ;;  %5159 = vrcp.f32 %v3062_v53  ;;  %v3063_v57 = vadd.f32 1.0, %v5132_v54  ;;  %v514_v48 = vld [vmem:[%s7410_s24 + $0xb0] sm:$0xff]  ;;  %v2580_v51 = vmul.f32 1.442695, %v2304_v32  ;;  %v2305_v53 = vsub.f32 0.0, %v513_v38 }
  0x9d   : > { %v5136_v59 = vpop.eup %5135  ;;  %5161 = vrcp.f32 %v1527_v55  ;;  %v1528_v60 = vadd.f32 1.0, %v5134_v56  ;;  %v2306_v61 = vsub.f32 0.0, %v514_v48  ;;  %v1046_v4 = vmul.f32 1.442695, %v769_v52  ;;  %v516_v52 = vld [vmem:[%s7410_s24 + $0xc0] sm:$0xff] }
  0x9e   : > { %v5138_v62 = vpop.eup %5137  ;;  %5163 = vrcp.f32 %v3063_v57  ;;  %v3064_v63 = vadd.f32 1.0, %v5136_v59  ;;  %v2582_v5 = vmul.f32 1.442695, %v2305_v53 }
  0x9f   : > { %v5140_v2 = vpop.eup %5139  ;;  %5165 = vrcp.f32 %v1528_v60  ;;  %v1529_v3 = vadd.f32 1.0, %v5138_v62  ;;  %v770_v60 = vsub.f32 0.0, %v258_v47  ;;  %v771_v62 = vsub.f32 0.0, %v259_v49 }
  0xa0   : > { %v5142_v6 = vpop.eup %5141  ;;  %5167 = vrcp.f32 %v3064_v63  ;;  %v3065_v7 = vadd.f32 1.0, %v5140_v2 }
  0xa1   : > { %v5144_v12 = vpop.eup %5143  ;;  %5169 = vrcp.f32 %v1529_v3  ;;  %v1530_v13 = vadd.f32 1.0, %v5142_v6  ;;  %v2307_v6 = vsub.f32 0.0, %v515_v58  ;;  %v1050_v19 = vmul.f32 1.442695, %v771_v62 }
  0xa2   : > { %v5146_v17 = vpop.eup %5145  ;;  %5171 = vrcp.f32 %v3065_v7  ;;  %v3066_v18 = vadd.f32 1.0, %v5144_v12  ;;  %v1048_v12 = vmul.f32 1.442695, %v770_v60  ;;  %v262_v60 = vld [vmem:[%s7402_s28 + $0xd0] sm:$0xff] }
  0xa3   : > { %v5148_v22 = vpop.eup %5147  ;;  %5173 = vrcp.f32 %v1530_v13  ;;  %v1531_v23 = vadd.f32 1.0, %v5146_v17  ;;  %v2584_v13 = vmul.f32 1.442695, %v2306_v61  ;;  %v2586_v20 = vmul.f32 1.442695, %v2307_v6  ;;  %v519_v6 = vld [vmem:[%s7410_s24 + $0xd8] sm:$0xff] }
  0xa4   : > { %v5150_v26 = vpop.eup %5149  ;;  %5175 = vrcp.f32 %v3066_v18  ;;  %v3067_v27 = vadd.f32 1.0, %v5148_v22 }
  0xa5   : > { %v5152_v30 = vpop.eup %5151  ;;  %5177 = vrcp.f32 %v1531_v23 }
  0xa6   : > { %v5154_v33 = vpop.eup %5153  ;;  %v3828_v34 = vsub.f32 %v5150_v26, %v5152_v30  ;;  %5179 = vrcp.f32 %v3067_v27 }
  0xa7   : > { %v5156_v39 = vpop.eup %5155  ;;  %5181 = vpow2.f32 %v1036_v8 }
  0xa8   : > { %v5158_v43 = vpop.eup %5157  ;;  %v4084_v44 = vadd.f32 0.5, %v3828_v34  ;;  %v3829_v45 = vsub.f32 %v5154_v33, %v5156_v39  ;;  %5183 = vpow2.f32 %v2572_v28 }
  0xa9   : > { %v5160_v50 = vpop.eup %5159  ;;  %5185 = vpow2.f32 %v1038_v31 }
  0xaa   : > { %v5162_v54 = vpop.eup %5161  ;;  %v4340_v55 = vmax.f32 %v4084_v44, 0.0  ;;  %v4085_v56 = vadd.f32 0.5, %v3829_v45  ;;  %v3830_v57 = vsub.f32 %v5158_v43, %v5160_v50  ;;  %5187 = vpow2.f32 %v2574_v35  ;;  %v260_v45 = vld [vmem:[%s7402_s28 + $0xc0] sm:$0xff] }
  0xab   : > { %v5164_v59 = vpop.eup %5163  ;;  %5189 = vpow2.f32 %v1040_v36  ;;  %v772_v53 = vsub.f32 0.0, %v260_v45 }
  0xac   : > { %v5166_v63 = vpop.eup %5165  ;;  %4596 = vst [vmem:[%s7449_s20 + $0x40] sm:$0xff] %v4340_v55  ;;  %v4341_v0 = vmax.f32 %v4085_v56, 0.0  ;;  %v4086_v1 = vadd.f32 0.5, %v3830_v57  ;;  %v3831_v2 = vsub.f32 %v5162_v54, %v5164_v59  ;;  %5191 = vpow2.f32 %v2576_v40  ;;  %v261_v56 = vld [vmem:[%s7402_s28 + $0xc8] sm:$0xff] }
  0xad   : > { %v5168_v3 = vpop.eup %5167  ;;  %5193 = vpow2.f32 %v1042_v41  ;;  %v517_v59 = vld [vmem:[%s7410_s24 + $0xc8] sm:$0xff] }
  0xae   : > { %v5170_v7 = vpop.eup %5169  ;;  %4597 = vst [vmem:[%s7449_s20 + $0x48] sm:$0xff] %v4341_v0  ;;  %v4342_v8 = vmax.f32 %v4086_v1, 0.0  ;;  %v4087_v9 = vadd.f32 0.5, %v3831_v2  ;;  %v3832_v10 = vsub.f32 %v5166_v63, %v5168_v3  ;;  %5195 = vpow2.f32 %v2578_v42  ;;  %v518_v0 = vld [vmem:[%s7410_s24 + $0xd0] sm:$0xff]  ;;  %v263_v1 = vld [vmem:[%s7402_s28 + $0xd8] sm:$0xff] }
  0xaf   : > { %v5172_v11 = vpop.eup %5171  ;;  %5197 = vpow2.f32 %v1044_v46  ;;  %v2308_v63 = vsub.f32 0.0, %v516_v52 }
  0xb0   : > { %v5174_v14 = vpop.eup %5173  ;;  %4598 = vst [vmem:[%s7449_s20 + $0x50] sm:$0xff] %v4342_v8  ;;  %v4343_v15 = vmax.f32 %v4087_v9, 0.0  ;;  %v4088_v16 = vadd.f32 0.5, %v3832_v10  ;;  %v3833_v17 = vsub.f32 %v5170_v7, %v5172_v11  ;;  %5199 = vpow2.f32 %v2580_v51  ;;  %v264_v11 = vld [vmem:[%s7402_s28 + $0xe0] sm:$0xff] }
  0xb1   : > { %v5176_v18 = vpop.eup %5175  ;;  %5201 = vpow2.f32 %v1046_v4  ;;  %v1052_v4 = vmul.f32 1.442695, %v772_v53  ;;  %v2309_v9 = vsub.f32 0.0, %v517_v59  ;;  %v774_v10 = vsub.f32 0.0, %v262_v60 }
  0xb2   : > { %v5178_v21 = vpop.eup %5177  ;;  %4599 = vst [vmem:[%s7449_s20 + $0x58] sm:$0xff] %v4343_v15  ;;  %v4344_v22 = vmax.f32 %v4088_v16, 0.0  ;;  %v4089_v23 = vadd.f32 0.5, %v3833_v17  ;;  %v3834_v24 = vsub.f32 %v5174_v14, %v5176_v18  ;;  %5203 = vpow2.f32 %v2582_v5 }
  0xb3   : > { %v5180_v25 = vpop.eup %5179  ;;  %5205 = vpow2.f32 %v1048_v12  ;;  %v773_v5 = vsub.f32 0.0, %v261_v56  ;;  %v520_v12 = vld [vmem:[%s7410_s24 + $0xe0] sm:$0xff]  ;;  %v2310_v15 = vsub.f32 0.0, %v518_v0  ;;  %v775_v16 = vsub.f32 0.0, %v263_v1 }
  0xb4   : > { %v5182_v26 = vpop.eup %5181  ;;  %4600 = vst [vmem:[%s7449_s20 + $0x60] sm:$0xff] %v4344_v22  ;;  %v4345_v27 = vmax.f32 %v4089_v23, 0.0  ;;  %v4090_v28 = vadd.f32 0.5, %v3834_v24  ;;  %v3835_v29 = vsub.f32 %v5178_v21, %v5180_v25  ;;  %5207 = vpow2.f32 %v2584_v13  ;;  %v265_v21 = vld [vmem:[%s7402_s28 + $0xe8] sm:$0xff] }
  0xb5   : > { %v5184_v30 = vpop.eup %5183  ;;  %v1532_v31 = vadd.f32 1.0, %v5182_v26  ;;  %5209 = vpow2.f32 %v1050_v19  ;;  %v2588_v19 = vmul.f32 1.442695, %v2308_v63  ;;  %v1054_v23 = vmul.f32 1.442695, %v773_v5 }
  0xb6   : > { %v5186_v32 = vpop.eup %5185  ;;  %4601 = vst [vmem:[%s7449_s20 + $0x68] sm:$0xff] %v4345_v27  ;;  %v4346_v33 = vmax.f32 %v4090_v28, 0.0  ;;  %v4091_v34 = vadd.f32 0.5, %v3835_v29  ;;  %v3068_v35 = vadd.f32 1.0, %v5184_v30  ;;  %5211 = vpow2.f32 %v2586_v20  ;;  %v521_v30 = vld [vmem:[%s7410_s24 + $0xe8] sm:$0xff] }
  0xb7   : > { %v5188_v36 = vpop.eup %5187  ;;  %5213 = vrcp.f32 %v1532_v31  ;;  %v1533_v37 = vadd.f32 1.0, %v5186_v32  ;;  %v2311_v20 = vsub.f32 0.0, %v519_v6  ;;  %v776_v24 = vsub.f32 0.0, %v264_v11 }
  0xb8   : > { %v5190_v38 = vpop.eup %5189  ;;  %4602 = vst [vmem:[%s7449_s20 + $0x70] sm:$0xff] %v4346_v33  ;;  %v4347_v39 = vmax.f32 %v4091_v34, 0.0  ;;  %5215 = vrcp.f32 %v3068_v35  ;;  %v3069_v40 = vadd.f32 1.0, %v5188_v36  ;;  %v2312_v25 = vsub.f32 0.0, %v520_v12 }
  0xb9   : > { %v5192_v41 = vpop.eup %5191  ;;  %5217 = vrcp.f32 %v1533_v37  ;;  %v1534_v42 = vadd.f32 1.0, %v5190_v38  ;;  %v2590_v28 = vmul.f32 1.442695, %v2309_v9  ;;  %v1056_v29 = vmul.f32 1.442695, %v774_v10 }
  0xba   : > { %v5194_v43 = vpop.eup %5193  ;;  %4603 = vst [vmem:[%s7449_s20 + $0x78] sm:$0xff] %v4347_v39  ;;  %5219 = vrcp.f32 %v3069_v40  ;;  %v3070_v44 = vadd.f32 1.0, %v5192_v41  ;;  %v2592_v32 = vmul.f32 1.442695, %v2310_v15  ;;  %v1058_v33 = vmul.f32 1.442695, %v775_v16 }
  0xbb   : > { %v5196_v46 = vpop.eup %5195  ;;  %5221 = vrcp.f32 %v1534_v42  ;;  %v1535_v47 = vadd.f32 1.0, %v5194_v43  ;;  %v777_v34 = vsub.f32 0.0, %v265_v21  ;;  %v2594_v38 = vmul.f32 1.442695, %v2311_v20  ;;  %v266_v39 = vld [vmem:[%s7402_s28 + $0xf0] sm:$0xff] }
  0xbc   : > { %v5198_v48 = vpop.eup %5197  ;;  %5223 = vrcp.f32 %v3070_v44  ;;  %v3071_v49 = vadd.f32 1.0, %v5196_v46  ;;  %v522_v40 = vld [vmem:[%s7410_s24 + $0xf0] sm:$0xff]  ;;  %v1060_v42 = vmul.f32 1.442695, %v776_v24  ;;  %v2596_v43 = vmul.f32 1.442695, %v2312_v25 }
  0xbd   : > { %v5200_v50 = vpop.eup %5199  ;;  %5225 = vrcp.f32 %v1535_v47  ;;  %v1536_v51 = vadd.f32 1.0, %v5198_v48  ;;  %v2313_v44 = vsub.f32 0.0, %v521_v30  ;;  %v1062_v52 = vmul.f32 1.442695, %v777_v34 }
  0xbe   : > { %v5202_v54 = vpop.eup %5201  ;;  %5227 = vrcp.f32 %v3071_v49  ;;  %v3072_v55 = vadd.f32 1.0, %v5200_v50  ;;  %v267_v49 = vld [vmem:[%s7402_s28 + $0xf8] sm:$0xff]  ;;  %v778_v53 = vsub.f32 0.0, %v266_v39 }
  0xbf   : > { %v5204_v57 = vpop.eup %5203  ;;  %5229 = vrcp.f32 %v1536_v51  ;;  %v1537_v58 = vadd.f32 1.0, %v5202_v54  ;;  %v523_v50 = vld [vmem:[%s7410_s24 + $0xf8] sm:$0xff]  ;;  %v2314_v54 = vsub.f32 0.0, %v522_v40  ;;  %v2598_v60 = vmul.f32 1.442695, %v2313_v44  ;;  %v524_v44 = vld [vmem:[%s7410_s24 + $0x100] sm:$0xff] }
  0xc0   : > { %v5206_v61 = vpop.eup %5205  ;;  %5231 = vrcp.f32 %v3072_v55  ;;  %v3073_v62 = vadd.f32 1.0, %v5204_v57 }
  0xc1   : > { %v5208_v2 = vpop.eup %5207  ;;  %5233 = vrcp.f32 %v1537_v58  ;;  %v1538_v3 = vadd.f32 1.0, %v5206_v61  ;;  %v779_v61 = vsub.f32 0.0, %v267_v49  ;;  %v2600_v5 = vmul.f32 1.442695, %v2314_v54 }
  0xc2   : > { %v5210_v7 = vpop.eup %5209  ;;  %5235 = vrcp.f32 %v3073_v62  ;;  %v3074_v8 = vadd.f32 1.0, %v5208_v2  ;;  %v2315_v62 = vsub.f32 0.0, %v523_v50 }
  0xc3   : > { %v5212_v13 = vpop.eup %5211  ;;  %5237 = vrcp.f32 %v1538_v3  ;;  %v1539_v14 = vadd.f32 1.0, %v5210_v7  ;;  %v1066_v11 = vmul.f32 1.442695, %v779_v61 }
  0xc4   : > { %v5214_v17 = vpop.eup %5213  ;;  %5239 = vrcp.f32 %v3074_v8  ;;  %v3075_v18 = vadd.f32 1.0, %v5212_v13  ;;  %v2602_v12 = vmul.f32 1.442695, %v2315_v62  ;;  %v527_v62 = vld [vmem:[%s7410_s24 + $0x118] sm:$0xff] }
  0xc5   : > { %v5216_v22 = vpop.eup %5215  ;;  %5241 = vrcp.f32 %v1539_v14 }
  0xc6   : > { %v5218_v26 = vpop.eup %5217  ;;  %v3836_v27 = vsub.f32 %v5214_v17, %v5216_v22  ;;  %5243 = vrcp.f32 %v3075_v18 }
  0xc7   : > { %v5220_v31 = vpop.eup %5219  ;;  %5245 = vpow2.f32 %v1052_v4  ;;  %v1064_v4 = vmul.f32 1.442695, %v778_v53 }
  0xc8   : > { %v5222_v35 = vpop.eup %5221  ;;  %v4092_v36 = vadd.f32 0.5, %v3836_v27  ;;  %v3837_v37 = vsub.f32 %v5218_v26, %v5220_v31  ;;  %5247 = vpow2.f32 %v2588_v19 }
  0xc9   : > { %v5224_v41 = vpop.eup %5223  ;;  %5249 = vpow2.f32 %v1054_v23 }
  0xca   : > { %v5226_v45 = vpop.eup %5225  ;;  %v4348_v46 = vmax.f32 %v4092_v36, 0.0  ;;  %v4093_v47 = vadd.f32 0.5, %v3837_v37  ;;  %v3838_v48 = vsub.f32 %v5222_v35, %v5224_v41  ;;  %5251 = vpow2.f32 %v2590_v28  ;;  %v268_v37 = vld [vmem:[%s7402_s28 + $0x100] sm:$0xff] }
  0xcb   : > { %v5228_v51 = vpop.eup %5227  ;;  %5253 = vpow2.f32 %v1056_v29 }
  0xcc   : > { %v5230_v55 = vpop.eup %5229  ;;  %4604 = vst [vmem:[%s7449_s20 + $0x80] sm:$0xff] %v4348_v46  ;;  %v4349_v56 = vmax.f32 %v4093_v47, 0.0  ;;  %v4094_v57 = vadd.f32 0.5, %v3838_v48  ;;  %v3839_v58 = vsub.f32 %v5226_v45, %v5228_v51  ;;  %5255 = vpow2.f32 %v2592_v32  ;;  %v269_v48 = vld [vmem:[%s7402_s28 + $0x108] sm:$0xff] }
  0xcd   : > { %v5232_v59 = vpop.eup %5231  ;;  %5257 = vpow2.f32 %v1058_v33  ;;  %v780_v45 = vsub.f32 0.0, %v268_v37  ;;  %v525_v51 = vld [vmem:[%s7410_s24 + $0x108] sm:$0xff]  ;;  %v781_v61 = vsub.f32 0.0, %v269_v48 }
  0xce   : > { %v5234_v63 = vpop.eup %5233  ;;  %4605 = vst [vmem:[%s7449_s20 + $0x88] sm:$0xff] %v4349_v56  ;;  %v4350_v0 = vmax.f32 %v4094_v57, 0.0  ;;  %v4095_v1 = vadd.f32 0.5, %v3839_v58  ;;  %v3840_v2 = vsub.f32 %v5230_v55, %v5232_v59  ;;  %5259 = vpow2.f32 %v2594_v38  ;;  %v526_v56 = vld [vmem:[%s7410_s24 + $0x110] sm:$0xff]  ;;  %v271_v57 = vld [vmem:[%s7402_s28 + $0x118] sm:$0xff] }
  0xcf   : > { %v5236_v3 = vpop.eup %5235  ;;  %5261 = vpow2.f32 %v1060_v42  ;;  %v2316_v55 = vsub.f32 0.0, %v524_v44 }
  0xd0   : > { %v5238_v6 = vpop.eup %5237  ;;  %4606 = vst [vmem:[%s7449_s20 + $0x90] sm:$0xff] %v4350_v0  ;;  %v4351_v7 = vmax.f32 %v4095_v1, 0.0  ;;  %v4096_v8 = vadd.f32 0.5, %v3840_v2  ;;  %v3841_v9 = vsub.f32 %v5234_v63, %v5236_v3  ;;  %5263 = vpow2.f32 %v2596_v43  ;;  %v272_v3 = vld [vmem:[%s7402_s28 + $0x120] sm:$0xff] }
  0xd1   : > { %v5240_v10 = vpop.eup %5239  ;;  %5265 = vpow2.f32 %v1062_v52  ;;  %v270_v52 = vld [vmem:[%s7402_s28 + $0x110] sm:$0xff]  ;;  %v2317_v1 = vsub.f32 0.0, %v525_v51 }
  0xd2   : > { %v5242_v13 = vpop.eup %5241  ;;  %4607 = vst [vmem:[%s7449_s20 + $0x98] sm:$0xff] %v4351_v7  ;;  %v4352_v14 = vmax.f32 %v4096_v8, 0.0  ;;  %v4097_v15 = vadd.f32 0.5, %v3841_v9  ;;  %v3842_v16 = vsub.f32 %v5238_v6, %v5240_v10  ;;  %5267 = vpow2.f32 %v2598_v60 }
  0xd3   : > { %v5244_v17 = vpop.eup %5243  ;;  %5269 = vpow2.f32 %v1064_v4  ;;  %v1068_v60 = vmul.f32 1.442695, %v780_v45  ;;  %v782_v2 = vsub.f32 0.0, %v270_v52  ;;  %v528_v4 = vld [vmem:[%s7410_s24 + $0x120] sm:$0xff]  ;;  %v2318_v7 = vsub.f32 0.0, %v526_v56 }
  0xd4   : > { %v5246_v18 = vpop.eup %5245  ;;  %4608 = vst [vmem:[%s7449_s20 + $0xa0] sm:$0xff] %v4352_v14  ;;  %v4353_v19 = vmax.f32 %v4097_v15, 0.0  ;;  %v4098_v20 = vadd.f32 0.5, %v3842_v16  ;;  %v3843_v21 = vsub.f32 %v5242_v13, %v5244_v17  ;;  %5271 = vpow2.f32 %v2600_v5  ;;  %v273_v13 = vld [vmem:[%s7402_s28 + $0x128] sm:$0xff] }
  0xd5   : > { %v5248_v22 = vpop.eup %5247  ;;  %v1540_v23 = vadd.f32 1.0, %v5246_v18  ;;  %5273 = vpow2.f32 %v1066_v11  ;;  %v783_v8 = vsub.f32 0.0, %v271_v57  ;;  %v2604_v11 = vmul.f32 1.442695, %v2316_v55 }
  0xd6   : > { %v5250_v24 = vpop.eup %5249  ;;  %4609 = vst [vmem:[%s7449_s20 + $0xa8] sm:$0xff] %v4353_v19  ;;  %v4354_v25 = vmax.f32 %v4098_v20, 0.0  ;;  %v4099_v26 = vadd.f32 0.5, %v3843_v21  ;;  %v3076_v27 = vadd.f32 1.0, %v5248_v22  ;;  %5275 = vpow2.f32 %v2602_v12  ;;  %v529_v22 = vld [vmem:[%s7410_s24 + $0x128] sm:$0xff] }
  0xd7   : > { %v5252_v28 = vpop.eup %5251  ;;  %5277 = vrcp.f32 %v1540_v23  ;;  %v1541_v29 = vadd.f32 1.0, %v5250_v24  ;;  %v2319_v12 = vsub.f32 0.0, %v527_v62  ;;  %v1070_v15 = vmul.f32 1.442695, %v781_v61 }
  0xd8   : > { %v5254_v30 = vpop.eup %5253  ;;  %4610 = vst [vmem:[%s7449_s20 + $0xb0] sm:$0xff] %v4354_v25  ;;  %v4355_v31 = vmax.f32 %v4099_v26, 0.0  ;;  %5279 = vrcp.f32 %v3076_v27  ;;  %v3077_v32 = vadd.f32 1.0, %v5252_v28  ;;  %v784_v16 = vsub.f32 0.0, %v272_v3 }
  0xd9   : > { %v5256_v33 = vpop.eup %5255  ;;  %5281 = vrcp.f32 %v1541_v29  ;;  %v1542_v34 = vadd.f32 1.0, %v5254_v30  ;;  %v2320_v17 = vsub.f32 0.0, %v528_v4  ;;  %v2606_v20 = vmul.f32 1.442695, %v2317_v1 }
  0xda   : > { %v5258_v35 = vpop.eup %5257  ;;  %4611 = vst [vmem:[%s7449_s20 + $0xb8] sm:$0xff] %v4355_v31  ;;  %5283 = vrcp.f32 %v3077_v32  ;;  %v3078_v36 = vadd.f32 1.0, %v5256_v33  ;;  %v1072_v21 = vmul.f32 1.442695, %v782_v2  ;;  %v2608_v24 = vmul.f32 1.442695, %v2318_v7 }
  0xdb   : > { %v5260_v38 = vpop.eup %5259  ;;  %5285 = vrcp.f32 %v1542_v34  ;;  %v1543_v39 = vadd.f32 1.0, %v5258_v35  ;;  %v1074_v25 = vmul.f32 1.442695, %v783_v8  ;;  %v785_v26 = vsub.f32 0.0, %v273_v13  ;;  %v274_v31 = vld [vmem:[%s7402_s28 + $0x130] sm:$0xff] }
  0xdc   : > { %v5262_v40 = vpop.eup %5261  ;;  %5287 = vrcp.f32 %v3078_v36  ;;  %v3079_v41 = vadd.f32 1.0, %v5260_v38  ;;  %v2610_v30 = vmul.f32 1.442695, %v2319_v12  ;;  %v530_v32 = vld [vmem:[%s7410_s24 + $0x130] sm:$0xff]  ;;  %v1076_v34 = vmul.f32 1.442695, %v784_v16 }
  0xdd   : > { %v5264_v42 = vpop.eup %5263  ;;  %5289 = vrcp.f32 %v1543_v39  ;;  %v1544_v43 = vadd.f32 1.0, %v5262_v40  ;;  %v2612_v35 = vmul.f32 1.442695, %v2320_v17  ;;  %v2321_v36 = vsub.f32 0.0, %v529_v22 }
  0xde   : > { %v5266_v46 = vpop.eup %5265  ;;  %5291 = vrcp.f32 %v3079_v41  ;;  %v3080_v47 = vadd.f32 1.0, %v5264_v42  ;;  %v275_v41 = vld [vmem:[%s7402_s28 + $0x138] sm:$0xff]  ;;  %v1078_v44 = vmul.f32 1.442695, %v785_v26  ;;  %v786_v45 = vsub.f32 0.0, %v274_v31 }
  0xdf   : > { %v5268_v49 = vpop.eup %5267  ;;  %5293 = vrcp.f32 %v1544_v43  ;;  %v1545_v50 = vadd.f32 1.0, %v5266_v46  ;;  %v531_v42 = vld [vmem:[%s7410_s24 + $0x138] sm:$0xff]  ;;  %v2322_v46 = vsub.f32 0.0, %v530_v32  ;;  %v2614_v52 = vmul.f32 1.442695, %v2321_v36  ;;  %v532_v36 = vld [vmem:[%s7410_s24 + $0x140] sm:$0xff] }
  0xe0   : > { %v5270_v53 = vpop.eup %5269  ;;  %5295 = vrcp.f32 %v3080_v47  ;;  %v3081_v54 = vadd.f32 1.0, %v5268_v49 }
  0xe1   : > { %v5272_v58 = vpop.eup %5271  ;;  %5297 = vrcp.f32 %v1545_v50  ;;  %v1546_v59 = vadd.f32 1.0, %v5270_v53  ;;  %v787_v53 = vsub.f32 0.0, %v275_v41  ;;  %v2616_v61 = vmul.f32 1.442695, %v2322_v46 }
  0xe2   : > { %v5274_v63 = vpop.eup %5273  ;;  %5299 = vrcp.f32 %v3081_v54  ;;  %v3082_v0 = vadd.f32 1.0, %v5272_v58  ;;  %v2323_v54 = vsub.f32 0.0, %v531_v42 }
  0xe3   : > { %v5276_v5 = vpop.eup %5275  ;;  %5301 = vrcp.f32 %v1546_v59  ;;  %v1547_v6 = vadd.f32 1.0, %v5274_v63  ;;  %v1082_v3 = vmul.f32 1.442695, %v787_v53 }
  0xe4   : > { %v5278_v9 = vpop.eup %5277  ;;  %5303 = vrcp.f32 %v3082_v0  ;;  %v3083_v10 = vadd.f32 1.0, %v5276_v5  ;;  %v2618_v4 = vmul.f32 1.442695, %v2323_v54  ;;  %v535_v54 = vld [vmem:[%s7410_s24 + $0x158] sm:$0xff] }
  0xe5   : > { %v5280_v14 = vpop.eup %5279  ;;  %5305 = vrcp.f32 %v1547_v6 }
  0xe6   : > { %v5282_v18 = vpop.eup %5281  ;;  %v3844_v19 = vsub.f32 %v5278_v9, %v5280_v14  ;;  %5307 = vrcp.f32 %v3083_v10 }
  0xe7   : > { %v5284_v23 = vpop.eup %5283  ;;  %5309 = vpow2.f32 %v1068_v60  ;;  %v1080_v60 = vmul.f32 1.442695, %v786_v45 }
  0xe8   : > { %v5286_v27 = vpop.eup %5285  ;;  %v4100_v28 = vadd.f32 0.5, %v3844_v19  ;;  %v3845_v29 = vsub.f32 %v5282_v18, %v5284_v23  ;;  %5311 = vpow2.f32 %v2604_v11 }
  0xe9   : > { %v5288_v33 = vpop.eup %5287  ;;  %5313 = vpow2.f32 %v1070_v15 }
  0xea   : > { %v5290_v37 = vpop.eup %5289  ;;  %v4356_v38 = vmax.f32 %v4100_v28, 0.0  ;;  %v4101_v39 = vadd.f32 0.5, %v3845_v29  ;;  %v3846_v40 = vsub.f32 %v5286_v27, %v5288_v33  ;;  %5315 = vpow2.f32 %v2606_v20  ;;  %v276_v29 = vld [vmem:[%s7402_s28 + $0x140] sm:$0xff] }
  0xeb   : > { %v5292_v43 = vpop.eup %5291  ;;  %5317 = vpow2.f32 %v1072_v21 }
  0xec   : > { %v5294_v47 = vpop.eup %5293  ;;  %4612 = vst [vmem:[%s7449_s20 + $0xc0] sm:$0xff] %v4356_v38  ;;  %v4357_v48 = vmax.f32 %v4101_v39, 0.0  ;;  %v4102_v49 = vadd.f32 0.5, %v3846_v40  ;;  %v3847_v50 = vsub.f32 %v5290_v37, %v5292_v43  ;;  %5319 = vpow2.f32 %v2608_v24  ;;  %v277_v40 = vld [vmem:[%s7402_s28 + $0x148] sm:$0xff] }
  0xed   : > { %v5296_v51 = vpop.eup %5295  ;;  %5321 = vpow2.f32 %v1074_v25  ;;  %v788_v37 = vsub.f32 0.0, %v276_v29  ;;  %v533_v43 = vld [vmem:[%s7410_s24 + $0x148] sm:$0xff]  ;;  %v789_v53 = vsub.f32 0.0, %v277_v40 }
  0xee   : > { %v5298_v55 = vpop.eup %5297  ;;  %4613 = vst [vmem:[%s7449_s20 + $0xc8] sm:$0xff] %v4357_v48  ;;  %v4358_v56 = vmax.f32 %v4102_v49, 0.0  ;;  %v4103_v57 = vadd.f32 0.5, %v3847_v50  ;;  %v3848_v58 = vsub.f32 %v5294_v47, %v5296_v51  ;;  %5323 = vpow2.f32 %v2610_v30  ;;  %v534_v48 = vld [vmem:[%s7410_s24 + $0x150] sm:$0xff]  ;;  %v279_v49 = vld [vmem:[%s7402_s28 + $0x158] sm:$0xff] }
  0xef   : > { %v5300_v59 = vpop.eup %5299  ;;  %5325 = vpow2.f32 %v1076_v34  ;;  %v2324_v47 = vsub.f32 0.0, %v532_v36 }
  0xf0   : > { %v5302_v62 = vpop.eup %5301  ;;  %4614 = vst [vmem:[%s7449_s20 + $0xd0] sm:$0xff] %v4358_v56  ;;  %v4359_v63 = vmax.f32 %v4103_v57, 0.0  ;;  %v4104_v0 = vadd.f32 0.5, %v3848_v58  ;;  %v3849_v1 = vsub.f32 %v5298_v55, %v5300_v59  ;;  %5327 = vpow2.f32 %v2612_v35  ;;  %v280_v59 = vld [vmem:[%s7402_s28 + $0x160] sm:$0xff] }
  0xf1   : > { %v5304_v2 = vpop.eup %5303  ;;  %5329 = vpow2.f32 %v1078_v44  ;;  %v278_v44 = vld [vmem:[%s7402_s28 + $0x150] sm:$0xff]  ;;  %v2325_v57 = vsub.f32 0.0, %v533_v43 }
  0xf2   : > { %v5306_v5 = vpop.eup %5305  ;;  %4615 = vst [vmem:[%s7449_s20 + $0xd8] sm:$0xff] %v4359_v63  ;;  %v4360_v6 = vmax.f32 %v4104_v0, 0.0  ;;  %v4105_v7 = vadd.f32 0.5, %v3849_v1  ;;  %v3850_v8 = vsub.f32 %v5302_v62, %v5304_v2  ;;  %5331 = vpow2.f32 %v2614_v52 }
  0xf3   : > { %v5308_v9 = vpop.eup %5307  ;;  %5333 = vpow2.f32 %v1080_v60  ;;  %v1084_v52 = vmul.f32 1.442695, %v788_v37  ;;  %v790_v58 = vsub.f32 0.0, %v278_v44  ;;  %v536_v60 = vld [vmem:[%s7410_s24 + $0x160] sm:$0xff]  ;;  %v2326_v63 = vsub.f32 0.0, %v534_v48 }
  0xf4   : > { %v5310_v10 = vpop.eup %5309  ;;  %4616 = vst [vmem:[%s7449_s20 + $0xe0] sm:$0xff] %v4360_v6  ;;  %v4361_v11 = vmax.f32 %v4105_v7, 0.0  ;;  %v4106_v12 = vadd.f32 0.5, %v3850_v8  ;;  %v3851_v13 = vsub.f32 %v5306_v5, %v5308_v9  ;;  %5335 = vpow2.f32 %v2616_v61  ;;  %v281_v5 = vld [vmem:[%s7402_s28 + $0x168] sm:$0xff] }
  0xf5   : > { %v5312_v14 = vpop.eup %5311  ;;  %v1548_v15 = vadd.f32 1.0, %v5310_v10  ;;  %5337 = vpow2.f32 %v1082_v3  ;;  %v791_v0 = vsub.f32 0.0, %v279_v49  ;;  %v2620_v3 = vmul.f32 1.442695, %v2324_v47 }
  0xf6   : > { %v5314_v16 = vpop.eup %5313  ;;  %4617 = vst [vmem:[%s7449_s20 + $0xe8] sm:$0xff] %v4361_v11  ;;  %v4362_v17 = vmax.f32 %v4106_v12, 0.0  ;;  %v4107_v18 = vadd.f32 0.5, %v3851_v13  ;;  %v3084_v19 = vadd.f32 1.0, %v5312_v14  ;;  %5339 = vpow2.f32 %v2618_v4  ;;  %v537_v14 = vld [vmem:[%s7410_s24 + $0x168] sm:$0xff] }
  0xf7   : > { %v5316_v20 = vpop.eup %5315  ;;  %5341 = vrcp.f32 %v1548_v15  ;;  %v1549_v21 = vadd.f32 1.0, %v5314_v16  ;;  %v2327_v4 = vsub.f32 0.0, %v535_v54  ;;  %v1086_v7 = vmul.f32 1.442695, %v789_v53 }
  0xf8   : > { %v5318_v22 = vpop.eup %5317  ;;  %4618 = vst [vmem:[%s7449_s20 + $0xf0] sm:$0xff] %v4362_v17  ;;  %v4363_v23 = vmax.f32 %v4107_v18, 0.0  ;;  %5343 = vrcp.f32 %v3084_v19  ;;  %v3085_v24 = vadd.f32 1.0, %v5316_v20  ;;  %v792_v8 = vsub.f32 0.0, %v280_v59 }
  0xf9   : > { %v5320_v25 = vpop.eup %5319  ;;  %5345 = vrcp.f32 %v1549_v21  ;;  %v1550_v26 = vadd.f32 1.0, %v5318_v22  ;;  %v2328_v9 = vsub.f32 0.0, %v536_v60  ;;  %v2622_v12 = vmul.f32 1.442695, %v2325_v57 }
  0xfa   : > { %v5322_v27 = vpop.eup %5321  ;;  %4619 = vst [vmem:[%s7449_s20 + $0xf8] sm:$0xff] %v4363_v23  ;;  %5347 = vrcp.f32 %v3085_v24  ;;  %v3086_v28 = vadd.f32 1.0, %v5320_v25  ;;  %v1088_v13 = vmul.f32 1.442695, %v790_v58  ;;  %v2624_v16 = vmul.f32 1.442695, %v2326_v63 }
  0xfb   : > { %v5324_v30 = vpop.eup %5323  ;;  %5349 = vrcp.f32 %v1550_v26  ;;  %v1551_v31 = vadd.f32 1.0, %v5322_v27  ;;  %v1090_v17 = vmul.f32 1.442695, %v791_v0  ;;  %v793_v18 = vsub.f32 0.0, %v281_v5  ;;  %v282_v23 = vld [vmem:[%s7402_s28 + $0x170] sm:$0xff] }
  0xfc   : > { %v5326_v32 = vpop.eup %5325  ;;  %5351 = vrcp.f32 %v3086_v28  ;;  %v3087_v33 = vadd.f32 1.0, %v5324_v30  ;;  %v2626_v22 = vmul.f32 1.442695, %v2327_v4  ;;  %v538_v24 = vld [vmem:[%s7410_s24 + $0x170] sm:$0xff]  ;;  %v1092_v26 = vmul.f32 1.442695, %v792_v8 }
  0xfd   : > { %v5328_v34 = vpop.eup %5327  ;;  %5353 = vrcp.f32 %v1551_v31  ;;  %v1552_v35 = vadd.f32 1.0, %v5326_v32  ;;  %v2628_v27 = vmul.f32 1.442695, %v2328_v9  ;;  %v2329_v28 = vsub.f32 0.0, %v537_v14 }
  0xfe   : > { %v5330_v38 = vpop.eup %5329  ;;  %5355 = vrcp.f32 %v3087_v33  ;;  %v3088_v39 = vadd.f32 1.0, %v5328_v34  ;;  %v283_v33 = vld [vmem:[%s7402_s28 + $0x178] sm:$0xff]  ;;  %v1094_v36 = vmul.f32 1.442695, %v793_v18  ;;  %v794_v37 = vsub.f32 0.0, %v282_v23 }
  0xff   : > { %v5332_v41 = vpop.eup %5331  ;;  %5357 = vrcp.f32 %v1552_v35  ;;  %v1553_v42 = vadd.f32 1.0, %v5330_v38  ;;  %v539_v34 = vld [vmem:[%s7410_s24 + $0x178] sm:$0xff]  ;;  %v2330_v38 = vsub.f32 0.0, %v538_v24  ;;  %v2630_v44 = vmul.f32 1.442695, %v2329_v28  ;;  %v540_v28 = vld [vmem:[%s7410_s24 + $0x180] sm:$0xff] }
 0x100   : > { %v5334_v45 = vpop.eup %5333  ;;  %5359 = vrcp.f32 %v3088_v39  ;;  %v3089_v46 = vadd.f32 1.0, %v5332_v41 }
 0x101   : > { %v5336_v50 = vpop.eup %5335  ;;  %5361 = vrcp.f32 %v1553_v42  ;;  %v1554_v51 = vadd.f32 1.0, %v5334_v45  ;;  %v795_v45 = vsub.f32 0.0, %v283_v33  ;;  %v2632_v53 = vmul.f32 1.442695, %v2330_v38 }
 0x102   : > { %v5338_v55 = vpop.eup %5337  ;;  %5363 = vrcp.f32 %v3089_v46  ;;  %v3090_v56 = vadd.f32 1.0, %v5336_v50  ;;  %v2331_v46 = vsub.f32 0.0, %v539_v34 }
 0x103   : > { %v5340_v61 = vpop.eup %5339  ;;  %5365 = vrcp.f32 %v1554_v51  ;;  %v1555_v62 = vadd.f32 1.0, %v5338_v55  ;;  %v1098_v59 = vmul.f32 1.442695, %v795_v45 }
 0x104   : > { %v5342_v1 = vpop.eup %5341  ;;  %5367 = vrcp.f32 %v3090_v56  ;;  %v3091_v2 = vadd.f32 1.0, %v5340_v61  ;;  %v2634_v60 = vmul.f32 1.442695, %v2331_v46  ;;  %v543_v46 = vld [vmem:[%s7410_s24 + $0x198] sm:$0xff] }
 0x105   : > { %v5344_v6 = vpop.eup %5343  ;;  %5369 = vrcp.f32 %v1555_v62 }
 0x106   : > { %v5346_v10 = vpop.eup %5345  ;;  %v3852_v11 = vsub.f32 %v5342_v1, %v5344_v6  ;;  %5371 = vrcp.f32 %v3091_v2 }
 0x107   : > { %v5348_v15 = vpop.eup %5347  ;;  %5373 = vpow2.f32 %v1084_v52  ;;  %v1096_v52 = vmul.f32 1.442695, %v794_v37 }
 0x108   : > { %v5350_v19 = vpop.eup %5349  ;;  %v4108_v20 = vadd.f32 0.5, %v3852_v11  ;;  %v3853_v21 = vsub.f32 %v5346_v10, %v5348_v15  ;;  %5375 = vpow2.f32 %v2620_v3 }
 0x109   : > { %v5352_v25 = vpop.eup %5351  ;;  %5377 = vpow2.f32 %v1086_v7 }
 0x10a   : > { %v5354_v29 = vpop.eup %5353  ;;  %v4364_v30 = vmax.f32 %v4108_v20, 0.0  ;;  %v4109_v31 = vadd.f32 0.5, %v3853_v21  ;;  %v3854_v32 = vsub.f32 %v5350_v19, %v5352_v25  ;;  %5379 = vpow2.f32 %v2622_v12  ;;  %v284_v21 = vld [vmem:[%s7402_s28 + $0x180] sm:$0xff] }
 0x10b   : > { %v5356_v35 = vpop.eup %5355  ;;  %5381 = vpow2.f32 %v1088_v13 }
 0x10c   : > { %v5358_v39 = vpop.eup %5357  ;;  %4620 = vst [vmem:[%s7449_s20 + $0x100] sm:$0xff] %v4364_v30  ;;  %v4365_v40 = vmax.f32 %v4109_v31, 0.0  ;;  %v4110_v41 = vadd.f32 0.5, %v3854_v32  ;;  %v3855_v42 = vsub.f32 %v5354_v29, %v5356_v35  ;;  %5383 = vpow2.f32 %v2624_v16  ;;  %v285_v32 = vld [vmem:[%s7402_s28 + $0x188] sm:$0xff] }
 0x10d   : > { %v5360_v43 = vpop.eup %5359  ;;  %5385 = vpow2.f32 %v1090_v17  ;;  %v796_v29 = vsub.f32 0.0, %v284_v21  ;;  %v541_v35 = vld [vmem:[%s7410_s24 + $0x188] sm:$0xff]  ;;  %v797_v45 = vsub.f32 0.0, %v285_v32 }
 0x10e   : > { %v5362_v47 = vpop.eup %5361  ;;  %4621 = vst [vmem:[%s7449_s20 + $0x108] sm:$0xff] %v4365_v40  ;;  %v4366_v48 = vmax.f32 %v4110_v41, 0.0  ;;  %v4111_v49 = vadd.f32 0.5, %v3855_v42  ;;  %v3856_v50 = vsub.f32 %v5358_v39, %v5360_v43  ;;  %5387 = vpow2.f32 %v2626_v22  ;;  %v542_v40 = vld [vmem:[%s7410_s24 + $0x190] sm:$0xff]  ;;  %v287_v41 = vld [vmem:[%s7402_s28 + $0x198] sm:$0xff] }
 0x10f   : > { %v5364_v51 = vpop.eup %5363  ;;  %5389 = vpow2.f32 %v1092_v26  ;;  %v2332_v39 = vsub.f32 0.0, %v540_v28 }
 0x110   : > { %v5366_v54 = vpop.eup %5365  ;;  %4622 = vst [vmem:[%s7449_s20 + $0x110] sm:$0xff] %v4366_v48  ;;  %v4367_v55 = vmax.f32 %v4111_v49, 0.0  ;;  %v4112_v56 = vadd.f32 0.5, %v3856_v50  ;;  %v3857_v57 = vsub.f32 %v5362_v47, %v5364_v51  ;;  %5391 = vpow2.f32 %v2628_v27  ;;  %v288_v51 = vld [vmem:[%s7402_s28 + $0x1a0] sm:$0xff] }
 0x111   : > { %v5368_v58 = vpop.eup %5367  ;;  %5393 = vpow2.f32 %v1094_v36  ;;  %v286_v36 = vld [vmem:[%s7402_s28 + $0x190] sm:$0xff]  ;;  %v2333_v49 = vsub.f32 0.0, %v541_v35 }
 0x112   : > { %v5370_v61 = vpop.eup %5369  ;;  %4623 = vst [vmem:[%s7449_s20 + $0x118] sm:$0xff] %v4367_v55  ;;  %v4368_v62 = vmax.f32 %v4112_v56, 0.0  ;;  %v4113_v63 = vadd.f32 0.5, %v3857_v57  ;;  %v3858_v0 = vsub.f32 %v5366_v54, %v5368_v58  ;;  %5395 = vpow2.f32 %v2630_v44 }
 0x113   : > { %v5372_v1 = vpop.eup %5371  ;;  %5397 = vpow2.f32 %v1096_v52  ;;  %v1100_v44 = vmul.f32 1.442695, %v796_v29  ;;  %v798_v50 = vsub.f32 0.0, %v286_v36  ;;  %v544_v52 = vld [vmem:[%s7410_s24 + $0x1a0] sm:$0xff]  ;;  %v2334_v55 = vsub.f32 0.0, %v542_v40 }
 0x114   : > { %v5374_v2 = vpop.eup %5373  ;;  %4624 = vst [vmem:[%s7449_s20 + $0x120] sm:$0xff] %v4368_v62  ;;  %v4369_v3 = vmax.f32 %v4113_v63, 0.0  ;;  %v4114_v4 = vadd.f32 0.5, %v3858_v0  ;;  %v3859_v5 = vsub.f32 %v5370_v61, %v5372_v1  ;;  %5399 = vpow2.f32 %v2632_v53  ;;  %v289_v61 = vld [vmem:[%s7402_s28 + $0x1a8] sm:$0xff] }
 0x115   : > { %v5376_v6 = vpop.eup %5375  ;;  %v1556_v7 = vadd.f32 1.0, %v5374_v2  ;;  %5401 = vpow2.f32 %v1098_v59  ;;  %v799_v56 = vsub.f32 0.0, %v287_v41  ;;  %v2636_v59 = vmul.f32 1.442695, %v2332_v39 }
 0x116   : > { %v5378_v8 = vpop.eup %5377  ;;  %4625 = vst [vmem:[%s7449_s20 + $0x128] sm:$0xff] %v4369_v3  ;;  %v4370_v9 = vmax.f32 %v4114_v4, 0.0  ;;  %v4115_v10 = vadd.f32 0.5, %v3859_v5  ;;  %v3092_v11 = vadd.f32 1.0, %v5376_v6  ;;  %5403 = vpow2.f32 %v2634_v60  ;;  %v545_v6 = vld [vmem:[%s7410_s24 + $0x1a8] sm:$0xff] }
 0x117   : > { %v5380_v12 = vpop.eup %5379  ;;  %5405 = vrcp.f32 %v1556_v7  ;;  %v1557_v13 = vadd.f32 1.0, %v5378_v8  ;;  %v2335_v60 = vsub.f32 0.0, %v543_v46  ;;  %v1102_v63 = vmul.f32 1.442695, %v797_v45 }
 0x118   : > { %v5382_v14 = vpop.eup %5381  ;;  %4626 = vst [vmem:[%s7449_s20 + $0x130] sm:$0xff] %v4370_v9  ;;  %v4371_v15 = vmax.f32 %v4115_v10, 0.0  ;;  %5407 = vrcp.f32 %v3092_v11  ;;  %v3093_v16 = vadd.f32 1.0, %v5380_v12  ;;  %v800_v0 = vsub.f32 0.0, %v288_v51 }
 0x119   : > { %v5384_v17 = vpop.eup %5383  ;;  %5409 = vrcp.f32 %v1557_v13  ;;  %v1558_v18 = vadd.f32 1.0, %v5382_v14  ;;  %v2336_v1 = vsub.f32 0.0, %v544_v52  ;;  %v2638_v4 = vmul.f32 1.442695, %v2333_v49 }
 0x11a   : > { %v5386_v19 = vpop.eup %5385  ;;  %4627 = vst [vmem:[%s7449_s20 + $0x138] sm:$0xff] %v4371_v15  ;;  %5411 = vrcp.f32 %v3093_v16  ;;  %v3094_v20 = vadd.f32 1.0, %v5384_v17  ;;  %v1104_v5 = vmul.f32 1.442695, %v798_v50  ;;  %v2640_v8 = vmul.f32 1.442695, %v2334_v55 }
 0x11b   : > { %v5388_v22 = vpop.eup %5387  ;;  %5413 = vrcp.f32 %v1558_v18  ;;  %v1559_v23 = vadd.f32 1.0, %v5386_v19  ;;  %v1106_v9 = vmul.f32 1.442695, %v799_v56  ;;  %v801_v10 = vsub.f32 0.0, %v289_v61  ;;  %v290_v15 = vld [vmem:[%s7402_s28 + $0x1b0] sm:$0xff] }
 0x11c   : > { %v5390_v24 = vpop.eup %5389  ;;  %5415 = vrcp.f32 %v3094_v20  ;;  %v3095_v25 = vadd.f32 1.0, %v5388_v22  ;;  %v2642_v14 = vmul.f32 1.442695, %v2335_v60  ;;  %v546_v16 = vld [vmem:[%s7410_s24 + $0x1b0] sm:$0xff]  ;;  %v1108_v18 = vmul.f32 1.442695, %v800_v0 }
 0x11d   : > { %v5392_v26 = vpop.eup %5391  ;;  %5417 = vrcp.f32 %v1559_v23  ;;  %v1560_v27 = vadd.f32 1.0, %v5390_v24  ;;  %v2644_v19 = vmul.f32 1.442695, %v2336_v1  ;;  %v2337_v20 = vsub.f32 0.0, %v545_v6 }
 0x11e   : > { %v5394_v30 = vpop.eup %5393  ;;  %5419 = vrcp.f32 %v3095_v25  ;;  %v3096_v31 = vadd.f32 1.0, %v5392_v26  ;;  %v291_v25 = vld [vmem:[%s7402_s28 + $0x1b8] sm:$0xff]  ;;  %v1110_v28 = vmul.f32 1.442695, %v801_v10  ;;  %v802_v29 = vsub.f32 0.0, %v290_v15 }
 0x11f   : > { %v5396_v33 = vpop.eup %5395  ;;  %5421 = vrcp.f32 %v1560_v27  ;;  %v1561_v34 = vadd.f32 1.0, %v5394_v30  ;;  %v547_v26 = vld [vmem:[%s7410_s24 + $0x1b8] sm:$0xff]  ;;  %v2338_v30 = vsub.f32 0.0, %v546_v16  ;;  %v2646_v36 = vmul.f32 1.442695, %v2337_v20  ;;  %v548_v20 = vld [vmem:[%s7410_s24 + $0x1c0] sm:$0xff] }
 0x120   : > { %v5398_v37 = vpop.eup %5397  ;;  %5423 = vrcp.f32 %v3096_v31  ;;  %v3097_v38 = vadd.f32 1.0, %v5396_v33 }
 0x121   : > { %v5400_v42 = vpop.eup %5399  ;;  %5425 = vrcp.f32 %v1561_v34  ;;  %v1562_v43 = vadd.f32 1.0, %v5398_v37  ;;  %v803_v37 = vsub.f32 0.0, %v291_v25  ;;  %v2648_v45 = vmul.f32 1.442695, %v2338_v30 }
 0x122   : > { %v5402_v47 = vpop.eup %5401  ;;  %5427 = vrcp.f32 %v3097_v38  ;;  %v3098_v48 = vadd.f32 1.0, %v5400_v42  ;;  %v2339_v38 = vsub.f32 0.0, %v547_v26 }
 0x123   : > { %v5404_v53 = vpop.eup %5403  ;;  %5429 = vrcp.f32 %v1562_v43  ;;  %v1563_v54 = vadd.f32 1.0, %v5402_v47  ;;  %v1114_v51 = vmul.f32 1.442695, %v803_v37 }
 0x124   : > { %v5406_v57 = vpop.eup %5405  ;;  %5431 = vrcp.f32 %v3098_v48  ;;  %v3099_v58 = vadd.f32 1.0, %v5404_v53  ;;  %v2650_v52 = vmul.f32 1.442695, %v2339_v38  ;;  %v551_v38 = vld [vmem:[%s7410_s24 + $0x1d8] sm:$0xff] }
 0x125   : > { %v5408_v62 = vpop.eup %5407  ;;  %5433 = vrcp.f32 %v1563_v54 }
 0x126   : > { %v5410_v2 = vpop.eup %5409  ;;  %v3860_v3 = vsub.f32 %v5406_v57, %v5408_v62  ;;  %5435 = vrcp.f32 %v3099_v58 }
 0x127   : > { %v5412_v7 = vpop.eup %5411  ;;  %5437 = vpow2.f32 %v1100_v44  ;;  %v1112_v44 = vmul.f32 1.442695, %v802_v29 }
 0x128   : > { %v5414_v11 = vpop.eup %5413  ;;  %v4116_v12 = vadd.f32 0.5, %v3860_v3  ;;  %v3861_v13 = vsub.f32 %v5410_v2, %v5412_v7  ;;  %5439 = vpow2.f32 %v2636_v59 }
 0x129   : > { %v5416_v17 = vpop.eup %5415  ;;  %5441 = vpow2.f32 %v1102_v63 }
 0x12a   : > { %v5418_v21 = vpop.eup %5417  ;;  %v4372_v22 = vmax.f32 %v4116_v12, 0.0  ;;  %v4117_v23 = vadd.f32 0.5, %v3861_v13  ;;  %v3862_v24 = vsub.f32 %v5414_v11, %v5416_v17  ;;  %5443 = vpow2.f32 %v2638_v4  ;;  %v292_v13 = vld [vmem:[%s7402_s28 + $0x1c0] sm:$0xff] }
 0x12b   : > { %v5420_v27 = vpop.eup %5419  ;;  %5445 = vpow2.f32 %v1104_v5 }
 0x12c   : > { %v5422_v31 = vpop.eup %5421  ;;  %4628 = vst [vmem:[%s7449_s20 + $0x140] sm:$0xff] %v4372_v22  ;;  %v4373_v32 = vmax.f32 %v4117_v23, 0.0  ;;  %v4118_v33 = vadd.f32 0.5, %v3862_v24  ;;  %v3863_v34 = vsub.f32 %v5418_v21, %v5420_v27  ;;  %5447 = vpow2.f32 %v2640_v8  ;;  %v293_v24 = vld [vmem:[%s7402_s28 + $0x1c8] sm:$0xff] }
 0x12d   : > { %v5424_v35 = vpop.eup %5423  ;;  %5449 = vpow2.f32 %v1106_v9  ;;  %v804_v21 = vsub.f32 0.0, %v292_v13  ;;  %v549_v27 = vld [vmem:[%s7410_s24 + $0x1c8] sm:$0xff]  ;;  %v805_v37 = vsub.f32 0.0, %v293_v24 }
 0x12e   : > { %v5426_v39 = vpop.eup %5425  ;;  %4629 = vst [vmem:[%s7449_s20 + $0x148] sm:$0xff] %v4373_v32  ;;  %v4374_v40 = vmax.f32 %v4118_v33, 0.0  ;;  %v4119_v41 = vadd.f32 0.5, %v3863_v34  ;;  %v3864_v42 = vsub.f32 %v5422_v31, %v5424_v35  ;;  %5451 = vpow2.f32 %v2642_v14  ;;  %v550_v32 = vld [vmem:[%s7410_s24 + $0x1d0] sm:$0xff]  ;;  %v295_v33 = vld [vmem:[%s7402_s28 + $0x1d8] sm:$0xff] }
 0x12f   : > { %v5428_v43 = vpop.eup %5427  ;;  %5453 = vpow2.f32 %v1108_v18  ;;  %v2340_v31 = vsub.f32 0.0, %v548_v20 }
 0x130   : > { %v5430_v46 = vpop.eup %5429  ;;  %4630 = vst [vmem:[%s7449_s20 + $0x150] sm:$0xff] %v4374_v40  ;;  %v4375_v47 = vmax.f32 %v4119_v41, 0.0  ;;  %v4120_v48 = vadd.f32 0.5, %v3864_v42  ;;  %v3865_v49 = vsub.f32 %v5426_v39, %v5428_v43  ;;  %5455 = vpow2.f32 %v2644_v19  ;;  %v296_v43 = vld [vmem:[%s7402_s28 + $0x1e0] sm:$0xff] }
 0x131   : > { %v5432_v50 = vpop.eup %5431  ;;  %5457 = vpow2.f32 %v1110_v28  ;;  %v294_v28 = vld [vmem:[%s7402_s28 + $0x1d0] sm:$0xff]  ;;  %v2341_v41 = vsub.f32 0.0, %v549_v27 }
 0x132   : > { %v5434_v53 = vpop.eup %5433  ;;  %4631 = vst [vmem:[%s7449_s20 + $0x158] sm:$0xff] %v4375_v47  ;;  %v4376_v54 = vmax.f32 %v4120_v48, 0.0  ;;  %v4121_v55 = vadd.f32 0.5, %v3865_v49  ;;  %v3866_v56 = vsub.f32 %v5430_v46, %v5432_v50  ;;  %5459 = vpow2.f32 %v2646_v36 }
 0x133   : > { %v5436_v57 = vpop.eup %5435  ;;  %5461 = vpow2.f32 %v1112_v44  ;;  %v1116_v36 = vmul.f32 1.442695, %v804_v21  ;;  %v806_v42 = vsub.f32 0.0, %v294_v28  ;;  %v552_v44 = vld [vmem:[%s7410_s24 + $0x1e0] sm:$0xff]  ;;  %v2342_v47 = vsub.f32 0.0, %v550_v32 }
 0x134   : > { %v5438_v58 = vpop.eup %5437  ;;  %4632 = vst [vmem:[%s7449_s20 + $0x160] sm:$0xff] %v4376_v54  ;;  %v4377_v59 = vmax.f32 %v4121_v55, 0.0  ;;  %v4122_v60 = vadd.f32 0.5, %v3866_v56  ;;  %v3867_v61 = vsub.f32 %v5434_v53, %v5436_v57  ;;  %5463 = vpow2.f32 %v2648_v45  ;;  %v297_v53 = vld [vmem:[%s7402_s28 + $0x1e8] sm:$0xff] }
 0x135   : > { %v5440_v62 = vpop.eup %5439  ;;  %v1564_v63 = vadd.f32 1.0, %v5438_v58  ;;  %5465 = vpow2.f32 %v1114_v51  ;;  %v807_v48 = vsub.f32 0.0, %v295_v33  ;;  %v2652_v51 = vmul.f32 1.442695, %v2340_v31 }
 0x136   : > { %v5442_v0 = vpop.eup %5441  ;;  %4633 = vst [vmem:[%s7449_s20 + $0x168] sm:$0xff] %v4377_v59  ;;  %v4378_v1 = vmax.f32 %v4122_v60, 0.0  ;;  %v4123_v2 = vadd.f32 0.5, %v3867_v61  ;;  %v3100_v3 = vadd.f32 1.0, %v5440_v62  ;;  %5467 = vpow2.f32 %v2650_v52  ;;  %v553_v62 = vld [vmem:[%s7410_s24 + $0x1e8] sm:$0xff] }
 0x137   : > { %v5444_v4 = vpop.eup %5443  ;;  %5469 = vrcp.f32 %v1564_v63  ;;  %v1565_v5 = vadd.f32 1.0, %v5442_v0  ;;  %v2343_v52 = vsub.f32 0.0, %v551_v38  ;;  %v1118_v55 = vmul.f32 1.442695, %v805_v37 }
 0x138   : > { %v5446_v6 = vpop.eup %5445  ;;  %4634 = vst [vmem:[%s7449_s20 + $0x170] sm:$0xff] %v4378_v1  ;;  %v4379_v7 = vmax.f32 %v4123_v2, 0.0  ;;  %5471 = vrcp.f32 %v3100_v3  ;;  %v3101_v8 = vadd.f32 1.0, %v5444_v4  ;;  %v808_v56 = vsub.f32 0.0, %v296_v43 }
 0x139   : > { %v5448_v9 = vpop.eup %5447  ;;  %5473 = vrcp.f32 %v1565_v5  ;;  %v1566_v10 = vadd.f32 1.0, %v5446_v6  ;;  %v2344_v57 = vsub.f32 0.0, %v552_v44  ;;  %v2654_v60 = vmul.f32 1.442695, %v2341_v41 }
 0x13a   : > { %v5450_v11 = vpop.eup %5449  ;;  %4635 = vst [vmem:[%s7449_s20 + $0x178] sm:$0xff] %v4379_v7  ;;  %5475 = vrcp.f32 %v3101_v8  ;;  %v3102_v12 = vadd.f32 1.0, %v5448_v9  ;;  %v1120_v61 = vmul.f32 1.442695, %v806_v42  ;;  %v2656_v0 = vmul.f32 1.442695, %v2342_v47 }
 0x13b   : > { %v5452_v14 = vpop.eup %5451  ;;  %5477 = vrcp.f32 %v1566_v10  ;;  %v1567_v15 = vadd.f32 1.0, %v5450_v11  ;;  %v1122_v1 = vmul.f32 1.442695, %v807_v48  ;;  %v809_v2 = vsub.f32 0.0, %v297_v53  ;;  %v298_v7 = vld [vmem:[%s7402_s28 + $0x1f0] sm:$0xff] }
 0x13c   : > { %v5454_v16 = vpop.eup %5453  ;;  %5479 = vrcp.f32 %v3102_v12  ;;  %v3103_v17 = vadd.f32 1.0, %v5452_v14  ;;  %v2658_v6 = vmul.f32 1.442695, %v2343_v52  ;;  %v554_v8 = vld [vmem:[%s7410_s24 + $0x1f0] sm:$0xff]  ;;  %v1124_v10 = vmul.f32 1.442695, %v808_v56 }
 0x13d   : > { %v5456_v18 = vpop.eup %5455  ;;  %5481 = vrcp.f32 %v1567_v15  ;;  %v1568_v19 = vadd.f32 1.0, %v5454_v16  ;;  %v2660_v11 = vmul.f32 1.442695, %v2344_v57  ;;  %v2345_v12 = vsub.f32 0.0, %v553_v62 }
 0x13e   : > { %v5458_v22 = vpop.eup %5457  ;;  %5483 = vrcp.f32 %v3103_v17  ;;  %v3104_v23 = vadd.f32 1.0, %v5456_v18  ;;  %v299_v17 = vld [vmem:[%s7402_s28 + $0x1f8] sm:$0xff]  ;;  %v1126_v20 = vmul.f32 1.442695, %v809_v2  ;;  %v810_v21 = vsub.f32 0.0, %v298_v7 }
 0x13f   : > { %v5460_v25 = vpop.eup %5459  ;;  %5485 = vrcp.f32 %v1568_v19  ;;  %v1569_v26 = vadd.f32 1.0, %v5458_v22  ;;  %v555_v18 = vld [vmem:[%s7410_s24 + $0x1f8] sm:$0xff]  ;;  %v2346_v22 = vsub.f32 0.0, %v554_v8  ;;  %v2662_v28 = vmul.f32 1.442695, %v2345_v12  ;;  %v556_v12 = vld [vmem:[%s7410_s24 + $0x200] sm:$0xff] }
 0x140   : > { %v5462_v29 = vpop.eup %5461  ;;  %5487 = vrcp.f32 %v3104_v23  ;;  %v3105_v30 = vadd.f32 1.0, %v5460_v25 }
 0x141   : > { %v5464_v34 = vpop.eup %5463  ;;  %5489 = vrcp.f32 %v1569_v26  ;;  %v1570_v35 = vadd.f32 1.0, %v5462_v29  ;;  %v811_v29 = vsub.f32 0.0, %v299_v17  ;;  %v2664_v37 = vmul.f32 1.442695, %v2346_v22 }
 0x142   : > { %v5466_v39 = vpop.eup %5465  ;;  %5491 = vrcp.f32 %v3105_v30  ;;  %v3106_v40 = vadd.f32 1.0, %v5464_v34  ;;  %v2347_v30 = vsub.f32 0.0, %v555_v18 }
 0x143   : > { %v5468_v45 = vpop.eup %5467  ;;  %5493 = vrcp.f32 %v1570_v35  ;;  %v1571_v46 = vadd.f32 1.0, %v5466_v39  ;;  %v1130_v43 = vmul.f32 1.442695, %v811_v29 }
 0x144   : > { %v5470_v49 = vpop.eup %5469  ;;  %5495 = vrcp.f32 %v3106_v40  ;;  %v3107_v50 = vadd.f32 1.0, %v5468_v45  ;;  %v2666_v44 = vmul.f32 1.442695, %v2347_v30  ;;  %v559_v30 = vld [vmem:[%s7410_s24 + $0x218] sm:$0xff] }
 0x145   : > { %v5472_v54 = vpop.eup %5471  ;;  %5497 = vrcp.f32 %v1571_v46 }
 0x146   : > { %v5474_v58 = vpop.eup %5473  ;;  %v3868_v59 = vsub.f32 %v5470_v49, %v5472_v54  ;;  %5499 = vrcp.f32 %v3107_v50 }
 0x147   : > { %v5476_v63 = vpop.eup %5475  ;;  %5501 = vpow2.f32 %v1116_v36  ;;  %v1128_v36 = vmul.f32 1.442695, %v810_v21 }
 0x148   : > { %v5478_v3 = vpop.eup %5477  ;;  %v4124_v4 = vadd.f32 0.5, %v3868_v59  ;;  %v3869_v5 = vsub.f32 %v5474_v58, %v5476_v63  ;;  %5503 = vpow2.f32 %v2652_v51 }
 0x149   : > { %v5480_v9 = vpop.eup %5479  ;;  %5505 = vpow2.f32 %v1118_v55 }
 0x14a   : > { %v5482_v13 = vpop.eup %5481  ;;  %v4380_v14 = vmax.f32 %v4124_v4, 0.0  ;;  %v4125_v15 = vadd.f32 0.5, %v3869_v5  ;;  %v3870_v16 = vsub.f32 %v5478_v3, %v5480_v9  ;;  %5507 = vpow2.f32 %v2654_v60  ;;  %v300_v5 = vld [vmem:[%s7402_s28 + $0x200] sm:$0xff] }
 0x14b   : > { %v5484_v19 = vpop.eup %5483  ;;  %5509 = vpow2.f32 %v1120_v61 }
 0x14c   : > { %v5486_v23 = vpop.eup %5485  ;;  %4636 = vst [vmem:[%s7449_s20 + $0x180] sm:$0xff] %v4380_v14  ;;  %v4381_v24 = vmax.f32 %v4125_v15, 0.0  ;;  %v4126_v25 = vadd.f32 0.5, %v3870_v16  ;;  %v3871_v26 = vsub.f32 %v5482_v13, %v5484_v19  ;;  %5511 = vpow2.f32 %v2656_v0  ;;  %v301_v16 = vld [vmem:[%s7402_s28 + $0x208] sm:$0xff] }
 0x14d   : > { %v5488_v27 = vpop.eup %5487  ;;  %5513 = vpow2.f32 %v1122_v1  ;;  %v812_v13 = vsub.f32 0.0, %v300_v5  ;;  %v557_v19 = vld [vmem:[%s7410_s24 + $0x208] sm:$0xff]  ;;  %v813_v29 = vsub.f32 0.0, %v301_v16 }
 0x14e   : > { %v5490_v31 = vpop.eup %5489  ;;  %4637 = vst [vmem:[%s7449_s20 + $0x188] sm:$0xff] %v4381_v24  ;;  %v4382_v32 = vmax.f32 %v4126_v25, 0.0  ;;  %v4127_v33 = vadd.f32 0.5, %v3871_v26  ;;  %v3872_v34 = vsub.f32 %v5486_v23, %v5488_v27  ;;  %5515 = vpow2.f32 %v2658_v6  ;;  %v558_v24 = vld [vmem:[%s7410_s24 + $0x210] sm:$0xff]  ;;  %v303_v25 = vld [vmem:[%s7402_s28 + $0x218] sm:$0xff] }
 0x14f   : > { %v5492_v35 = vpop.eup %5491  ;;  %5517 = vpow2.f32 %v1124_v10  ;;  %v2348_v23 = vsub.f32 0.0, %v556_v12 }
 0x150   : > { %v5494_v38 = vpop.eup %5493  ;;  %4638 = vst [vmem:[%s7449_s20 + $0x190] sm:$0xff] %v4382_v32  ;;  %v4383_v39 = vmax.f32 %v4127_v33, 0.0  ;;  %v4128_v40 = vadd.f32 0.5, %v3872_v34  ;;  %v3873_v41 = vsub.f32 %v5490_v31, %v5492_v35  ;;  %5519 = vpow2.f32 %v2660_v11  ;;  %v304_v35 = vld [vmem:[%s7402_s28 + $0x220] sm:$0xff] }
 0x151   : > { %v5496_v42 = vpop.eup %5495  ;;  %5521 = vpow2.f32 %v1126_v20  ;;  %v302_v20 = vld [vmem:[%s7402_s28 + $0x210] sm:$0xff]  ;;  %v2349_v33 = vsub.f32 0.0, %v557_v19 }
 0x152   : > { %v5498_v45 = vpop.eup %5497  ;;  %4639 = vst [vmem:[%s7449_s20 + $0x198] sm:$0xff] %v4383_v39  ;;  %v4384_v46 = vmax.f32 %v4128_v40, 0.0  ;;  %v4129_v47 = vadd.f32 0.5, %v3873_v41  ;;  %v3874_v48 = vsub.f32 %v5494_v38, %v5496_v42  ;;  %5523 = vpow2.f32 %v2662_v28 }
 0x153   : > { %v5500_v49 = vpop.eup %5499  ;;  %5525 = vpow2.f32 %v1128_v36  ;;  %v1132_v28 = vmul.f32 1.442695, %v812_v13  ;;  %v814_v34 = vsub.f32 0.0, %v302_v20  ;;  %v560_v36 = vld [vmem:[%s7410_s24 + $0x220] sm:$0xff]  ;;  %v2350_v39 = vsub.f32 0.0, %v558_v24 }
 0x154   : > { %v5502_v50 = vpop.eup %5501  ;;  %4640 = vst [vmem:[%s7449_s20 + $0x1a0] sm:$0xff] %v4384_v46  ;;  %v4385_v51 = vmax.f32 %v4129_v47, 0.0  ;;  %v4130_v52 = vadd.f32 0.5, %v3874_v48  ;;  %v3875_v53 = vsub.f32 %v5498_v45, %v5500_v49  ;;  %5527 = vpow2.f32 %v2664_v37  ;;  %v305_v45 = vld [vmem:[%s7402_s28 + $0x228] sm:$0xff] }
 0x155   : > { %v5504_v54 = vpop.eup %5503  ;;  %v1572_v55 = vadd.f32 1.0, %v5502_v50  ;;  %5529 = vpow2.f32 %v1130_v43  ;;  %v815_v40 = vsub.f32 0.0, %v303_v25  ;;  %v2668_v43 = vmul.f32 1.442695, %v2348_v23 }
 0x156   : > { %v5506_v56 = vpop.eup %5505  ;;  %4641 = vst [vmem:[%s7449_s20 + $0x1a8] sm:$0xff] %v4385_v51  ;;  %v4386_v57 = vmax.f32 %v4130_v52, 0.0  ;;  %v4131_v58 = vadd.f32 0.5, %v3875_v53  ;;  %v3108_v59 = vadd.f32 1.0, %v5504_v54  ;;  %5531 = vpow2.f32 %v2666_v44  ;;  %v561_v54 = vld [vmem:[%s7410_s24 + $0x228] sm:$0xff] }
 0x157   : > { %v5508_v60 = vpop.eup %5507  ;;  %5533 = vrcp.f32 %v1572_v55  ;;  %v1573_v61 = vadd.f32 1.0, %v5506_v56  ;;  %v2351_v44 = vsub.f32 0.0, %v559_v30  ;;  %v1134_v47 = vmul.f32 1.442695, %v813_v29 }
 0x158   : > { %v5510_v62 = vpop.eup %5509  ;;  %4642 = vst [vmem:[%s7449_s20 + $0x1b0] sm:$0xff] %v4386_v57  ;;  %v4387_v63 = vmax.f32 %v4131_v58, 0.0  ;;  %5535 = vrcp.f32 %v3108_v59  ;;  %v3109_v0 = vadd.f32 1.0, %v5508_v60  ;;  %v816_v48 = vsub.f32 0.0, %v304_v35 }
 0x159   : > { %v5512_v1 = vpop.eup %5511  ;;  %5537 = vrcp.f32 %v1573_v61  ;;  %v1574_v2 = vadd.f32 1.0, %v5510_v62  ;;  %v2352_v49 = vsub.f32 0.0, %v560_v36  ;;  %v2670_v52 = vmul.f32 1.442695, %v2349_v33 }
 0x15a   : > { %v5514_v3 = vpop.eup %5513  ;;  %4643 = vst [vmem:[%s7449_s20 + $0x1b8] sm:$0xff] %v4387_v63  ;;  %5539 = vrcp.f32 %v3109_v0  ;;  %v3110_v4 = vadd.f32 1.0, %v5512_v1  ;;  %v1136_v53 = vmul.f32 1.442695, %v814_v34  ;;  %v2672_v56 = vmul.f32 1.442695, %v2350_v39 }
 0x15b   : > { %v5516_v6 = vpop.eup %5515  ;;  %5541 = vrcp.f32 %v1574_v2  ;;  %v1575_v7 = vadd.f32 1.0, %v5514_v3  ;;  %v1138_v57 = vmul.f32 1.442695, %v815_v40  ;;  %v817_v58 = vsub.f32 0.0, %v305_v45  ;;  %v306_v63 = vld [vmem:[%s7402_s28 + $0x230] sm:$0xff] }
 0x15c   : > { %v5518_v8 = vpop.eup %5517  ;;  %5543 = vrcp.f32 %v3110_v4  ;;  %v3111_v9 = vadd.f32 1.0, %v5516_v6  ;;  %v2674_v62 = vmul.f32 1.442695, %v2351_v44  ;;  %v562_v0 = vld [vmem:[%s7410_s24 + $0x230] sm:$0xff]  ;;  %v1140_v2 = vmul.f32 1.442695, %v816_v48 }
 0x15d   : > { %v5520_v10 = vpop.eup %5519  ;;  %5545 = vrcp.f32 %v1575_v7  ;;  %v1576_v11 = vadd.f32 1.0, %v5518_v8  ;;  %v2676_v3 = vmul.f32 1.442695, %v2352_v49  ;;  %v2353_v4 = vsub.f32 0.0, %v561_v54 }
 0x15e   : > { %v5522_v14 = vpop.eup %5521  ;;  %5547 = vrcp.f32 %v3111_v9  ;;  %v3112_v15 = vadd.f32 1.0, %v5520_v10  ;;  %v307_v9 = vld [vmem:[%s7402_s28 + $0x238] sm:$0xff]  ;;  %v1142_v12 = vmul.f32 1.442695, %v817_v58  ;;  %v818_v13 = vsub.f32 0.0, %v306_v63 }
 0x15f   : > { %v5524_v17 = vpop.eup %5523  ;;  %5549 = vrcp.f32 %v1576_v11  ;;  %v1577_v18 = vadd.f32 1.0, %v5522_v14  ;;  %v563_v10 = vld [vmem:[%s7410_s24 + $0x238] sm:$0xff]  ;;  %v2354_v14 = vsub.f32 0.0, %v562_v0  ;;  %v2678_v20 = vmul.f32 1.442695, %v2353_v4  ;;  %v564_v4 = vld [vmem:[%s7410_s24 + $0x240] sm:$0xff] }
 0x160   : > { %v5526_v21 = vpop.eup %5525  ;;  %5551 = vrcp.f32 %v3112_v15  ;;  %v3113_v22 = vadd.f32 1.0, %v5524_v17 }
 0x161   : > { %v5528_v26 = vpop.eup %5527  ;;  %5553 = vrcp.f32 %v1577_v18  ;;  %v1578_v27 = vadd.f32 1.0, %v5526_v21  ;;  %v819_v21 = vsub.f32 0.0, %v307_v9  ;;  %v2680_v29 = vmul.f32 1.442695, %v2354_v14 }
 0x162   : > { %v5530_v31 = vpop.eup %5529  ;;  %5555 = vrcp.f32 %v3113_v22  ;;  %v3114_v32 = vadd.f32 1.0, %v5528_v26  ;;  %v2355_v22 = vsub.f32 0.0, %v563_v10 }
 0x163   : > { %v5532_v37 = vpop.eup %5531  ;;  %5557 = vrcp.f32 %v1578_v27  ;;  %v1579_v38 = vadd.f32 1.0, %v5530_v31  ;;  %v1146_v35 = vmul.f32 1.442695, %v819_v21 }
 0x164   : > { %v5534_v41 = vpop.eup %5533  ;;  %5559 = vrcp.f32 %v3114_v32  ;;  %v3115_v42 = vadd.f32 1.0, %v5532_v37  ;;  %v2682_v36 = vmul.f32 1.442695, %v2355_v22  ;;  %v567_v22 = vld [vmem:[%s7410_s24 + $0x258] sm:$0xff] }
 0x165   : > { %v5536_v46 = vpop.eup %5535  ;;  %5561 = vrcp.f32 %v1579_v38 }
 0x166   : > { %v5538_v50 = vpop.eup %5537  ;;  %v3876_v51 = vsub.f32 %v5534_v41, %v5536_v46  ;;  %5563 = vrcp.f32 %v3115_v42 }
 0x167   : > { %v5540_v55 = vpop.eup %5539  ;;  %5565 = vpow2.f32 %v1132_v28  ;;  %v1144_v28 = vmul.f32 1.442695, %v818_v13 }
 0x168   : > { %v5542_v59 = vpop.eup %5541  ;;  %v4132_v60 = vadd.f32 0.5, %v3876_v51  ;;  %v3877_v61 = vsub.f32 %v5538_v50, %v5540_v55  ;;  %5567 = vpow2.f32 %v2668_v43 }
 0x169   : > { %v5544_v1 = vpop.eup %5543  ;;  %5569 = vpow2.f32 %v1134_v47 }
 0x16a   : > { %v5546_v5 = vpop.eup %5545  ;;  %v4388_v6 = vmax.f32 %v4132_v60, 0.0  ;;  %v4133_v7 = vadd.f32 0.5, %v3877_v61  ;;  %v3878_v8 = vsub.f32 %v5542_v59, %v5544_v1  ;;  %5571 = vpow2.f32 %v2670_v52  ;;  %v308_v61 = vld [vmem:[%s7402_s28 + $0x240] sm:$0xff] }
 0x16b   : > { %v5548_v11 = vpop.eup %5547  ;;  %5573 = vpow2.f32 %v1136_v53 }
 0x16c   : > { %v5550_v15 = vpop.eup %5549  ;;  %4644 = vst [vmem:[%s7449_s20 + $0x1c0] sm:$0xff] %v4388_v6  ;;  %v4389_v16 = vmax.f32 %v4133_v7, 0.0  ;;  %v4134_v17 = vadd.f32 0.5, %v3878_v8  ;;  %v3879_v18 = vsub.f32 %v5546_v5, %v5548_v11  ;;  %5575 = vpow2.f32 %v2672_v56  ;;  %v309_v8 = vld [vmem:[%s7402_s28 + $0x248] sm:$0xff] }
 0x16d   : > { %v5552_v19 = vpop.eup %5551  ;;  %5577 = vpow2.f32 %v1138_v57  ;;  %v820_v5 = vsub.f32 0.0, %v308_v61  ;;  %v565_v11 = vld [vmem:[%s7410_s24 + $0x248] sm:$0xff]  ;;  %v821_v21 = vsub.f32 0.0, %v309_v8 }
 0x16e   : > { %v5554_v23 = vpop.eup %5553  ;;  %4645 = vst [vmem:[%s7449_s20 + $0x1c8] sm:$0xff] %v4389_v16  ;;  %v4390_v24 = vmax.f32 %v4134_v17, 0.0  ;;  %v4135_v25 = vadd.f32 0.5, %v3879_v18  ;;  %v3880_v26 = vsub.f32 %v5550_v15, %v5552_v19  ;;  %5579 = vpow2.f32 %v2674_v62  ;;  %v566_v16 = vld [vmem:[%s7410_s24 + $0x250] sm:$0xff]  ;;  %v311_v17 = vld [vmem:[%s7402_s28 + $0x258] sm:$0xff] }
 0x16f   : > { %v5556_v27 = vpop.eup %5555  ;;  %5581 = vpow2.f32 %v1140_v2  ;;  %v2356_v15 = vsub.f32 0.0, %v564_v4 }
 0x170   : > { %v5558_v30 = vpop.eup %5557  ;;  %4646 = vst [vmem:[%s7449_s20 + $0x1d0] sm:$0xff] %v4390_v24  ;;  %v4391_v31 = vmax.f32 %v4135_v25, 0.0  ;;  %v4136_v32 = vadd.f32 0.5, %v3880_v26  ;;  %v3881_v33 = vsub.f32 %v5554_v23, %v5556_v27  ;;  %5583 = vpow2.f32 %v2676_v3  ;;  %v312_v27 = vld [vmem:[%s7402_s28 + $0x260] sm:$0xff] }
 0x171   : > { %v5560_v34 = vpop.eup %5559  ;;  %5585 = vpow2.f32 %v1142_v12  ;;  %v310_v12 = vld [vmem:[%s7402_s28 + $0x250] sm:$0xff]  ;;  %v2357_v25 = vsub.f32 0.0, %v565_v11 }
 0x172   : > { %v5562_v37 = vpop.eup %5561  ;;  %4647 = vst [vmem:[%s7449_s20 + $0x1d8] sm:$0xff] %v4391_v31  ;;  %v4392_v38 = vmax.f32 %v4136_v32, 0.0  ;;  %v4137_v39 = vadd.f32 0.5, %v3881_v33  ;;  %v3882_v40 = vsub.f32 %v5558_v30, %v5560_v34  ;;  %5587 = vpow2.f32 %v2678_v20 }
 0x173   : > { %v5564_v41 = vpop.eup %5563  ;;  %5589 = vpow2.f32 %v1144_v28  ;;  %v1148_v20 = vmul.f32 1.442695, %v820_v5  ;;  %v822_v26 = vsub.f32 0.0, %v310_v12  ;;  %v568_v28 = vld [vmem:[%s7410_s24 + $0x260] sm:$0xff]  ;;  %v2358_v31 = vsub.f32 0.0, %v566_v16 }
 0x174   : > { %v5566_v42 = vpop.eup %5565  ;;  %4648 = vst [vmem:[%s7449_s20 + $0x1e0] sm:$0xff] %v4392_v38  ;;  %v4393_v43 = vmax.f32 %v4137_v39, 0.0  ;;  %v4138_v44 = vadd.f32 0.5, %v3882_v40  ;;  %v3883_v45 = vsub.f32 %v5562_v37, %v5564_v41  ;;  %5591 = vpow2.f32 %v2680_v29  ;;  %v313_v37 = vld [vmem:[%s7402_s28 + $0x268] sm:$0xff] }
 0x175   : > { %v5568_v46 = vpop.eup %5567  ;;  %v1580_v47 = vadd.f32 1.0, %v5566_v42  ;;  %5593 = vpow2.f32 %v1146_v35  ;;  %v823_v32 = vsub.f32 0.0, %v311_v17  ;;  %v2684_v35 = vmul.f32 1.442695, %v2356_v15 }
 0x176   : > { %v5570_v48 = vpop.eup %5569  ;;  %4649 = vst [vmem:[%s7449_s20 + $0x1e8] sm:$0xff] %v4393_v43  ;;  %v4394_v49 = vmax.f32 %v4138_v44, 0.0  ;;  %v4139_v50 = vadd.f32 0.5, %v3883_v45  ;;  %v3116_v51 = vadd.f32 1.0, %v5568_v46  ;;  %5595 = vpow2.f32 %v2682_v36  ;;  %v569_v46 = vld [vmem:[%s7410_s24 + $0x268] sm:$0xff] }
 0x177   : > { %v5572_v52 = vpop.eup %5571  ;;  %5597 = vrcp.f32 %v1580_v47  ;;  %v1581_v53 = vadd.f32 1.0, %v5570_v48  ;;  %v2359_v36 = vsub.f32 0.0, %v567_v22  ;;  %v1150_v39 = vmul.f32 1.442695, %v821_v21 }
 0x178   : > { %v5574_v54 = vpop.eup %5573  ;;  %4650 = vst [vmem:[%s7449_s20 + $0x1f0] sm:$0xff] %v4394_v49  ;;  %v4395_v55 = vmax.f32 %v4139_v50, 0.0  ;;  %5599 = vrcp.f32 %v3116_v51  ;;  %v3117_v56 = vadd.f32 1.0, %v5572_v52  ;;  %v824_v40 = vsub.f32 0.0, %v312_v27 }
 0x179   : > { %v5576_v57 = vpop.eup %5575  ;;  %5601 = vrcp.f32 %v1581_v53  ;;  %v1582_v58 = vadd.f32 1.0, %v5574_v54  ;;  %v2360_v41 = vsub.f32 0.0, %v568_v28  ;;  %v2686_v44 = vmul.f32 1.442695, %v2357_v25 }
 0x17a   : > { %v5578_v59 = vpop.eup %5577  ;;  %4651 = vst [vmem:[%s7449_s20 + $0x1f8] sm:$0xff] %v4395_v55  ;;  %5603 = vrcp.f32 %v3117_v56  ;;  %v3118_v60 = vadd.f32 1.0, %v5576_v57  ;;  %v1152_v45 = vmul.f32 1.442695, %v822_v26  ;;  %v2688_v48 = vmul.f32 1.442695, %v2358_v31 }
 0x17b   : > { %v5580_v62 = vpop.eup %5579  ;;  %5605 = vrcp.f32 %v1582_v58  ;;  %v1583_v63 = vadd.f32 1.0, %v5578_v59  ;;  %v1154_v49 = vmul.f32 1.442695, %v823_v32  ;;  %v825_v50 = vsub.f32 0.0, %v313_v37  ;;  %v314_v55 = vld [vmem:[%s7402_s28 + $0x270] sm:$0xff] }
 0x17c   : > { %v5582_v0 = vpop.eup %5581  ;;  %5607 = vrcp.f32 %v3118_v60  ;;  %v3119_v1 = vadd.f32 1.0, %v5580_v62  ;;  %v2690_v54 = vmul.f32 1.442695, %v2359_v36  ;;  %v570_v56 = vld [vmem:[%s7410_s24 + $0x270] sm:$0xff]  ;;  %v1156_v58 = vmul.f32 1.442695, %v824_v40 }
 0x17d   : > { %v5584_v2 = vpop.eup %5583  ;;  %5609 = vrcp.f32 %v1583_v63  ;;  %v1584_v3 = vadd.f32 1.0, %v5582_v0  ;;  %v2692_v59 = vmul.f32 1.442695, %v2360_v41  ;;  %v2361_v60 = vsub.f32 0.0, %v569_v46 }
 0x17e   : > { %v5586_v6 = vpop.eup %5585  ;;  %5611 = vrcp.f32 %v3119_v1  ;;  %v3120_v7 = vadd.f32 1.0, %v5584_v2  ;;  %v315_v1 = vld [vmem:[%s7402_s28 + $0x278] sm:$0xff]  ;;  %v1158_v4 = vmul.f32 1.442695, %v825_v50  ;;  %v826_v5 = vsub.f32 0.0, %v314_v55 }
 0x17f   : > { %v5588_v9 = vpop.eup %5587  ;;  %5613 = vrcp.f32 %v1584_v3  ;;  %v1585_v10 = vadd.f32 1.0, %v5586_v6  ;;  %v571_v2 = vld [vmem:[%s7410_s24 + $0x278] sm:$0xff]  ;;  %v2362_v6 = vsub.f32 0.0, %v570_v56  ;;  %v2694_v12 = vmul.f32 1.442695, %v2361_v60  ;;  %v572_v60 = vld [vmem:[%s7410_s24 + $0x280] sm:$0xff] }
 0x180   : > { %v5590_v13 = vpop.eup %5589  ;;  %5615 = vrcp.f32 %v3120_v7  ;;  %v3121_v14 = vadd.f32 1.0, %v5588_v9 }
 0x181   : > { %v5592_v18 = vpop.eup %5591  ;;  %5617 = vrcp.f32 %v1585_v10  ;;  %v1586_v19 = vadd.f32 1.0, %v5590_v13  ;;  %v827_v13 = vsub.f32 0.0, %v315_v1  ;;  %v2696_v21 = vmul.f32 1.442695, %v2362_v6 }
 0x182   : > { %v5594_v23 = vpop.eup %5593  ;;  %5619 = vrcp.f32 %v3121_v14  ;;  %v3122_v24 = vadd.f32 1.0, %v5592_v18  ;;  %v2363_v14 = vsub.f32 0.0, %v571_v2 }
 0x183   : > { %v5596_v29 = vpop.eup %5595  ;;  %5621 = vrcp.f32 %v1586_v19  ;;  %v1587_v30 = vadd.f32 1.0, %v5594_v23  ;;  %v1162_v27 = vmul.f32 1.442695, %v827_v13 }
 0x184   : > { %v5598_v33 = vpop.eup %5597  ;;  %5623 = vrcp.f32 %v3122_v24  ;;  %v3123_v34 = vadd.f32 1.0, %v5596_v29  ;;  %v2698_v28 = vmul.f32 1.442695, %v2363_v14  ;;  %v575_v14 = vld [vmem:[%s7410_s24 + $0x298] sm:$0xff] }
 0x185   : > { %v5600_v38 = vpop.eup %5599  ;;  %5625 = vrcp.f32 %v1587_v30 }
 0x186   : > { %v5602_v42 = vpop.eup %5601  ;;  %v3884_v43 = vsub.f32 %v5598_v33, %v5600_v38  ;;  %5627 = vrcp.f32 %v3123_v34 }
 0x187   : > { %v5604_v47 = vpop.eup %5603  ;;  %5629 = vpow2.f32 %v1148_v20  ;;  %v1160_v20 = vmul.f32 1.442695, %v826_v5 }
 0x188   : > { %v5606_v51 = vpop.eup %5605  ;;  %v4140_v52 = vadd.f32 0.5, %v3884_v43  ;;  %v3885_v53 = vsub.f32 %v5602_v42, %v5604_v47  ;;  %5631 = vpow2.f32 %v2684_v35 }
 0x189   : > { %v5608_v57 = vpop.eup %5607  ;;  %5633 = vpow2.f32 %v1150_v39 }
 0x18a   : > { %v5610_v61 = vpop.eup %5609  ;;  %v4396_v62 = vmax.f32 %v4140_v52, 0.0  ;;  %v4141_v63 = vadd.f32 0.5, %v3885_v53  ;;  %v3886_v0 = vsub.f32 %v5606_v51, %v5608_v57  ;;  %5635 = vpow2.f32 %v2686_v44  ;;  %v316_v53 = vld [vmem:[%s7402_s28 + $0x280] sm:$0xff] }
 0x18b   : > { %v5612_v3 = vpop.eup %5611  ;;  %5637 = vpow2.f32 %v1152_v45 }
 0x18c   : > { %v5614_v7 = vpop.eup %5613  ;;  %4652 = vst [vmem:[%s7449_s20 + $0x200] sm:$0xff] %v4396_v62  ;;  %v4397_v8 = vmax.f32 %v4141_v63, 0.0  ;;  %v4142_v9 = vadd.f32 0.5, %v3886_v0  ;;  %v3887_v10 = vsub.f32 %v5610_v61, %v5612_v3  ;;  %5639 = vpow2.f32 %v2688_v48  ;;  %v317_v0 = vld [vmem:[%s7402_s28 + $0x288] sm:$0xff] }
 0x18d   : > { %v5616_v11 = vpop.eup %5615  ;;  %5641 = vpow2.f32 %v1154_v49  ;;  %v828_v61 = vsub.f32 0.0, %v316_v53  ;;  %v573_v3 = vld [vmem:[%s7410_s24 + $0x288] sm:$0xff]  ;;  %v829_v13 = vsub.f32 0.0, %v317_v0 }
 0x18e   : > { %v5618_v15 = vpop.eup %5617  ;;  %4653 = vst [vmem:[%s7449_s20 + $0x208] sm:$0xff] %v4397_v8  ;;  %v4398_v16 = vmax.f32 %v4142_v9, 0.0  ;;  %v4143_v17 = vadd.f32 0.5, %v3887_v10  ;;  %v3888_v18 = vsub.f32 %v5614_v7, %v5616_v11  ;;  %5643 = vpow2.f32 %v2690_v54  ;;  %v574_v8 = vld [vmem:[%s7410_s24 + $0x290] sm:$0xff]  ;;  %v319_v9 = vld [vmem:[%s7402_s28 + $0x298] sm:$0xff] }
 0x18f   : > { %v5620_v19 = vpop.eup %5619  ;;  %5645 = vpow2.f32 %v1156_v58  ;;  %v2364_v7 = vsub.f32 0.0, %v572_v60 }
 0x190   : > { %v5622_v22 = vpop.eup %5621  ;;  %4654 = vst [vmem:[%s7449_s20 + $0x210] sm:$0xff] %v4398_v16  ;;  %v4399_v23 = vmax.f32 %v4143_v17, 0.0  ;;  %v4144_v24 = vadd.f32 0.5, %v3888_v18  ;;  %v3889_v25 = vsub.f32 %v5618_v15, %v5620_v19  ;;  %5647 = vpow2.f32 %v2692_v59  ;;  %v320_v19 = vld [vmem:[%s7402_s28 + $0x2a0] sm:$0xff] }
 0x191   : > { %v5624_v26 = vpop.eup %5623  ;;  %5649 = vpow2.f32 %v1158_v4  ;;  %v318_v4 = vld [vmem:[%s7402_s28 + $0x290] sm:$0xff]  ;;  %v2365_v17 = vsub.f32 0.0, %v573_v3 }
 0x192   : > { %v5626_v29 = vpop.eup %5625  ;;  %4655 = vst [vmem:[%s7449_s20 + $0x218] sm:$0xff] %v4399_v23  ;;  %v4400_v30 = vmax.f32 %v4144_v24, 0.0  ;;  %v4145_v31 = vadd.f32 0.5, %v3889_v25  ;;  %v3890_v32 = vsub.f32 %v5622_v22, %v5624_v26  ;;  %5651 = vpow2.f32 %v2694_v12 }
 0x193   : > { %v5628_v33 = vpop.eup %5627  ;;  %5653 = vpow2.f32 %v1160_v20  ;;  %v1164_v12 = vmul.f32 1.442695, %v828_v61  ;;  %v830_v18 = vsub.f32 0.0, %v318_v4  ;;  %v576_v20 = vld [vmem:[%s7410_s24 + $0x2a0] sm:$0xff]  ;;  %v2366_v23 = vsub.f32 0.0, %v574_v8 }
 0x194   : > { %v5630_v34 = vpop.eup %5629  ;;  %4656 = vst [vmem:[%s7449_s20 + $0x220] sm:$0xff] %v4400_v30  ;;  %v4401_v35 = vmax.f32 %v4145_v31, 0.0  ;;  %v4146_v36 = vadd.f32 0.5, %v3890_v32  ;;  %v3891_v37 = vsub.f32 %v5626_v29, %v5628_v33  ;;  %5655 = vpow2.f32 %v2696_v21  ;;  %v321_v29 = vld [vmem:[%s7402_s28 + $0x2a8] sm:$0xff] }
 0x195   : > { %v5632_v38 = vpop.eup %5631  ;;  %v1588_v39 = vadd.f32 1.0, %v5630_v34  ;;  %5657 = vpow2.f32 %v1162_v27  ;;  %v831_v24 = vsub.f32 0.0, %v319_v9  ;;  %v2700_v27 = vmul.f32 1.442695, %v2364_v7 }
 0x196   : > { %v5634_v40 = vpop.eup %5633  ;;  %4657 = vst [vmem:[%s7449_s20 + $0x228] sm:$0xff] %v4401_v35  ;;  %v4402_v41 = vmax.f32 %v4146_v36, 0.0  ;;  %v4147_v42 = vadd.f32 0.5, %v3891_v37  ;;  %v3124_v43 = vadd.f32 1.0, %v5632_v38  ;;  %5659 = vpow2.f32 %v2698_v28  ;;  %v577_v38 = vld [vmem:[%s7410_s24 + $0x2a8] sm:$0xff] }
 0x197   : > { %v5636_v44 = vpop.eup %5635  ;;  %5661 = vrcp.f32 %v1588_v39  ;;  %v1589_v45 = vadd.f32 1.0, %v5634_v40  ;;  %v2367_v28 = vsub.f32 0.0, %v575_v14  ;;  %v1166_v31 = vmul.f32 1.442695, %v829_v13 }
 0x198   : > { %v5638_v46 = vpop.eup %5637  ;;  %4658 = vst [vmem:[%s7449_s20 + $0x230] sm:$0xff] %v4402_v41  ;;  %v4403_v47 = vmax.f32 %v4147_v42, 0.0  ;;  %5663 = vrcp.f32 %v3124_v43  ;;  %v3125_v48 = vadd.f32 1.0, %v5636_v44  ;;  %v832_v32 = vsub.f32 0.0, %v320_v19 }
 0x199   : > { %v5640_v49 = vpop.eup %5639  ;;  %5665 = vrcp.f32 %v1589_v45  ;;  %v1590_v50 = vadd.f32 1.0, %v5638_v46  ;;  %v2368_v33 = vsub.f32 0.0, %v576_v20  ;;  %v2702_v36 = vmul.f32 1.442695, %v2365_v17 }
 0x19a   : > { %v5642_v51 = vpop.eup %5641  ;;  %4659 = vst [vmem:[%s7449_s20 + $0x238] sm:$0xff] %v4403_v47  ;;  %5667 = vrcp.f32 %v3125_v48  ;;  %v3126_v52 = vadd.f32 1.0, %v5640_v49  ;;  %v1168_v37 = vmul.f32 1.442695, %v830_v18  ;;  %v2704_v40 = vmul.f32 1.442695, %v2366_v23 }
 0x19b   : > { %v5644_v54 = vpop.eup %5643  ;;  %5669 = vrcp.f32 %v1590_v50  ;;  %v1591_v55 = vadd.f32 1.0, %v5642_v51  ;;  %v1170_v41 = vmul.f32 1.442695, %v831_v24  ;;  %v833_v42 = vsub.f32 0.0, %v321_v29  ;;  %v322_v47 = vld [vmem:[%s7402_s28 + $0x2b0] sm:$0xff] }
 0x19c   : > { %v5646_v56 = vpop.eup %5645  ;;  %5671 = vrcp.f32 %v3126_v52  ;;  %v3127_v57 = vadd.f32 1.0, %v5644_v54  ;;  %v2706_v46 = vmul.f32 1.442695, %v2367_v28  ;;  %v578_v48 = vld [vmem:[%s7410_s24 + $0x2b0] sm:$0xff]  ;;  %v1172_v50 = vmul.f32 1.442695, %v832_v32 }
 0x19d   : > { %v5648_v58 = vpop.eup %5647  ;;  %5673 = vrcp.f32 %v1591_v55  ;;  %v1592_v59 = vadd.f32 1.0, %v5646_v56  ;;  %v2708_v51 = vmul.f32 1.442695, %v2368_v33  ;;  %v2369_v52 = vsub.f32 0.0, %v577_v38 }
 0x19e   : > { %v5650_v62 = vpop.eup %5649  ;;  %5675 = vrcp.f32 %v3127_v57  ;;  %v3128_v63 = vadd.f32 1.0, %v5648_v58  ;;  %v323_v57 = vld [vmem:[%s7402_s28 + $0x2b8] sm:$0xff]  ;;  %v1174_v60 = vmul.f32 1.442695, %v833_v42  ;;  %v834_v61 = vsub.f32 0.0, %v322_v47 }
 0x19f   : > { %v5652_v1 = vpop.eup %5651  ;;  %5677 = vrcp.f32 %v1592_v59  ;;  %v1593_v2 = vadd.f32 1.0, %v5650_v62  ;;  %v579_v58 = vld [vmem:[%s7410_s24 + $0x2b8] sm:$0xff]  ;;  %v2370_v62 = vsub.f32 0.0, %v578_v48  ;;  %v2710_v4 = vmul.f32 1.442695, %v2369_v52  ;;  %v580_v52 = vld [vmem:[%s7410_s24 + $0x2c0] sm:$0xff] }
 0x1a0   : > { %v5654_v5 = vpop.eup %5653  ;;  %5679 = vrcp.f32 %v3128_v63  ;;  %v3129_v6 = vadd.f32 1.0, %v5652_v1 }
 0x1a1   : > { %v5656_v10 = vpop.eup %5655  ;;  %5681 = vrcp.f32 %v1593_v2  ;;  %v1594_v11 = vadd.f32 1.0, %v5654_v5  ;;  %v835_v5 = vsub.f32 0.0, %v323_v57  ;;  %v2712_v13 = vmul.f32 1.442695, %v2370_v62 }
 0x1a2   : > { %v5658_v15 = vpop.eup %5657  ;;  %5683 = vrcp.f32 %v3129_v6  ;;  %v3130_v16 = vadd.f32 1.0, %v5656_v10  ;;  %v2371_v6 = vsub.f32 0.0, %v579_v58 }
 0x1a3   : > { %v5660_v21 = vpop.eup %5659  ;;  %5685 = vrcp.f32 %v1594_v11  ;;  %v1595_v22 = vadd.f32 1.0, %v5658_v15  ;;  %v1178_v19 = vmul.f32 1.442695, %v835_v5 }
 0x1a4   : > { %v5662_v25 = vpop.eup %5661  ;;  %5687 = vrcp.f32 %v3130_v16  ;;  %v3131_v26 = vadd.f32 1.0, %v5660_v21  ;;  %v2714_v20 = vmul.f32 1.442695, %v2371_v6  ;;  %v583_v6 = vld [vmem:[%s7410_s24 + $0x2d8] sm:$0xff] }
 0x1a5   : > { %v5664_v30 = vpop.eup %5663  ;;  %5689 = vrcp.f32 %v1595_v22 }
 0x1a6   : > { %v5666_v34 = vpop.eup %5665  ;;  %v3892_v35 = vsub.f32 %v5662_v25, %v5664_v30  ;;  %5691 = vrcp.f32 %v3131_v26 }
 0x1a7   : > { %v5668_v39 = vpop.eup %5667  ;;  %5693 = vpow2.f32 %v1164_v12  ;;  %v1176_v12 = vmul.f32 1.442695, %v834_v61 }
 0x1a8   : > { %v5670_v43 = vpop.eup %5669  ;;  %v4148_v44 = vadd.f32 0.5, %v3892_v35  ;;  %v3893_v45 = vsub.f32 %v5666_v34, %v5668_v39  ;;  %5695 = vpow2.f32 %v2700_v27 }
 0x1a9   : > { %v5672_v49 = vpop.eup %5671  ;;  %5697 = vpow2.f32 %v1166_v31 }
 0x1aa   : > { %v5674_v53 = vpop.eup %5673  ;;  %v4404_v54 = vmax.f32 %v4148_v44, 0.0  ;;  %v4149_v55 = vadd.f32 0.5, %v3893_v45  ;;  %v3894_v56 = vsub.f32 %v5670_v43, %v5672_v49  ;;  %5699 = vpow2.f32 %v2702_v36  ;;  %v324_v45 = vld [vmem:[%s7402_s28 + $0x2c0] sm:$0xff] }
 0x1ab   : > { %v5676_v59 = vpop.eup %5675  ;;  %5701 = vpow2.f32 %v1168_v37 }
 0x1ac   : > { %v5678_v63 = vpop.eup %5677  ;;  %4660 = vst [vmem:[%s7449_s20 + $0x240] sm:$0xff] %v4404_v54  ;;  %v4405_v0 = vmax.f32 %v4149_v55, 0.0  ;;  %v4150_v1 = vadd.f32 0.5, %v3894_v56  ;;  %v3895_v2 = vsub.f32 %v5674_v53, %v5676_v59  ;;  %5703 = vpow2.f32 %v2704_v40  ;;  %v325_v56 = vld [vmem:[%s7402_s28 + $0x2c8] sm:$0xff] }
 0x1ad   : > { %v5680_v3 = vpop.eup %5679  ;;  %5705 = vpow2.f32 %v1170_v41  ;;  %v836_v53 = vsub.f32 0.0, %v324_v45  ;;  %v581_v59 = vld [vmem:[%s7410_s24 + $0x2c8] sm:$0xff]  ;;  %v837_v5 = vsub.f32 0.0, %v325_v56 }
 0x1ae   : > { %v5682_v7 = vpop.eup %5681  ;;  %4661 = vst [vmem:[%s7449_s20 + $0x248] sm:$0xff] %v4405_v0  ;;  %v4406_v8 = vmax.f32 %v4150_v1, 0.0  ;;  %v4151_v9 = vadd.f32 0.5, %v3895_v2  ;;  %v3896_v10 = vsub.f32 %v5678_v63, %v5680_v3  ;;  %5707 = vpow2.f32 %v2706_v46  ;;  %v582_v0 = vld [vmem:[%s7410_s24 + $0x2d0] sm:$0xff]  ;;  %v327_v1 = vld [vmem:[%s7402_s28 + $0x2d8] sm:$0xff] }
 0x1af   : > { %v5684_v11 = vpop.eup %5683  ;;  %5709 = vpow2.f32 %v1172_v50  ;;  %v2372_v63 = vsub.f32 0.0, %v580_v52 }
 0x1b0   : > { %v5686_v14 = vpop.eup %5685  ;;  %4662 = vst [vmem:[%s7449_s20 + $0x250] sm:$0xff] %v4406_v8  ;;  %v4407_v15 = vmax.f32 %v4151_v9, 0.0  ;;  %v4152_v16 = vadd.f32 0.5, %v3896_v10  ;;  %v3897_v17 = vsub.f32 %v5682_v7, %v5684_v11  ;;  %5711 = vpow2.f32 %v2708_v51  ;;  %v328_v11 = vld [vmem:[%s7402_s28 + $0x2e0] sm:$0xff] }
 0x1b1   : > { %v5688_v18 = vpop.eup %5687  ;;  %5713 = vpow2.f32 %v1174_v60  ;;  %v326_v60 = vld [vmem:[%s7402_s28 + $0x2d0] sm:$0xff]  ;;  %v2373_v9 = vsub.f32 0.0, %v581_v59 }
 0x1b2   : > { %v5690_v21 = vpop.eup %5689  ;;  %4663 = vst [vmem:[%s7449_s20 + $0x258] sm:$0xff] %v4407_v15  ;;  %v4408_v22 = vmax.f32 %v4152_v16, 0.0  ;;  %v4153_v23 = vadd.f32 0.5, %v3897_v17  ;;  %v3898_v24 = vsub.f32 %v5686_v14, %v5688_v18  ;;  %5715 = vpow2.f32 %v2710_v4 }
 0x1b3   : > { %v5692_v25 = vpop.eup %5691  ;;  %5717 = vpow2.f32 %v1176_v12  ;;  %v1180_v4 = vmul.f32 1.442695, %v836_v53  ;;  %v838_v10 = vsub.f32 0.0, %v326_v60  ;;  %v584_v12 = vld [vmem:[%s7410_s24 + $0x2e0] sm:$0xff]  ;;  %v2374_v15 = vsub.f32 0.0, %v582_v0 }
 0x1b4   : > { %v5694_v26 = vpop.eup %5693  ;;  %4664 = vst [vmem:[%s7449_s20 + $0x260] sm:$0xff] %v4408_v22  ;;  %v4409_v27 = vmax.f32 %v4153_v23, 0.0  ;;  %v4154_v28 = vadd.f32 0.5, %v3898_v24  ;;  %v3899_v29 = vsub.f32 %v5690_v21, %v5692_v25  ;;  %5719 = vpow2.f32 %v2712_v13  ;;  %v329_v21 = vld [vmem:[%s7402_s28 + $0x2e8] sm:$0xff] }
 0x1b5   : > { %v5696_v30 = vpop.eup %5695  ;;  %v1596_v31 = vadd.f32 1.0, %v5694_v26  ;;  %5721 = vpow2.f32 %v1178_v19  ;;  %v839_v16 = vsub.f32 0.0, %v327_v1  ;;  %v2716_v19 = vmul.f32 1.442695, %v2372_v63 }
 0x1b6   : > { %v5698_v32 = vpop.eup %5697  ;;  %4665 = vst [vmem:[%s7449_s20 + $0x268] sm:$0xff] %v4409_v27  ;;  %v4410_v33 = vmax.f32 %v4154_v28, 0.0  ;;  %v4155_v34 = vadd.f32 0.5, %v3899_v29  ;;  %v3132_v35 = vadd.f32 1.0, %v5696_v30  ;;  %5723 = vpow2.f32 %v2714_v20  ;;  %v585_v30 = vld [vmem:[%s7410_s24 + $0x2e8] sm:$0xff] }
 0x1b7   : > { %v5700_v36 = vpop.eup %5699  ;;  %5725 = vrcp.f32 %v1596_v31  ;;  %v1597_v37 = vadd.f32 1.0, %v5698_v32  ;;  %v2375_v20 = vsub.f32 0.0, %v583_v6  ;;  %v1182_v23 = vmul.f32 1.442695, %v837_v5 }
 0x1b8   : > { %v5702_v38 = vpop.eup %5701  ;;  %4666 = vst [vmem:[%s7449_s20 + $0x270] sm:$0xff] %v4410_v33  ;;  %v4411_v39 = vmax.f32 %v4155_v34, 0.0  ;;  %5727 = vrcp.f32 %v3132_v35  ;;  %v3133_v40 = vadd.f32 1.0, %v5700_v36  ;;  %v840_v24 = vsub.f32 0.0, %v328_v11 }
 0x1b9   : > { %v5704_v41 = vpop.eup %5703  ;;  %5729 = vrcp.f32 %v1597_v37  ;;  %v1598_v42 = vadd.f32 1.0, %v5702_v38  ;;  %v2376_v25 = vsub.f32 0.0, %v584_v12  ;;  %v2718_v28 = vmul.f32 1.442695, %v2373_v9 }
 0x1ba   : > { %v5706_v43 = vpop.eup %5705  ;;  %4667 = vst [vmem:[%s7449_s20 + $0x278] sm:$0xff] %v4411_v39  ;;  %5731 = vrcp.f32 %v3133_v40  ;;  %v3134_v44 = vadd.f32 1.0, %v5704_v41  ;;  %v1184_v29 = vmul.f32 1.442695, %v838_v10  ;;  %v2720_v32 = vmul.f32 1.442695, %v2374_v15 }
 0x1bb   : > { %v5708_v46 = vpop.eup %5707  ;;  %5733 = vrcp.f32 %v1598_v42  ;;  %v1599_v47 = vadd.f32 1.0, %v5706_v43  ;;  %v1186_v33 = vmul.f32 1.442695, %v839_v16  ;;  %v841_v34 = vsub.f32 0.0, %v329_v21  ;;  %v330_v39 = vld [vmem:[%s7402_s28 + $0x2f0] sm:$0xff] }
 0x1bc   : > { %v5710_v48 = vpop.eup %5709  ;;  %5735 = vrcp.f32 %v3134_v44  ;;  %v3135_v49 = vadd.f32 1.0, %v5708_v46  ;;  %v2722_v38 = vmul.f32 1.442695, %v2375_v20  ;;  %v586_v40 = vld [vmem:[%s7410_s24 + $0x2f0] sm:$0xff]  ;;  %v1188_v42 = vmul.f32 1.442695, %v840_v24 }
 0x1bd   : > { %v5712_v50 = vpop.eup %5711  ;;  %5737 = vrcp.f32 %v1599_v47  ;;  %v1600_v51 = vadd.f32 1.0, %v5710_v48  ;;  %v2724_v43 = vmul.f32 1.442695, %v2376_v25  ;;  %v2377_v44 = vsub.f32 0.0, %v585_v30 }
 0x1be   : > { %v5714_v54 = vpop.eup %5713  ;;  %5739 = vrcp.f32 %v3135_v49  ;;  %v3136_v55 = vadd.f32 1.0, %v5712_v50  ;;  %v331_v49 = vld [vmem:[%s7402_s28 + $0x2f8] sm:$0xff]  ;;  %v1190_v52 = vmul.f32 1.442695, %v841_v34  ;;  %v842_v53 = vsub.f32 0.0, %v330_v39 }
 0x1bf   : > { %v5716_v57 = vpop.eup %5715  ;;  %5741 = vrcp.f32 %v1600_v51  ;;  %v1601_v58 = vadd.f32 1.0, %v5714_v54  ;;  %v587_v50 = vld [vmem:[%s7410_s24 + $0x2f8] sm:$0xff]  ;;  %v2378_v54 = vsub.f32 0.0, %v586_v40  ;;  %v2726_v60 = vmul.f32 1.442695, %v2377_v44  ;;  %v588_v44 = vld [vmem:[%s7410_s24 + $0x300] sm:$0xff] }
 0x1c0   : > { %v5718_v61 = vpop.eup %5717  ;;  %5743 = vrcp.f32 %v3136_v55  ;;  %v3137_v62 = vadd.f32 1.0, %v5716_v57 }
 0x1c1   : > { %v5720_v2 = vpop.eup %5719  ;;  %5745 = vrcp.f32 %v1601_v58  ;;  %v1602_v3 = vadd.f32 1.0, %v5718_v61  ;;  %v843_v61 = vsub.f32 0.0, %v331_v49  ;;  %v2728_v5 = vmul.f32 1.442695, %v2378_v54 }
 0x1c2   : > { %v5722_v7 = vpop.eup %5721  ;;  %5747 = vrcp.f32 %v3137_v62  ;;  %v3138_v8 = vadd.f32 1.0, %v5720_v2  ;;  %v2379_v62 = vsub.f32 0.0, %v587_v50 }
 0x1c3   : > { %v5724_v13 = vpop.eup %5723  ;;  %5749 = vrcp.f32 %v1602_v3  ;;  %v1603_v14 = vadd.f32 1.0, %v5722_v7  ;;  %v1194_v11 = vmul.f32 1.442695, %v843_v61 }
 0x1c4   : > { %v5726_v17 = vpop.eup %5725  ;;  %5751 = vrcp.f32 %v3138_v8  ;;  %v3139_v18 = vadd.f32 1.0, %v5724_v13  ;;  %v2730_v12 = vmul.f32 1.442695, %v2379_v62  ;;  %v591_v62 = vld [vmem:[%s7410_s24 + $0x318] sm:$0xff] }
 0x1c5   : > { %v5728_v22 = vpop.eup %5727  ;;  %5753 = vrcp.f32 %v1603_v14 }
 0x1c6   : > { %v5730_v26 = vpop.eup %5729  ;;  %v3900_v27 = vsub.f32 %v5726_v17, %v5728_v22  ;;  %5755 = vrcp.f32 %v3139_v18 }
 0x1c7   : > { %v5732_v31 = vpop.eup %5731  ;;  %5757 = vpow2.f32 %v1180_v4  ;;  %v1192_v4 = vmul.f32 1.442695, %v842_v53 }
 0x1c8   : > { %v5734_v35 = vpop.eup %5733  ;;  %v4156_v36 = vadd.f32 0.5, %v3900_v27  ;;  %v3901_v37 = vsub.f32 %v5730_v26, %v5732_v31  ;;  %5759 = vpow2.f32 %v2716_v19 }
 0x1c9   : > { %v5736_v41 = vpop.eup %5735  ;;  %5761 = vpow2.f32 %v1182_v23 }
 0x1ca   : > { %v5738_v45 = vpop.eup %5737  ;;  %v4412_v46 = vmax.f32 %v4156_v36, 0.0  ;;  %v4157_v47 = vadd.f32 0.5, %v3901_v37  ;;  %v3902_v48 = vsub.f32 %v5734_v35, %v5736_v41  ;;  %5763 = vpow2.f32 %v2718_v28  ;;  %v332_v37 = vld [vmem:[%s7402_s28 + $0x300] sm:$0xff] }
 0x1cb   : > { %v5740_v51 = vpop.eup %5739  ;;  %5765 = vpow2.f32 %v1184_v29 }
 0x1cc   : > { %v5742_v55 = vpop.eup %5741  ;;  %4668 = vst [vmem:[%s7449_s20 + $0x280] sm:$0xff] %v4412_v46  ;;  %v4413_v56 = vmax.f32 %v4157_v47, 0.0  ;;  %v4158_v57 = vadd.f32 0.5, %v3902_v48  ;;  %v3903_v58 = vsub.f32 %v5738_v45, %v5740_v51  ;;  %5767 = vpow2.f32 %v2720_v32  ;;  %v333_v48 = vld [vmem:[%s7402_s28 + $0x308] sm:$0xff] }
 0x1cd   : > { %v5744_v59 = vpop.eup %5743  ;;  %5769 = vpow2.f32 %v1186_v33  ;;  %v844_v45 = vsub.f32 0.0, %v332_v37  ;;  %v589_v51 = vld [vmem:[%s7410_s24 + $0x308] sm:$0xff]  ;;  %v845_v61 = vsub.f32 0.0, %v333_v48 }
 0x1ce   : > { %v5746_v63 = vpop.eup %5745  ;;  %4669 = vst [vmem:[%s7449_s20 + $0x288] sm:$0xff] %v4413_v56  ;;  %v4414_v0 = vmax.f32 %v4158_v57, 0.0  ;;  %v4159_v1 = vadd.f32 0.5, %v3903_v58  ;;  %v3904_v2 = vsub.f32 %v5742_v55, %v5744_v59  ;;  %5771 = vpow2.f32 %v2722_v38  ;;  %v590_v56 = vld [vmem:[%s7410_s24 + $0x310] sm:$0xff]  ;;  %v335_v57 = vld [vmem:[%s7402_s28 + $0x318] sm:$0xff] }
 0x1cf   : > { %v5748_v3 = vpop.eup %5747  ;;  %5773 = vpow2.f32 %v1188_v42  ;;  %v2380_v55 = vsub.f32 0.0, %v588_v44 }
 0x1d0   : > { %v5750_v6 = vpop.eup %5749  ;;  %4670 = vst [vmem:[%s7449_s20 + $0x290] sm:$0xff] %v4414_v0  ;;  %v4415_v7 = vmax.f32 %v4159_v1, 0.0  ;;  %v4160_v8 = vadd.f32 0.5, %v3904_v2  ;;  %v3905_v9 = vsub.f32 %v5746_v63, %v5748_v3  ;;  %5775 = vpow2.f32 %v2724_v43  ;;  %v336_v3 = vld [vmem:[%s7402_s28 + $0x320] sm:$0xff] }
 0x1d1   : > { %v5752_v10 = vpop.eup %5751  ;;  %5777 = vpow2.f32 %v1190_v52  ;;  %v334_v52 = vld [vmem:[%s7402_s28 + $0x310] sm:$0xff]  ;;  %v2381_v1 = vsub.f32 0.0, %v589_v51 }
 0x1d2   : > { %v5754_v13 = vpop.eup %5753  ;;  %4671 = vst [vmem:[%s7449_s20 + $0x298] sm:$0xff] %v4415_v7  ;;  %v4416_v14 = vmax.f32 %v4160_v8, 0.0  ;;  %v4161_v15 = vadd.f32 0.5, %v3905_v9  ;;  %v3906_v16 = vsub.f32 %v5750_v6, %v5752_v10  ;;  %5779 = vpow2.f32 %v2726_v60 }
 0x1d3   : > { %v5756_v17 = vpop.eup %5755  ;;  %5781 = vpow2.f32 %v1192_v4  ;;  %v1196_v60 = vmul.f32 1.442695, %v844_v45  ;;  %v846_v2 = vsub.f32 0.0, %v334_v52  ;;  %v592_v4 = vld [vmem:[%s7410_s24 + $0x320] sm:$0xff]  ;;  %v2382_v7 = vsub.f32 0.0, %v590_v56 }
 0x1d4   : > { %v5758_v18 = vpop.eup %5757  ;;  %4672 = vst [vmem:[%s7449_s20 + $0x2a0] sm:$0xff] %v4416_v14  ;;  %v4417_v19 = vmax.f32 %v4161_v15, 0.0  ;;  %v4162_v20 = vadd.f32 0.5, %v3906_v16  ;;  %v3907_v21 = vsub.f32 %v5754_v13, %v5756_v17  ;;  %5783 = vpow2.f32 %v2728_v5  ;;  %v337_v13 = vld [vmem:[%s7402_s28 + $0x328] sm:$0xff] }
 0x1d5   : > { %v5760_v22 = vpop.eup %5759  ;;  %v1604_v23 = vadd.f32 1.0, %v5758_v18  ;;  %5785 = vpow2.f32 %v1194_v11  ;;  %v847_v8 = vsub.f32 0.0, %v335_v57  ;;  %v2732_v11 = vmul.f32 1.442695, %v2380_v55 }
 0x1d6   : > { %v5762_v24 = vpop.eup %5761  ;;  %4673 = vst [vmem:[%s7449_s20 + $0x2a8] sm:$0xff] %v4417_v19  ;;  %v4418_v25 = vmax.f32 %v4162_v20, 0.0  ;;  %v4163_v26 = vadd.f32 0.5, %v3907_v21  ;;  %v3140_v27 = vadd.f32 1.0, %v5760_v22  ;;  %5787 = vpow2.f32 %v2730_v12  ;;  %v593_v22 = vld [vmem:[%s7410_s24 + $0x328] sm:$0xff] }
 0x1d7   : > { %v5764_v28 = vpop.eup %5763  ;;  %5789 = vrcp.f32 %v1604_v23  ;;  %v1605_v29 = vadd.f32 1.0, %v5762_v24  ;;  %v2383_v12 = vsub.f32 0.0, %v591_v62  ;;  %v1198_v15 = vmul.f32 1.442695, %v845_v61 }
 0x1d8   : > { %v5766_v30 = vpop.eup %5765  ;;  %4674 = vst [vmem:[%s7449_s20 + $0x2b0] sm:$0xff] %v4418_v25  ;;  %v4419_v31 = vmax.f32 %v4163_v26, 0.0  ;;  %5791 = vrcp.f32 %v3140_v27  ;;  %v3141_v32 = vadd.f32 1.0, %v5764_v28  ;;  %v848_v16 = vsub.f32 0.0, %v336_v3 }
 0x1d9   : > { %v5768_v33 = vpop.eup %5767  ;;  %5793 = vrcp.f32 %v1605_v29  ;;  %v1606_v34 = vadd.f32 1.0, %v5766_v30  ;;  %v2384_v17 = vsub.f32 0.0, %v592_v4  ;;  %v2734_v20 = vmul.f32 1.442695, %v2381_v1 }
 0x1da   : > { %v5770_v35 = vpop.eup %5769  ;;  %4675 = vst [vmem:[%s7449_s20 + $0x2b8] sm:$0xff] %v4419_v31  ;;  %5795 = vrcp.f32 %v3141_v32  ;;  %v3142_v36 = vadd.f32 1.0, %v5768_v33  ;;  %v1200_v21 = vmul.f32 1.442695, %v846_v2  ;;  %v2736_v24 = vmul.f32 1.442695, %v2382_v7 }
 0x1db   : > { %v5772_v38 = vpop.eup %5771  ;;  %5797 = vrcp.f32 %v1606_v34  ;;  %v1607_v39 = vadd.f32 1.0, %v5770_v35  ;;  %v1202_v25 = vmul.f32 1.442695, %v847_v8  ;;  %v849_v26 = vsub.f32 0.0, %v337_v13  ;;  %v338_v31 = vld [vmem:[%s7402_s28 + $0x330] sm:$0xff] }
 0x1dc   : > { %v5774_v40 = vpop.eup %5773  ;;  %5799 = vrcp.f32 %v3142_v36  ;;  %v3143_v41 = vadd.f32 1.0, %v5772_v38  ;;  %v2738_v30 = vmul.f32 1.442695, %v2383_v12  ;;  %v594_v32 = vld [vmem:[%s7410_s24 + $0x330] sm:$0xff]  ;;  %v1204_v34 = vmul.f32 1.442695, %v848_v16 }
 0x1dd   : > { %v5776_v42 = vpop.eup %5775  ;;  %5801 = vrcp.f32 %v1607_v39  ;;  %v1608_v43 = vadd.f32 1.0, %v5774_v40  ;;  %v2740_v35 = vmul.f32 1.442695, %v2384_v17  ;;  %v2385_v36 = vsub.f32 0.0, %v593_v22 }
 0x1de   : > { %v5778_v46 = vpop.eup %5777  ;;  %5803 = vrcp.f32 %v3143_v41  ;;  %v3144_v47 = vadd.f32 1.0, %v5776_v42  ;;  %v339_v41 = vld [vmem:[%s7402_s28 + $0x338] sm:$0xff]  ;;  %v1206_v44 = vmul.f32 1.442695, %v849_v26  ;;  %v850_v45 = vsub.f32 0.0, %v338_v31 }
 0x1df   : > { %v5780_v49 = vpop.eup %5779  ;;  %5805 = vrcp.f32 %v1608_v43  ;;  %v1609_v50 = vadd.f32 1.0, %v5778_v46  ;;  %v595_v42 = vld [vmem:[%s7410_s24 + $0x338] sm:$0xff]  ;;  %v2386_v46 = vsub.f32 0.0, %v594_v32  ;;  %v2742_v52 = vmul.f32 1.442695, %v2385_v36  ;;  %v596_v36 = vld [vmem:[%s7410_s24 + $0x340] sm:$0xff] }
 0x1e0   : > { %v5782_v53 = vpop.eup %5781  ;;  %5807 = vrcp.f32 %v3144_v47  ;;  %v3145_v54 = vadd.f32 1.0, %v5780_v49 }
 0x1e1   : > { %v5784_v58 = vpop.eup %5783  ;;  %5809 = vrcp.f32 %v1609_v50  ;;  %v1610_v59 = vadd.f32 1.0, %v5782_v53  ;;  %v851_v53 = vsub.f32 0.0, %v339_v41  ;;  %v2744_v61 = vmul.f32 1.442695, %v2386_v46 }
 0x1e2   : > { %v5786_v63 = vpop.eup %5785  ;;  %5811 = vrcp.f32 %v3145_v54  ;;  %v3146_v0 = vadd.f32 1.0, %v5784_v58  ;;  %v2387_v54 = vsub.f32 0.0, %v595_v42 }
 0x1e3   : > { %v5788_v5 = vpop.eup %5787  ;;  %5813 = vrcp.f32 %v1610_v59  ;;  %v1611_v6 = vadd.f32 1.0, %v5786_v63  ;;  %v1210_v3 = vmul.f32 1.442695, %v851_v53 }
 0x1e4   : > { %v5790_v9 = vpop.eup %5789  ;;  %5815 = vrcp.f32 %v3146_v0  ;;  %v3147_v10 = vadd.f32 1.0, %v5788_v5  ;;  %v2746_v4 = vmul.f32 1.442695, %v2387_v54  ;;  %v599_v54 = vld [vmem:[%s7410_s24 + $0x358] sm:$0xff] }
 0x1e5   : > { %v5792_v14 = vpop.eup %5791  ;;  %5817 = vrcp.f32 %v1611_v6 }
 0x1e6   : > { %v5794_v18 = vpop.eup %5793  ;;  %v3908_v19 = vsub.f32 %v5790_v9, %v5792_v14  ;;  %5819 = vrcp.f32 %v3147_v10 }
 0x1e7   : > { %v5796_v23 = vpop.eup %5795  ;;  %5821 = vpow2.f32 %v1196_v60  ;;  %v1208_v60 = vmul.f32 1.442695, %v850_v45 }
 0x1e8   : > { %v5798_v27 = vpop.eup %5797  ;;  %v4164_v28 = vadd.f32 0.5, %v3908_v19  ;;  %v3909_v29 = vsub.f32 %v5794_v18, %v5796_v23  ;;  %5823 = vpow2.f32 %v2732_v11 }
 0x1e9   : > { %v5800_v33 = vpop.eup %5799  ;;  %5825 = vpow2.f32 %v1198_v15 }
 0x1ea   : > { %v5802_v37 = vpop.eup %5801  ;;  %v4420_v38 = vmax.f32 %v4164_v28, 0.0  ;;  %v4165_v39 = vadd.f32 0.5, %v3909_v29  ;;  %v3910_v40 = vsub.f32 %v5798_v27, %v5800_v33  ;;  %5827 = vpow2.f32 %v2734_v20  ;;  %v340_v29 = vld [vmem:[%s7402_s28 + $0x340] sm:$0xff] }
 0x1eb   : > { %v5804_v43 = vpop.eup %5803  ;;  %5829 = vpow2.f32 %v1200_v21 }
 0x1ec   : > { %v5806_v47 = vpop.eup %5805  ;;  %4676 = vst [vmem:[%s7449_s20 + $0x2c0] sm:$0xff] %v4420_v38  ;;  %v4421_v48 = vmax.f32 %v4165_v39, 0.0  ;;  %v4166_v49 = vadd.f32 0.5, %v3910_v40  ;;  %v3911_v50 = vsub.f32 %v5802_v37, %v5804_v43  ;;  %5831 = vpow2.f32 %v2736_v24  ;;  %v341_v40 = vld [vmem:[%s7402_s28 + $0x348] sm:$0xff] }
 0x1ed   : > { %v5808_v51 = vpop.eup %5807  ;;  %5833 = vpow2.f32 %v1202_v25  ;;  %v852_v37 = vsub.f32 0.0, %v340_v29  ;;  %v597_v43 = vld [vmem:[%s7410_s24 + $0x348] sm:$0xff]  ;;  %v853_v53 = vsub.f32 0.0, %v341_v40 }
 0x1ee   : > { %v5810_v55 = vpop.eup %5809  ;;  %4677 = vst [vmem:[%s7449_s20 + $0x2c8] sm:$0xff] %v4421_v48  ;;  %v4422_v56 = vmax.f32 %v4166_v49, 0.0  ;;  %v4167_v57 = vadd.f32 0.5, %v3911_v50  ;;  %v3912_v58 = vsub.f32 %v5806_v47, %v5808_v51  ;;  %5835 = vpow2.f32 %v2738_v30  ;;  %v598_v48 = vld [vmem:[%s7410_s24 + $0x350] sm:$0xff]  ;;  %v343_v49 = vld [vmem:[%s7402_s28 + $0x358] sm:$0xff] }
 0x1ef   : > { %v5812_v59 = vpop.eup %5811  ;;  %5837 = vpow2.f32 %v1204_v34  ;;  %v2388_v47 = vsub.f32 0.0, %v596_v36 }
 0x1f0   : > { %v5814_v62 = vpop.eup %5813  ;;  %4678 = vst [vmem:[%s7449_s20 + $0x2d0] sm:$0xff] %v4422_v56  ;;  %v4423_v63 = vmax.f32 %v4167_v57, 0.0  ;;  %v4168_v0 = vadd.f32 0.5, %v3912_v58  ;;  %v3913_v1 = vsub.f32 %v5810_v55, %v5812_v59  ;;  %5839 = vpow2.f32 %v2740_v35  ;;  %v344_v59 = vld [vmem:[%s7402_s28 + $0x360] sm:$0xff] }
 0x1f1   : > { %v5816_v2 = vpop.eup %5815  ;;  %5841 = vpow2.f32 %v1206_v44  ;;  %v342_v44 = vld [vmem:[%s7402_s28 + $0x350] sm:$0xff]  ;;  %v2389_v57 = vsub.f32 0.0, %v597_v43 }
 0x1f2   : > { %v5818_v5 = vpop.eup %5817  ;;  %4679 = vst [vmem:[%s7449_s20 + $0x2d8] sm:$0xff] %v4423_v63  ;;  %v4424_v6 = vmax.f32 %v4168_v0, 0.0  ;;  %v4169_v7 = vadd.f32 0.5, %v3913_v1  ;;  %v3914_v8 = vsub.f32 %v5814_v62, %v5816_v2  ;;  %5843 = vpow2.f32 %v2742_v52 }
 0x1f3   : > { %v5820_v9 = vpop.eup %5819  ;;  %5845 = vpow2.f32 %v1208_v60  ;;  %v1212_v52 = vmul.f32 1.442695, %v852_v37  ;;  %v854_v58 = vsub.f32 0.0, %v342_v44  ;;  %v600_v60 = vld [vmem:[%s7410_s24 + $0x360] sm:$0xff]  ;;  %v2390_v63 = vsub.f32 0.0, %v598_v48 }
 0x1f4   : > { %v5822_v10 = vpop.eup %5821  ;;  %4680 = vst [vmem:[%s7449_s20 + $0x2e0] sm:$0xff] %v4424_v6  ;;  %v4425_v11 = vmax.f32 %v4169_v7, 0.0  ;;  %v4170_v12 = vadd.f32 0.5, %v3914_v8  ;;  %v3915_v13 = vsub.f32 %v5818_v5, %v5820_v9  ;;  %5847 = vpow2.f32 %v2744_v61  ;;  %v345_v5 = vld [vmem:[%s7402_s28 + $0x368] sm:$0xff] }
 0x1f5   : > { %v5824_v14 = vpop.eup %5823  ;;  %v1612_v15 = vadd.f32 1.0, %v5822_v10  ;;  %5849 = vpow2.f32 %v1210_v3  ;;  %v855_v0 = vsub.f32 0.0, %v343_v49  ;;  %v2748_v3 = vmul.f32 1.442695, %v2388_v47 }
 0x1f6   : > { %v5826_v16 = vpop.eup %5825  ;;  %4681 = vst [vmem:[%s7449_s20 + $0x2e8] sm:$0xff] %v4425_v11  ;;  %v4426_v17 = vmax.f32 %v4170_v12, 0.0  ;;  %v4171_v18 = vadd.f32 0.5, %v3915_v13  ;;  %v3148_v19 = vadd.f32 1.0, %v5824_v14  ;;  %5851 = vpow2.f32 %v2746_v4  ;;  %v601_v14 = vld [vmem:[%s7410_s24 + $0x368] sm:$0xff] }
 0x1f7   : > { %v5828_v20 = vpop.eup %5827  ;;  %5853 = vrcp.f32 %v1612_v15  ;;  %v1613_v21 = vadd.f32 1.0, %v5826_v16  ;;  %v2391_v4 = vsub.f32 0.0, %v599_v54  ;;  %v1214_v7 = vmul.f32 1.442695, %v853_v53 }
 0x1f8   : > { %v5830_v22 = vpop.eup %5829  ;;  %4682 = vst [vmem:[%s7449_s20 + $0x2f0] sm:$0xff] %v4426_v17  ;;  %v4427_v23 = vmax.f32 %v4171_v18, 0.0  ;;  %5855 = vrcp.f32 %v3148_v19  ;;  %v3149_v24 = vadd.f32 1.0, %v5828_v20  ;;  %v856_v8 = vsub.f32 0.0, %v344_v59 }
 0x1f9   : > { %v5832_v25 = vpop.eup %5831  ;;  %5857 = vrcp.f32 %v1613_v21  ;;  %v1614_v26 = vadd.f32 1.0, %v5830_v22  ;;  %v2392_v9 = vsub.f32 0.0, %v600_v60  ;;  %v2750_v12 = vmul.f32 1.442695, %v2389_v57 }
 0x1fa   : > { %v5834_v27 = vpop.eup %5833  ;;  %4683 = vst [vmem:[%s7449_s20 + $0x2f8] sm:$0xff] %v4427_v23  ;;  %5859 = vrcp.f32 %v3149_v24  ;;  %v3150_v28 = vadd.f32 1.0, %v5832_v25  ;;  %v1216_v13 = vmul.f32 1.442695, %v854_v58  ;;  %v2752_v16 = vmul.f32 1.442695, %v2390_v63 }
 0x1fb   : > { %v5836_v30 = vpop.eup %5835  ;;  %5861 = vrcp.f32 %v1614_v26  ;;  %v1615_v31 = vadd.f32 1.0, %v5834_v27  ;;  %v1218_v17 = vmul.f32 1.442695, %v855_v0  ;;  %v857_v18 = vsub.f32 0.0, %v345_v5  ;;  %v346_v23 = vld [vmem:[%s7402_s28 + $0x370] sm:$0xff] }
 0x1fc   : > { %v5838_v32 = vpop.eup %5837  ;;  %5863 = vrcp.f32 %v3150_v28  ;;  %v3151_v33 = vadd.f32 1.0, %v5836_v30  ;;  %v2754_v22 = vmul.f32 1.442695, %v2391_v4  ;;  %v602_v24 = vld [vmem:[%s7410_s24 + $0x370] sm:$0xff]  ;;  %v1220_v26 = vmul.f32 1.442695, %v856_v8 }
 0x1fd   : > { %v5840_v34 = vpop.eup %5839  ;;  %5865 = vrcp.f32 %v1615_v31  ;;  %v1616_v35 = vadd.f32 1.0, %v5838_v32  ;;  %v2756_v27 = vmul.f32 1.442695, %v2392_v9  ;;  %v2393_v28 = vsub.f32 0.0, %v601_v14 }
 0x1fe   : > { %v5842_v38 = vpop.eup %5841  ;;  %5867 = vrcp.f32 %v3151_v33  ;;  %v3152_v39 = vadd.f32 1.0, %v5840_v34  ;;  %v347_v33 = vld [vmem:[%s7402_s28 + $0x378] sm:$0xff]  ;;  %v1222_v36 = vmul.f32 1.442695, %v857_v18  ;;  %v858_v37 = vsub.f32 0.0, %v346_v23 }
 0x1ff   : > { %v5844_v41 = vpop.eup %5843  ;;  %5869 = vrcp.f32 %v1616_v35  ;;  %v1617_v42 = vadd.f32 1.0, %v5842_v38  ;;  %v603_v34 = vld [vmem:[%s7410_s24 + $0x378] sm:$0xff]  ;;  %v2394_v38 = vsub.f32 0.0, %v602_v24  ;;  %v2758_v44 = vmul.f32 1.442695, %v2393_v28  ;;  %v604_v28 = vld [vmem:[%s7410_s24 + $0x380] sm:$0xff] }
 0x200   : > { %v5846_v45 = vpop.eup %5845  ;;  %5871 = vrcp.f32 %v3152_v39  ;;  %v3153_v46 = vadd.f32 1.0, %v5844_v41 }
 0x201   : > { %v5848_v50 = vpop.eup %5847  ;;  %5873 = vrcp.f32 %v1617_v42  ;;  %v1618_v51 = vadd.f32 1.0, %v5846_v45  ;;  %v859_v45 = vsub.f32 0.0, %v347_v33  ;;  %v2760_v53 = vmul.f32 1.442695, %v2394_v38 }
 0x202   : > { %v5850_v55 = vpop.eup %5849  ;;  %5875 = vrcp.f32 %v3153_v46  ;;  %v3154_v56 = vadd.f32 1.0, %v5848_v50  ;;  %v2395_v46 = vsub.f32 0.0, %v603_v34 }
 0x203   : > { %v5852_v61 = vpop.eup %5851  ;;  %5877 = vrcp.f32 %v1618_v51  ;;  %v1619_v62 = vadd.f32 1.0, %v5850_v55  ;;  %v1226_v59 = vmul.f32 1.442695, %v859_v45 }
 0x204   : > { %v5854_v1 = vpop.eup %5853  ;;  %5879 = vrcp.f32 %v3154_v56  ;;  %v3155_v2 = vadd.f32 1.0, %v5852_v61  ;;  %v2762_v60 = vmul.f32 1.442695, %v2395_v46  ;;  %v607_v46 = vld [vmem:[%s7410_s24 + $0x398] sm:$0xff] }
 0x205   : > { %v5856_v6 = vpop.eup %5855  ;;  %5881 = vrcp.f32 %v1619_v62 }
 0x206   : > { %v5858_v10 = vpop.eup %5857  ;;  %v3916_v11 = vsub.f32 %v5854_v1, %v5856_v6  ;;  %5883 = vrcp.f32 %v3155_v2 }
 0x207   : > { %v5860_v15 = vpop.eup %5859  ;;  %5885 = vpow2.f32 %v1212_v52  ;;  %v1224_v52 = vmul.f32 1.442695, %v858_v37 }
 0x208   : > { %v5862_v19 = vpop.eup %5861  ;;  %v4172_v20 = vadd.f32 0.5, %v3916_v11  ;;  %v3917_v21 = vsub.f32 %v5858_v10, %v5860_v15  ;;  %5887 = vpow2.f32 %v2748_v3 }
 0x209   : > { %v5864_v25 = vpop.eup %5863  ;;  %5889 = vpow2.f32 %v1214_v7 }
 0x20a   : > { %v5866_v29 = vpop.eup %5865  ;;  %v4428_v30 = vmax.f32 %v4172_v20, 0.0  ;;  %v4173_v31 = vadd.f32 0.5, %v3917_v21  ;;  %v3918_v32 = vsub.f32 %v5862_v19, %v5864_v25  ;;  %5891 = vpow2.f32 %v2750_v12  ;;  %v348_v21 = vld [vmem:[%s7402_s28 + $0x380] sm:$0xff] }
 0x20b   : > { %v5868_v35 = vpop.eup %5867  ;;  %5893 = vpow2.f32 %v1216_v13 }
 0x20c   : > { %v5870_v39 = vpop.eup %5869  ;;  %4684 = vst [vmem:[%s7449_s20 + $0x300] sm:$0xff] %v4428_v30  ;;  %v4429_v40 = vmax.f32 %v4173_v31, 0.0  ;;  %v4174_v41 = vadd.f32 0.5, %v3918_v32  ;;  %v3919_v42 = vsub.f32 %v5866_v29, %v5868_v35  ;;  %5895 = vpow2.f32 %v2752_v16  ;;  %v349_v32 = vld [vmem:[%s7402_s28 + $0x388] sm:$0xff] }
 0x20d   : > { %v5872_v43 = vpop.eup %5871  ;;  %5897 = vpow2.f32 %v1218_v17  ;;  %v860_v29 = vsub.f32 0.0, %v348_v21  ;;  %v605_v35 = vld [vmem:[%s7410_s24 + $0x388] sm:$0xff]  ;;  %v861_v45 = vsub.f32 0.0, %v349_v32 }
 0x20e   : > { %v5874_v47 = vpop.eup %5873  ;;  %4685 = vst [vmem:[%s7449_s20 + $0x308] sm:$0xff] %v4429_v40  ;;  %v4430_v48 = vmax.f32 %v4174_v41, 0.0  ;;  %v4175_v49 = vadd.f32 0.5, %v3919_v42  ;;  %v3920_v50 = vsub.f32 %v5870_v39, %v5872_v43  ;;  %5899 = vpow2.f32 %v2754_v22  ;;  %v606_v40 = vld [vmem:[%s7410_s24 + $0x390] sm:$0xff]  ;;  %v351_v41 = vld [vmem:[%s7402_s28 + $0x398] sm:$0xff] }
 0x20f   : > { %v5876_v51 = vpop.eup %5875  ;;  %5901 = vpow2.f32 %v1220_v26  ;;  %v2396_v39 = vsub.f32 0.0, %v604_v28 }
 0x210   : > { %v5878_v54 = vpop.eup %5877  ;;  %4686 = vst [vmem:[%s7449_s20 + $0x310] sm:$0xff] %v4430_v48  ;;  %v4431_v55 = vmax.f32 %v4175_v49, 0.0  ;;  %v4176_v56 = vadd.f32 0.5, %v3920_v50  ;;  %v3921_v57 = vsub.f32 %v5874_v47, %v5876_v51  ;;  %5903 = vpow2.f32 %v2756_v27  ;;  %v352_v51 = vld [vmem:[%s7402_s28 + $0x3a0] sm:$0xff] }
 0x211   : > { %v5880_v58 = vpop.eup %5879  ;;  %5905 = vpow2.f32 %v1222_v36  ;;  %v350_v36 = vld [vmem:[%s7402_s28 + $0x390] sm:$0xff]  ;;  %v2397_v49 = vsub.f32 0.0, %v605_v35 }
 0x212   : > { %v5882_v61 = vpop.eup %5881  ;;  %4687 = vst [vmem:[%s7449_s20 + $0x318] sm:$0xff] %v4431_v55  ;;  %v4432_v62 = vmax.f32 %v4176_v56, 0.0  ;;  %v4177_v63 = vadd.f32 0.5, %v3921_v57  ;;  %v3922_v0 = vsub.f32 %v5878_v54, %v5880_v58  ;;  %5907 = vpow2.f32 %v2758_v44 }
 0x213   : > { %v5884_v1 = vpop.eup %5883  ;;  %5909 = vpow2.f32 %v1224_v52  ;;  %v1228_v44 = vmul.f32 1.442695, %v860_v29  ;;  %v862_v50 = vsub.f32 0.0, %v350_v36  ;;  %v608_v52 = vld [vmem:[%s7410_s24 + $0x3a0] sm:$0xff]  ;;  %v2398_v55 = vsub.f32 0.0, %v606_v40 }
 0x214   : > { %v5886_v2 = vpop.eup %5885  ;;  %4688 = vst [vmem:[%s7449_s20 + $0x320] sm:$0xff] %v4432_v62  ;;  %v4433_v3 = vmax.f32 %v4177_v63, 0.0  ;;  %v4178_v4 = vadd.f32 0.5, %v3922_v0  ;;  %v3923_v5 = vsub.f32 %v5882_v61, %v5884_v1  ;;  %5911 = vpow2.f32 %v2760_v53  ;;  %v353_v61 = vld [vmem:[%s7402_s28 + $0x3a8] sm:$0xff] }
 0x215   : > { %v5888_v6 = vpop.eup %5887  ;;  %v1620_v7 = vadd.f32 1.0, %v5886_v2  ;;  %5913 = vpow2.f32 %v1226_v59  ;;  %v863_v56 = vsub.f32 0.0, %v351_v41  ;;  %v2764_v59 = vmul.f32 1.442695, %v2396_v39 }
 0x216   : > { %v5890_v8 = vpop.eup %5889  ;;  %4689 = vst [vmem:[%s7449_s20 + $0x328] sm:$0xff] %v4433_v3  ;;  %v4434_v9 = vmax.f32 %v4178_v4, 0.0  ;;  %v4179_v10 = vadd.f32 0.5, %v3923_v5  ;;  %v3156_v11 = vadd.f32 1.0, %v5888_v6  ;;  %5915 = vpow2.f32 %v2762_v60  ;;  %v609_v6 = vld [vmem:[%s7410_s24 + $0x3a8] sm:$0xff] }
 0x217   : > { %v5892_v12 = vpop.eup %5891  ;;  %5917 = vrcp.f32 %v1620_v7  ;;  %v1621_v13 = vadd.f32 1.0, %v5890_v8  ;;  %v2399_v60 = vsub.f32 0.0, %v607_v46  ;;  %v1230_v63 = vmul.f32 1.442695, %v861_v45 }
 0x218   : > { %v5894_v14 = vpop.eup %5893  ;;  %4690 = vst [vmem:[%s7449_s20 + $0x330] sm:$0xff] %v4434_v9  ;;  %v4435_v15 = vmax.f32 %v4179_v10, 0.0  ;;  %5919 = vrcp.f32 %v3156_v11  ;;  %v3157_v16 = vadd.f32 1.0, %v5892_v12  ;;  %v864_v0 = vsub.f32 0.0, %v352_v51 }
 0x219   : > { %v5896_v17 = vpop.eup %5895  ;;  %5921 = vrcp.f32 %v1621_v13  ;;  %v1622_v18 = vadd.f32 1.0, %v5894_v14  ;;  %v2400_v1 = vsub.f32 0.0, %v608_v52  ;;  %v2766_v4 = vmul.f32 1.442695, %v2397_v49 }
 0x21a   : > { %v5898_v19 = vpop.eup %5897  ;;  %4691 = vst [vmem:[%s7449_s20 + $0x338] sm:$0xff] %v4435_v15  ;;  %5923 = vrcp.f32 %v3157_v16  ;;  %v3158_v20 = vadd.f32 1.0, %v5896_v17  ;;  %v1232_v5 = vmul.f32 1.442695, %v862_v50  ;;  %v2768_v8 = vmul.f32 1.442695, %v2398_v55 }
 0x21b   : > { %v5900_v22 = vpop.eup %5899  ;;  %5925 = vrcp.f32 %v1622_v18  ;;  %v1623_v23 = vadd.f32 1.0, %v5898_v19  ;;  %v1234_v9 = vmul.f32 1.442695, %v863_v56  ;;  %v865_v10 = vsub.f32 0.0, %v353_v61  ;;  %v354_v15 = vld [vmem:[%s7402_s28 + $0x3b0] sm:$0xff] }
 0x21c   : > { %v5902_v24 = vpop.eup %5901  ;;  %5927 = vrcp.f32 %v3158_v20  ;;  %v3159_v25 = vadd.f32 1.0, %v5900_v22  ;;  %v2770_v14 = vmul.f32 1.442695, %v2399_v60  ;;  %v610_v16 = vld [vmem:[%s7410_s24 + $0x3b0] sm:$0xff]  ;;  %v1236_v18 = vmul.f32 1.442695, %v864_v0 }
 0x21d   : > { %v5904_v26 = vpop.eup %5903  ;;  %5929 = vrcp.f32 %v1623_v23  ;;  %v1624_v27 = vadd.f32 1.0, %v5902_v24  ;;  %v2772_v19 = vmul.f32 1.442695, %v2400_v1  ;;  %v2401_v20 = vsub.f32 0.0, %v609_v6 }
 0x21e   : > { %v5906_v30 = vpop.eup %5905  ;;  %5931 = vrcp.f32 %v3159_v25  ;;  %v3160_v31 = vadd.f32 1.0, %v5904_v26  ;;  %v355_v25 = vld [vmem:[%s7402_s28 + $0x3b8] sm:$0xff]  ;;  %v1238_v28 = vmul.f32 1.442695, %v865_v10  ;;  %v866_v29 = vsub.f32 0.0, %v354_v15 }
 0x21f   : > { %v5908_v33 = vpop.eup %5907  ;;  %5933 = vrcp.f32 %v1624_v27  ;;  %v1625_v34 = vadd.f32 1.0, %v5906_v30  ;;  %v611_v26 = vld [vmem:[%s7410_s24 + $0x3b8] sm:$0xff]  ;;  %v2402_v30 = vsub.f32 0.0, %v610_v16  ;;  %v2774_v36 = vmul.f32 1.442695, %v2401_v20  ;;  %v612_v20 = vld [vmem:[%s7410_s24 + $0x3c0] sm:$0xff] }
 0x220   : > { %v5910_v37 = vpop.eup %5909  ;;  %5935 = vrcp.f32 %v3160_v31  ;;  %v3161_v38 = vadd.f32 1.0, %v5908_v33 }
 0x221   : > { %v5912_v42 = vpop.eup %5911  ;;  %5937 = vrcp.f32 %v1625_v34  ;;  %v1626_v43 = vadd.f32 1.0, %v5910_v37  ;;  %v867_v37 = vsub.f32 0.0, %v355_v25  ;;  %v2776_v45 = vmul.f32 1.442695, %v2402_v30 }
 0x222   : > { %v5914_v47 = vpop.eup %5913  ;;  %5939 = vrcp.f32 %v3161_v38  ;;  %v3162_v48 = vadd.f32 1.0, %v5912_v42  ;;  %v2403_v38 = vsub.f32 0.0, %v611_v26 }
 0x223   : > { %v5916_v53 = vpop.eup %5915  ;;  %5941 = vrcp.f32 %v1626_v43  ;;  %v1627_v54 = vadd.f32 1.0, %v5914_v47  ;;  %v1242_v51 = vmul.f32 1.442695, %v867_v37 }
 0x224   : > { %v5918_v57 = vpop.eup %5917  ;;  %5943 = vrcp.f32 %v3162_v48  ;;  %v3163_v58 = vadd.f32 1.0, %v5916_v53  ;;  %v2778_v52 = vmul.f32 1.442695, %v2403_v38  ;;  %v615_v38 = vld [vmem:[%s7410_s24 + $0x3d8] sm:$0xff] }
 0x225   : > { %v5920_v62 = vpop.eup %5919  ;;  %5945 = vrcp.f32 %v1627_v54 }
 0x226   : > { %v5922_v2 = vpop.eup %5921  ;;  %v3924_v3 = vsub.f32 %v5918_v57, %v5920_v62  ;;  %5947 = vrcp.f32 %v3163_v58 }
 0x227   : > { %v5924_v7 = vpop.eup %5923  ;;  %5949 = vpow2.f32 %v1228_v44  ;;  %v1240_v44 = vmul.f32 1.442695, %v866_v29 }
 0x228   : > { %v5926_v11 = vpop.eup %5925  ;;  %v4180_v12 = vadd.f32 0.5, %v3924_v3  ;;  %v3925_v13 = vsub.f32 %v5922_v2, %v5924_v7  ;;  %5951 = vpow2.f32 %v2764_v59 }
 0x229   : > { %v5928_v17 = vpop.eup %5927  ;;  %5953 = vpow2.f32 %v1230_v63 }
 0x22a   : > { %v5930_v21 = vpop.eup %5929  ;;  %v4436_v22 = vmax.f32 %v4180_v12, 0.0  ;;  %v4181_v23 = vadd.f32 0.5, %v3925_v13  ;;  %v3926_v24 = vsub.f32 %v5926_v11, %v5928_v17  ;;  %5955 = vpow2.f32 %v2766_v4  ;;  %v356_v13 = vld [vmem:[%s7402_s28 + $0x3c0] sm:$0xff] }
 0x22b   : > { %v5932_v27 = vpop.eup %5931  ;;  %5957 = vpow2.f32 %v1232_v5 }
 0x22c   : > { %v5934_v31 = vpop.eup %5933  ;;  %4692 = vst [vmem:[%s7449_s20 + $0x340] sm:$0xff] %v4436_v22  ;;  %v4437_v32 = vmax.f32 %v4181_v23, 0.0  ;;  %v4182_v33 = vadd.f32 0.5, %v3926_v24  ;;  %v3927_v34 = vsub.f32 %v5930_v21, %v5932_v27  ;;  %5959 = vpow2.f32 %v2768_v8  ;;  %v357_v24 = vld [vmem:[%s7402_s28 + $0x3c8] sm:$0xff] }
 0x22d   : > { %v5936_v35 = vpop.eup %5935  ;;  %5961 = vpow2.f32 %v1234_v9  ;;  %v868_v21 = vsub.f32 0.0, %v356_v13  ;;  %v613_v27 = vld [vmem:[%s7410_s24 + $0x3c8] sm:$0xff]  ;;  %v869_v37 = vsub.f32 0.0, %v357_v24 }
 0x22e   : > { %v5938_v39 = vpop.eup %5937  ;;  %4693 = vst [vmem:[%s7449_s20 + $0x348] sm:$0xff] %v4437_v32  ;;  %v4438_v40 = vmax.f32 %v4182_v33, 0.0  ;;  %v4183_v41 = vadd.f32 0.5, %v3927_v34  ;;  %v3928_v42 = vsub.f32 %v5934_v31, %v5936_v35  ;;  %5963 = vpow2.f32 %v2770_v14  ;;  %v614_v32 = vld [vmem:[%s7410_s24 + $0x3d0] sm:$0xff]  ;;  %v359_v33 = vld [vmem:[%s7402_s28 + $0x3d8] sm:$0xff] }
 0x22f   : > { %v5940_v43 = vpop.eup %5939  ;;  %5965 = vpow2.f32 %v1236_v18  ;;  %v2404_v31 = vsub.f32 0.0, %v612_v20 }
 0x230   : > { %v5942_v46 = vpop.eup %5941  ;;  %4694 = vst [vmem:[%s7449_s20 + $0x350] sm:$0xff] %v4438_v40  ;;  %v4439_v47 = vmax.f32 %v4183_v41, 0.0  ;;  %v4184_v48 = vadd.f32 0.5, %v3928_v42  ;;  %v3929_v49 = vsub.f32 %v5938_v39, %v5940_v43  ;;  %5967 = vpow2.f32 %v2772_v19  ;;  %v360_v43 = vld [vmem:[%s7402_s28 + $0x3e0] sm:$0xff] }
 0x231   : > { %v5944_v50 = vpop.eup %5943  ;;  %5969 = vpow2.f32 %v1238_v28  ;;  %v358_v28 = vld [vmem:[%s7402_s28 + $0x3d0] sm:$0xff]  ;;  %v2405_v41 = vsub.f32 0.0, %v613_v27 }
 0x232   : > { %v5946_v53 = vpop.eup %5945  ;;  %4695 = vst [vmem:[%s7449_s20 + $0x358] sm:$0xff] %v4439_v47  ;;  %v4440_v54 = vmax.f32 %v4184_v48, 0.0  ;;  %v4185_v55 = vadd.f32 0.5, %v3929_v49  ;;  %v3930_v56 = vsub.f32 %v5942_v46, %v5944_v50  ;;  %5971 = vpow2.f32 %v2774_v36 }
 0x233   : > { %v5948_v57 = vpop.eup %5947  ;;  %5973 = vpow2.f32 %v1240_v44  ;;  %v1244_v36 = vmul.f32 1.442695, %v868_v21  ;;  %v870_v42 = vsub.f32 0.0, %v358_v28  ;;  %v616_v44 = vld [vmem:[%s7410_s24 + $0x3e0] sm:$0xff]  ;;  %v2406_v47 = vsub.f32 0.0, %v614_v32 }
 0x234   : > { %v5950_v58 = vpop.eup %5949  ;;  %4696 = vst [vmem:[%s7449_s20 + $0x360] sm:$0xff] %v4440_v54  ;;  %v4441_v59 = vmax.f32 %v4185_v55, 0.0  ;;  %v4186_v60 = vadd.f32 0.5, %v3930_v56  ;;  %v3931_v61 = vsub.f32 %v5946_v53, %v5948_v57  ;;  %5975 = vpow2.f32 %v2776_v45  ;;  %v361_v53 = vld [vmem:[%s7402_s28 + $0x3e8] sm:$0xff] }
 0x235   : > { %v5952_v62 = vpop.eup %5951  ;;  %v1628_v63 = vadd.f32 1.0, %v5950_v58  ;;  %5977 = vpow2.f32 %v1242_v51  ;;  %v871_v48 = vsub.f32 0.0, %v359_v33  ;;  %v2780_v51 = vmul.f32 1.442695, %v2404_v31 }
 0x236   : > { %v5954_v0 = vpop.eup %5953  ;;  %4697 = vst [vmem:[%s7449_s20 + $0x368] sm:$0xff] %v4441_v59  ;;  %v4442_v1 = vmax.f32 %v4186_v60, 0.0  ;;  %v4187_v2 = vadd.f32 0.5, %v3931_v61  ;;  %v3164_v3 = vadd.f32 1.0, %v5952_v62  ;;  %5979 = vpow2.f32 %v2778_v52  ;;  %v617_v62 = vld [vmem:[%s7410_s24 + $0x3e8] sm:$0xff] }
 0x237   : > { %v5956_v4 = vpop.eup %5955  ;;  %5981 = vrcp.f32 %v1628_v63  ;;  %v1629_v5 = vadd.f32 1.0, %v5954_v0  ;;  %v2407_v52 = vsub.f32 0.0, %v615_v38  ;;  %v1246_v55 = vmul.f32 1.442695, %v869_v37 }
 0x238   : > { %v5958_v6 = vpop.eup %5957  ;;  %4698 = vst [vmem:[%s7449_s20 + $0x370] sm:$0xff] %v4442_v1  ;;  %v4443_v7 = vmax.f32 %v4187_v2, 0.0  ;;  %5983 = vrcp.f32 %v3164_v3  ;;  %v3165_v8 = vadd.f32 1.0, %v5956_v4  ;;  %v872_v56 = vsub.f32 0.0, %v360_v43 }
 0x239   : > { %v5960_v9 = vpop.eup %5959  ;;  %5985 = vrcp.f32 %v1629_v5  ;;  %v1630_v10 = vadd.f32 1.0, %v5958_v6  ;;  %v2408_v57 = vsub.f32 0.0, %v616_v44  ;;  %v2782_v60 = vmul.f32 1.442695, %v2405_v41 }
 0x23a   : > { %v5962_v11 = vpop.eup %5961  ;;  %4699 = vst [vmem:[%s7449_s20 + $0x378] sm:$0xff] %v4443_v7  ;;  %5987 = vrcp.f32 %v3165_v8  ;;  %v3166_v12 = vadd.f32 1.0, %v5960_v9  ;;  %v1248_v61 = vmul.f32 1.442695, %v870_v42  ;;  %v2784_v0 = vmul.f32 1.442695, %v2406_v47 }
 0x23b   : > { %v5964_v14 = vpop.eup %5963  ;;  %5989 = vrcp.f32 %v1630_v10  ;;  %v1631_v15 = vadd.f32 1.0, %v5962_v11  ;;  %v1250_v1 = vmul.f32 1.442695, %v871_v48  ;;  %v873_v2 = vsub.f32 0.0, %v361_v53  ;;  %v362_v7 = vld [vmem:[%s7402_s28 + $0x3f0] sm:$0xff] }
 0x23c   : > { %v5966_v16 = vpop.eup %5965  ;;  %5991 = vrcp.f32 %v3166_v12  ;;  %v3167_v17 = vadd.f32 1.0, %v5964_v14  ;;  %v2786_v6 = vmul.f32 1.442695, %v2407_v52  ;;  %v618_v8 = vld [vmem:[%s7410_s24 + $0x3f0] sm:$0xff]  ;;  %v1252_v10 = vmul.f32 1.442695, %v872_v56 }
 0x23d   : > { %v5968_v18 = vpop.eup %5967  ;;  %5993 = vrcp.f32 %v1631_v15  ;;  %v1632_v19 = vadd.f32 1.0, %v5966_v16  ;;  %v2788_v11 = vmul.f32 1.442695, %v2408_v57  ;;  %v2409_v12 = vsub.f32 0.0, %v617_v62 }
 0x23e   : > { %v5970_v22 = vpop.eup %5969  ;;  %5995 = vrcp.f32 %v3167_v17  ;;  %v3168_v23 = vadd.f32 1.0, %v5968_v18  ;;  %v363_v17 = vld [vmem:[%s7402_s28 + $0x3f8] sm:$0xff]  ;;  %v1254_v20 = vmul.f32 1.442695, %v873_v2  ;;  %v874_v21 = vsub.f32 0.0, %v362_v7 }
 0x23f   : > { %v5972_v25 = vpop.eup %5971  ;;  %5997 = vrcp.f32 %v1632_v19  ;;  %v1633_v26 = vadd.f32 1.0, %v5970_v22  ;;  %v619_v18 = vld [vmem:[%s7410_s24 + $0x3f8] sm:$0xff]  ;;  %v2410_v22 = vsub.f32 0.0, %v618_v8  ;;  %v2790_v28 = vmul.f32 1.442695, %v2409_v12  ;;  %v620_v12 = vld [vmem:[%s7410_s24 + $0x400] sm:$0xff] }
 0x240   : > { %v5974_v29 = vpop.eup %5973  ;;  %5999 = vrcp.f32 %v3168_v23  ;;  %v3169_v30 = vadd.f32 1.0, %v5972_v25 }
 0x241   : > { %v5976_v34 = vpop.eup %5975  ;;  %6001 = vrcp.f32 %v1633_v26  ;;  %v1634_v35 = vadd.f32 1.0, %v5974_v29  ;;  %v875_v29 = vsub.f32 0.0, %v363_v17  ;;  %v2792_v37 = vmul.f32 1.442695, %v2410_v22 }
 0x242   : > { %v5978_v39 = vpop.eup %5977  ;;  %6003 = vrcp.f32 %v3169_v30  ;;  %v3170_v40 = vadd.f32 1.0, %v5976_v34  ;;  %v2411_v30 = vsub.f32 0.0, %v619_v18 }
 0x243   : > { %v5980_v45 = vpop.eup %5979  ;;  %6005 = vrcp.f32 %v1634_v35  ;;  %v1635_v46 = vadd.f32 1.0, %v5978_v39  ;;  %v1258_v43 = vmul.f32 1.442695, %v875_v29 }
 0x244   : > { %v5982_v49 = vpop.eup %5981  ;;  %6007 = vrcp.f32 %v3170_v40  ;;  %v3171_v50 = vadd.f32 1.0, %v5980_v45  ;;  %v2794_v44 = vmul.f32 1.442695, %v2411_v30  ;;  %v623_v30 = vld [vmem:[%s7410_s24 + $0x418] sm:$0xff] }
 0x245   : > { %v5984_v54 = vpop.eup %5983  ;;  %6009 = vrcp.f32 %v1635_v46 }
 0x246   : > { %v5986_v58 = vpop.eup %5985  ;;  %v3932_v59 = vsub.f32 %v5982_v49, %v5984_v54  ;;  %6011 = vrcp.f32 %v3171_v50 }
 0x247   : > { %v5988_v63 = vpop.eup %5987  ;;  %6013 = vpow2.f32 %v1244_v36  ;;  %v1256_v36 = vmul.f32 1.442695, %v874_v21 }
 0x248   : > { %v5990_v3 = vpop.eup %5989  ;;  %v4188_v4 = vadd.f32 0.5, %v3932_v59  ;;  %v3933_v5 = vsub.f32 %v5986_v58, %v5988_v63  ;;  %6015 = vpow2.f32 %v2780_v51 }
 0x249   : > { %v5992_v9 = vpop.eup %5991  ;;  %6017 = vpow2.f32 %v1246_v55 }
 0x24a   : > { %v5994_v13 = vpop.eup %5993  ;;  %v4444_v14 = vmax.f32 %v4188_v4, 0.0  ;;  %v4189_v15 = vadd.f32 0.5, %v3933_v5  ;;  %v3934_v16 = vsub.f32 %v5990_v3, %v5992_v9  ;;  %6019 = vpow2.f32 %v2782_v60  ;;  %v364_v5 = vld [vmem:[%s7402_s28 + $0x400] sm:$0xff] }
 0x24b   : > { %v5996_v19 = vpop.eup %5995  ;;  %6021 = vpow2.f32 %v1248_v61 }
 0x24c   : > { %v5998_v23 = vpop.eup %5997  ;;  %4700 = vst [vmem:[%s7449_s20 + $0x380] sm:$0xff] %v4444_v14  ;;  %v4445_v24 = vmax.f32 %v4189_v15, 0.0  ;;  %v4190_v25 = vadd.f32 0.5, %v3934_v16  ;;  %v3935_v26 = vsub.f32 %v5994_v13, %v5996_v19  ;;  %6023 = vpow2.f32 %v2784_v0  ;;  %v365_v16 = vld [vmem:[%s7402_s28 + $0x408] sm:$0xff] }
 0x24d   : > { %v6000_v27 = vpop.eup %5999  ;;  %6025 = vpow2.f32 %v1250_v1  ;;  %v876_v13 = vsub.f32 0.0, %v364_v5  ;;  %v621_v19 = vld [vmem:[%s7410_s24 + $0x408] sm:$0xff]  ;;  %v877_v29 = vsub.f32 0.0, %v365_v16 }
 0x24e   : > { %v6002_v31 = vpop.eup %6001  ;;  %4701 = vst [vmem:[%s7449_s20 + $0x388] sm:$0xff] %v4445_v24  ;;  %v4446_v32 = vmax.f32 %v4190_v25, 0.0  ;;  %v4191_v33 = vadd.f32 0.5, %v3935_v26  ;;  %v3936_v34 = vsub.f32 %v5998_v23, %v6000_v27  ;;  %6027 = vpow2.f32 %v2786_v6  ;;  %v622_v24 = vld [vmem:[%s7410_s24 + $0x410] sm:$0xff]  ;;  %v367_v25 = vld [vmem:[%s7402_s28 + $0x418] sm:$0xff] }
 0x24f   : > { %v6004_v35 = vpop.eup %6003  ;;  %6029 = vpow2.f32 %v1252_v10  ;;  %v2412_v23 = vsub.f32 0.0, %v620_v12 }
 0x250   : > { %v6006_v38 = vpop.eup %6005  ;;  %4702 = vst [vmem:[%s7449_s20 + $0x390] sm:$0xff] %v4446_v32  ;;  %v4447_v39 = vmax.f32 %v4191_v33, 0.0  ;;  %v4192_v40 = vadd.f32 0.5, %v3936_v34  ;;  %v3937_v41 = vsub.f32 %v6002_v31, %v6004_v35  ;;  %6031 = vpow2.f32 %v2788_v11  ;;  %v368_v35 = vld [vmem:[%s7402_s28 + $0x420] sm:$0xff] }
 0x251   : > { %v6008_v42 = vpop.eup %6007  ;;  %6033 = vpow2.f32 %v1254_v20  ;;  %v366_v20 = vld [vmem:[%s7402_s28 + $0x410] sm:$0xff]  ;;  %v2413_v33 = vsub.f32 0.0, %v621_v19 }
 0x252   : > { %v6010_v45 = vpop.eup %6009  ;;  %4703 = vst [vmem:[%s7449_s20 + $0x398] sm:$0xff] %v4447_v39  ;;  %v4448_v46 = vmax.f32 %v4192_v40, 0.0  ;;  %v4193_v47 = vadd.f32 0.5, %v3937_v41  ;;  %v3938_v48 = vsub.f32 %v6006_v38, %v6008_v42  ;;  %6035 = vpow2.f32 %v2790_v28 }
 0x253   : > { %v6012_v49 = vpop.eup %6011  ;;  %6037 = vpow2.f32 %v1256_v36  ;;  %v1260_v28 = vmul.f32 1.442695, %v876_v13  ;;  %v878_v34 = vsub.f32 0.0, %v366_v20  ;;  %v624_v36 = vld [vmem:[%s7410_s24 + $0x420] sm:$0xff]  ;;  %v2414_v39 = vsub.f32 0.0, %v622_v24 }
 0x254   : > { %v6014_v50 = vpop.eup %6013  ;;  %4704 = vst [vmem:[%s7449_s20 + $0x3a0] sm:$0xff] %v4448_v46  ;;  %v4449_v51 = vmax.f32 %v4193_v47, 0.0  ;;  %v4194_v52 = vadd.f32 0.5, %v3938_v48  ;;  %v3939_v53 = vsub.f32 %v6010_v45, %v6012_v49  ;;  %6039 = vpow2.f32 %v2792_v37  ;;  %v369_v45 = vld [vmem:[%s7402_s28 + $0x428] sm:$0xff] }
 0x255   : > { %v6016_v54 = vpop.eup %6015  ;;  %v1636_v55 = vadd.f32 1.0, %v6014_v50  ;;  %6041 = vpow2.f32 %v1258_v43  ;;  %v879_v40 = vsub.f32 0.0, %v367_v25  ;;  %v2796_v43 = vmul.f32 1.442695, %v2412_v23 }
 0x256   : > { %v6018_v56 = vpop.eup %6017  ;;  %4705 = vst [vmem:[%s7449_s20 + $0x3a8] sm:$0xff] %v4449_v51  ;;  %v4450_v57 = vmax.f32 %v4194_v52, 0.0  ;;  %v4195_v58 = vadd.f32 0.5, %v3939_v53  ;;  %v3172_v59 = vadd.f32 1.0, %v6016_v54  ;;  %6043 = vpow2.f32 %v2794_v44  ;;  %v625_v54 = vld [vmem:[%s7410_s24 + $0x428] sm:$0xff] }
 0x257   : > { %v6020_v60 = vpop.eup %6019  ;;  %6045 = vrcp.f32 %v1636_v55  ;;  %v1637_v61 = vadd.f32 1.0, %v6018_v56  ;;  %v2415_v44 = vsub.f32 0.0, %v623_v30  ;;  %v1262_v47 = vmul.f32 1.442695, %v877_v29 }
 0x258   : > { %v6022_v62 = vpop.eup %6021  ;;  %4706 = vst [vmem:[%s7449_s20 + $0x3b0] sm:$0xff] %v4450_v57  ;;  %v4451_v63 = vmax.f32 %v4195_v58, 0.0  ;;  %6047 = vrcp.f32 %v3172_v59  ;;  %v3173_v0 = vadd.f32 1.0, %v6020_v60  ;;  %v880_v48 = vsub.f32 0.0, %v368_v35 }
 0x259   : > { %v6024_v1 = vpop.eup %6023  ;;  %6049 = vrcp.f32 %v1637_v61  ;;  %v1638_v2 = vadd.f32 1.0, %v6022_v62  ;;  %v2416_v49 = vsub.f32 0.0, %v624_v36  ;;  %v2798_v52 = vmul.f32 1.442695, %v2413_v33 }
 0x25a   : > { %v6026_v3 = vpop.eup %6025  ;;  %4707 = vst [vmem:[%s7449_s20 + $0x3b8] sm:$0xff] %v4451_v63  ;;  %6051 = vrcp.f32 %v3173_v0  ;;  %v3174_v4 = vadd.f32 1.0, %v6024_v1  ;;  %v1264_v53 = vmul.f32 1.442695, %v878_v34  ;;  %v2800_v56 = vmul.f32 1.442695, %v2414_v39 }
 0x25b   : > { %v6028_v6 = vpop.eup %6027  ;;  %6053 = vrcp.f32 %v1638_v2  ;;  %v1639_v7 = vadd.f32 1.0, %v6026_v3  ;;  %v1266_v57 = vmul.f32 1.442695, %v879_v40  ;;  %v881_v58 = vsub.f32 0.0, %v369_v45  ;;  %v370_v63 = vld [vmem:[%s7402_s28 + $0x430] sm:$0xff] }
 0x25c   : > { %v6030_v8 = vpop.eup %6029  ;;  %6055 = vrcp.f32 %v3174_v4  ;;  %v3175_v9 = vadd.f32 1.0, %v6028_v6  ;;  %v2802_v62 = vmul.f32 1.442695, %v2415_v44  ;;  %v626_v0 = vld [vmem:[%s7410_s24 + $0x430] sm:$0xff]  ;;  %v1268_v2 = vmul.f32 1.442695, %v880_v48 }
 0x25d   : > { %v6032_v10 = vpop.eup %6031  ;;  %6057 = vrcp.f32 %v1639_v7  ;;  %v1640_v11 = vadd.f32 1.0, %v6030_v8  ;;  %v2804_v3 = vmul.f32 1.442695, %v2416_v49  ;;  %v2417_v4 = vsub.f32 0.0, %v625_v54 }
 0x25e   : > { %v6034_v14 = vpop.eup %6033  ;;  %6059 = vrcp.f32 %v3175_v9  ;;  %v3176_v15 = vadd.f32 1.0, %v6032_v10  ;;  %v371_v9 = vld [vmem:[%s7402_s28 + $0x438] sm:$0xff]  ;;  %v1270_v12 = vmul.f32 1.442695, %v881_v58  ;;  %v882_v13 = vsub.f32 0.0, %v370_v63 }
 0x25f   : > { %v6036_v17 = vpop.eup %6035  ;;  %6061 = vrcp.f32 %v1640_v11  ;;  %v1641_v18 = vadd.f32 1.0, %v6034_v14  ;;  %v627_v10 = vld [vmem:[%s7410_s24 + $0x438] sm:$0xff]  ;;  %v2418_v14 = vsub.f32 0.0, %v626_v0  ;;  %v2806_v20 = vmul.f32 1.442695, %v2417_v4  ;;  %v628_v4 = vld [vmem:[%s7410_s24 + $0x440] sm:$0xff] }
 0x260   : > { %v6038_v21 = vpop.eup %6037  ;;  %6063 = vrcp.f32 %v3176_v15  ;;  %v3177_v22 = vadd.f32 1.0, %v6036_v17 }
 0x261   : > { %v6040_v26 = vpop.eup %6039  ;;  %6065 = vrcp.f32 %v1641_v18  ;;  %v1642_v27 = vadd.f32 1.0, %v6038_v21  ;;  %v883_v21 = vsub.f32 0.0, %v371_v9  ;;  %v2808_v29 = vmul.f32 1.442695, %v2418_v14 }
 0x262   : > { %v6042_v31 = vpop.eup %6041  ;;  %6067 = vrcp.f32 %v3177_v22  ;;  %v3178_v32 = vadd.f32 1.0, %v6040_v26  ;;  %v2419_v22 = vsub.f32 0.0, %v627_v10 }
 0x263   : > { %v6044_v37 = vpop.eup %6043  ;;  %6069 = vrcp.f32 %v1642_v27  ;;  %v1643_v38 = vadd.f32 1.0, %v6042_v31  ;;  %v1274_v35 = vmul.f32 1.442695, %v883_v21 }
 0x264   : > { %v6046_v41 = vpop.eup %6045  ;;  %6071 = vrcp.f32 %v3178_v32  ;;  %v3179_v42 = vadd.f32 1.0, %v6044_v37  ;;  %v2810_v36 = vmul.f32 1.442695, %v2419_v22  ;;  %v631_v22 = vld [vmem:[%s7410_s24 + $0x458] sm:$0xff] }
 0x265   : > { %v6048_v46 = vpop.eup %6047  ;;  %6073 = vrcp.f32 %v1643_v38 }
 0x266   : > { %v6050_v50 = vpop.eup %6049  ;;  %v3940_v51 = vsub.f32 %v6046_v41, %v6048_v46  ;;  %6075 = vrcp.f32 %v3179_v42 }
 0x267   : > { %v6052_v55 = vpop.eup %6051  ;;  %6077 = vpow2.f32 %v1260_v28  ;;  %v1272_v28 = vmul.f32 1.442695, %v882_v13 }
 0x268   : > { %v6054_v59 = vpop.eup %6053  ;;  %v4196_v60 = vadd.f32 0.5, %v3940_v51  ;;  %v3941_v61 = vsub.f32 %v6050_v50, %v6052_v55  ;;  %6079 = vpow2.f32 %v2796_v43 }
 0x269   : > { %v6056_v1 = vpop.eup %6055  ;;  %6081 = vpow2.f32 %v1262_v47 }
 0x26a   : > { %v6058_v5 = vpop.eup %6057  ;;  %v4452_v6 = vmax.f32 %v4196_v60, 0.0  ;;  %v4197_v7 = vadd.f32 0.5, %v3941_v61  ;;  %v3942_v8 = vsub.f32 %v6054_v59, %v6056_v1  ;;  %6083 = vpow2.f32 %v2798_v52  ;;  %v372_v61 = vld [vmem:[%s7402_s28 + $0x440] sm:$0xff] }
 0x26b   : > { %v6060_v11 = vpop.eup %6059  ;;  %6085 = vpow2.f32 %v1264_v53 }
 0x26c   : > { %v6062_v15 = vpop.eup %6061  ;;  %4708 = vst [vmem:[%s7449_s20 + $0x3c0] sm:$0xff] %v4452_v6  ;;  %v4453_v16 = vmax.f32 %v4197_v7, 0.0  ;;  %v4198_v17 = vadd.f32 0.5, %v3942_v8  ;;  %v3943_v18 = vsub.f32 %v6058_v5, %v6060_v11  ;;  %6087 = vpow2.f32 %v2800_v56  ;;  %v373_v8 = vld [vmem:[%s7402_s28 + $0x448] sm:$0xff] }
 0x26d   : > { %v6064_v19 = vpop.eup %6063  ;;  %6089 = vpow2.f32 %v1266_v57  ;;  %v884_v5 = vsub.f32 0.0, %v372_v61  ;;  %v629_v11 = vld [vmem:[%s7410_s24 + $0x448] sm:$0xff]  ;;  %v885_v21 = vsub.f32 0.0, %v373_v8 }
 0x26e   : > { %v6066_v23 = vpop.eup %6065  ;;  %4709 = vst [vmem:[%s7449_s20 + $0x3c8] sm:$0xff] %v4453_v16  ;;  %v4454_v24 = vmax.f32 %v4198_v17, 0.0  ;;  %v4199_v25 = vadd.f32 0.5, %v3943_v18  ;;  %v3944_v26 = vsub.f32 %v6062_v15, %v6064_v19  ;;  %6091 = vpow2.f32 %v2802_v62  ;;  %v630_v16 = vld [vmem:[%s7410_s24 + $0x450] sm:$0xff]  ;;  %v375_v17 = vld [vmem:[%s7402_s28 + $0x458] sm:$0xff] }
 0x26f   : > { %v6068_v27 = vpop.eup %6067  ;;  %6093 = vpow2.f32 %v1268_v2  ;;  %v2420_v15 = vsub.f32 0.0, %v628_v4 }
 0x270   : > { %v6070_v30 = vpop.eup %6069  ;;  %4710 = vst [vmem:[%s7449_s20 + $0x3d0] sm:$0xff] %v4454_v24  ;;  %v4455_v31 = vmax.f32 %v4199_v25, 0.0  ;;  %v4200_v32 = vadd.f32 0.5, %v3944_v26  ;;  %v3945_v33 = vsub.f32 %v6066_v23, %v6068_v27  ;;  %6095 = vpow2.f32 %v2804_v3  ;;  %v376_v27 = vld [vmem:[%s7402_s28 + $0x460] sm:$0xff] }
 0x271   : > { %v6072_v34 = vpop.eup %6071  ;;  %6097 = vpow2.f32 %v1270_v12  ;;  %v374_v12 = vld [vmem:[%s7402_s28 + $0x450] sm:$0xff]  ;;  %v2421_v25 = vsub.f32 0.0, %v629_v11 }
 0x272   : > { %v6074_v37 = vpop.eup %6073  ;;  %4711 = vst [vmem:[%s7449_s20 + $0x3d8] sm:$0xff] %v4455_v31  ;;  %v4456_v38 = vmax.f32 %v4200_v32, 0.0  ;;  %v4201_v39 = vadd.f32 0.5, %v3945_v33  ;;  %v3946_v40 = vsub.f32 %v6070_v30, %v6072_v34  ;;  %6099 = vpow2.f32 %v2806_v20 }
 0x273   : > { %v6076_v41 = vpop.eup %6075  ;;  %6101 = vpow2.f32 %v1272_v28  ;;  %v1276_v20 = vmul.f32 1.442695, %v884_v5  ;;  %v886_v26 = vsub.f32 0.0, %v374_v12  ;;  %v632_v28 = vld [vmem:[%s7410_s24 + $0x460] sm:$0xff]  ;;  %v2422_v31 = vsub.f32 0.0, %v630_v16 }
 0x274   : > { %v6078_v42 = vpop.eup %6077  ;;  %4712 = vst [vmem:[%s7449_s20 + $0x3e0] sm:$0xff] %v4456_v38  ;;  %v4457_v43 = vmax.f32 %v4201_v39, 0.0  ;;  %v4202_v44 = vadd.f32 0.5, %v3946_v40  ;;  %v3947_v45 = vsub.f32 %v6074_v37, %v6076_v41  ;;  %6103 = vpow2.f32 %v2808_v29  ;;  %v377_v37 = vld [vmem:[%s7402_s28 + $0x468] sm:$0xff] }
 0x275   : > { %v6080_v46 = vpop.eup %6079  ;;  %v1644_v47 = vadd.f32 1.0, %v6078_v42  ;;  %6105 = vpow2.f32 %v1274_v35  ;;  %v887_v32 = vsub.f32 0.0, %v375_v17  ;;  %v2812_v35 = vmul.f32 1.442695, %v2420_v15 }
 0x276   : > { %v6082_v48 = vpop.eup %6081  ;;  %4713 = vst [vmem:[%s7449_s20 + $0x3e8] sm:$0xff] %v4457_v43  ;;  %v4458_v49 = vmax.f32 %v4202_v44, 0.0  ;;  %v4203_v50 = vadd.f32 0.5, %v3947_v45  ;;  %v3180_v51 = vadd.f32 1.0, %v6080_v46  ;;  %6107 = vpow2.f32 %v2810_v36  ;;  %v633_v46 = vld [vmem:[%s7410_s24 + $0x468] sm:$0xff] }
 0x277   : > { %v6084_v52 = vpop.eup %6083  ;;  %6109 = vrcp.f32 %v1644_v47  ;;  %v1645_v53 = vadd.f32 1.0, %v6082_v48  ;;  %v2423_v36 = vsub.f32 0.0, %v631_v22  ;;  %v1278_v39 = vmul.f32 1.442695, %v885_v21 }
 0x278   : > { %v6086_v54 = vpop.eup %6085  ;;  %4714 = vst [vmem:[%s7449_s20 + $0x3f0] sm:$0xff] %v4458_v49  ;;  %v4459_v55 = vmax.f32 %v4203_v50, 0.0  ;;  %6111 = vrcp.f32 %v3180_v51  ;;  %v3181_v56 = vadd.f32 1.0, %v6084_v52  ;;  %v888_v40 = vsub.f32 0.0, %v376_v27 }
 0x279   : > { %v6088_v57 = vpop.eup %6087  ;;  %6113 = vrcp.f32 %v1645_v53  ;;  %v1646_v58 = vadd.f32 1.0, %v6086_v54  ;;  %v2424_v41 = vsub.f32 0.0, %v632_v28  ;;  %v2814_v44 = vmul.f32 1.442695, %v2421_v25 }
 0x27a   : > { %v6090_v59 = vpop.eup %6089  ;;  %4715 = vst [vmem:[%s7449_s20 + $0x3f8] sm:$0xff] %v4459_v55  ;;  %6115 = vrcp.f32 %v3181_v56  ;;  %v3182_v60 = vadd.f32 1.0, %v6088_v57  ;;  %v1280_v45 = vmul.f32 1.442695, %v886_v26  ;;  %v2816_v48 = vmul.f32 1.442695, %v2422_v31 }
 0x27b   : > { %v6092_v62 = vpop.eup %6091  ;;  %6117 = vrcp.f32 %v1646_v58  ;;  %v1647_v63 = vadd.f32 1.0, %v6090_v59  ;;  %v1282_v49 = vmul.f32 1.442695, %v887_v32  ;;  %v889_v50 = vsub.f32 0.0, %v377_v37  ;;  %v378_v55 = vld [vmem:[%s7402_s28 + $0x470] sm:$0xff] }
 0x27c   : > { %v6094_v0 = vpop.eup %6093  ;;  %6119 = vrcp.f32 %v3182_v60  ;;  %v3183_v1 = vadd.f32 1.0, %v6092_v62  ;;  %v2818_v54 = vmul.f32 1.442695, %v2423_v36  ;;  %v634_v56 = vld [vmem:[%s7410_s24 + $0x470] sm:$0xff]  ;;  %v1284_v58 = vmul.f32 1.442695, %v888_v40 }
 0x27d   : > { %v6096_v2 = vpop.eup %6095  ;;  %6121 = vrcp.f32 %v1647_v63  ;;  %v1648_v3 = vadd.f32 1.0, %v6094_v0  ;;  %v2820_v59 = vmul.f32 1.442695, %v2424_v41  ;;  %v2425_v60 = vsub.f32 0.0, %v633_v46 }
 0x27e   : > { %v6098_v6 = vpop.eup %6097  ;;  %6123 = vrcp.f32 %v3183_v1  ;;  %v3184_v7 = vadd.f32 1.0, %v6096_v2  ;;  %v379_v1 = vld [vmem:[%s7402_s28 + $0x478] sm:$0xff]  ;;  %v1286_v4 = vmul.f32 1.442695, %v889_v50  ;;  %v890_v5 = vsub.f32 0.0, %v378_v55 }
 0x27f   : > { %v6100_v9 = vpop.eup %6099  ;;  %6125 = vrcp.f32 %v1648_v3  ;;  %v1649_v10 = vadd.f32 1.0, %v6098_v6  ;;  %v635_v2 = vld [vmem:[%s7410_s24 + $0x478] sm:$0xff]  ;;  %v2426_v6 = vsub.f32 0.0, %v634_v56  ;;  %v2822_v12 = vmul.f32 1.442695, %v2425_v60  ;;  %v636_v60 = vld [vmem:[%s7410_s24 + $0x480] sm:$0xff] }
 0x280   : > { %v6102_v13 = vpop.eup %6101  ;;  %6127 = vrcp.f32 %v3184_v7  ;;  %v3185_v14 = vadd.f32 1.0, %v6100_v9 }
 0x281   : > { %v6104_v18 = vpop.eup %6103  ;;  %6129 = vrcp.f32 %v1649_v10  ;;  %v1650_v19 = vadd.f32 1.0, %v6102_v13  ;;  %v891_v13 = vsub.f32 0.0, %v379_v1  ;;  %v2824_v21 = vmul.f32 1.442695, %v2426_v6 }
 0x282   : > { %v6106_v23 = vpop.eup %6105  ;;  %6131 = vrcp.f32 %v3185_v14  ;;  %v3186_v24 = vadd.f32 1.0, %v6104_v18  ;;  %v2427_v14 = vsub.f32 0.0, %v635_v2 }
 0x283   : > { %v6108_v29 = vpop.eup %6107  ;;  %6133 = vrcp.f32 %v1650_v19  ;;  %v1651_v30 = vadd.f32 1.0, %v6106_v23  ;;  %v1290_v27 = vmul.f32 1.442695, %v891_v13 }
 0x284   : > { %v6110_v33 = vpop.eup %6109  ;;  %6135 = vrcp.f32 %v3186_v24  ;;  %v3187_v34 = vadd.f32 1.0, %v6108_v29  ;;  %v2826_v28 = vmul.f32 1.442695, %v2427_v14  ;;  %v639_v14 = vld [vmem:[%s7410_s24 + $0x498] sm:$0xff] }
 0x285   : > { %v6112_v38 = vpop.eup %6111  ;;  %6137 = vrcp.f32 %v1651_v30 }
 0x286   : > { %v6114_v42 = vpop.eup %6113  ;;  %v3948_v43 = vsub.f32 %v6110_v33, %v6112_v38  ;;  %6139 = vrcp.f32 %v3187_v34 }
 0x287   : > { %v6116_v47 = vpop.eup %6115  ;;  %6141 = vpow2.f32 %v1276_v20  ;;  %v1288_v20 = vmul.f32 1.442695, %v890_v5 }
 0x288   : > { %v6118_v51 = vpop.eup %6117  ;;  %v4204_v52 = vadd.f32 0.5, %v3948_v43  ;;  %v3949_v53 = vsub.f32 %v6114_v42, %v6116_v47  ;;  %6143 = vpow2.f32 %v2812_v35 }
 0x289   : > { %v6120_v57 = vpop.eup %6119  ;;  %6145 = vpow2.f32 %v1278_v39 }
 0x28a   : > { %v6122_v61 = vpop.eup %6121  ;;  %v4460_v62 = vmax.f32 %v4204_v52, 0.0  ;;  %v4205_v63 = vadd.f32 0.5, %v3949_v53  ;;  %v3950_v0 = vsub.f32 %v6118_v51, %v6120_v57  ;;  %6147 = vpow2.f32 %v2814_v44  ;;  %v380_v53 = vld [vmem:[%s7402_s28 + $0x480] sm:$0xff] }
 0x28b   : > { %v6124_v3 = vpop.eup %6123  ;;  %6149 = vpow2.f32 %v1280_v45 }
 0x28c   : > { %v6126_v7 = vpop.eup %6125  ;;  %4716 = vst [vmem:[%s7449_s20 + $0x400] sm:$0xff] %v4460_v62  ;;  %v4461_v8 = vmax.f32 %v4205_v63, 0.0  ;;  %v4206_v9 = vadd.f32 0.5, %v3950_v0  ;;  %v3951_v10 = vsub.f32 %v6122_v61, %v6124_v3  ;;  %6151 = vpow2.f32 %v2816_v48  ;;  %v381_v0 = vld [vmem:[%s7402_s28 + $0x488] sm:$0xff] }
 0x28d   : > { %v6128_v11 = vpop.eup %6127  ;;  %6153 = vpow2.f32 %v1282_v49  ;;  %v892_v61 = vsub.f32 0.0, %v380_v53  ;;  %v637_v3 = vld [vmem:[%s7410_s24 + $0x488] sm:$0xff]  ;;  %v893_v13 = vsub.f32 0.0, %v381_v0 }
 0x28e   : > { %v6130_v15 = vpop.eup %6129  ;;  %4717 = vst [vmem:[%s7449_s20 + $0x408] sm:$0xff] %v4461_v8  ;;  %v4462_v16 = vmax.f32 %v4206_v9, 0.0  ;;  %v4207_v17 = vadd.f32 0.5, %v3951_v10  ;;  %v3952_v18 = vsub.f32 %v6126_v7, %v6128_v11  ;;  %6155 = vpow2.f32 %v2818_v54  ;;  %v638_v8 = vld [vmem:[%s7410_s24 + $0x490] sm:$0xff]  ;;  %v383_v9 = vld [vmem:[%s7402_s28 + $0x498] sm:$0xff] }
 0x28f   : > { %v6132_v19 = vpop.eup %6131  ;;  %6157 = vpow2.f32 %v1284_v58  ;;  %v2428_v7 = vsub.f32 0.0, %v636_v60 }
 0x290   : > { %v6134_v22 = vpop.eup %6133  ;;  %4718 = vst [vmem:[%s7449_s20 + $0x410] sm:$0xff] %v4462_v16  ;;  %v4463_v23 = vmax.f32 %v4207_v17, 0.0  ;;  %v4208_v24 = vadd.f32 0.5, %v3952_v18  ;;  %v3953_v25 = vsub.f32 %v6130_v15, %v6132_v19  ;;  %6159 = vpow2.f32 %v2820_v59  ;;  %v384_v19 = vld [vmem:[%s7402_s28 + $0x4a0] sm:$0xff] }
 0x291   : > { %v6136_v26 = vpop.eup %6135  ;;  %6161 = vpow2.f32 %v1286_v4  ;;  %v382_v4 = vld [vmem:[%s7402_s28 + $0x490] sm:$0xff]  ;;  %v2429_v17 = vsub.f32 0.0, %v637_v3 }
 0x292   : > { %v6138_v29 = vpop.eup %6137  ;;  %4719 = vst [vmem:[%s7449_s20 + $0x418] sm:$0xff] %v4463_v23  ;;  %v4464_v30 = vmax.f32 %v4208_v24, 0.0  ;;  %v4209_v31 = vadd.f32 0.5, %v3953_v25  ;;  %v3954_v32 = vsub.f32 %v6134_v22, %v6136_v26  ;;  %6163 = vpow2.f32 %v2822_v12 }
 0x293   : > { %v6140_v33 = vpop.eup %6139  ;;  %6165 = vpow2.f32 %v1288_v20  ;;  %v1292_v12 = vmul.f32 1.442695, %v892_v61  ;;  %v894_v18 = vsub.f32 0.0, %v382_v4  ;;  %v640_v20 = vld [vmem:[%s7410_s24 + $0x4a0] sm:$0xff]  ;;  %v2430_v23 = vsub.f32 0.0, %v638_v8 }
 0x294   : > { %v6142_v34 = vpop.eup %6141  ;;  %4720 = vst [vmem:[%s7449_s20 + $0x420] sm:$0xff] %v4464_v30  ;;  %v4465_v35 = vmax.f32 %v4209_v31, 0.0  ;;  %v4210_v36 = vadd.f32 0.5, %v3954_v32  ;;  %v3955_v37 = vsub.f32 %v6138_v29, %v6140_v33  ;;  %6167 = vpow2.f32 %v2824_v21  ;;  %v385_v29 = vld [vmem:[%s7402_s28 + $0x4a8] sm:$0xff] }
 0x295   : > { %v6144_v38 = vpop.eup %6143  ;;  %v1652_v39 = vadd.f32 1.0, %v6142_v34  ;;  %6169 = vpow2.f32 %v1290_v27  ;;  %v895_v24 = vsub.f32 0.0, %v383_v9  ;;  %v2828_v27 = vmul.f32 1.442695, %v2428_v7 }
 0x296   : > { %v6146_v40 = vpop.eup %6145  ;;  %4721 = vst [vmem:[%s7449_s20 + $0x428] sm:$0xff] %v4465_v35  ;;  %v4466_v41 = vmax.f32 %v4210_v36, 0.0  ;;  %v4211_v42 = vadd.f32 0.5, %v3955_v37  ;;  %v3188_v43 = vadd.f32 1.0, %v6144_v38  ;;  %6171 = vpow2.f32 %v2826_v28  ;;  %v641_v38 = vld [vmem:[%s7410_s24 + $0x4a8] sm:$0xff] }
 0x297   : > { %v6148_v44 = vpop.eup %6147  ;;  %6173 = vrcp.f32 %v1652_v39  ;;  %v1653_v45 = vadd.f32 1.0, %v6146_v40  ;;  %v2431_v28 = vsub.f32 0.0, %v639_v14  ;;  %v1294_v31 = vmul.f32 1.442695, %v893_v13 }
 0x298   : > { %v6150_v46 = vpop.eup %6149  ;;  %4722 = vst [vmem:[%s7449_s20 + $0x430] sm:$0xff] %v4466_v41  ;;  %v4467_v47 = vmax.f32 %v4211_v42, 0.0  ;;  %6175 = vrcp.f32 %v3188_v43  ;;  %v3189_v48 = vadd.f32 1.0, %v6148_v44  ;;  %v896_v32 = vsub.f32 0.0, %v384_v19 }
 0x299   : > { %v6152_v49 = vpop.eup %6151  ;;  %6177 = vrcp.f32 %v1653_v45  ;;  %v1654_v50 = vadd.f32 1.0, %v6150_v46  ;;  %v2432_v33 = vsub.f32 0.0, %v640_v20  ;;  %v2830_v36 = vmul.f32 1.442695, %v2429_v17 }
 0x29a   : > { %v6154_v51 = vpop.eup %6153  ;;  %4723 = vst [vmem:[%s7449_s20 + $0x438] sm:$0xff] %v4467_v47  ;;  %6179 = vrcp.f32 %v3189_v48  ;;  %v3190_v52 = vadd.f32 1.0, %v6152_v49  ;;  %v1296_v37 = vmul.f32 1.442695, %v894_v18  ;;  %v2832_v40 = vmul.f32 1.442695, %v2430_v23 }
 0x29b   : > { %v6156_v54 = vpop.eup %6155  ;;  %6181 = vrcp.f32 %v1654_v50  ;;  %v1655_v55 = vadd.f32 1.0, %v6154_v51  ;;  %v1298_v41 = vmul.f32 1.442695, %v895_v24  ;;  %v897_v42 = vsub.f32 0.0, %v385_v29  ;;  %v386_v47 = vld [vmem:[%s7402_s28 + $0x4b0] sm:$0xff] }
 0x29c   : > { %v6158_v56 = vpop.eup %6157  ;;  %6183 = vrcp.f32 %v3190_v52  ;;  %v3191_v57 = vadd.f32 1.0, %v6156_v54  ;;  %v2834_v46 = vmul.f32 1.442695, %v2431_v28  ;;  %v642_v48 = vld [vmem:[%s7410_s24 + $0x4b0] sm:$0xff]  ;;  %v1300_v50 = vmul.f32 1.442695, %v896_v32 }
 0x29d   : > { %v6160_v58 = vpop.eup %6159  ;;  %6185 = vrcp.f32 %v1655_v55  ;;  %v1656_v59 = vadd.f32 1.0, %v6158_v56  ;;  %v2836_v51 = vmul.f32 1.442695, %v2432_v33  ;;  %v2433_v52 = vsub.f32 0.0, %v641_v38 }
 0x29e   : > { %v6162_v62 = vpop.eup %6161  ;;  %6187 = vrcp.f32 %v3191_v57  ;;  %v3192_v63 = vadd.f32 1.0, %v6160_v58  ;;  %v387_v57 = vld [vmem:[%s7402_s28 + $0x4b8] sm:$0xff]  ;;  %v1302_v60 = vmul.f32 1.442695, %v897_v42  ;;  %v898_v61 = vsub.f32 0.0, %v386_v47 }
 0x29f   : > { %v6164_v1 = vpop.eup %6163  ;;  %6189 = vrcp.f32 %v1656_v59  ;;  %v1657_v2 = vadd.f32 1.0, %v6162_v62  ;;  %v643_v58 = vld [vmem:[%s7410_s24 + $0x4b8] sm:$0xff]  ;;  %v2434_v62 = vsub.f32 0.0, %v642_v48  ;;  %v2838_v4 = vmul.f32 1.442695, %v2433_v52  ;;  %v644_v52 = vld [vmem:[%s7410_s24 + $0x4c0] sm:$0xff] }
 0x2a0   : > { %v6166_v5 = vpop.eup %6165  ;;  %6191 = vrcp.f32 %v3192_v63  ;;  %v3193_v6 = vadd.f32 1.0, %v6164_v1 }
 0x2a1   : > { %v6168_v10 = vpop.eup %6167  ;;  %6193 = vrcp.f32 %v1657_v2  ;;  %v1658_v11 = vadd.f32 1.0, %v6166_v5  ;;  %v899_v5 = vsub.f32 0.0, %v387_v57  ;;  %v2840_v13 = vmul.f32 1.442695, %v2434_v62 }
 0x2a2   : > { %v6170_v15 = vpop.eup %6169  ;;  %6195 = vrcp.f32 %v3193_v6  ;;  %v3194_v16 = vadd.f32 1.0, %v6168_v10  ;;  %v2435_v6 = vsub.f32 0.0, %v643_v58 }
 0x2a3   : > { %v6172_v21 = vpop.eup %6171  ;;  %6197 = vrcp.f32 %v1658_v11  ;;  %v1659_v22 = vadd.f32 1.0, %v6170_v15  ;;  %v1306_v19 = vmul.f32 1.442695, %v899_v5 }
 0x2a4   : > { %v6174_v25 = vpop.eup %6173  ;;  %6199 = vrcp.f32 %v3194_v16  ;;  %v3195_v26 = vadd.f32 1.0, %v6172_v21  ;;  %v2842_v20 = vmul.f32 1.442695, %v2435_v6  ;;  %v647_v6 = vld [vmem:[%s7410_s24 + $0x4d8] sm:$0xff] }
 0x2a5   : > { %v6176_v30 = vpop.eup %6175  ;;  %6201 = vrcp.f32 %v1659_v22 }
 0x2a6   : > { %v6178_v34 = vpop.eup %6177  ;;  %v3956_v35 = vsub.f32 %v6174_v25, %v6176_v30  ;;  %6203 = vrcp.f32 %v3195_v26 }
 0x2a7   : > { %v6180_v39 = vpop.eup %6179  ;;  %6205 = vpow2.f32 %v1292_v12  ;;  %v1304_v12 = vmul.f32 1.442695, %v898_v61 }
 0x2a8   : > { %v6182_v43 = vpop.eup %6181  ;;  %v4212_v44 = vadd.f32 0.5, %v3956_v35  ;;  %v3957_v45 = vsub.f32 %v6178_v34, %v6180_v39  ;;  %6207 = vpow2.f32 %v2828_v27 }
 0x2a9   : > { %v6184_v49 = vpop.eup %6183  ;;  %6209 = vpow2.f32 %v1294_v31 }
 0x2aa   : > { %v6186_v53 = vpop.eup %6185  ;;  %v4468_v54 = vmax.f32 %v4212_v44, 0.0  ;;  %v4213_v55 = vadd.f32 0.5, %v3957_v45  ;;  %v3958_v56 = vsub.f32 %v6182_v43, %v6184_v49  ;;  %6211 = vpow2.f32 %v2830_v36  ;;  %v388_v45 = vld [vmem:[%s7402_s28 + $0x4c0] sm:$0xff] }
 0x2ab   : > { %v6188_v59 = vpop.eup %6187  ;;  %6213 = vpow2.f32 %v1296_v37 }
 0x2ac   : > { %v6190_v63 = vpop.eup %6189  ;;  %4724 = vst [vmem:[%s7449_s20 + $0x440] sm:$0xff] %v4468_v54  ;;  %v4469_v0 = vmax.f32 %v4213_v55, 0.0  ;;  %v4214_v1 = vadd.f32 0.5, %v3958_v56  ;;  %v3959_v2 = vsub.f32 %v6186_v53, %v6188_v59  ;;  %6215 = vpow2.f32 %v2832_v40  ;;  %v389_v56 = vld [vmem:[%s7402_s28 + $0x4c8] sm:$0xff] }
 0x2ad   : > { %v6192_v3 = vpop.eup %6191  ;;  %6217 = vpow2.f32 %v1298_v41  ;;  %v900_v53 = vsub.f32 0.0, %v388_v45  ;;  %v645_v59 = vld [vmem:[%s7410_s24 + $0x4c8] sm:$0xff]  ;;  %v901_v5 = vsub.f32 0.0, %v389_v56 }
 0x2ae   : > { %v6194_v7 = vpop.eup %6193  ;;  %4725 = vst [vmem:[%s7449_s20 + $0x448] sm:$0xff] %v4469_v0  ;;  %v4470_v8 = vmax.f32 %v4214_v1, 0.0  ;;  %v4215_v9 = vadd.f32 0.5, %v3959_v2  ;;  %v3960_v10 = vsub.f32 %v6190_v63, %v6192_v3  ;;  %6219 = vpow2.f32 %v2834_v46  ;;  %v646_v0 = vld [vmem:[%s7410_s24 + $0x4d0] sm:$0xff]  ;;  %v391_v1 = vld [vmem:[%s7402_s28 + $0x4d8] sm:$0xff] }
 0x2af   : > { %v6196_v11 = vpop.eup %6195  ;;  %6221 = vpow2.f32 %v1300_v50  ;;  %v2436_v63 = vsub.f32 0.0, %v644_v52 }
 0x2b0   : > { %v6198_v14 = vpop.eup %6197  ;;  %4726 = vst [vmem:[%s7449_s20 + $0x450] sm:$0xff] %v4470_v8  ;;  %v4471_v15 = vmax.f32 %v4215_v9, 0.0  ;;  %v4216_v16 = vadd.f32 0.5, %v3960_v10  ;;  %v3961_v17 = vsub.f32 %v6194_v7, %v6196_v11  ;;  %6223 = vpow2.f32 %v2836_v51  ;;  %v392_v11 = vld [vmem:[%s7402_s28 + $0x4e0] sm:$0xff] }
 0x2b1   : > { %v6200_v18 = vpop.eup %6199  ;;  %6225 = vpow2.f32 %v1302_v60  ;;  %v390_v60 = vld [vmem:[%s7402_s28 + $0x4d0] sm:$0xff]  ;;  %v2437_v9 = vsub.f32 0.0, %v645_v59 }
 0x2b2   : > { %v6202_v21 = vpop.eup %6201  ;;  %4727 = vst [vmem:[%s7449_s20 + $0x458] sm:$0xff] %v4471_v15  ;;  %v4472_v22 = vmax.f32 %v4216_v16, 0.0  ;;  %v4217_v23 = vadd.f32 0.5, %v3961_v17  ;;  %v3962_v24 = vsub.f32 %v6198_v14, %v6200_v18  ;;  %6227 = vpow2.f32 %v2838_v4 }
 0x2b3   : > { %v6204_v25 = vpop.eup %6203  ;;  %6229 = vpow2.f32 %v1304_v12  ;;  %v1308_v4 = vmul.f32 1.442695, %v900_v53  ;;  %v902_v10 = vsub.f32 0.0, %v390_v60  ;;  %v648_v12 = vld [vmem:[%s7410_s24 + $0x4e0] sm:$0xff]  ;;  %v2438_v15 = vsub.f32 0.0, %v646_v0 }
 0x2b4   : > { %v6206_v26 = vpop.eup %6205  ;;  %4728 = vst [vmem:[%s7449_s20 + $0x460] sm:$0xff] %v4472_v22  ;;  %v4473_v27 = vmax.f32 %v4217_v23, 0.0  ;;  %v4218_v28 = vadd.f32 0.5, %v3962_v24  ;;  %v3963_v29 = vsub.f32 %v6202_v21, %v6204_v25  ;;  %6231 = vpow2.f32 %v2840_v13  ;;  %v393_v21 = vld [vmem:[%s7402_s28 + $0x4e8] sm:$0xff] }
 0x2b5   : > { %v6208_v30 = vpop.eup %6207  ;;  %v1660_v31 = vadd.f32 1.0, %v6206_v26  ;;  %6233 = vpow2.f32 %v1306_v19  ;;  %v903_v16 = vsub.f32 0.0, %v391_v1  ;;  %v2844_v19 = vmul.f32 1.442695, %v2436_v63 }
 0x2b6   : > { %v6210_v32 = vpop.eup %6209  ;;  %4729 = vst [vmem:[%s7449_s20 + $0x468] sm:$0xff] %v4473_v27  ;;  %v4474_v33 = vmax.f32 %v4218_v28, 0.0  ;;  %v4219_v34 = vadd.f32 0.5, %v3963_v29  ;;  %v3196_v35 = vadd.f32 1.0, %v6208_v30  ;;  %6235 = vpow2.f32 %v2842_v20  ;;  %v649_v30 = vld [vmem:[%s7410_s24 + $0x4e8] sm:$0xff] }
 0x2b7   : > { %v6212_v36 = vpop.eup %6211  ;;  %6237 = vrcp.f32 %v1660_v31  ;;  %v1661_v37 = vadd.f32 1.0, %v6210_v32  ;;  %v2439_v20 = vsub.f32 0.0, %v647_v6  ;;  %v1310_v23 = vmul.f32 1.442695, %v901_v5 }
 0x2b8   : > { %v6214_v38 = vpop.eup %6213  ;;  %4730 = vst [vmem:[%s7449_s20 + $0x470] sm:$0xff] %v4474_v33  ;;  %v4475_v39 = vmax.f32 %v4219_v34, 0.0  ;;  %6239 = vrcp.f32 %v3196_v35  ;;  %v3197_v40 = vadd.f32 1.0, %v6212_v36  ;;  %v904_v24 = vsub.f32 0.0, %v392_v11 }
 0x2b9   : > { %v6216_v41 = vpop.eup %6215  ;;  %6241 = vrcp.f32 %v1661_v37  ;;  %v1662_v42 = vadd.f32 1.0, %v6214_v38  ;;  %v2440_v25 = vsub.f32 0.0, %v648_v12  ;;  %v2846_v28 = vmul.f32 1.442695, %v2437_v9 }
 0x2ba   : > { %v6218_v43 = vpop.eup %6217  ;;  %4731 = vst [vmem:[%s7449_s20 + $0x478] sm:$0xff] %v4475_v39  ;;  %6243 = vrcp.f32 %v3197_v40  ;;  %v3198_v44 = vadd.f32 1.0, %v6216_v41  ;;  %v1312_v29 = vmul.f32 1.442695, %v902_v10  ;;  %v2848_v32 = vmul.f32 1.442695, %v2438_v15 }
 0x2bb   : > { %v6220_v46 = vpop.eup %6219  ;;  %6245 = vrcp.f32 %v1662_v42  ;;  %v1663_v47 = vadd.f32 1.0, %v6218_v43  ;;  %v1314_v33 = vmul.f32 1.442695, %v903_v16  ;;  %v905_v34 = vsub.f32 0.0, %v393_v21  ;;  %v394_v39 = vld [vmem:[%s7402_s28 + $0x4f0] sm:$0xff] }
 0x2bc   : > { %v6222_v48 = vpop.eup %6221  ;;  %6247 = vrcp.f32 %v3198_v44  ;;  %v3199_v49 = vadd.f32 1.0, %v6220_v46  ;;  %v2850_v38 = vmul.f32 1.442695, %v2439_v20  ;;  %v650_v40 = vld [vmem:[%s7410_s24 + $0x4f0] sm:$0xff]  ;;  %v1316_v42 = vmul.f32 1.442695, %v904_v24 }
 0x2bd   : > { %v6224_v50 = vpop.eup %6223  ;;  %6249 = vrcp.f32 %v1663_v47  ;;  %v1664_v51 = vadd.f32 1.0, %v6222_v48  ;;  %v2852_v43 = vmul.f32 1.442695, %v2440_v25  ;;  %v2441_v44 = vsub.f32 0.0, %v649_v30 }
 0x2be   : > { %v6226_v54 = vpop.eup %6225  ;;  %6251 = vrcp.f32 %v3199_v49  ;;  %v3200_v55 = vadd.f32 1.0, %v6224_v50  ;;  %v395_v49 = vld [vmem:[%s7402_s28 + $0x4f8] sm:$0xff]  ;;  %v1318_v52 = vmul.f32 1.442695, %v905_v34  ;;  %v906_v53 = vsub.f32 0.0, %v394_v39 }
 0x2bf   : > { %v6228_v57 = vpop.eup %6227  ;;  %6253 = vrcp.f32 %v1664_v51  ;;  %v1665_v58 = vadd.f32 1.0, %v6226_v54  ;;  %v651_v50 = vld [vmem:[%s7410_s24 + $0x4f8] sm:$0xff]  ;;  %v2442_v54 = vsub.f32 0.0, %v650_v40  ;;  %v2854_v60 = vmul.f32 1.442695, %v2441_v44  ;;  %v652_v44 = vld [vmem:[%s7410_s24 + $0x500] sm:$0xff] }
 0x2c0   : > { %v6230_v61 = vpop.eup %6229  ;;  %6255 = vrcp.f32 %v3200_v55  ;;  %v3201_v62 = vadd.f32 1.0, %v6228_v57 }
 0x2c1   : > { %v6232_v2 = vpop.eup %6231  ;;  %6257 = vrcp.f32 %v1665_v58  ;;  %v1666_v3 = vadd.f32 1.0, %v6230_v61  ;;  %v907_v61 = vsub.f32 0.0, %v395_v49  ;;  %v2856_v5 = vmul.f32 1.442695, %v2442_v54 }
 0x2c2   : > { %v6234_v7 = vpop.eup %6233  ;;  %6259 = vrcp.f32 %v3201_v62  ;;  %v3202_v8 = vadd.f32 1.0, %v6232_v2  ;;  %v2443_v62 = vsub.f32 0.0, %v651_v50 }
 0x2c3   : > { %v6236_v13 = vpop.eup %6235  ;;  %6261 = vrcp.f32 %v1666_v3  ;;  %v1667_v14 = vadd.f32 1.0, %v6234_v7  ;;  %v1322_v11 = vmul.f32 1.442695, %v907_v61 }
 0x2c4   : > { %v6238_v17 = vpop.eup %6237  ;;  %6263 = vrcp.f32 %v3202_v8  ;;  %v3203_v18 = vadd.f32 1.0, %v6236_v13  ;;  %v2858_v12 = vmul.f32 1.442695, %v2443_v62  ;;  %v655_v62 = vld [vmem:[%s7410_s24 + $0x518] sm:$0xff] }
 0x2c5   : > { %v6240_v22 = vpop.eup %6239  ;;  %6265 = vrcp.f32 %v1667_v14 }
 0x2c6   : > { %v6242_v26 = vpop.eup %6241  ;;  %v3964_v27 = vsub.f32 %v6238_v17, %v6240_v22  ;;  %6267 = vrcp.f32 %v3203_v18 }
 0x2c7   : > { %v6244_v31 = vpop.eup %6243  ;;  %6269 = vpow2.f32 %v1308_v4  ;;  %v1320_v4 = vmul.f32 1.442695, %v906_v53 }
 0x2c8   : > { %v6246_v35 = vpop.eup %6245  ;;  %v4220_v36 = vadd.f32 0.5, %v3964_v27  ;;  %v3965_v37 = vsub.f32 %v6242_v26, %v6244_v31  ;;  %6271 = vpow2.f32 %v2844_v19 }
 0x2c9   : > { %v6248_v41 = vpop.eup %6247  ;;  %6273 = vpow2.f32 %v1310_v23 }
 0x2ca   : > { %v6250_v45 = vpop.eup %6249  ;;  %v4476_v46 = vmax.f32 %v4220_v36, 0.0  ;;  %v4221_v47 = vadd.f32 0.5, %v3965_v37  ;;  %v3966_v48 = vsub.f32 %v6246_v35, %v6248_v41  ;;  %6275 = vpow2.f32 %v2846_v28  ;;  %v396_v37 = vld [vmem:[%s7402_s28 + $0x500] sm:$0xff] }
 0x2cb   : > { %v6252_v51 = vpop.eup %6251  ;;  %6277 = vpow2.f32 %v1312_v29 }
 0x2cc   : > { %v6254_v55 = vpop.eup %6253  ;;  %4732 = vst [vmem:[%s7449_s20 + $0x480] sm:$0xff] %v4476_v46  ;;  %v4477_v56 = vmax.f32 %v4221_v47, 0.0  ;;  %v4222_v57 = vadd.f32 0.5, %v3966_v48  ;;  %v3967_v58 = vsub.f32 %v6250_v45, %v6252_v51  ;;  %6279 = vpow2.f32 %v2848_v32  ;;  %v397_v48 = vld [vmem:[%s7402_s28 + $0x508] sm:$0xff] }
 0x2cd   : > { %v6256_v59 = vpop.eup %6255  ;;  %6281 = vpow2.f32 %v1314_v33  ;;  %v908_v45 = vsub.f32 0.0, %v396_v37  ;;  %v653_v51 = vld [vmem:[%s7410_s24 + $0x508] sm:$0xff]  ;;  %v909_v61 = vsub.f32 0.0, %v397_v48 }
 0x2ce   : > { %v6258_v63 = vpop.eup %6257  ;;  %4733 = vst [vmem:[%s7449_s20 + $0x488] sm:$0xff] %v4477_v56  ;;  %v4478_v0 = vmax.f32 %v4222_v57, 0.0  ;;  %v4223_v1 = vadd.f32 0.5, %v3967_v58  ;;  %v3968_v2 = vsub.f32 %v6254_v55, %v6256_v59  ;;  %6283 = vpow2.f32 %v2850_v38  ;;  %v654_v56 = vld [vmem:[%s7410_s24 + $0x510] sm:$0xff]  ;;  %v399_v57 = vld [vmem:[%s7402_s28 + $0x518] sm:$0xff] }
 0x2cf   : > { %v6260_v3 = vpop.eup %6259  ;;  %6285 = vpow2.f32 %v1316_v42  ;;  %v2444_v55 = vsub.f32 0.0, %v652_v44 }
 0x2d0   : > { %v6262_v6 = vpop.eup %6261  ;;  %4734 = vst [vmem:[%s7449_s20 + $0x490] sm:$0xff] %v4478_v0  ;;  %v4479_v7 = vmax.f32 %v4223_v1, 0.0  ;;  %v4224_v8 = vadd.f32 0.5, %v3968_v2  ;;  %v3969_v9 = vsub.f32 %v6258_v63, %v6260_v3  ;;  %6287 = vpow2.f32 %v2852_v43  ;;  %v400_v3 = vld [vmem:[%s7402_s28 + $0x520] sm:$0xff] }
 0x2d1   : > { %v6264_v10 = vpop.eup %6263  ;;  %6289 = vpow2.f32 %v1318_v52  ;;  %v398_v52 = vld [vmem:[%s7402_s28 + $0x510] sm:$0xff]  ;;  %v2445_v1 = vsub.f32 0.0, %v653_v51 }
 0x2d2   : > { %v6266_v13 = vpop.eup %6265  ;;  %4735 = vst [vmem:[%s7449_s20 + $0x498] sm:$0xff] %v4479_v7  ;;  %v4480_v14 = vmax.f32 %v4224_v8, 0.0  ;;  %v4225_v15 = vadd.f32 0.5, %v3969_v9  ;;  %v3970_v16 = vsub.f32 %v6262_v6, %v6264_v10  ;;  %6291 = vpow2.f32 %v2854_v60 }
 0x2d3   : > { %v6268_v17 = vpop.eup %6267  ;;  %6293 = vpow2.f32 %v1320_v4  ;;  %v1324_v60 = vmul.f32 1.442695, %v908_v45  ;;  %v910_v2 = vsub.f32 0.0, %v398_v52  ;;  %v656_v4 = vld [vmem:[%s7410_s24 + $0x520] sm:$0xff]  ;;  %v2446_v7 = vsub.f32 0.0, %v654_v56 }
 0x2d4   : > { %v6270_v18 = vpop.eup %6269  ;;  %4736 = vst [vmem:[%s7449_s20 + $0x4a0] sm:$0xff] %v4480_v14  ;;  %v4481_v19 = vmax.f32 %v4225_v15, 0.0  ;;  %v4226_v20 = vadd.f32 0.5, %v3970_v16  ;;  %v3971_v21 = vsub.f32 %v6266_v13, %v6268_v17  ;;  %6295 = vpow2.f32 %v2856_v5  ;;  %v401_v13 = vld [vmem:[%s7402_s28 + $0x528] sm:$0xff] }
 0x2d5   : > { %v6272_v22 = vpop.eup %6271  ;;  %v1668_v23 = vadd.f32 1.0, %v6270_v18  ;;  %6297 = vpow2.f32 %v1322_v11  ;;  %v911_v8 = vsub.f32 0.0, %v399_v57  ;;  %v2860_v11 = vmul.f32 1.442695, %v2444_v55 }
 0x2d6   : > { %v6274_v24 = vpop.eup %6273  ;;  %4737 = vst [vmem:[%s7449_s20 + $0x4a8] sm:$0xff] %v4481_v19  ;;  %v4482_v25 = vmax.f32 %v4226_v20, 0.0  ;;  %v4227_v26 = vadd.f32 0.5, %v3971_v21  ;;  %v3204_v27 = vadd.f32 1.0, %v6272_v22  ;;  %6299 = vpow2.f32 %v2858_v12  ;;  %v657_v22 = vld [vmem:[%s7410_s24 + $0x528] sm:$0xff] }
 0x2d7   : > { %v6276_v28 = vpop.eup %6275  ;;  %6301 = vrcp.f32 %v1668_v23  ;;  %v1669_v29 = vadd.f32 1.0, %v6274_v24  ;;  %v2447_v12 = vsub.f32 0.0, %v655_v62  ;;  %v1326_v15 = vmul.f32 1.442695, %v909_v61 }
 0x2d8   : > { %v6278_v30 = vpop.eup %6277  ;;  %4738 = vst [vmem:[%s7449_s20 + $0x4b0] sm:$0xff] %v4482_v25  ;;  %v4483_v31 = vmax.f32 %v4227_v26, 0.0  ;;  %6303 = vrcp.f32 %v3204_v27  ;;  %v3205_v32 = vadd.f32 1.0, %v6276_v28  ;;  %v912_v16 = vsub.f32 0.0, %v400_v3 }
 0x2d9   : > { %v6280_v33 = vpop.eup %6279  ;;  %6305 = vrcp.f32 %v1669_v29  ;;  %v1670_v34 = vadd.f32 1.0, %v6278_v30  ;;  %v2448_v17 = vsub.f32 0.0, %v656_v4  ;;  %v2862_v20 = vmul.f32 1.442695, %v2445_v1 }
 0x2da   : > { %v6282_v35 = vpop.eup %6281  ;;  %4739 = vst [vmem:[%s7449_s20 + $0x4b8] sm:$0xff] %v4483_v31  ;;  %6307 = vrcp.f32 %v3205_v32  ;;  %v3206_v36 = vadd.f32 1.0, %v6280_v33  ;;  %v1328_v21 = vmul.f32 1.442695, %v910_v2  ;;  %v2864_v24 = vmul.f32 1.442695, %v2446_v7 }
 0x2db   : > { %v6284_v38 = vpop.eup %6283  ;;  %6309 = vrcp.f32 %v1670_v34  ;;  %v1671_v39 = vadd.f32 1.0, %v6282_v35  ;;  %v1330_v25 = vmul.f32 1.442695, %v911_v8  ;;  %v913_v26 = vsub.f32 0.0, %v401_v13  ;;  %v402_v31 = vld [vmem:[%s7402_s28 + $0x530] sm:$0xff] }
 0x2dc   : > { %v6286_v40 = vpop.eup %6285  ;;  %6311 = vrcp.f32 %v3206_v36  ;;  %v3207_v41 = vadd.f32 1.0, %v6284_v38  ;;  %v2866_v30 = vmul.f32 1.442695, %v2447_v12  ;;  %v658_v32 = vld [vmem:[%s7410_s24 + $0x530] sm:$0xff]  ;;  %v1332_v34 = vmul.f32 1.442695, %v912_v16 }
 0x2dd   : > { %v6288_v42 = vpop.eup %6287  ;;  %6313 = vrcp.f32 %v1671_v39  ;;  %v1672_v43 = vadd.f32 1.0, %v6286_v40  ;;  %v2868_v35 = vmul.f32 1.442695, %v2448_v17  ;;  %v2449_v36 = vsub.f32 0.0, %v657_v22 }
 0x2de   : > { %v6290_v46 = vpop.eup %6289  ;;  %6315 = vrcp.f32 %v3207_v41  ;;  %v3208_v47 = vadd.f32 1.0, %v6288_v42  ;;  %v403_v41 = vld [vmem:[%s7402_s28 + $0x538] sm:$0xff]  ;;  %v1334_v44 = vmul.f32 1.442695, %v913_v26  ;;  %v914_v45 = vsub.f32 0.0, %v402_v31 }
 0x2df   : > { %v6292_v49 = vpop.eup %6291  ;;  %6317 = vrcp.f32 %v1672_v43  ;;  %v1673_v50 = vadd.f32 1.0, %v6290_v46  ;;  %v659_v42 = vld [vmem:[%s7410_s24 + $0x538] sm:$0xff]  ;;  %v2450_v46 = vsub.f32 0.0, %v658_v32  ;;  %v2870_v52 = vmul.f32 1.442695, %v2449_v36  ;;  %v660_v36 = vld [vmem:[%s7410_s24 + $0x540] sm:$0xff] }
 0x2e0   : > { %v6294_v53 = vpop.eup %6293  ;;  %6319 = vrcp.f32 %v3208_v47  ;;  %v3209_v54 = vadd.f32 1.0, %v6292_v49 }
 0x2e1   : > { %v6296_v58 = vpop.eup %6295  ;;  %6321 = vrcp.f32 %v1673_v50  ;;  %v1674_v59 = vadd.f32 1.0, %v6294_v53  ;;  %v915_v53 = vsub.f32 0.0, %v403_v41  ;;  %v2872_v61 = vmul.f32 1.442695, %v2450_v46 }
 0x2e2   : > { %v6298_v63 = vpop.eup %6297  ;;  %6323 = vrcp.f32 %v3209_v54  ;;  %v3210_v0 = vadd.f32 1.0, %v6296_v58  ;;  %v2451_v54 = vsub.f32 0.0, %v659_v42 }
 0x2e3   : > { %v6300_v5 = vpop.eup %6299  ;;  %6325 = vrcp.f32 %v1674_v59  ;;  %v1675_v6 = vadd.f32 1.0, %v6298_v63  ;;  %v1338_v3 = vmul.f32 1.442695, %v915_v53 }
 0x2e4   : > { %v6302_v9 = vpop.eup %6301  ;;  %6327 = vrcp.f32 %v3210_v0  ;;  %v3211_v10 = vadd.f32 1.0, %v6300_v5  ;;  %v2874_v4 = vmul.f32 1.442695, %v2451_v54  ;;  %v663_v54 = vld [vmem:[%s7410_s24 + $0x558] sm:$0xff] }
 0x2e5   : > { %v6304_v14 = vpop.eup %6303  ;;  %6329 = vrcp.f32 %v1675_v6 }
 0x2e6   : > { %v6306_v18 = vpop.eup %6305  ;;  %v3972_v19 = vsub.f32 %v6302_v9, %v6304_v14  ;;  %6331 = vrcp.f32 %v3211_v10 }
 0x2e7   : > { %v6308_v23 = vpop.eup %6307  ;;  %6333 = vpow2.f32 %v1324_v60  ;;  %v1336_v60 = vmul.f32 1.442695, %v914_v45 }
 0x2e8   : > { %v6310_v27 = vpop.eup %6309  ;;  %v4228_v28 = vadd.f32 0.5, %v3972_v19  ;;  %v3973_v29 = vsub.f32 %v6306_v18, %v6308_v23  ;;  %6335 = vpow2.f32 %v2860_v11 }
 0x2e9   : > { %v6312_v33 = vpop.eup %6311  ;;  %6337 = vpow2.f32 %v1326_v15 }
 0x2ea   : > { %v6314_v37 = vpop.eup %6313  ;;  %v4484_v38 = vmax.f32 %v4228_v28, 0.0  ;;  %v4229_v39 = vadd.f32 0.5, %v3973_v29  ;;  %v3974_v40 = vsub.f32 %v6310_v27, %v6312_v33  ;;  %6339 = vpow2.f32 %v2862_v20  ;;  %v404_v29 = vld [vmem:[%s7402_s28 + $0x540] sm:$0xff] }
 0x2eb   : > { %v6316_v43 = vpop.eup %6315  ;;  %6341 = vpow2.f32 %v1328_v21 }
 0x2ec   : > { %v6318_v47 = vpop.eup %6317  ;;  %4740 = vst [vmem:[%s7449_s20 + $0x4c0] sm:$0xff] %v4484_v38  ;;  %v4485_v48 = vmax.f32 %v4229_v39, 0.0  ;;  %v4230_v49 = vadd.f32 0.5, %v3974_v40  ;;  %v3975_v50 = vsub.f32 %v6314_v37, %v6316_v43  ;;  %6343 = vpow2.f32 %v2864_v24  ;;  %v405_v40 = vld [vmem:[%s7402_s28 + $0x548] sm:$0xff] }
 0x2ed   : > { %v6320_v51 = vpop.eup %6319  ;;  %6345 = vpow2.f32 %v1330_v25  ;;  %v916_v37 = vsub.f32 0.0, %v404_v29  ;;  %v661_v43 = vld [vmem:[%s7410_s24 + $0x548] sm:$0xff]  ;;  %v917_v53 = vsub.f32 0.0, %v405_v40 }
 0x2ee   : > { %v6322_v55 = vpop.eup %6321  ;;  %4741 = vst [vmem:[%s7449_s20 + $0x4c8] sm:$0xff] %v4485_v48  ;;  %v4486_v56 = vmax.f32 %v4230_v49, 0.0  ;;  %v4231_v57 = vadd.f32 0.5, %v3975_v50  ;;  %v3976_v58 = vsub.f32 %v6318_v47, %v6320_v51  ;;  %6347 = vpow2.f32 %v2866_v30  ;;  %v662_v48 = vld [vmem:[%s7410_s24 + $0x550] sm:$0xff]  ;;  %v407_v49 = vld [vmem:[%s7402_s28 + $0x558] sm:$0xff] }
 0x2ef   : > { %v6324_v59 = vpop.eup %6323  ;;  %6349 = vpow2.f32 %v1332_v34  ;;  %v2452_v47 = vsub.f32 0.0, %v660_v36 }
 0x2f0   : > { %v6326_v62 = vpop.eup %6325  ;;  %4742 = vst [vmem:[%s7449_s20 + $0x4d0] sm:$0xff] %v4486_v56  ;;  %v4487_v63 = vmax.f32 %v4231_v57, 0.0  ;;  %v4232_v0 = vadd.f32 0.5, %v3976_v58  ;;  %v3977_v1 = vsub.f32 %v6322_v55, %v6324_v59  ;;  %6351 = vpow2.f32 %v2868_v35  ;;  %v408_v59 = vld [vmem:[%s7402_s28 + $0x560] sm:$0xff] }
 0x2f1   : > { %v6328_v2 = vpop.eup %6327  ;;  %6353 = vpow2.f32 %v1334_v44  ;;  %v406_v44 = vld [vmem:[%s7402_s28 + $0x550] sm:$0xff]  ;;  %v2453_v57 = vsub.f32 0.0, %v661_v43 }
 0x2f2   : > { %v6330_v5 = vpop.eup %6329  ;;  %4743 = vst [vmem:[%s7449_s20 + $0x4d8] sm:$0xff] %v4487_v63  ;;  %v4488_v6 = vmax.f32 %v4232_v0, 0.0  ;;  %v4233_v7 = vadd.f32 0.5, %v3977_v1  ;;  %v3978_v8 = vsub.f32 %v6326_v62, %v6328_v2  ;;  %6355 = vpow2.f32 %v2870_v52 }
 0x2f3   : > { %v6332_v9 = vpop.eup %6331  ;;  %6357 = vpow2.f32 %v1336_v60  ;;  %v1340_v52 = vmul.f32 1.442695, %v916_v37  ;;  %v918_v58 = vsub.f32 0.0, %v406_v44  ;;  %v664_v60 = vld [vmem:[%s7410_s24 + $0x560] sm:$0xff]  ;;  %v2454_v63 = vsub.f32 0.0, %v662_v48 }
 0x2f4   : > { %v6334_v10 = vpop.eup %6333  ;;  %4744 = vst [vmem:[%s7449_s20 + $0x4e0] sm:$0xff] %v4488_v6  ;;  %v4489_v11 = vmax.f32 %v4233_v7, 0.0  ;;  %v4234_v12 = vadd.f32 0.5, %v3978_v8  ;;  %v3979_v13 = vsub.f32 %v6330_v5, %v6332_v9  ;;  %6359 = vpow2.f32 %v2872_v61  ;;  %v409_v5 = vld [vmem:[%s7402_s28 + $0x568] sm:$0xff] }
 0x2f5   : > { %v6336_v14 = vpop.eup %6335  ;;  %v1676_v15 = vadd.f32 1.0, %v6334_v10  ;;  %6361 = vpow2.f32 %v1338_v3  ;;  %v919_v0 = vsub.f32 0.0, %v407_v49  ;;  %v2876_v3 = vmul.f32 1.442695, %v2452_v47 }
 0x2f6   : > { %v6338_v16 = vpop.eup %6337  ;;  %4745 = vst [vmem:[%s7449_s20 + $0x4e8] sm:$0xff] %v4489_v11  ;;  %v4490_v17 = vmax.f32 %v4234_v12, 0.0  ;;  %v4235_v18 = vadd.f32 0.5, %v3979_v13  ;;  %v3212_v19 = vadd.f32 1.0, %v6336_v14  ;;  %6363 = vpow2.f32 %v2874_v4  ;;  %v665_v14 = vld [vmem:[%s7410_s24 + $0x568] sm:$0xff] }
 0x2f7   : > { %v6340_v20 = vpop.eup %6339  ;;  %6365 = vrcp.f32 %v1676_v15  ;;  %v1677_v21 = vadd.f32 1.0, %v6338_v16  ;;  %v2455_v4 = vsub.f32 0.0, %v663_v54  ;;  %v1342_v7 = vmul.f32 1.442695, %v917_v53 }
 0x2f8   : > { %v6342_v22 = vpop.eup %6341  ;;  %4746 = vst [vmem:[%s7449_s20 + $0x4f0] sm:$0xff] %v4490_v17  ;;  %v4491_v23 = vmax.f32 %v4235_v18, 0.0  ;;  %6367 = vrcp.f32 %v3212_v19  ;;  %v3213_v24 = vadd.f32 1.0, %v6340_v20  ;;  %v920_v8 = vsub.f32 0.0, %v408_v59 }
 0x2f9   : > { %v6344_v25 = vpop.eup %6343  ;;  %6369 = vrcp.f32 %v1677_v21  ;;  %v1678_v26 = vadd.f32 1.0, %v6342_v22  ;;  %v2456_v9 = vsub.f32 0.0, %v664_v60  ;;  %v2878_v12 = vmul.f32 1.442695, %v2453_v57 }
 0x2fa   : > { %v6346_v27 = vpop.eup %6345  ;;  %4747 = vst [vmem:[%s7449_s20 + $0x4f8] sm:$0xff] %v4491_v23  ;;  %6371 = vrcp.f32 %v3213_v24  ;;  %v3214_v28 = vadd.f32 1.0, %v6344_v25  ;;  %v1344_v13 = vmul.f32 1.442695, %v918_v58  ;;  %v2880_v16 = vmul.f32 1.442695, %v2454_v63 }
 0x2fb   : > { %v6348_v30 = vpop.eup %6347  ;;  %6373 = vrcp.f32 %v1678_v26  ;;  %v1679_v31 = vadd.f32 1.0, %v6346_v27  ;;  %v1346_v17 = vmul.f32 1.442695, %v919_v0  ;;  %v921_v18 = vsub.f32 0.0, %v409_v5  ;;  %v410_v23 = vld [vmem:[%s7402_s28 + $0x570] sm:$0xff] }
 0x2fc   : > { %v6350_v32 = vpop.eup %6349  ;;  %6375 = vrcp.f32 %v3214_v28  ;;  %v3215_v33 = vadd.f32 1.0, %v6348_v30  ;;  %v2882_v22 = vmul.f32 1.442695, %v2455_v4  ;;  %v666_v24 = vld [vmem:[%s7410_s24 + $0x570] sm:$0xff]  ;;  %v1348_v26 = vmul.f32 1.442695, %v920_v8 }
 0x2fd   : > { %v6352_v34 = vpop.eup %6351  ;;  %6377 = vrcp.f32 %v1679_v31  ;;  %v1680_v35 = vadd.f32 1.0, %v6350_v32  ;;  %v2884_v27 = vmul.f32 1.442695, %v2456_v9  ;;  %v2457_v28 = vsub.f32 0.0, %v665_v14 }
 0x2fe   : > { %v6354_v38 = vpop.eup %6353  ;;  %6379 = vrcp.f32 %v3215_v33  ;;  %v3216_v39 = vadd.f32 1.0, %v6352_v34  ;;  %v411_v33 = vld [vmem:[%s7402_s28 + $0x578] sm:$0xff]  ;;  %v1350_v36 = vmul.f32 1.442695, %v921_v18  ;;  %v922_v37 = vsub.f32 0.0, %v410_v23 }
 0x2ff   : > { %v6356_v41 = vpop.eup %6355  ;;  %6381 = vrcp.f32 %v1680_v35  ;;  %v1681_v42 = vadd.f32 1.0, %v6354_v38  ;;  %v667_v34 = vld [vmem:[%s7410_s24 + $0x578] sm:$0xff]  ;;  %v2458_v38 = vsub.f32 0.0, %v666_v24  ;;  %v2886_v44 = vmul.f32 1.442695, %v2457_v28  ;;  %v668_v28 = vld [vmem:[%s7410_s24 + $0x580] sm:$0xff] }
 0x300   : > { %v6358_v45 = vpop.eup %6357  ;;  %6383 = vrcp.f32 %v3216_v39  ;;  %v3217_v46 = vadd.f32 1.0, %v6356_v41 }
 0x301   : > { %v6360_v50 = vpop.eup %6359  ;;  %6385 = vrcp.f32 %v1681_v42  ;;  %v1682_v51 = vadd.f32 1.0, %v6358_v45  ;;  %v923_v45 = vsub.f32 0.0, %v411_v33  ;;  %v2888_v53 = vmul.f32 1.442695, %v2458_v38 }
 0x302   : > { %v6362_v55 = vpop.eup %6361  ;;  %6387 = vrcp.f32 %v3217_v46  ;;  %v3218_v56 = vadd.f32 1.0, %v6360_v50  ;;  %v2459_v46 = vsub.f32 0.0, %v667_v34 }
 0x303   : > { %v6364_v61 = vpop.eup %6363  ;;  %6389 = vrcp.f32 %v1682_v51  ;;  %v1683_v62 = vadd.f32 1.0, %v6362_v55  ;;  %v1354_v59 = vmul.f32 1.442695, %v923_v45 }
 0x304   : > { %v6366_v1 = vpop.eup %6365  ;;  %6391 = vrcp.f32 %v3218_v56  ;;  %v3219_v2 = vadd.f32 1.0, %v6364_v61  ;;  %v2890_v60 = vmul.f32 1.442695, %v2459_v46  ;;  %v671_v46 = vld [vmem:[%s7410_s24 + $0x598] sm:$0xff] }
 0x305   : > { %v6368_v6 = vpop.eup %6367  ;;  %6393 = vrcp.f32 %v1683_v62 }
 0x306   : > { %v6370_v10 = vpop.eup %6369  ;;  %v3980_v11 = vsub.f32 %v6366_v1, %v6368_v6  ;;  %6395 = vrcp.f32 %v3219_v2 }
 0x307   : > { %v6372_v15 = vpop.eup %6371  ;;  %6397 = vpow2.f32 %v1340_v52  ;;  %v1352_v52 = vmul.f32 1.442695, %v922_v37 }
 0x308   : > { %v6374_v19 = vpop.eup %6373  ;;  %v4236_v20 = vadd.f32 0.5, %v3980_v11  ;;  %v3981_v21 = vsub.f32 %v6370_v10, %v6372_v15  ;;  %6399 = vpow2.f32 %v2876_v3 }
 0x309   : > { %v6376_v25 = vpop.eup %6375  ;;  %6401 = vpow2.f32 %v1342_v7 }
 0x30a   : > { %v6378_v29 = vpop.eup %6377  ;;  %v4492_v30 = vmax.f32 %v4236_v20, 0.0  ;;  %v4237_v31 = vadd.f32 0.5, %v3981_v21  ;;  %v3982_v32 = vsub.f32 %v6374_v19, %v6376_v25  ;;  %6403 = vpow2.f32 %v2878_v12  ;;  %v412_v21 = vld [vmem:[%s7402_s28 + $0x580] sm:$0xff] }
 0x30b   : > { %v6380_v35 = vpop.eup %6379  ;;  %6405 = vpow2.f32 %v1344_v13 }
 0x30c   : > { %v6382_v39 = vpop.eup %6381  ;;  %4748 = vst [vmem:[%s7449_s20 + $0x500] sm:$0xff] %v4492_v30  ;;  %v4493_v40 = vmax.f32 %v4237_v31, 0.0  ;;  %v4238_v41 = vadd.f32 0.5, %v3982_v32  ;;  %v3983_v42 = vsub.f32 %v6378_v29, %v6380_v35  ;;  %6407 = vpow2.f32 %v2880_v16  ;;  %v413_v32 = vld [vmem:[%s7402_s28 + $0x588] sm:$0xff] }
 0x30d   : > { %v6384_v43 = vpop.eup %6383  ;;  %6409 = vpow2.f32 %v1346_v17  ;;  %v924_v29 = vsub.f32 0.0, %v412_v21  ;;  %v669_v35 = vld [vmem:[%s7410_s24 + $0x588] sm:$0xff]  ;;  %v925_v45 = vsub.f32 0.0, %v413_v32 }
 0x30e   : > { %v6386_v47 = vpop.eup %6385  ;;  %4749 = vst [vmem:[%s7449_s20 + $0x508] sm:$0xff] %v4493_v40  ;;  %v4494_v48 = vmax.f32 %v4238_v41, 0.0  ;;  %v4239_v49 = vadd.f32 0.5, %v3983_v42  ;;  %v3984_v50 = vsub.f32 %v6382_v39, %v6384_v43  ;;  %6411 = vpow2.f32 %v2882_v22  ;;  %v670_v40 = vld [vmem:[%s7410_s24 + $0x590] sm:$0xff]  ;;  %v415_v41 = vld [vmem:[%s7402_s28 + $0x598] sm:$0xff] }
 0x30f   : > { %v6388_v51 = vpop.eup %6387  ;;  %6413 = vpow2.f32 %v1348_v26  ;;  %v2460_v39 = vsub.f32 0.0, %v668_v28 }
 0x310   : > { %v6390_v54 = vpop.eup %6389  ;;  %4750 = vst [vmem:[%s7449_s20 + $0x510] sm:$0xff] %v4494_v48  ;;  %v4495_v55 = vmax.f32 %v4239_v49, 0.0  ;;  %v4240_v56 = vadd.f32 0.5, %v3984_v50  ;;  %v3985_v57 = vsub.f32 %v6386_v47, %v6388_v51  ;;  %6415 = vpow2.f32 %v2884_v27  ;;  %v416_v51 = vld [vmem:[%s7402_s28 + $0x5a0] sm:$0xff] }
 0x311   : > { %v6392_v58 = vpop.eup %6391  ;;  %6417 = vpow2.f32 %v1350_v36  ;;  %v414_v36 = vld [vmem:[%s7402_s28 + $0x590] sm:$0xff]  ;;  %v2461_v49 = vsub.f32 0.0, %v669_v35 }
 0x312   : > { %v6394_v61 = vpop.eup %6393  ;;  %4751 = vst [vmem:[%s7449_s20 + $0x518] sm:$0xff] %v4495_v55  ;;  %v4496_v62 = vmax.f32 %v4240_v56, 0.0  ;;  %v4241_v63 = vadd.f32 0.5, %v3985_v57  ;;  %v3986_v0 = vsub.f32 %v6390_v54, %v6392_v58  ;;  %6419 = vpow2.f32 %v2886_v44 }
 0x313   : > { %v6396_v1 = vpop.eup %6395  ;;  %6421 = vpow2.f32 %v1352_v52  ;;  %v1356_v44 = vmul.f32 1.442695, %v924_v29  ;;  %v926_v50 = vsub.f32 0.0, %v414_v36  ;;  %v672_v52 = vld [vmem:[%s7410_s24 + $0x5a0] sm:$0xff]  ;;  %v2462_v55 = vsub.f32 0.0, %v670_v40 }
 0x314   : > { %v6398_v2 = vpop.eup %6397  ;;  %4752 = vst [vmem:[%s7449_s20 + $0x520] sm:$0xff] %v4496_v62  ;;  %v4497_v3 = vmax.f32 %v4241_v63, 0.0  ;;  %v4242_v4 = vadd.f32 0.5, %v3986_v0  ;;  %v3987_v5 = vsub.f32 %v6394_v61, %v6396_v1  ;;  %6423 = vpow2.f32 %v2888_v53  ;;  %v417_v61 = vld [vmem:[%s7402_s28 + $0x5a8] sm:$0xff] }
 0x315   : > { %v6400_v6 = vpop.eup %6399  ;;  %v1684_v7 = vadd.f32 1.0, %v6398_v2  ;;  %6425 = vpow2.f32 %v1354_v59  ;;  %v927_v56 = vsub.f32 0.0, %v415_v41  ;;  %v2892_v59 = vmul.f32 1.442695, %v2460_v39 }
 0x316   : > { %v6402_v8 = vpop.eup %6401  ;;  %4753 = vst [vmem:[%s7449_s20 + $0x528] sm:$0xff] %v4497_v3  ;;  %v4498_v9 = vmax.f32 %v4242_v4, 0.0  ;;  %v4243_v10 = vadd.f32 0.5, %v3987_v5  ;;  %v3220_v11 = vadd.f32 1.0, %v6400_v6  ;;  %6427 = vpow2.f32 %v2890_v60  ;;  %v673_v6 = vld [vmem:[%s7410_s24 + $0x5a8] sm:$0xff] }
 0x317   : > { %v6404_v12 = vpop.eup %6403  ;;  %6429 = vrcp.f32 %v1684_v7  ;;  %v1685_v13 = vadd.f32 1.0, %v6402_v8  ;;  %v2463_v60 = vsub.f32 0.0, %v671_v46  ;;  %v1358_v63 = vmul.f32 1.442695, %v925_v45 }
 0x318   : > { %v6406_v14 = vpop.eup %6405  ;;  %4754 = vst [vmem:[%s7449_s20 + $0x530] sm:$0xff] %v4498_v9  ;;  %v4499_v15 = vmax.f32 %v4243_v10, 0.0  ;;  %6431 = vrcp.f32 %v3220_v11  ;;  %v3221_v16 = vadd.f32 1.0, %v6404_v12  ;;  %v928_v0 = vsub.f32 0.0, %v416_v51 }
 0x319   : > { %v6408_v17 = vpop.eup %6407  ;;  %6433 = vrcp.f32 %v1685_v13  ;;  %v1686_v18 = vadd.f32 1.0, %v6406_v14  ;;  %v2464_v1 = vsub.f32 0.0, %v672_v52  ;;  %v2894_v4 = vmul.f32 1.442695, %v2461_v49 }
 0x31a   : > { %v6410_v19 = vpop.eup %6409  ;;  %4755 = vst [vmem:[%s7449_s20 + $0x538] sm:$0xff] %v4499_v15  ;;  %6435 = vrcp.f32 %v3221_v16  ;;  %v3222_v20 = vadd.f32 1.0, %v6408_v17  ;;  %v1360_v5 = vmul.f32 1.442695, %v926_v50  ;;  %v2896_v8 = vmul.f32 1.442695, %v2462_v55 }
 0x31b   : > { %v6412_v22 = vpop.eup %6411  ;;  %6437 = vrcp.f32 %v1686_v18  ;;  %v1687_v23 = vadd.f32 1.0, %v6410_v19  ;;  %v1362_v9 = vmul.f32 1.442695, %v927_v56  ;;  %v929_v10 = vsub.f32 0.0, %v417_v61  ;;  %v418_v15 = vld [vmem:[%s7402_s28 + $0x5b0] sm:$0xff] }
 0x31c   : > { %v6414_v24 = vpop.eup %6413  ;;  %6439 = vrcp.f32 %v3222_v20  ;;  %v3223_v25 = vadd.f32 1.0, %v6412_v22  ;;  %v2898_v14 = vmul.f32 1.442695, %v2463_v60  ;;  %v674_v16 = vld [vmem:[%s7410_s24 + $0x5b0] sm:$0xff]  ;;  %v1364_v18 = vmul.f32 1.442695, %v928_v0 }
 0x31d   : > { %v6416_v26 = vpop.eup %6415  ;;  %6441 = vrcp.f32 %v1687_v23  ;;  %v1688_v27 = vadd.f32 1.0, %v6414_v24  ;;  %v2900_v19 = vmul.f32 1.442695, %v2464_v1  ;;  %v2465_v20 = vsub.f32 0.0, %v673_v6 }
 0x31e   : > { %v6418_v30 = vpop.eup %6417  ;;  %6443 = vrcp.f32 %v3223_v25  ;;  %v3224_v31 = vadd.f32 1.0, %v6416_v26  ;;  %v419_v25 = vld [vmem:[%s7402_s28 + $0x5b8] sm:$0xff]  ;;  %v1366_v28 = vmul.f32 1.442695, %v929_v10  ;;  %v930_v29 = vsub.f32 0.0, %v418_v15 }
 0x31f   : > { %v6420_v33 = vpop.eup %6419  ;;  %6445 = vrcp.f32 %v1688_v27  ;;  %v1689_v34 = vadd.f32 1.0, %v6418_v30  ;;  %v675_v26 = vld [vmem:[%s7410_s24 + $0x5b8] sm:$0xff]  ;;  %v2466_v30 = vsub.f32 0.0, %v674_v16  ;;  %v2902_v36 = vmul.f32 1.442695, %v2465_v20  ;;  %v676_v20 = vld [vmem:[%s7410_s24 + $0x5c0] sm:$0xff] }
 0x320   : > { %v6422_v37 = vpop.eup %6421  ;;  %6447 = vrcp.f32 %v3224_v31  ;;  %v3225_v38 = vadd.f32 1.0, %v6420_v33 }
 0x321   : > { %v6424_v42 = vpop.eup %6423  ;;  %6449 = vrcp.f32 %v1689_v34  ;;  %v1690_v43 = vadd.f32 1.0, %v6422_v37  ;;  %v931_v37 = vsub.f32 0.0, %v419_v25  ;;  %v2904_v45 = vmul.f32 1.442695, %v2466_v30 }
 0x322   : > { %v6426_v47 = vpop.eup %6425  ;;  %6451 = vrcp.f32 %v3225_v38  ;;  %v3226_v48 = vadd.f32 1.0, %v6424_v42  ;;  %v2467_v38 = vsub.f32 0.0, %v675_v26 }
 0x323   : > { %v6428_v53 = vpop.eup %6427  ;;  %6453 = vrcp.f32 %v1690_v43  ;;  %v1691_v54 = vadd.f32 1.0, %v6426_v47  ;;  %v1370_v51 = vmul.f32 1.442695, %v931_v37 }
 0x324   : > { %v6430_v57 = vpop.eup %6429  ;;  %6455 = vrcp.f32 %v3226_v48  ;;  %v3227_v58 = vadd.f32 1.0, %v6428_v53  ;;  %v2906_v52 = vmul.f32 1.442695, %v2467_v38  ;;  %v679_v38 = vld [vmem:[%s7410_s24 + $0x5d8] sm:$0xff] }
 0x325   : > { %v6432_v62 = vpop.eup %6431  ;;  %6457 = vrcp.f32 %v1691_v54 }
 0x326   : > { %v6434_v2 = vpop.eup %6433  ;;  %v3988_v3 = vsub.f32 %v6430_v57, %v6432_v62  ;;  %6459 = vrcp.f32 %v3227_v58 }
 0x327   : > { %v6436_v7 = vpop.eup %6435  ;;  %6461 = vpow2.f32 %v1356_v44  ;;  %v1368_v44 = vmul.f32 1.442695, %v930_v29 }
 0x328   : > { %v6438_v11 = vpop.eup %6437  ;;  %v4244_v12 = vadd.f32 0.5, %v3988_v3  ;;  %v3989_v13 = vsub.f32 %v6434_v2, %v6436_v7  ;;  %6463 = vpow2.f32 %v2892_v59 }
 0x329   : > { %v6440_v17 = vpop.eup %6439  ;;  %6465 = vpow2.f32 %v1358_v63 }
 0x32a   : > { %v6442_v21 = vpop.eup %6441  ;;  %v4500_v22 = vmax.f32 %v4244_v12, 0.0  ;;  %v4245_v23 = vadd.f32 0.5, %v3989_v13  ;;  %v3990_v24 = vsub.f32 %v6438_v11, %v6440_v17  ;;  %6467 = vpow2.f32 %v2894_v4  ;;  %v420_v13 = vld [vmem:[%s7402_s28 + $0x5c0] sm:$0xff] }
 0x32b   : > { %v6444_v27 = vpop.eup %6443  ;;  %6469 = vpow2.f32 %v1360_v5 }
 0x32c   : > { %v6446_v31 = vpop.eup %6445  ;;  %4756 = vst [vmem:[%s7449_s20 + $0x540] sm:$0xff] %v4500_v22  ;;  %v4501_v32 = vmax.f32 %v4245_v23, 0.0  ;;  %v4246_v33 = vadd.f32 0.5, %v3990_v24  ;;  %v3991_v34 = vsub.f32 %v6442_v21, %v6444_v27  ;;  %6471 = vpow2.f32 %v2896_v8  ;;  %v421_v24 = vld [vmem:[%s7402_s28 + $0x5c8] sm:$0xff] }
 0x32d   : > { %v6448_v35 = vpop.eup %6447  ;;  %6473 = vpow2.f32 %v1362_v9  ;;  %v932_v21 = vsub.f32 0.0, %v420_v13  ;;  %v677_v27 = vld [vmem:[%s7410_s24 + $0x5c8] sm:$0xff]  ;;  %v933_v37 = vsub.f32 0.0, %v421_v24 }
 0x32e   : > { %v6450_v39 = vpop.eup %6449  ;;  %4757 = vst [vmem:[%s7449_s20 + $0x548] sm:$0xff] %v4501_v32  ;;  %v4502_v40 = vmax.f32 %v4246_v33, 0.0  ;;  %v4247_v41 = vadd.f32 0.5, %v3991_v34  ;;  %v3992_v42 = vsub.f32 %v6446_v31, %v6448_v35  ;;  %6475 = vpow2.f32 %v2898_v14  ;;  %v678_v32 = vld [vmem:[%s7410_s24 + $0x5d0] sm:$0xff]  ;;  %v423_v33 = vld [vmem:[%s7402_s28 + $0x5d8] sm:$0xff] }
 0x32f   : > { %v6452_v43 = vpop.eup %6451  ;;  %6477 = vpow2.f32 %v1364_v18  ;;  %v2468_v31 = vsub.f32 0.0, %v676_v20 }
 0x330   : > { %v6454_v46 = vpop.eup %6453  ;;  %4758 = vst [vmem:[%s7449_s20 + $0x550] sm:$0xff] %v4502_v40  ;;  %v4503_v47 = vmax.f32 %v4247_v41, 0.0  ;;  %v4248_v48 = vadd.f32 0.5, %v3992_v42  ;;  %v3993_v49 = vsub.f32 %v6450_v39, %v6452_v43  ;;  %6479 = vpow2.f32 %v2900_v19  ;;  %v424_v43 = vld [vmem:[%s7402_s28 + $0x5e0] sm:$0xff] }
 0x331   : > { %v6456_v50 = vpop.eup %6455  ;;  %6481 = vpow2.f32 %v1366_v28  ;;  %v422_v28 = vld [vmem:[%s7402_s28 + $0x5d0] sm:$0xff]  ;;  %v2469_v41 = vsub.f32 0.0, %v677_v27 }
 0x332   : > { %v6458_v53 = vpop.eup %6457  ;;  %4759 = vst [vmem:[%s7449_s20 + $0x558] sm:$0xff] %v4503_v47  ;;  %v4504_v54 = vmax.f32 %v4248_v48, 0.0  ;;  %v4249_v55 = vadd.f32 0.5, %v3993_v49  ;;  %v3994_v56 = vsub.f32 %v6454_v46, %v6456_v50  ;;  %6483 = vpow2.f32 %v2902_v36 }
 0x333   : > { %v6460_v57 = vpop.eup %6459  ;;  %6485 = vpow2.f32 %v1368_v44  ;;  %v1372_v36 = vmul.f32 1.442695, %v932_v21  ;;  %v934_v42 = vsub.f32 0.0, %v422_v28  ;;  %v680_v44 = vld [vmem:[%s7410_s24 + $0x5e0] sm:$0xff]  ;;  %v2470_v47 = vsub.f32 0.0, %v678_v32 }
 0x334   : > { %v6462_v58 = vpop.eup %6461  ;;  %4760 = vst [vmem:[%s7449_s20 + $0x560] sm:$0xff] %v4504_v54  ;;  %v4505_v59 = vmax.f32 %v4249_v55, 0.0  ;;  %v4250_v60 = vadd.f32 0.5, %v3994_v56  ;;  %v3995_v61 = vsub.f32 %v6458_v53, %v6460_v57  ;;  %6487 = vpow2.f32 %v2904_v45  ;;  %v425_v53 = vld [vmem:[%s7402_s28 + $0x5e8] sm:$0xff] }
 0x335   : > { %v6464_v62 = vpop.eup %6463  ;;  %v1692_v63 = vadd.f32 1.0, %v6462_v58  ;;  %6489 = vpow2.f32 %v1370_v51  ;;  %v935_v48 = vsub.f32 0.0, %v423_v33  ;;  %v2908_v51 = vmul.f32 1.442695, %v2468_v31 }
 0x336   : > { %v6466_v0 = vpop.eup %6465  ;;  %4761 = vst [vmem:[%s7449_s20 + $0x568] sm:$0xff] %v4505_v59  ;;  %v4506_v1 = vmax.f32 %v4250_v60, 0.0  ;;  %v4251_v2 = vadd.f32 0.5, %v3995_v61  ;;  %v3228_v3 = vadd.f32 1.0, %v6464_v62  ;;  %6491 = vpow2.f32 %v2906_v52  ;;  %v681_v62 = vld [vmem:[%s7410_s24 + $0x5e8] sm:$0xff] }
 0x337   : > { %v6468_v4 = vpop.eup %6467  ;;  %6493 = vrcp.f32 %v1692_v63  ;;  %v1693_v5 = vadd.f32 1.0, %v6466_v0  ;;  %v2471_v52 = vsub.f32 0.0, %v679_v38  ;;  %v1374_v55 = vmul.f32 1.442695, %v933_v37 }
 0x338   : > { %v6470_v6 = vpop.eup %6469  ;;  %4762 = vst [vmem:[%s7449_s20 + $0x570] sm:$0xff] %v4506_v1  ;;  %v4507_v7 = vmax.f32 %v4251_v2, 0.0  ;;  %6495 = vrcp.f32 %v3228_v3  ;;  %v3229_v8 = vadd.f32 1.0, %v6468_v4  ;;  %v936_v56 = vsub.f32 0.0, %v424_v43 }
 0x339   : > { %v6472_v9 = vpop.eup %6471  ;;  %6497 = vrcp.f32 %v1693_v5  ;;  %v1694_v10 = vadd.f32 1.0, %v6470_v6  ;;  %v2472_v57 = vsub.f32 0.0, %v680_v44  ;;  %v2910_v60 = vmul.f32 1.442695, %v2469_v41 }
 0x33a   : > { %v6474_v11 = vpop.eup %6473  ;;  %4763 = vst [vmem:[%s7449_s20 + $0x578] sm:$0xff] %v4507_v7  ;;  %6499 = vrcp.f32 %v3229_v8  ;;  %v3230_v12 = vadd.f32 1.0, %v6472_v9  ;;  %v1376_v61 = vmul.f32 1.442695, %v934_v42  ;;  %v2912_v0 = vmul.f32 1.442695, %v2470_v47 }
 0x33b   : > { %v6476_v14 = vpop.eup %6475  ;;  %6501 = vrcp.f32 %v1694_v10  ;;  %v1695_v15 = vadd.f32 1.0, %v6474_v11  ;;  %v1378_v1 = vmul.f32 1.442695, %v935_v48  ;;  %v937_v2 = vsub.f32 0.0, %v425_v53  ;;  %v426_v7 = vld [vmem:[%s7402_s28 + $0x5f0] sm:$0xff] }
 0x33c   : > { %v6478_v16 = vpop.eup %6477  ;;  %6503 = vrcp.f32 %v3230_v12  ;;  %v3231_v17 = vadd.f32 1.0, %v6476_v14  ;;  %v2914_v6 = vmul.f32 1.442695, %v2471_v52  ;;  %v682_v8 = vld [vmem:[%s7410_s24 + $0x5f0] sm:$0xff]  ;;  %v1380_v10 = vmul.f32 1.442695, %v936_v56 }
 0x33d   : > { %v6480_v18 = vpop.eup %6479  ;;  %6505 = vrcp.f32 %v1695_v15  ;;  %v1696_v19 = vadd.f32 1.0, %v6478_v16  ;;  %v2916_v11 = vmul.f32 1.442695, %v2472_v57  ;;  %v2473_v12 = vsub.f32 0.0, %v681_v62 }
 0x33e   : > { %v6482_v22 = vpop.eup %6481  ;;  %6507 = vrcp.f32 %v3231_v17  ;;  %v3232_v23 = vadd.f32 1.0, %v6480_v18  ;;  %v427_v17 = vld [vmem:[%s7402_s28 + $0x5f8] sm:$0xff]  ;;  %v1382_v20 = vmul.f32 1.442695, %v937_v2  ;;  %v938_v21 = vsub.f32 0.0, %v426_v7 }
 0x33f   : > { %v6484_v25 = vpop.eup %6483  ;;  %6509 = vrcp.f32 %v1696_v19  ;;  %v1697_v26 = vadd.f32 1.0, %v6482_v22  ;;  %v683_v18 = vld [vmem:[%s7410_s24 + $0x5f8] sm:$0xff]  ;;  %v2474_v22 = vsub.f32 0.0, %v682_v8  ;;  %v2918_v28 = vmul.f32 1.442695, %v2473_v12  ;;  %v684_v12 = vld [vmem:[%s7410_s24 + $0x600] sm:$0xff] }
 0x340   : > { %v6486_v29 = vpop.eup %6485  ;;  %6511 = vrcp.f32 %v3232_v23  ;;  %v3233_v30 = vadd.f32 1.0, %v6484_v25 }
 0x341   : > { %v6488_v34 = vpop.eup %6487  ;;  %6513 = vrcp.f32 %v1697_v26  ;;  %v1698_v35 = vadd.f32 1.0, %v6486_v29  ;;  %v939_v29 = vsub.f32 0.0, %v427_v17  ;;  %v2920_v37 = vmul.f32 1.442695, %v2474_v22 }
 0x342   : > { %v6490_v39 = vpop.eup %6489  ;;  %6515 = vrcp.f32 %v3233_v30  ;;  %v3234_v40 = vadd.f32 1.0, %v6488_v34  ;;  %v2475_v30 = vsub.f32 0.0, %v683_v18 }
 0x343   : > { %v6492_v45 = vpop.eup %6491  ;;  %6517 = vrcp.f32 %v1698_v35  ;;  %v1699_v46 = vadd.f32 1.0, %v6490_v39  ;;  %v1386_v43 = vmul.f32 1.442695, %v939_v29 }
 0x344   : > { %v6494_v49 = vpop.eup %6493  ;;  %6519 = vrcp.f32 %v3234_v40  ;;  %v3235_v50 = vadd.f32 1.0, %v6492_v45  ;;  %v2922_v44 = vmul.f32 1.442695, %v2475_v30  ;;  %v687_v30 = vld [vmem:[%s7410_s24 + $0x618] sm:$0xff] }
 0x345   : > { %v6496_v54 = vpop.eup %6495  ;;  %6521 = vrcp.f32 %v1699_v46 }
 0x346   : > { %v6498_v58 = vpop.eup %6497  ;;  %v3996_v59 = vsub.f32 %v6494_v49, %v6496_v54  ;;  %6523 = vrcp.f32 %v3235_v50 }
 0x347   : > { %v6500_v63 = vpop.eup %6499  ;;  %6525 = vpow2.f32 %v1372_v36  ;;  %v1384_v36 = vmul.f32 1.442695, %v938_v21 }
 0x348   : > { %v6502_v3 = vpop.eup %6501  ;;  %v4252_v4 = vadd.f32 0.5, %v3996_v59  ;;  %v3997_v5 = vsub.f32 %v6498_v58, %v6500_v63  ;;  %6527 = vpow2.f32 %v2908_v51 }
 0x349   : > { %v6504_v9 = vpop.eup %6503  ;;  %6529 = vpow2.f32 %v1374_v55 }
 0x34a   : > { %v6506_v13 = vpop.eup %6505  ;;  %v4508_v14 = vmax.f32 %v4252_v4, 0.0  ;;  %v4253_v15 = vadd.f32 0.5, %v3997_v5  ;;  %v3998_v16 = vsub.f32 %v6502_v3, %v6504_v9  ;;  %6531 = vpow2.f32 %v2910_v60  ;;  %v428_v5 = vld [vmem:[%s7402_s28 + $0x600] sm:$0xff] }
 0x34b   : > { %v6508_v19 = vpop.eup %6507  ;;  %6533 = vpow2.f32 %v1376_v61 }
 0x34c   : > { %v6510_v23 = vpop.eup %6509  ;;  %4764 = vst [vmem:[%s7449_s20 + $0x580] sm:$0xff] %v4508_v14  ;;  %v4509_v24 = vmax.f32 %v4253_v15, 0.0  ;;  %v4254_v25 = vadd.f32 0.5, %v3998_v16  ;;  %v3999_v26 = vsub.f32 %v6506_v13, %v6508_v19  ;;  %6535 = vpow2.f32 %v2912_v0  ;;  %v429_v16 = vld [vmem:[%s7402_s28 + $0x608] sm:$0xff] }
 0x34d   : > { %v6512_v27 = vpop.eup %6511  ;;  %6537 = vpow2.f32 %v1378_v1  ;;  %v940_v13 = vsub.f32 0.0, %v428_v5  ;;  %v685_v19 = vld [vmem:[%s7410_s24 + $0x608] sm:$0xff]  ;;  %v941_v29 = vsub.f32 0.0, %v429_v16 }
 0x34e   : > { %v6514_v31 = vpop.eup %6513  ;;  %4765 = vst [vmem:[%s7449_s20 + $0x588] sm:$0xff] %v4509_v24  ;;  %v4510_v32 = vmax.f32 %v4254_v25, 0.0  ;;  %v4255_v33 = vadd.f32 0.5, %v3999_v26  ;;  %v4000_v34 = vsub.f32 %v6510_v23, %v6512_v27  ;;  %6539 = vpow2.f32 %v2914_v6  ;;  %v686_v24 = vld [vmem:[%s7410_s24 + $0x610] sm:$0xff]  ;;  %v431_v25 = vld [vmem:[%s7402_s28 + $0x618] sm:$0xff] }
 0x34f   : > { %v6516_v35 = vpop.eup %6515  ;;  %6541 = vpow2.f32 %v1380_v10  ;;  %v2476_v23 = vsub.f32 0.0, %v684_v12 }
 0x350   : > { %v6518_v38 = vpop.eup %6517  ;;  %4766 = vst [vmem:[%s7449_s20 + $0x590] sm:$0xff] %v4510_v32  ;;  %v4511_v39 = vmax.f32 %v4255_v33, 0.0  ;;  %v4256_v40 = vadd.f32 0.5, %v4000_v34  ;;  %v4001_v41 = vsub.f32 %v6514_v31, %v6516_v35  ;;  %6543 = vpow2.f32 %v2916_v11  ;;  %v432_v35 = vld [vmem:[%s7402_s28 + $0x620] sm:$0xff] }
 0x351   : > { %v6520_v42 = vpop.eup %6519  ;;  %6545 = vpow2.f32 %v1382_v20  ;;  %v430_v20 = vld [vmem:[%s7402_s28 + $0x610] sm:$0xff]  ;;  %v2477_v33 = vsub.f32 0.0, %v685_v19 }
 0x352   : > { %v6522_v45 = vpop.eup %6521  ;;  %4767 = vst [vmem:[%s7449_s20 + $0x598] sm:$0xff] %v4511_v39  ;;  %v4512_v46 = vmax.f32 %v4256_v40, 0.0  ;;  %v4257_v47 = vadd.f32 0.5, %v4001_v41  ;;  %v4002_v48 = vsub.f32 %v6518_v38, %v6520_v42  ;;  %6547 = vpow2.f32 %v2918_v28 }
 0x353   : > { %v6524_v49 = vpop.eup %6523  ;;  %6549 = vpow2.f32 %v1384_v36  ;;  %v1388_v28 = vmul.f32 1.442695, %v940_v13  ;;  %v942_v34 = vsub.f32 0.0, %v430_v20  ;;  %v688_v36 = vld [vmem:[%s7410_s24 + $0x620] sm:$0xff]  ;;  %v2478_v39 = vsub.f32 0.0, %v686_v24 }
 0x354   : > { %v6526_v50 = vpop.eup %6525  ;;  %4768 = vst [vmem:[%s7449_s20 + $0x5a0] sm:$0xff] %v4512_v46  ;;  %v4513_v51 = vmax.f32 %v4257_v47, 0.0  ;;  %v4258_v52 = vadd.f32 0.5, %v4002_v48  ;;  %v4003_v53 = vsub.f32 %v6522_v45, %v6524_v49  ;;  %6551 = vpow2.f32 %v2920_v37  ;;  %v433_v45 = vld [vmem:[%s7402_s28 + $0x628] sm:$0xff] }
 0x355   : > { %v6528_v54 = vpop.eup %6527  ;;  %v1700_v55 = vadd.f32 1.0, %v6526_v50  ;;  %6553 = vpow2.f32 %v1386_v43  ;;  %v943_v40 = vsub.f32 0.0, %v431_v25  ;;  %v2924_v43 = vmul.f32 1.442695, %v2476_v23 }
 0x356   : > { %v6530_v56 = vpop.eup %6529  ;;  %4769 = vst [vmem:[%s7449_s20 + $0x5a8] sm:$0xff] %v4513_v51  ;;  %v4514_v57 = vmax.f32 %v4258_v52, 0.0  ;;  %v4259_v58 = vadd.f32 0.5, %v4003_v53  ;;  %v3236_v59 = vadd.f32 1.0, %v6528_v54  ;;  %6555 = vpow2.f32 %v2922_v44  ;;  %v689_v54 = vld [vmem:[%s7410_s24 + $0x628] sm:$0xff] }
 0x357   : > { %v6532_v60 = vpop.eup %6531  ;;  %6557 = vrcp.f32 %v1700_v55  ;;  %v1701_v61 = vadd.f32 1.0, %v6530_v56  ;;  %v2479_v44 = vsub.f32 0.0, %v687_v30  ;;  %v1390_v47 = vmul.f32 1.442695, %v941_v29 }
 0x358   : > { %v6534_v62 = vpop.eup %6533  ;;  %4770 = vst [vmem:[%s7449_s20 + $0x5b0] sm:$0xff] %v4514_v57  ;;  %v4515_v63 = vmax.f32 %v4259_v58, 0.0  ;;  %6559 = vrcp.f32 %v3236_v59  ;;  %v3237_v0 = vadd.f32 1.0, %v6532_v60  ;;  %v944_v48 = vsub.f32 0.0, %v432_v35 }
 0x359   : > { %v6536_v1 = vpop.eup %6535  ;;  %6561 = vrcp.f32 %v1701_v61  ;;  %v1702_v2 = vadd.f32 1.0, %v6534_v62  ;;  %v2480_v49 = vsub.f32 0.0, %v688_v36  ;;  %v2926_v52 = vmul.f32 1.442695, %v2477_v33 }
 0x35a   : > { %v6538_v3 = vpop.eup %6537  ;;  %4771 = vst [vmem:[%s7449_s20 + $0x5b8] sm:$0xff] %v4515_v63  ;;  %6563 = vrcp.f32 %v3237_v0  ;;  %v3238_v4 = vadd.f32 1.0, %v6536_v1  ;;  %v1392_v53 = vmul.f32 1.442695, %v942_v34  ;;  %v2928_v56 = vmul.f32 1.442695, %v2478_v39 }
 0x35b   : > { %v6540_v6 = vpop.eup %6539  ;;  %6565 = vrcp.f32 %v1702_v2  ;;  %v1703_v7 = vadd.f32 1.0, %v6538_v3  ;;  %v1394_v57 = vmul.f32 1.442695, %v943_v40  ;;  %v945_v58 = vsub.f32 0.0, %v433_v45  ;;  %v434_v63 = vld [vmem:[%s7402_s28 + $0x630] sm:$0xff] }
 0x35c   : > { %v6542_v8 = vpop.eup %6541  ;;  %6567 = vrcp.f32 %v3238_v4  ;;  %v3239_v9 = vadd.f32 1.0, %v6540_v6  ;;  %v2930_v62 = vmul.f32 1.442695, %v2479_v44  ;;  %v690_v0 = vld [vmem:[%s7410_s24 + $0x630] sm:$0xff]  ;;  %v1396_v2 = vmul.f32 1.442695, %v944_v48 }
 0x35d   : > { %v6544_v10 = vpop.eup %6543  ;;  %6569 = vrcp.f32 %v1703_v7  ;;  %v1704_v11 = vadd.f32 1.0, %v6542_v8  ;;  %v2932_v3 = vmul.f32 1.442695, %v2480_v49  ;;  %v2481_v4 = vsub.f32 0.0, %v689_v54 }
 0x35e   : > { %v6546_v14 = vpop.eup %6545  ;;  %6571 = vrcp.f32 %v3239_v9  ;;  %v3240_v15 = vadd.f32 1.0, %v6544_v10  ;;  %v435_v9 = vld [vmem:[%s7402_s28 + $0x638] sm:$0xff]  ;;  %v1398_v12 = vmul.f32 1.442695, %v945_v58  ;;  %v946_v13 = vsub.f32 0.0, %v434_v63 }
 0x35f   : > { %v6548_v17 = vpop.eup %6547  ;;  %6573 = vrcp.f32 %v1704_v11  ;;  %v1705_v18 = vadd.f32 1.0, %v6546_v14  ;;  %v691_v10 = vld [vmem:[%s7410_s24 + $0x638] sm:$0xff]  ;;  %v2482_v14 = vsub.f32 0.0, %v690_v0  ;;  %v2934_v20 = vmul.f32 1.442695, %v2481_v4  ;;  %v692_v4 = vld [vmem:[%s7410_s24 + $0x640] sm:$0xff] }
 0x360   : > { %v6550_v21 = vpop.eup %6549  ;;  %6575 = vrcp.f32 %v3240_v15  ;;  %v3241_v22 = vadd.f32 1.0, %v6548_v17 }
 0x361   : > { %v6552_v26 = vpop.eup %6551  ;;  %6577 = vrcp.f32 %v1705_v18  ;;  %v1706_v27 = vadd.f32 1.0, %v6550_v21  ;;  %v947_v21 = vsub.f32 0.0, %v435_v9  ;;  %v2936_v29 = vmul.f32 1.442695, %v2482_v14 }
 0x362   : > { %v6554_v31 = vpop.eup %6553  ;;  %6579 = vrcp.f32 %v3241_v22  ;;  %v3242_v32 = vadd.f32 1.0, %v6552_v26  ;;  %v2483_v22 = vsub.f32 0.0, %v691_v10 }
 0x363   : > { %v6556_v37 = vpop.eup %6555  ;;  %6581 = vrcp.f32 %v1706_v27  ;;  %v1707_v38 = vadd.f32 1.0, %v6554_v31  ;;  %v1402_v35 = vmul.f32 1.442695, %v947_v21 }
 0x364   : > { %v6558_v41 = vpop.eup %6557  ;;  %6583 = vrcp.f32 %v3242_v32  ;;  %v3243_v42 = vadd.f32 1.0, %v6556_v37  ;;  %v2938_v36 = vmul.f32 1.442695, %v2483_v22  ;;  %v695_v22 = vld [vmem:[%s7410_s24 + $0x658] sm:$0xff] }
 0x365   : > { %v6560_v46 = vpop.eup %6559  ;;  %6585 = vrcp.f32 %v1707_v38 }
 0x366   : > { %v6562_v50 = vpop.eup %6561  ;;  %v4004_v51 = vsub.f32 %v6558_v41, %v6560_v46  ;;  %6587 = vrcp.f32 %v3243_v42 }
 0x367   : > { %v6564_v55 = vpop.eup %6563  ;;  %6589 = vpow2.f32 %v1388_v28  ;;  %v1400_v28 = vmul.f32 1.442695, %v946_v13 }
 0x368   : > { %v6566_v59 = vpop.eup %6565  ;;  %v4260_v60 = vadd.f32 0.5, %v4004_v51  ;;  %v4005_v61 = vsub.f32 %v6562_v50, %v6564_v55  ;;  %6591 = vpow2.f32 %v2924_v43 }
 0x369   : > { %v6568_v1 = vpop.eup %6567  ;;  %6593 = vpow2.f32 %v1390_v47 }
 0x36a   : > { %v6570_v5 = vpop.eup %6569  ;;  %v4516_v6 = vmax.f32 %v4260_v60, 0.0  ;;  %v4261_v7 = vadd.f32 0.5, %v4005_v61  ;;  %v4006_v8 = vsub.f32 %v6566_v59, %v6568_v1  ;;  %6595 = vpow2.f32 %v2926_v52  ;;  %v436_v61 = vld [vmem:[%s7402_s28 + $0x640] sm:$0xff] }
 0x36b   : > { %v6572_v11 = vpop.eup %6571  ;;  %6597 = vpow2.f32 %v1392_v53 }
 0x36c   : > { %v6574_v15 = vpop.eup %6573  ;;  %4772 = vst [vmem:[%s7449_s20 + $0x5c0] sm:$0xff] %v4516_v6  ;;  %v4517_v16 = vmax.f32 %v4261_v7, 0.0  ;;  %v4262_v17 = vadd.f32 0.5, %v4006_v8  ;;  %v4007_v18 = vsub.f32 %v6570_v5, %v6572_v11  ;;  %6599 = vpow2.f32 %v2928_v56  ;;  %v437_v8 = vld [vmem:[%s7402_s28 + $0x648] sm:$0xff] }
 0x36d   : > { %v6576_v19 = vpop.eup %6575  ;;  %6601 = vpow2.f32 %v1394_v57  ;;  %v948_v5 = vsub.f32 0.0, %v436_v61  ;;  %v693_v11 = vld [vmem:[%s7410_s24 + $0x648] sm:$0xff]  ;;  %v949_v21 = vsub.f32 0.0, %v437_v8 }
 0x36e   : > { %v6578_v23 = vpop.eup %6577  ;;  %4773 = vst [vmem:[%s7449_s20 + $0x5c8] sm:$0xff] %v4517_v16  ;;  %v4518_v24 = vmax.f32 %v4262_v17, 0.0  ;;  %v4263_v25 = vadd.f32 0.5, %v4007_v18  ;;  %v4008_v26 = vsub.f32 %v6574_v15, %v6576_v19  ;;  %6603 = vpow2.f32 %v2930_v62  ;;  %v694_v16 = vld [vmem:[%s7410_s24 + $0x650] sm:$0xff]  ;;  %v439_v17 = vld [vmem:[%s7402_s28 + $0x658] sm:$0xff] }
 0x36f   : > { %v6580_v27 = vpop.eup %6579  ;;  %6605 = vpow2.f32 %v1396_v2  ;;  %v2484_v15 = vsub.f32 0.0, %v692_v4 }
 0x370   : > { %v6582_v30 = vpop.eup %6581  ;;  %4774 = vst [vmem:[%s7449_s20 + $0x5d0] sm:$0xff] %v4518_v24  ;;  %v4519_v31 = vmax.f32 %v4263_v25, 0.0  ;;  %v4264_v32 = vadd.f32 0.5, %v4008_v26  ;;  %v4009_v33 = vsub.f32 %v6578_v23, %v6580_v27  ;;  %6607 = vpow2.f32 %v2932_v3  ;;  %v440_v27 = vld [vmem:[%s7402_s28 + $0x660] sm:$0xff] }
 0x371   : > { %v6584_v34 = vpop.eup %6583  ;;  %6609 = vpow2.f32 %v1398_v12  ;;  %v438_v12 = vld [vmem:[%s7402_s28 + $0x650] sm:$0xff]  ;;  %v2485_v25 = vsub.f32 0.0, %v693_v11 }
 0x372   : > { %v6586_v37 = vpop.eup %6585  ;;  %4775 = vst [vmem:[%s7449_s20 + $0x5d8] sm:$0xff] %v4519_v31  ;;  %v4520_v38 = vmax.f32 %v4264_v32, 0.0  ;;  %v4265_v39 = vadd.f32 0.5, %v4009_v33  ;;  %v4010_v40 = vsub.f32 %v6582_v30, %v6584_v34  ;;  %6611 = vpow2.f32 %v2934_v20 }
 0x373   : > { %v6588_v41 = vpop.eup %6587  ;;  %6613 = vpow2.f32 %v1400_v28  ;;  %v1404_v20 = vmul.f32 1.442695, %v948_v5  ;;  %v950_v26 = vsub.f32 0.0, %v438_v12  ;;  %v696_v28 = vld [vmem:[%s7410_s24 + $0x660] sm:$0xff]  ;;  %v2486_v31 = vsub.f32 0.0, %v694_v16 }
 0x374   : > { %v6590_v42 = vpop.eup %6589  ;;  %4776 = vst [vmem:[%s7449_s20 + $0x5e0] sm:$0xff] %v4520_v38  ;;  %v4521_v43 = vmax.f32 %v4265_v39, 0.0  ;;  %v4266_v44 = vadd.f32 0.5, %v4010_v40  ;;  %v4011_v45 = vsub.f32 %v6586_v37, %v6588_v41  ;;  %6615 = vpow2.f32 %v2936_v29  ;;  %v441_v37 = vld [vmem:[%s7402_s28 + $0x668] sm:$0xff] }
 0x375   : > { %v6592_v46 = vpop.eup %6591  ;;  %v1708_v47 = vadd.f32 1.0, %v6590_v42  ;;  %6617 = vpow2.f32 %v1402_v35  ;;  %v951_v32 = vsub.f32 0.0, %v439_v17  ;;  %v2940_v35 = vmul.f32 1.442695, %v2484_v15 }
 0x376   : > { %v6594_v48 = vpop.eup %6593  ;;  %4777 = vst [vmem:[%s7449_s20 + $0x5e8] sm:$0xff] %v4521_v43  ;;  %v4522_v49 = vmax.f32 %v4266_v44, 0.0  ;;  %v4267_v50 = vadd.f32 0.5, %v4011_v45  ;;  %v3244_v51 = vadd.f32 1.0, %v6592_v46  ;;  %6619 = vpow2.f32 %v2938_v36  ;;  %v697_v46 = vld [vmem:[%s7410_s24 + $0x668] sm:$0xff] }
 0x377   : > { %v6596_v52 = vpop.eup %6595  ;;  %6621 = vrcp.f32 %v1708_v47  ;;  %v1709_v53 = vadd.f32 1.0, %v6594_v48  ;;  %v2487_v36 = vsub.f32 0.0, %v695_v22  ;;  %v1406_v39 = vmul.f32 1.442695, %v949_v21 }
 0x378   : > { %v6598_v54 = vpop.eup %6597  ;;  %4778 = vst [vmem:[%s7449_s20 + $0x5f0] sm:$0xff] %v4522_v49  ;;  %v4523_v55 = vmax.f32 %v4267_v50, 0.0  ;;  %6623 = vrcp.f32 %v3244_v51  ;;  %v3245_v56 = vadd.f32 1.0, %v6596_v52  ;;  %v952_v40 = vsub.f32 0.0, %v440_v27 }
 0x379   : > { %v6600_v57 = vpop.eup %6599  ;;  %6625 = vrcp.f32 %v1709_v53  ;;  %v1710_v58 = vadd.f32 1.0, %v6598_v54  ;;  %v2488_v41 = vsub.f32 0.0, %v696_v28  ;;  %v2942_v44 = vmul.f32 1.442695, %v2485_v25 }
 0x37a   : > { %v6602_v59 = vpop.eup %6601  ;;  %4779 = vst [vmem:[%s7449_s20 + $0x5f8] sm:$0xff] %v4523_v55  ;;  %6627 = vrcp.f32 %v3245_v56  ;;  %v3246_v60 = vadd.f32 1.0, %v6600_v57  ;;  %v1408_v45 = vmul.f32 1.442695, %v950_v26  ;;  %v2944_v48 = vmul.f32 1.442695, %v2486_v31 }
 0x37b   : > { %v6604_v62 = vpop.eup %6603  ;;  %6629 = vrcp.f32 %v1710_v58  ;;  %v1711_v63 = vadd.f32 1.0, %v6602_v59  ;;  %v1410_v49 = vmul.f32 1.442695, %v951_v32  ;;  %v953_v50 = vsub.f32 0.0, %v441_v37  ;;  %v442_v55 = vld [vmem:[%s7402_s28 + $0x670] sm:$0xff] }
 0x37c   : > { %v6606_v0 = vpop.eup %6605  ;;  %6631 = vrcp.f32 %v3246_v60  ;;  %v3247_v1 = vadd.f32 1.0, %v6604_v62  ;;  %v2946_v54 = vmul.f32 1.442695, %v2487_v36  ;;  %v698_v56 = vld [vmem:[%s7410_s24 + $0x670] sm:$0xff]  ;;  %v1412_v58 = vmul.f32 1.442695, %v952_v40 }
 0x37d   : > { %v6608_v2 = vpop.eup %6607  ;;  %6633 = vrcp.f32 %v1711_v63  ;;  %v1712_v3 = vadd.f32 1.0, %v6606_v0  ;;  %v2948_v59 = vmul.f32 1.442695, %v2488_v41  ;;  %v2489_v60 = vsub.f32 0.0, %v697_v46 }
 0x37e   : > { %v6610_v6 = vpop.eup %6609  ;;  %6635 = vrcp.f32 %v3247_v1  ;;  %v3248_v7 = vadd.f32 1.0, %v6608_v2  ;;  %v443_v1 = vld [vmem:[%s7402_s28 + $0x678] sm:$0xff]  ;;  %v1414_v4 = vmul.f32 1.442695, %v953_v50  ;;  %v954_v5 = vsub.f32 0.0, %v442_v55 }
 0x37f   : > { %v6612_v9 = vpop.eup %6611  ;;  %6637 = vrcp.f32 %v1712_v3  ;;  %v1713_v10 = vadd.f32 1.0, %v6610_v6  ;;  %v699_v2 = vld [vmem:[%s7410_s24 + $0x678] sm:$0xff]  ;;  %v2490_v6 = vsub.f32 0.0, %v698_v56  ;;  %v2950_v12 = vmul.f32 1.442695, %v2489_v60  ;;  %v700_v60 = vld [vmem:[%s7410_s24 + $0x680] sm:$0xff] }
 0x380   : > { %v6614_v13 = vpop.eup %6613  ;;  %6639 = vrcp.f32 %v3248_v7  ;;  %v3249_v14 = vadd.f32 1.0, %v6612_v9 }
 0x381   : > { %v6616_v18 = vpop.eup %6615  ;;  %6641 = vrcp.f32 %v1713_v10  ;;  %v1714_v19 = vadd.f32 1.0, %v6614_v13  ;;  %v955_v13 = vsub.f32 0.0, %v443_v1  ;;  %v2952_v21 = vmul.f32 1.442695, %v2490_v6 }
 0x382   : > { %v6618_v23 = vpop.eup %6617  ;;  %6643 = vrcp.f32 %v3249_v14  ;;  %v3250_v24 = vadd.f32 1.0, %v6616_v18  ;;  %v2491_v14 = vsub.f32 0.0, %v699_v2 }
 0x383   : > { %v6620_v29 = vpop.eup %6619  ;;  %6645 = vrcp.f32 %v1714_v19  ;;  %v1715_v30 = vadd.f32 1.0, %v6618_v23  ;;  %v1418_v27 = vmul.f32 1.442695, %v955_v13 }
 0x384   : > { %v6622_v33 = vpop.eup %6621  ;;  %6647 = vrcp.f32 %v3250_v24  ;;  %v3251_v34 = vadd.f32 1.0, %v6620_v29  ;;  %v2954_v28 = vmul.f32 1.442695, %v2491_v14  ;;  %v703_v14 = vld [vmem:[%s7410_s24 + $0x698] sm:$0xff] }
 0x385   : > { %v6624_v38 = vpop.eup %6623  ;;  %6649 = vrcp.f32 %v1715_v30 }
 0x386   : > { %v6626_v42 = vpop.eup %6625  ;;  %v4012_v43 = vsub.f32 %v6622_v33, %v6624_v38  ;;  %6651 = vrcp.f32 %v3251_v34 }
 0x387   : > { %v6628_v47 = vpop.eup %6627  ;;  %6653 = vpow2.f32 %v1404_v20  ;;  %v1416_v20 = vmul.f32 1.442695, %v954_v5 }
 0x388   : > { %v6630_v51 = vpop.eup %6629  ;;  %v4268_v52 = vadd.f32 0.5, %v4012_v43  ;;  %v4013_v53 = vsub.f32 %v6626_v42, %v6628_v47  ;;  %6655 = vpow2.f32 %v2940_v35 }
 0x389   : > { %v6632_v57 = vpop.eup %6631  ;;  %6657 = vpow2.f32 %v1406_v39 }
 0x38a   : > { %v6634_v61 = vpop.eup %6633  ;;  %v4524_v62 = vmax.f32 %v4268_v52, 0.0  ;;  %v4269_v63 = vadd.f32 0.5, %v4013_v53  ;;  %v4014_v0 = vsub.f32 %v6630_v51, %v6632_v57  ;;  %6659 = vpow2.f32 %v2942_v44  ;;  %v444_v53 = vld [vmem:[%s7402_s28 + $0x680] sm:$0xff] }
 0x38b   : > { %v6636_v3 = vpop.eup %6635  ;;  %6661 = vpow2.f32 %v1408_v45 }
 0x38c   : > { %v6638_v7 = vpop.eup %6637  ;;  %4780 = vst [vmem:[%s7449_s20 + $0x600] sm:$0xff] %v4524_v62  ;;  %v4525_v8 = vmax.f32 %v4269_v63, 0.0  ;;  %v4270_v9 = vadd.f32 0.5, %v4014_v0  ;;  %v4015_v10 = vsub.f32 %v6634_v61, %v6636_v3  ;;  %6663 = vpow2.f32 %v2944_v48  ;;  %v445_v0 = vld [vmem:[%s7402_s28 + $0x688] sm:$0xff] }
 0x38d   : > { %v6640_v11 = vpop.eup %6639  ;;  %6665 = vpow2.f32 %v1410_v49  ;;  %v956_v61 = vsub.f32 0.0, %v444_v53  ;;  %v701_v3 = vld [vmem:[%s7410_s24 + $0x688] sm:$0xff]  ;;  %v957_v13 = vsub.f32 0.0, %v445_v0 }
 0x38e   : > { %v6642_v15 = vpop.eup %6641  ;;  %4781 = vst [vmem:[%s7449_s20 + $0x608] sm:$0xff] %v4525_v8  ;;  %v4526_v16 = vmax.f32 %v4270_v9, 0.0  ;;  %v4271_v17 = vadd.f32 0.5, %v4015_v10  ;;  %v4016_v18 = vsub.f32 %v6638_v7, %v6640_v11  ;;  %6667 = vpow2.f32 %v2946_v54  ;;  %v702_v8 = vld [vmem:[%s7410_s24 + $0x690] sm:$0xff]  ;;  %v447_v9 = vld [vmem:[%s7402_s28 + $0x698] sm:$0xff] }
 0x38f   : > { %v6644_v19 = vpop.eup %6643  ;;  %6669 = vpow2.f32 %v1412_v58  ;;  %v2492_v7 = vsub.f32 0.0, %v700_v60 }
 0x390   : > { %v6646_v22 = vpop.eup %6645  ;;  %4782 = vst [vmem:[%s7449_s20 + $0x610] sm:$0xff] %v4526_v16  ;;  %v4527_v23 = vmax.f32 %v4271_v17, 0.0  ;;  %v4272_v24 = vadd.f32 0.5, %v4016_v18  ;;  %v4017_v25 = vsub.f32 %v6642_v15, %v6644_v19  ;;  %6671 = vpow2.f32 %v2948_v59  ;;  %v448_v19 = vld [vmem:[%s7402_s28 + $0x6a0] sm:$0xff] }
 0x391   : > { %v6648_v26 = vpop.eup %6647  ;;  %6673 = vpow2.f32 %v1414_v4  ;;  %v446_v4 = vld [vmem:[%s7402_s28 + $0x690] sm:$0xff]  ;;  %v2493_v17 = vsub.f32 0.0, %v701_v3 }
 0x392   : > { %v6650_v29 = vpop.eup %6649  ;;  %4783 = vst [vmem:[%s7449_s20 + $0x618] sm:$0xff] %v4527_v23  ;;  %v4528_v30 = vmax.f32 %v4272_v24, 0.0  ;;  %v4273_v31 = vadd.f32 0.5, %v4017_v25  ;;  %v4018_v32 = vsub.f32 %v6646_v22, %v6648_v26  ;;  %6675 = vpow2.f32 %v2950_v12 }
 0x393   : > { %v6652_v33 = vpop.eup %6651  ;;  %6677 = vpow2.f32 %v1416_v20  ;;  %v1420_v12 = vmul.f32 1.442695, %v956_v61  ;;  %v958_v18 = vsub.f32 0.0, %v446_v4  ;;  %v704_v20 = vld [vmem:[%s7410_s24 + $0x6a0] sm:$0xff]  ;;  %v2494_v23 = vsub.f32 0.0, %v702_v8 }
 0x394   : > { %v6654_v34 = vpop.eup %6653  ;;  %4784 = vst [vmem:[%s7449_s20 + $0x620] sm:$0xff] %v4528_v30  ;;  %v4529_v35 = vmax.f32 %v4273_v31, 0.0  ;;  %v4274_v36 = vadd.f32 0.5, %v4018_v32  ;;  %v4019_v37 = vsub.f32 %v6650_v29, %v6652_v33  ;;  %6679 = vpow2.f32 %v2952_v21  ;;  %v449_v29 = vld [vmem:[%s7402_s28 + $0x6a8] sm:$0xff] }
 0x395   : > { %v6656_v38 = vpop.eup %6655  ;;  %v1716_v39 = vadd.f32 1.0, %v6654_v34  ;;  %6681 = vpow2.f32 %v1418_v27  ;;  %v959_v24 = vsub.f32 0.0, %v447_v9  ;;  %v2956_v27 = vmul.f32 1.442695, %v2492_v7 }
 0x396   : > { %v6658_v40 = vpop.eup %6657  ;;  %4785 = vst [vmem:[%s7449_s20 + $0x628] sm:$0xff] %v4529_v35  ;;  %v4530_v41 = vmax.f32 %v4274_v36, 0.0  ;;  %v4275_v42 = vadd.f32 0.5, %v4019_v37  ;;  %v3252_v43 = vadd.f32 1.0, %v6656_v38  ;;  %6683 = vpow2.f32 %v2954_v28  ;;  %v705_v38 = vld [vmem:[%s7410_s24 + $0x6a8] sm:$0xff] }
 0x397   : > { %v6660_v44 = vpop.eup %6659  ;;  %6685 = vrcp.f32 %v1716_v39  ;;  %v1717_v45 = vadd.f32 1.0, %v6658_v40  ;;  %v2495_v28 = vsub.f32 0.0, %v703_v14  ;;  %v1422_v31 = vmul.f32 1.442695, %v957_v13 }
 0x398   : > { %v6662_v46 = vpop.eup %6661  ;;  %4786 = vst [vmem:[%s7449_s20 + $0x630] sm:$0xff] %v4530_v41  ;;  %v4531_v47 = vmax.f32 %v4275_v42, 0.0  ;;  %6687 = vrcp.f32 %v3252_v43  ;;  %v3253_v48 = vadd.f32 1.0, %v6660_v44  ;;  %v960_v32 = vsub.f32 0.0, %v448_v19 }
 0x399   : > { %v6664_v49 = vpop.eup %6663  ;;  %6689 = vrcp.f32 %v1717_v45  ;;  %v1718_v50 = vadd.f32 1.0, %v6662_v46  ;;  %v2496_v33 = vsub.f32 0.0, %v704_v20  ;;  %v2958_v36 = vmul.f32 1.442695, %v2493_v17 }
 0x39a   : > { %v6666_v51 = vpop.eup %6665  ;;  %4787 = vst [vmem:[%s7449_s20 + $0x638] sm:$0xff] %v4531_v47  ;;  %6691 = vrcp.f32 %v3253_v48  ;;  %v3254_v52 = vadd.f32 1.0, %v6664_v49  ;;  %v1424_v37 = vmul.f32 1.442695, %v958_v18  ;;  %v2960_v40 = vmul.f32 1.442695, %v2494_v23 }
 0x39b   : > { %v6668_v54 = vpop.eup %6667  ;;  %6693 = vrcp.f32 %v1718_v50  ;;  %v1719_v55 = vadd.f32 1.0, %v6666_v51  ;;  %v1426_v41 = vmul.f32 1.442695, %v959_v24  ;;  %v961_v42 = vsub.f32 0.0, %v449_v29  ;;  %v450_v47 = vld [vmem:[%s7402_s28 + $0x6b0] sm:$0xff] }
 0x39c   : > { %v6670_v56 = vpop.eup %6669  ;;  %6695 = vrcp.f32 %v3254_v52  ;;  %v3255_v57 = vadd.f32 1.0, %v6668_v54  ;;  %v2962_v46 = vmul.f32 1.442695, %v2495_v28  ;;  %v706_v48 = vld [vmem:[%s7410_s24 + $0x6b0] sm:$0xff]  ;;  %v1428_v50 = vmul.f32 1.442695, %v960_v32 }
 0x39d   : > { %v6672_v58 = vpop.eup %6671  ;;  %6697 = vrcp.f32 %v1719_v55  ;;  %v1720_v59 = vadd.f32 1.0, %v6670_v56  ;;  %v2964_v51 = vmul.f32 1.442695, %v2496_v33  ;;  %v2497_v52 = vsub.f32 0.0, %v705_v38 }
 0x39e   : > { %v6674_v62 = vpop.eup %6673  ;;  %6699 = vrcp.f32 %v3255_v57  ;;  %v3256_v63 = vadd.f32 1.0, %v6672_v58  ;;  %v451_v57 = vld [vmem:[%s7402_s28 + $0x6b8] sm:$0xff]  ;;  %v1430_v60 = vmul.f32 1.442695, %v961_v42  ;;  %v962_v61 = vsub.f32 0.0, %v450_v47 }
 0x39f   : > { %v6676_v1 = vpop.eup %6675  ;;  %6701 = vrcp.f32 %v1720_v59  ;;  %v1721_v2 = vadd.f32 1.0, %v6674_v62  ;;  %v707_v58 = vld [vmem:[%s7410_s24 + $0x6b8] sm:$0xff]  ;;  %v2498_v62 = vsub.f32 0.0, %v706_v48  ;;  %v2966_v4 = vmul.f32 1.442695, %v2497_v52  ;;  %v708_v52 = vld [vmem:[%s7410_s24 + $0x6c0] sm:$0xff] }
 0x3a0   : > { %v6678_v5 = vpop.eup %6677  ;;  %6703 = vrcp.f32 %v3256_v63  ;;  %v3257_v6 = vadd.f32 1.0, %v6676_v1 }
 0x3a1   : > { %v6680_v10 = vpop.eup %6679  ;;  %6705 = vrcp.f32 %v1721_v2  ;;  %v1722_v11 = vadd.f32 1.0, %v6678_v5  ;;  %v963_v5 = vsub.f32 0.0, %v451_v57  ;;  %v2968_v13 = vmul.f32 1.442695, %v2498_v62 }
 0x3a2   : > { %v6682_v15 = vpop.eup %6681  ;;  %6707 = vrcp.f32 %v3257_v6  ;;  %v3258_v16 = vadd.f32 1.0, %v6680_v10  ;;  %v2499_v6 = vsub.f32 0.0, %v707_v58 }
 0x3a3   : > { %v6684_v21 = vpop.eup %6683  ;;  %6709 = vrcp.f32 %v1722_v11  ;;  %v1723_v22 = vadd.f32 1.0, %v6682_v15  ;;  %v1434_v19 = vmul.f32 1.442695, %v963_v5 }
 0x3a4   : > { %v6686_v25 = vpop.eup %6685  ;;  %6711 = vrcp.f32 %v3258_v16  ;;  %v3259_v26 = vadd.f32 1.0, %v6684_v21  ;;  %v2970_v20 = vmul.f32 1.442695, %v2499_v6  ;;  %v711_v6 = vld [vmem:[%s7410_s24 + $0x6d8] sm:$0xff] }
 0x3a5   : > { %v6688_v30 = vpop.eup %6687  ;;  %6713 = vrcp.f32 %v1723_v22 }
 0x3a6   : > { %v6690_v34 = vpop.eup %6689  ;;  %v4020_v35 = vsub.f32 %v6686_v25, %v6688_v30  ;;  %6715 = vrcp.f32 %v3259_v26 }
 0x3a7   : > { %v6692_v39 = vpop.eup %6691  ;;  %6717 = vpow2.f32 %v1420_v12  ;;  %v1432_v12 = vmul.f32 1.442695, %v962_v61 }
 0x3a8   : > { %v6694_v43 = vpop.eup %6693  ;;  %v4276_v44 = vadd.f32 0.5, %v4020_v35  ;;  %v4021_v45 = vsub.f32 %v6690_v34, %v6692_v39  ;;  %6719 = vpow2.f32 %v2956_v27 }
 0x3a9   : > { %v6696_v49 = vpop.eup %6695  ;;  %6721 = vpow2.f32 %v1422_v31 }
 0x3aa   : > { %v6698_v53 = vpop.eup %6697  ;;  %v4532_v54 = vmax.f32 %v4276_v44, 0.0  ;;  %v4277_v55 = vadd.f32 0.5, %v4021_v45  ;;  %v4022_v56 = vsub.f32 %v6694_v43, %v6696_v49  ;;  %6723 = vpow2.f32 %v2958_v36  ;;  %v452_v45 = vld [vmem:[%s7402_s28 + $0x6c0] sm:$0xff] }
 0x3ab   : > { %v6700_v59 = vpop.eup %6699  ;;  %6725 = vpow2.f32 %v1424_v37 }
 0x3ac   : > { %v6702_v63 = vpop.eup %6701  ;;  %4788 = vst [vmem:[%s7449_s20 + $0x640] sm:$0xff] %v4532_v54  ;;  %v4533_v0 = vmax.f32 %v4277_v55, 0.0  ;;  %v4278_v1 = vadd.f32 0.5, %v4022_v56  ;;  %v4023_v2 = vsub.f32 %v6698_v53, %v6700_v59  ;;  %6727 = vpow2.f32 %v2960_v40  ;;  %v453_v56 = vld [vmem:[%s7402_s28 + $0x6c8] sm:$0xff] }
 0x3ad   : > { %v6704_v3 = vpop.eup %6703  ;;  %6729 = vpow2.f32 %v1426_v41  ;;  %v964_v53 = vsub.f32 0.0, %v452_v45  ;;  %v709_v59 = vld [vmem:[%s7410_s24 + $0x6c8] sm:$0xff]  ;;  %v965_v5 = vsub.f32 0.0, %v453_v56 }
 0x3ae   : > { %v6706_v7 = vpop.eup %6705  ;;  %4789 = vst [vmem:[%s7449_s20 + $0x648] sm:$0xff] %v4533_v0  ;;  %v4534_v8 = vmax.f32 %v4278_v1, 0.0  ;;  %v4279_v9 = vadd.f32 0.5, %v4023_v2  ;;  %v4024_v10 = vsub.f32 %v6702_v63, %v6704_v3  ;;  %6731 = vpow2.f32 %v2962_v46  ;;  %v710_v0 = vld [vmem:[%s7410_s24 + $0x6d0] sm:$0xff]  ;;  %v455_v1 = vld [vmem:[%s7402_s28 + $0x6d8] sm:$0xff] }
 0x3af   : > { %v6708_v11 = vpop.eup %6707  ;;  %6733 = vpow2.f32 %v1428_v50  ;;  %v2500_v63 = vsub.f32 0.0, %v708_v52 }
 0x3b0   : > { %v6710_v14 = vpop.eup %6709  ;;  %4790 = vst [vmem:[%s7449_s20 + $0x650] sm:$0xff] %v4534_v8  ;;  %v4535_v15 = vmax.f32 %v4279_v9, 0.0  ;;  %v4280_v16 = vadd.f32 0.5, %v4024_v10  ;;  %v4025_v17 = vsub.f32 %v6706_v7, %v6708_v11  ;;  %6735 = vpow2.f32 %v2964_v51  ;;  %v456_v11 = vld [vmem:[%s7402_s28 + $0x6e0] sm:$0xff] }
 0x3b1   : > { %v6712_v18 = vpop.eup %6711  ;;  %6737 = vpow2.f32 %v1430_v60  ;;  %v454_v60 = vld [vmem:[%s7402_s28 + $0x6d0] sm:$0xff]  ;;  %v2501_v9 = vsub.f32 0.0, %v709_v59 }
 0x3b2   : > { %v6714_v21 = vpop.eup %6713  ;;  %4791 = vst [vmem:[%s7449_s20 + $0x658] sm:$0xff] %v4535_v15  ;;  %v4536_v22 = vmax.f32 %v4280_v16, 0.0  ;;  %v4281_v23 = vadd.f32 0.5, %v4025_v17  ;;  %v4026_v24 = vsub.f32 %v6710_v14, %v6712_v18  ;;  %6739 = vpow2.f32 %v2966_v4 }
 0x3b3   : > { %v6716_v25 = vpop.eup %6715  ;;  %6741 = vpow2.f32 %v1432_v12  ;;  %v1436_v4 = vmul.f32 1.442695, %v964_v53  ;;  %v966_v10 = vsub.f32 0.0, %v454_v60  ;;  %v712_v12 = vld [vmem:[%s7410_s24 + $0x6e0] sm:$0xff]  ;;  %v2502_v15 = vsub.f32 0.0, %v710_v0 }
 0x3b4   : > { %v6718_v26 = vpop.eup %6717  ;;  %4792 = vst [vmem:[%s7449_s20 + $0x660] sm:$0xff] %v4536_v22  ;;  %v4537_v27 = vmax.f32 %v4281_v23, 0.0  ;;  %v4282_v28 = vadd.f32 0.5, %v4026_v24  ;;  %v4027_v29 = vsub.f32 %v6714_v21, %v6716_v25  ;;  %6743 = vpow2.f32 %v2968_v13  ;;  %v457_v21 = vld [vmem:[%s7402_s28 + $0x6e8] sm:$0xff] }
 0x3b5   : > { %v6720_v30 = vpop.eup %6719  ;;  %v1724_v31 = vadd.f32 1.0, %v6718_v26  ;;  %6745 = vpow2.f32 %v1434_v19  ;;  %v967_v16 = vsub.f32 0.0, %v455_v1  ;;  %v2972_v19 = vmul.f32 1.442695, %v2500_v63 }
 0x3b6   : > { %v6722_v32 = vpop.eup %6721  ;;  %4793 = vst [vmem:[%s7449_s20 + $0x668] sm:$0xff] %v4537_v27  ;;  %v4538_v33 = vmax.f32 %v4282_v28, 0.0  ;;  %v4283_v34 = vadd.f32 0.5, %v4027_v29  ;;  %v3260_v35 = vadd.f32 1.0, %v6720_v30  ;;  %6747 = vpow2.f32 %v2970_v20  ;;  %v713_v30 = vld [vmem:[%s7410_s24 + $0x6e8] sm:$0xff] }
 0x3b7   : > { %v6724_v36 = vpop.eup %6723  ;;  %6749 = vrcp.f32 %v1724_v31  ;;  %v1725_v37 = vadd.f32 1.0, %v6722_v32  ;;  %v2503_v20 = vsub.f32 0.0, %v711_v6  ;;  %v1438_v23 = vmul.f32 1.442695, %v965_v5 }
 0x3b8   : > { %v6726_v38 = vpop.eup %6725  ;;  %4794 = vst [vmem:[%s7449_s20 + $0x670] sm:$0xff] %v4538_v33  ;;  %v4539_v39 = vmax.f32 %v4283_v34, 0.0  ;;  %6751 = vrcp.f32 %v3260_v35  ;;  %v3261_v40 = vadd.f32 1.0, %v6724_v36  ;;  %v968_v24 = vsub.f32 0.0, %v456_v11 }
 0x3b9   : > { %v6728_v41 = vpop.eup %6727  ;;  %6753 = vrcp.f32 %v1725_v37  ;;  %v1726_v42 = vadd.f32 1.0, %v6726_v38  ;;  %v2504_v25 = vsub.f32 0.0, %v712_v12  ;;  %v2974_v28 = vmul.f32 1.442695, %v2501_v9 }
 0x3ba   : > { %v6730_v43 = vpop.eup %6729  ;;  %4795 = vst [vmem:[%s7449_s20 + $0x678] sm:$0xff] %v4539_v39  ;;  %6755 = vrcp.f32 %v3261_v40  ;;  %v3262_v44 = vadd.f32 1.0, %v6728_v41  ;;  %v1440_v29 = vmul.f32 1.442695, %v966_v10  ;;  %v2976_v32 = vmul.f32 1.442695, %v2502_v15 }
 0x3bb   : > { %v6732_v46 = vpop.eup %6731  ;;  %6757 = vrcp.f32 %v1726_v42  ;;  %v1727_v47 = vadd.f32 1.0, %v6730_v43  ;;  %v1442_v33 = vmul.f32 1.442695, %v967_v16  ;;  %v969_v34 = vsub.f32 0.0, %v457_v21  ;;  %v458_v39 = vld [vmem:[%s7402_s28 + $0x6f0] sm:$0xff] }
 0x3bc   : > { %v6734_v48 = vpop.eup %6733  ;;  %6759 = vrcp.f32 %v3262_v44  ;;  %v3263_v49 = vadd.f32 1.0, %v6732_v46  ;;  %v2978_v38 = vmul.f32 1.442695, %v2503_v20  ;;  %v714_v40 = vld [vmem:[%s7410_s24 + $0x6f0] sm:$0xff]  ;;  %v1444_v42 = vmul.f32 1.442695, %v968_v24 }
 0x3bd   : > { %v6736_v50 = vpop.eup %6735  ;;  %6761 = vrcp.f32 %v1727_v47  ;;  %v1728_v51 = vadd.f32 1.0, %v6734_v48  ;;  %v2980_v43 = vmul.f32 1.442695, %v2504_v25  ;;  %v2505_v44 = vsub.f32 0.0, %v713_v30 }
 0x3be   : > { %v6738_v54 = vpop.eup %6737  ;;  %6763 = vrcp.f32 %v3263_v49  ;;  %v3264_v55 = vadd.f32 1.0, %v6736_v50  ;;  %v459_v49 = vld [vmem:[%s7402_s28 + $0x6f8] sm:$0xff]  ;;  %v1446_v52 = vmul.f32 1.442695, %v969_v34  ;;  %v970_v53 = vsub.f32 0.0, %v458_v39 }
 0x3bf   : > { %v6740_v57 = vpop.eup %6739  ;;  %6765 = vrcp.f32 %v1728_v51  ;;  %v1729_v58 = vadd.f32 1.0, %v6738_v54  ;;  %v715_v50 = vld [vmem:[%s7410_s24 + $0x6f8] sm:$0xff]  ;;  %v2506_v54 = vsub.f32 0.0, %v714_v40  ;;  %v2982_v60 = vmul.f32 1.442695, %v2505_v44  ;;  %v716_v44 = vld [vmem:[%s7410_s24 + $0x700] sm:$0xff] }
 0x3c0   : > { %v6742_v61 = vpop.eup %6741  ;;  %6767 = vrcp.f32 %v3264_v55  ;;  %v3265_v62 = vadd.f32 1.0, %v6740_v57 }
 0x3c1   : > { %v6744_v2 = vpop.eup %6743  ;;  %6769 = vrcp.f32 %v1729_v58  ;;  %v1730_v3 = vadd.f32 1.0, %v6742_v61  ;;  %v971_v61 = vsub.f32 0.0, %v459_v49  ;;  %v2984_v5 = vmul.f32 1.442695, %v2506_v54 }
 0x3c2   : > { %v6746_v7 = vpop.eup %6745  ;;  %6771 = vrcp.f32 %v3265_v62  ;;  %v3266_v8 = vadd.f32 1.0, %v6744_v2  ;;  %v2507_v62 = vsub.f32 0.0, %v715_v50 }
 0x3c3   : > { %v6748_v13 = vpop.eup %6747  ;;  %6773 = vrcp.f32 %v1730_v3  ;;  %v1731_v14 = vadd.f32 1.0, %v6746_v7  ;;  %v1450_v11 = vmul.f32 1.442695, %v971_v61 }
 0x3c4   : > { %v6750_v17 = vpop.eup %6749  ;;  %6775 = vrcp.f32 %v3266_v8  ;;  %v3267_v18 = vadd.f32 1.0, %v6748_v13  ;;  %v2986_v12 = vmul.f32 1.442695, %v2507_v62  ;;  %v719_v62 = vld [vmem:[%s7410_s24 + $0x718] sm:$0xff] }
 0x3c5   : > { %v6752_v22 = vpop.eup %6751  ;;  %6777 = vrcp.f32 %v1731_v14 }
 0x3c6   : > { %v6754_v26 = vpop.eup %6753  ;;  %v4028_v27 = vsub.f32 %v6750_v17, %v6752_v22  ;;  %6779 = vrcp.f32 %v3267_v18 }
 0x3c7   : > { %v6756_v31 = vpop.eup %6755  ;;  %6781 = vpow2.f32 %v1436_v4  ;;  %v1448_v4 = vmul.f32 1.442695, %v970_v53 }
 0x3c8   : > { %v6758_v35 = vpop.eup %6757  ;;  %v4284_v36 = vadd.f32 0.5, %v4028_v27  ;;  %v4029_v37 = vsub.f32 %v6754_v26, %v6756_v31  ;;  %6783 = vpow2.f32 %v2972_v19 }
 0x3c9   : > { %v6760_v41 = vpop.eup %6759  ;;  %6785 = vpow2.f32 %v1438_v23 }
 0x3ca   : > { %v6762_v45 = vpop.eup %6761  ;;  %v4540_v46 = vmax.f32 %v4284_v36, 0.0  ;;  %v4285_v47 = vadd.f32 0.5, %v4029_v37  ;;  %v4030_v48 = vsub.f32 %v6758_v35, %v6760_v41  ;;  %6787 = vpow2.f32 %v2974_v28  ;;  %v460_v37 = vld [vmem:[%s7402_s28 + $0x700] sm:$0xff] }
 0x3cb   : > { %v6764_v51 = vpop.eup %6763  ;;  %6789 = vpow2.f32 %v1440_v29 }
 0x3cc   : > { %v6766_v55 = vpop.eup %6765  ;;  %4796 = vst [vmem:[%s7449_s20 + $0x680] sm:$0xff] %v4540_v46  ;;  %v4541_v56 = vmax.f32 %v4285_v47, 0.0  ;;  %v4286_v57 = vadd.f32 0.5, %v4030_v48  ;;  %v4031_v58 = vsub.f32 %v6762_v45, %v6764_v51  ;;  %6791 = vpow2.f32 %v2976_v32  ;;  %v461_v48 = vld [vmem:[%s7402_s28 + $0x708] sm:$0xff] }
 0x3cd   : > { %v6768_v59 = vpop.eup %6767  ;;  %6793 = vpow2.f32 %v1442_v33  ;;  %v972_v45 = vsub.f32 0.0, %v460_v37  ;;  %v717_v51 = vld [vmem:[%s7410_s24 + $0x708] sm:$0xff]  ;;  %v973_v61 = vsub.f32 0.0, %v461_v48 }
 0x3ce   : > { %v6770_v63 = vpop.eup %6769  ;;  %4797 = vst [vmem:[%s7449_s20 + $0x688] sm:$0xff] %v4541_v56  ;;  %v4542_v0 = vmax.f32 %v4286_v57, 0.0  ;;  %v4287_v1 = vadd.f32 0.5, %v4031_v58  ;;  %v4032_v2 = vsub.f32 %v6766_v55, %v6768_v59  ;;  %6795 = vpow2.f32 %v2978_v38  ;;  %v718_v56 = vld [vmem:[%s7410_s24 + $0x710] sm:$0xff]  ;;  %v463_v57 = vld [vmem:[%s7402_s28 + $0x718] sm:$0xff] }
 0x3cf   : > { %v6772_v3 = vpop.eup %6771  ;;  %6797 = vpow2.f32 %v1444_v42  ;;  %v2508_v55 = vsub.f32 0.0, %v716_v44 }
 0x3d0   : > { %v6774_v6 = vpop.eup %6773  ;;  %4798 = vst [vmem:[%s7449_s20 + $0x690] sm:$0xff] %v4542_v0  ;;  %v4543_v7 = vmax.f32 %v4287_v1, 0.0  ;;  %v4288_v8 = vadd.f32 0.5, %v4032_v2  ;;  %v4033_v9 = vsub.f32 %v6770_v63, %v6772_v3  ;;  %6799 = vpow2.f32 %v2980_v43  ;;  %v464_v3 = vld [vmem:[%s7402_s28 + $0x720] sm:$0xff] }
 0x3d1   : > { %v6776_v10 = vpop.eup %6775  ;;  %6801 = vpow2.f32 %v1446_v52  ;;  %v462_v52 = vld [vmem:[%s7402_s28 + $0x710] sm:$0xff]  ;;  %v2509_v1 = vsub.f32 0.0, %v717_v51 }
 0x3d2   : > { %v6778_v13 = vpop.eup %6777  ;;  %4799 = vst [vmem:[%s7449_s20 + $0x698] sm:$0xff] %v4543_v7  ;;  %v4544_v14 = vmax.f32 %v4288_v8, 0.0  ;;  %v4289_v15 = vadd.f32 0.5, %v4033_v9  ;;  %v4034_v16 = vsub.f32 %v6774_v6, %v6776_v10  ;;  %6803 = vpow2.f32 %v2982_v60 }
 0x3d3   : > { %v6780_v17 = vpop.eup %6779  ;;  %6805 = vpow2.f32 %v1448_v4  ;;  %v1452_v60 = vmul.f32 1.442695, %v972_v45  ;;  %v974_v2 = vsub.f32 0.0, %v462_v52  ;;  %v720_v4 = vld [vmem:[%s7410_s24 + $0x720] sm:$0xff]  ;;  %v2510_v7 = vsub.f32 0.0, %v718_v56 }
 0x3d4   : > { %v6782_v18 = vpop.eup %6781  ;;  %4800 = vst [vmem:[%s7449_s20 + $0x6a0] sm:$0xff] %v4544_v14  ;;  %v4545_v19 = vmax.f32 %v4289_v15, 0.0  ;;  %v4290_v20 = vadd.f32 0.5, %v4034_v16  ;;  %v4035_v21 = vsub.f32 %v6778_v13, %v6780_v17  ;;  %6807 = vpow2.f32 %v2984_v5  ;;  %v465_v13 = vld [vmem:[%s7402_s28 + $0x728] sm:$0xff] }
 0x3d5   : > { %v6784_v22 = vpop.eup %6783  ;;  %v1732_v23 = vadd.f32 1.0, %v6782_v18  ;;  %6809 = vpow2.f32 %v1450_v11  ;;  %v975_v8 = vsub.f32 0.0, %v463_v57  ;;  %v2988_v11 = vmul.f32 1.442695, %v2508_v55 }
 0x3d6   : > { %v6786_v24 = vpop.eup %6785  ;;  %4801 = vst [vmem:[%s7449_s20 + $0x6a8] sm:$0xff] %v4545_v19  ;;  %v4546_v25 = vmax.f32 %v4290_v20, 0.0  ;;  %v4291_v26 = vadd.f32 0.5, %v4035_v21  ;;  %v3268_v27 = vadd.f32 1.0, %v6784_v22  ;;  %6811 = vpow2.f32 %v2986_v12  ;;  %v721_v22 = vld [vmem:[%s7410_s24 + $0x728] sm:$0xff] }
 0x3d7   : > { %v6788_v28 = vpop.eup %6787  ;;  %6813 = vrcp.f32 %v1732_v23  ;;  %v1733_v29 = vadd.f32 1.0, %v6786_v24  ;;  %v2511_v12 = vsub.f32 0.0, %v719_v62  ;;  %v1454_v15 = vmul.f32 1.442695, %v973_v61 }
 0x3d8   : > { %v6790_v30 = vpop.eup %6789  ;;  %4802 = vst [vmem:[%s7449_s20 + $0x6b0] sm:$0xff] %v4546_v25  ;;  %v4547_v31 = vmax.f32 %v4291_v26, 0.0  ;;  %6815 = vrcp.f32 %v3268_v27  ;;  %v3269_v32 = vadd.f32 1.0, %v6788_v28  ;;  %v976_v16 = vsub.f32 0.0, %v464_v3 }
 0x3d9   : > { %v6792_v33 = vpop.eup %6791  ;;  %6817 = vrcp.f32 %v1733_v29  ;;  %v1734_v34 = vadd.f32 1.0, %v6790_v30  ;;  %v2512_v17 = vsub.f32 0.0, %v720_v4  ;;  %v2990_v20 = vmul.f32 1.442695, %v2509_v1 }
 0x3da   : > { %v6794_v35 = vpop.eup %6793  ;;  %4803 = vst [vmem:[%s7449_s20 + $0x6b8] sm:$0xff] %v4547_v31  ;;  %6819 = vrcp.f32 %v3269_v32  ;;  %v3270_v36 = vadd.f32 1.0, %v6792_v33  ;;  %v1456_v21 = vmul.f32 1.442695, %v974_v2  ;;  %v2992_v24 = vmul.f32 1.442695, %v2510_v7 }
 0x3db   : > { %v6796_v38 = vpop.eup %6795  ;;  %6821 = vrcp.f32 %v1734_v34  ;;  %v1735_v39 = vadd.f32 1.0, %v6794_v35  ;;  %v1458_v25 = vmul.f32 1.442695, %v975_v8  ;;  %v977_v26 = vsub.f32 0.0, %v465_v13  ;;  %v466_v31 = vld [vmem:[%s7402_s28 + $0x730] sm:$0xff] }
 0x3dc   : > { %v6798_v40 = vpop.eup %6797  ;;  %6823 = vrcp.f32 %v3270_v36  ;;  %v3271_v41 = vadd.f32 1.0, %v6796_v38  ;;  %v2994_v30 = vmul.f32 1.442695, %v2511_v12  ;;  %v722_v32 = vld [vmem:[%s7410_s24 + $0x730] sm:$0xff]  ;;  %v1460_v34 = vmul.f32 1.442695, %v976_v16 }
 0x3dd   : > { %v6800_v42 = vpop.eup %6799  ;;  %6825 = vrcp.f32 %v1735_v39  ;;  %v1736_v43 = vadd.f32 1.0, %v6798_v40  ;;  %v2996_v35 = vmul.f32 1.442695, %v2512_v17  ;;  %v2513_v36 = vsub.f32 0.0, %v721_v22 }
 0x3de   : > { %v6802_v46 = vpop.eup %6801  ;;  %6827 = vrcp.f32 %v3271_v41  ;;  %v3272_v47 = vadd.f32 1.0, %v6800_v42  ;;  %v467_v41 = vld [vmem:[%s7402_s28 + $0x738] sm:$0xff]  ;;  %v1462_v44 = vmul.f32 1.442695, %v977_v26  ;;  %v978_v45 = vsub.f32 0.0, %v466_v31 }
 0x3df   : > { %v6804_v49 = vpop.eup %6803  ;;  %6829 = vrcp.f32 %v1736_v43  ;;  %v1737_v50 = vadd.f32 1.0, %v6802_v46  ;;  %v723_v42 = vld [vmem:[%s7410_s24 + $0x738] sm:$0xff]  ;;  %v2514_v46 = vsub.f32 0.0, %v722_v32  ;;  %v2998_v52 = vmul.f32 1.442695, %v2513_v36  ;;  %v724_v36 = vld [vmem:[%s7410_s24 + $0x740] sm:$0xff] }
 0x3e0   : > { %v6806_v53 = vpop.eup %6805  ;;  %6831 = vrcp.f32 %v3272_v47  ;;  %v3273_v54 = vadd.f32 1.0, %v6804_v49 }
 0x3e1   : > { %v6808_v58 = vpop.eup %6807  ;;  %6833 = vrcp.f32 %v1737_v50  ;;  %v1738_v59 = vadd.f32 1.0, %v6806_v53  ;;  %v979_v53 = vsub.f32 0.0, %v467_v41  ;;  %v3000_v61 = vmul.f32 1.442695, %v2514_v46 }
 0x3e2   : > { %v6810_v63 = vpop.eup %6809  ;;  %6835 = vrcp.f32 %v3273_v54  ;;  %v3274_v0 = vadd.f32 1.0, %v6808_v58  ;;  %v2515_v54 = vsub.f32 0.0, %v723_v42 }
 0x3e3   : > { %v6812_v5 = vpop.eup %6811  ;;  %6837 = vrcp.f32 %v1738_v59  ;;  %v1739_v6 = vadd.f32 1.0, %v6810_v63  ;;  %v1466_v3 = vmul.f32 1.442695, %v979_v53 }
 0x3e4   : > { %v6814_v9 = vpop.eup %6813  ;;  %6839 = vrcp.f32 %v3274_v0  ;;  %v3275_v10 = vadd.f32 1.0, %v6812_v5  ;;  %v3002_v4 = vmul.f32 1.442695, %v2515_v54  ;;  %v727_v54 = vld [vmem:[%s7410_s24 + $0x758] sm:$0xff] }
 0x3e5   : > { %v6816_v14 = vpop.eup %6815  ;;  %6841 = vrcp.f32 %v1739_v6 }
 0x3e6   : > { %v6818_v18 = vpop.eup %6817  ;;  %v4036_v19 = vsub.f32 %v6814_v9, %v6816_v14  ;;  %6843 = vrcp.f32 %v3275_v10 }
 0x3e7   : > { %v6820_v23 = vpop.eup %6819  ;;  %6845 = vpow2.f32 %v1452_v60  ;;  %v1464_v60 = vmul.f32 1.442695, %v978_v45 }
 0x3e8   : > { %v6822_v27 = vpop.eup %6821  ;;  %v4292_v28 = vadd.f32 0.5, %v4036_v19  ;;  %v4037_v29 = vsub.f32 %v6818_v18, %v6820_v23  ;;  %6847 = vpow2.f32 %v2988_v11 }
 0x3e9   : > { %v6824_v33 = vpop.eup %6823  ;;  %6849 = vpow2.f32 %v1454_v15 }
 0x3ea   : > { %v6826_v37 = vpop.eup %6825  ;;  %v4548_v38 = vmax.f32 %v4292_v28, 0.0  ;;  %v4293_v39 = vadd.f32 0.5, %v4037_v29  ;;  %v4038_v40 = vsub.f32 %v6822_v27, %v6824_v33  ;;  %6851 = vpow2.f32 %v2990_v20  ;;  %v468_v29 = vld [vmem:[%s7402_s28 + $0x740] sm:$0xff] }
 0x3eb   : > { %v6828_v43 = vpop.eup %6827  ;;  %6853 = vpow2.f32 %v1456_v21 }
 0x3ec   : > { %v6830_v47 = vpop.eup %6829  ;;  %4804 = vst [vmem:[%s7449_s20 + $0x6c0] sm:$0xff] %v4548_v38  ;;  %v4549_v48 = vmax.f32 %v4293_v39, 0.0  ;;  %v4294_v49 = vadd.f32 0.5, %v4038_v40  ;;  %v4039_v50 = vsub.f32 %v6826_v37, %v6828_v43  ;;  %6855 = vpow2.f32 %v2992_v24  ;;  %v469_v40 = vld [vmem:[%s7402_s28 + $0x748] sm:$0xff] }
 0x3ed   : > { %v6832_v51 = vpop.eup %6831  ;;  %6857 = vpow2.f32 %v1458_v25  ;;  %v980_v37 = vsub.f32 0.0, %v468_v29  ;;  %v725_v43 = vld [vmem:[%s7410_s24 + $0x748] sm:$0xff]  ;;  %v981_v53 = vsub.f32 0.0, %v469_v40 }
 0x3ee   : > { %v6834_v55 = vpop.eup %6833  ;;  %4805 = vst [vmem:[%s7449_s20 + $0x6c8] sm:$0xff] %v4549_v48  ;;  %v4550_v56 = vmax.f32 %v4294_v49, 0.0  ;;  %v4295_v57 = vadd.f32 0.5, %v4039_v50  ;;  %v4040_v58 = vsub.f32 %v6830_v47, %v6832_v51  ;;  %6859 = vpow2.f32 %v2994_v30  ;;  %v726_v48 = vld [vmem:[%s7410_s24 + $0x750] sm:$0xff]  ;;  %v471_v49 = vld [vmem:[%s7402_s28 + $0x758] sm:$0xff] }
 0x3ef   : > { %v6836_v59 = vpop.eup %6835  ;;  %6861 = vpow2.f32 %v1460_v34  ;;  %v2516_v47 = vsub.f32 0.0, %v724_v36 }
 0x3f0   : > { %v6838_v62 = vpop.eup %6837  ;;  %4806 = vst [vmem:[%s7449_s20 + $0x6d0] sm:$0xff] %v4550_v56  ;;  %v4551_v63 = vmax.f32 %v4295_v57, 0.0  ;;  %v4296_v0 = vadd.f32 0.5, %v4040_v58  ;;  %v4041_v1 = vsub.f32 %v6834_v55, %v6836_v59  ;;  %6863 = vpow2.f32 %v2996_v35  ;;  %v472_v59 = vld [vmem:[%s7402_s28 + $0x760] sm:$0xff] }
 0x3f1   : > { %v6840_v2 = vpop.eup %6839  ;;  %6865 = vpow2.f32 %v1462_v44  ;;  %v470_v44 = vld [vmem:[%s7402_s28 + $0x750] sm:$0xff]  ;;  %v2517_v57 = vsub.f32 0.0, %v725_v43 }
 0x3f2   : > { %v6842_v5 = vpop.eup %6841  ;;  %4807 = vst [vmem:[%s7449_s20 + $0x6d8] sm:$0xff] %v4551_v63  ;;  %v4552_v6 = vmax.f32 %v4296_v0, 0.0  ;;  %v4297_v7 = vadd.f32 0.5, %v4041_v1  ;;  %v4042_v8 = vsub.f32 %v6838_v62, %v6840_v2  ;;  %6867 = vpow2.f32 %v2998_v52 }
 0x3f3   : > { %v6844_v9 = vpop.eup %6843  ;;  %6869 = vpow2.f32 %v1464_v60  ;;  %v1468_v52 = vmul.f32 1.442695, %v980_v37  ;;  %v982_v58 = vsub.f32 0.0, %v470_v44  ;;  %v728_v60 = vld [vmem:[%s7410_s24 + $0x760] sm:$0xff]  ;;  %v2518_v63 = vsub.f32 0.0, %v726_v48 }
 0x3f4   : > { %v6846_v10 = vpop.eup %6845  ;;  %4808 = vst [vmem:[%s7449_s20 + $0x6e0] sm:$0xff] %v4552_v6  ;;  %v4553_v11 = vmax.f32 %v4297_v7, 0.0  ;;  %v4298_v12 = vadd.f32 0.5, %v4042_v8  ;;  %v4043_v13 = vsub.f32 %v6842_v5, %v6844_v9  ;;  %6871 = vpow2.f32 %v3000_v61  ;;  %v473_v5 = vld [vmem:[%s7402_s28 + $0x768] sm:$0xff] }
 0x3f5   : > { %v6848_v14 = vpop.eup %6847  ;;  %v1740_v15 = vadd.f32 1.0, %v6846_v10  ;;  %6873 = vpow2.f32 %v1466_v3  ;;  %v983_v0 = vsub.f32 0.0, %v471_v49  ;;  %v3004_v3 = vmul.f32 1.442695, %v2516_v47 }
 0x3f6   : > { %v6850_v16 = vpop.eup %6849  ;;  %4809 = vst [vmem:[%s7449_s20 + $0x6e8] sm:$0xff] %v4553_v11  ;;  %v4554_v17 = vmax.f32 %v4298_v12, 0.0  ;;  %v4299_v18 = vadd.f32 0.5, %v4043_v13  ;;  %v3276_v19 = vadd.f32 1.0, %v6848_v14  ;;  %6875 = vpow2.f32 %v3002_v4  ;;  %v729_v14 = vld [vmem:[%s7410_s24 + $0x768] sm:$0xff] }
 0x3f7   : > { %v6852_v20 = vpop.eup %6851  ;;  %6877 = vrcp.f32 %v1740_v15  ;;  %v1741_v21 = vadd.f32 1.0, %v6850_v16  ;;  %v2519_v4 = vsub.f32 0.0, %v727_v54  ;;  %v1470_v7 = vmul.f32 1.442695, %v981_v53 }
 0x3f8   : > { %v6854_v22 = vpop.eup %6853  ;;  %4810 = vst [vmem:[%s7449_s20 + $0x6f0] sm:$0xff] %v4554_v17  ;;  %v4555_v23 = vmax.f32 %v4299_v18, 0.0  ;;  %6879 = vrcp.f32 %v3276_v19  ;;  %v3277_v24 = vadd.f32 1.0, %v6852_v20  ;;  %v984_v8 = vsub.f32 0.0, %v472_v59 }
 0x3f9   : > { %v6856_v25 = vpop.eup %6855  ;;  %6881 = vrcp.f32 %v1741_v21  ;;  %v1742_v26 = vadd.f32 1.0, %v6854_v22  ;;  %v2520_v9 = vsub.f32 0.0, %v728_v60  ;;  %v3006_v12 = vmul.f32 1.442695, %v2517_v57 }
 0x3fa   : > { %v6858_v27 = vpop.eup %6857  ;;  %4811 = vst [vmem:[%s7449_s20 + $0x6f8] sm:$0xff] %v4555_v23  ;;  %6883 = vrcp.f32 %v3277_v24  ;;  %v3278_v28 = vadd.f32 1.0, %v6856_v25  ;;  %v1472_v13 = vmul.f32 1.442695, %v982_v58  ;;  %v3008_v16 = vmul.f32 1.442695, %v2518_v63 }
 0x3fb   : > { %v6860_v30 = vpop.eup %6859  ;;  %6885 = vrcp.f32 %v1742_v26  ;;  %v1743_v31 = vadd.f32 1.0, %v6858_v27  ;;  %v1474_v17 = vmul.f32 1.442695, %v983_v0  ;;  %v985_v18 = vsub.f32 0.0, %v473_v5  ;;  %v474_v23 = vld [vmem:[%s7402_s28 + $0x770] sm:$0xff] }
 0x3fc   : > { %v6862_v32 = vpop.eup %6861  ;;  %6887 = vrcp.f32 %v3278_v28  ;;  %v3279_v33 = vadd.f32 1.0, %v6860_v30  ;;  %v3010_v22 = vmul.f32 1.442695, %v2519_v4  ;;  %v730_v24 = vld [vmem:[%s7410_s24 + $0x770] sm:$0xff]  ;;  %v1476_v26 = vmul.f32 1.442695, %v984_v8 }
 0x3fd   : > { %v6864_v34 = vpop.eup %6863  ;;  %6889 = vrcp.f32 %v1743_v31  ;;  %v1744_v35 = vadd.f32 1.0, %v6862_v32  ;;  %v3012_v27 = vmul.f32 1.442695, %v2520_v9  ;;  %v2521_v28 = vsub.f32 0.0, %v729_v14 }
 0x3fe   : > { %v6866_v38 = vpop.eup %6865  ;;  %6891 = vrcp.f32 %v3279_v33  ;;  %v3280_v39 = vadd.f32 1.0, %v6864_v34  ;;  %v475_v33 = vld [vmem:[%s7402_s28 + $0x778] sm:$0xff]  ;;  %v1478_v36 = vmul.f32 1.442695, %v985_v18  ;;  %v986_v37 = vsub.f32 0.0, %v474_v23 }
 0x3ff   : > { %v6868_v41 = vpop.eup %6867  ;;  %6893 = vrcp.f32 %v1744_v35  ;;  %v1745_v42 = vadd.f32 1.0, %v6866_v38  ;;  %v731_v34 = vld [vmem:[%s7410_s24 + $0x778] sm:$0xff]  ;;  %v2522_v38 = vsub.f32 0.0, %v730_v24  ;;  %v3014_v44 = vmul.f32 1.442695, %v2521_v28  ;;  %v732_v28 = vld [vmem:[%s7410_s24 + $0x780] sm:$0xff] }
 0x400   : > { %v6870_v45 = vpop.eup %6869  ;;  %6895 = vrcp.f32 %v3280_v39  ;;  %v3281_v46 = vadd.f32 1.0, %v6868_v41 }
 0x401   : > { %v6872_v50 = vpop.eup %6871  ;;  %6897 = vrcp.f32 %v1745_v42  ;;  %v1746_v51 = vadd.f32 1.0, %v6870_v45  ;;  %v987_v45 = vsub.f32 0.0, %v475_v33  ;;  %v3016_v53 = vmul.f32 1.442695, %v2522_v38 }
 0x402   : > { %v6874_v55 = vpop.eup %6873  ;;  %6899 = vrcp.f32 %v3281_v46  ;;  %v3282_v56 = vadd.f32 1.0, %v6872_v50  ;;  %v2523_v46 = vsub.f32 0.0, %v731_v34 }
 0x403   : > { %v6876_v61 = vpop.eup %6875  ;;  %6901 = vrcp.f32 %v1746_v51  ;;  %v1747_v62 = vadd.f32 1.0, %v6874_v55  ;;  %v1482_v59 = vmul.f32 1.442695, %v987_v45 }
 0x404   : > { %v6878_v1 = vpop.eup %6877  ;;  %6903 = vrcp.f32 %v3282_v56  ;;  %v3283_v2 = vadd.f32 1.0, %v6876_v61  ;;  %v3018_v60 = vmul.f32 1.442695, %v2523_v46  ;;  %v735_v46 = vld [vmem:[%s7410_s24 + $0x798] sm:$0xff] }
 0x405   : > { %v6880_v6 = vpop.eup %6879  ;;  %6905 = vrcp.f32 %v1747_v62 }
 0x406   : > { %v6882_v10 = vpop.eup %6881  ;;  %v4044_v11 = vsub.f32 %v6878_v1, %v6880_v6  ;;  %6907 = vrcp.f32 %v3283_v2 }
 0x407   : > { %v6884_v15 = vpop.eup %6883  ;;  %6909 = vpow2.f32 %v1468_v52  ;;  %v1480_v52 = vmul.f32 1.442695, %v986_v37 }
 0x408   : > { %v6886_v19 = vpop.eup %6885  ;;  %v4300_v20 = vadd.f32 0.5, %v4044_v11  ;;  %v4045_v21 = vsub.f32 %v6882_v10, %v6884_v15  ;;  %6911 = vpow2.f32 %v3004_v3 }
 0x409   : > { %v6888_v25 = vpop.eup %6887  ;;  %6913 = vpow2.f32 %v1470_v7 }
 0x40a   : > { %v6890_v29 = vpop.eup %6889  ;;  %v4556_v30 = vmax.f32 %v4300_v20, 0.0  ;;  %v4301_v31 = vadd.f32 0.5, %v4045_v21  ;;  %v4046_v32 = vsub.f32 %v6886_v19, %v6888_v25  ;;  %6915 = vpow2.f32 %v3006_v12  ;;  %v476_v21 = vld [vmem:[%s7402_s28 + $0x780] sm:$0xff] }
 0x40b   : > { %v6892_v35 = vpop.eup %6891  ;;  %6917 = vpow2.f32 %v1472_v13 }
 0x40c   : > { %v6894_v39 = vpop.eup %6893  ;;  %4812 = vst [vmem:[%s7449_s20 + $0x700] sm:$0xff] %v4556_v30  ;;  %v4557_v40 = vmax.f32 %v4301_v31, 0.0  ;;  %v4302_v41 = vadd.f32 0.5, %v4046_v32  ;;  %v4047_v42 = vsub.f32 %v6890_v29, %v6892_v35  ;;  %6919 = vpow2.f32 %v3008_v16  ;;  %v477_v32 = vld [vmem:[%s7402_s28 + $0x788] sm:$0xff] }
 0x40d   : > { %v6896_v43 = vpop.eup %6895  ;;  %6921 = vpow2.f32 %v1474_v17  ;;  %v988_v29 = vsub.f32 0.0, %v476_v21  ;;  %v733_v35 = vld [vmem:[%s7410_s24 + $0x788] sm:$0xff]  ;;  %v989_v45 = vsub.f32 0.0, %v477_v32 }
 0x40e   : > { %v6898_v47 = vpop.eup %6897  ;;  %4813 = vst [vmem:[%s7449_s20 + $0x708] sm:$0xff] %v4557_v40  ;;  %v4558_v48 = vmax.f32 %v4302_v41, 0.0  ;;  %v4303_v49 = vadd.f32 0.5, %v4047_v42  ;;  %v4048_v50 = vsub.f32 %v6894_v39, %v6896_v43  ;;  %6923 = vpow2.f32 %v3010_v22  ;;  %v734_v40 = vld [vmem:[%s7410_s24 + $0x790] sm:$0xff]  ;;  %v479_v41 = vld [vmem:[%s7402_s28 + $0x798] sm:$0xff] }
 0x40f   : > { %v6900_v51 = vpop.eup %6899  ;;  %6925 = vpow2.f32 %v1476_v26  ;;  %v2524_v39 = vsub.f32 0.0, %v732_v28 }
 0x410   : > { %v6902_v54 = vpop.eup %6901  ;;  %4814 = vst [vmem:[%s7449_s20 + $0x710] sm:$0xff] %v4558_v48  ;;  %v4559_v55 = vmax.f32 %v4303_v49, 0.0  ;;  %v4304_v56 = vadd.f32 0.5, %v4048_v50  ;;  %v4049_v57 = vsub.f32 %v6898_v47, %v6900_v51  ;;  %6927 = vpow2.f32 %v3012_v27  ;;  %v480_v51 = vld [vmem:[%s7402_s28 + $0x7a0] sm:$0xff] }
 0x411   : > { %v6904_v58 = vpop.eup %6903  ;;  %6929 = vpow2.f32 %v1478_v36  ;;  %v478_v36 = vld [vmem:[%s7402_s28 + $0x790] sm:$0xff]  ;;  %v2525_v49 = vsub.f32 0.0, %v733_v35 }
 0x412   : > { %v6906_v61 = vpop.eup %6905  ;;  %4815 = vst [vmem:[%s7449_s20 + $0x718] sm:$0xff] %v4559_v55  ;;  %v4560_v62 = vmax.f32 %v4304_v56, 0.0  ;;  %v4305_v63 = vadd.f32 0.5, %v4049_v57  ;;  %v4050_v0 = vsub.f32 %v6902_v54, %v6904_v58  ;;  %6931 = vpow2.f32 %v3014_v44 }
 0x413   : > { %v6908_v1 = vpop.eup %6907  ;;  %6933 = vpow2.f32 %v1480_v52  ;;  %v1484_v44 = vmul.f32 1.442695, %v988_v29  ;;  %v990_v50 = vsub.f32 0.0, %v478_v36  ;;  %v736_v52 = vld [vmem:[%s7410_s24 + $0x7a0] sm:$0xff]  ;;  %v2526_v55 = vsub.f32 0.0, %v734_v40 }
 0x414   : > { %v6910_v2 = vpop.eup %6909  ;;  %4816 = vst [vmem:[%s7449_s20 + $0x720] sm:$0xff] %v4560_v62  ;;  %v4561_v3 = vmax.f32 %v4305_v63, 0.0  ;;  %v4306_v4 = vadd.f32 0.5, %v4050_v0  ;;  %v4051_v5 = vsub.f32 %v6906_v61, %v6908_v1  ;;  %6935 = vpow2.f32 %v3016_v53  ;;  %v481_v61 = vld [vmem:[%s7402_s28 + $0x7a8] sm:$0xff] }
 0x415   : > { %v6912_v6 = vpop.eup %6911  ;;  %v1748_v7 = vadd.f32 1.0, %v6910_v2  ;;  %6937 = vpow2.f32 %v1482_v59  ;;  %v991_v56 = vsub.f32 0.0, %v479_v41  ;;  %v3020_v59 = vmul.f32 1.442695, %v2524_v39 }
 0x416   : > { %v6914_v8 = vpop.eup %6913  ;;  %4817 = vst [vmem:[%s7449_s20 + $0x728] sm:$0xff] %v4561_v3  ;;  %v4562_v9 = vmax.f32 %v4306_v4, 0.0  ;;  %v4307_v10 = vadd.f32 0.5, %v4051_v5  ;;  %v3284_v11 = vadd.f32 1.0, %v6912_v6  ;;  %6939 = vpow2.f32 %v3018_v60  ;;  %v737_v6 = vld [vmem:[%s7410_s24 + $0x7a8] sm:$0xff] }
 0x417   : > { %v6916_v12 = vpop.eup %6915  ;;  %6941 = vrcp.f32 %v1748_v7  ;;  %v1749_v13 = vadd.f32 1.0, %v6914_v8  ;;  %v2527_v60 = vsub.f32 0.0, %v735_v46  ;;  %v1486_v63 = vmul.f32 1.442695, %v989_v45 }
 0x418   : > { %v6918_v14 = vpop.eup %6917  ;;  %4818 = vst [vmem:[%s7449_s20 + $0x730] sm:$0xff] %v4562_v9  ;;  %v4563_v15 = vmax.f32 %v4307_v10, 0.0  ;;  %6943 = vrcp.f32 %v3284_v11  ;;  %v3285_v16 = vadd.f32 1.0, %v6916_v12  ;;  %v992_v0 = vsub.f32 0.0, %v480_v51 }
 0x419   : > { %v6920_v17 = vpop.eup %6919  ;;  %6945 = vrcp.f32 %v1749_v13  ;;  %v1750_v18 = vadd.f32 1.0, %v6918_v14  ;;  %v2528_v1 = vsub.f32 0.0, %v736_v52  ;;  %v3022_v4 = vmul.f32 1.442695, %v2525_v49 }
 0x41a   : > { %v6922_v19 = vpop.eup %6921  ;;  %4819 = vst [vmem:[%s7449_s20 + $0x738] sm:$0xff] %v4563_v15  ;;  %6947 = vrcp.f32 %v3285_v16  ;;  %v3286_v20 = vadd.f32 1.0, %v6920_v17  ;;  %v1488_v5 = vmul.f32 1.442695, %v990_v50  ;;  %v3024_v8 = vmul.f32 1.442695, %v2526_v55 }
 0x41b   : > { %v6924_v22 = vpop.eup %6923  ;;  %6949 = vrcp.f32 %v1750_v18  ;;  %v1751_v23 = vadd.f32 1.0, %v6922_v19  ;;  %v1490_v9 = vmul.f32 1.442695, %v991_v56  ;;  %v993_v10 = vsub.f32 0.0, %v481_v61  ;;  %v482_v15 = vld [vmem:[%s7402_s28 + $0x7b0] sm:$0xff] }
 0x41c   : > { %v6926_v24 = vpop.eup %6925  ;;  %6951 = vrcp.f32 %v3286_v20  ;;  %v3287_v25 = vadd.f32 1.0, %v6924_v22  ;;  %v3026_v14 = vmul.f32 1.442695, %v2527_v60  ;;  %v738_v16 = vld [vmem:[%s7410_s24 + $0x7b0] sm:$0xff]  ;;  %v1492_v18 = vmul.f32 1.442695, %v992_v0 }
 0x41d   : > { %v6928_v26 = vpop.eup %6927  ;;  %6953 = vrcp.f32 %v1751_v23  ;;  %v1752_v27 = vadd.f32 1.0, %v6926_v24  ;;  %v3028_v19 = vmul.f32 1.442695, %v2528_v1  ;;  %v2529_v20 = vsub.f32 0.0, %v737_v6 }
 0x41e   : > { %v6930_v30 = vpop.eup %6929  ;;  %6955 = vrcp.f32 %v3287_v25  ;;  %v3288_v31 = vadd.f32 1.0, %v6928_v26  ;;  %v483_v25 = vld [vmem:[%s7402_s28 + $0x7b8] sm:$0xff]  ;;  %v1494_v28 = vmul.f32 1.442695, %v993_v10  ;;  %v994_v29 = vsub.f32 0.0, %v482_v15 }
 0x41f   : > { %v6932_v33 = vpop.eup %6931  ;;  %6957 = vrcp.f32 %v1752_v27  ;;  %v1753_v34 = vadd.f32 1.0, %v6930_v30  ;;  %v739_v26 = vld [vmem:[%s7410_s24 + $0x7b8] sm:$0xff]  ;;  %v2530_v30 = vsub.f32 0.0, %v738_v16  ;;  %v3030_v36 = vmul.f32 1.442695, %v2529_v20  ;;  %v740_v20 = vld [vmem:[%s7410_s24 + $0x7c0] sm:$0xff] }
 0x420   : > { %v6934_v37 = vpop.eup %6933  ;;  %6959 = vrcp.f32 %v3288_v31  ;;  %v3289_v38 = vadd.f32 1.0, %v6932_v33 }
 0x421   : > { %v6936_v42 = vpop.eup %6935  ;;  %6961 = vrcp.f32 %v1753_v34  ;;  %v1754_v43 = vadd.f32 1.0, %v6934_v37  ;;  %v995_v37 = vsub.f32 0.0, %v483_v25  ;;  %v3032_v45 = vmul.f32 1.442695, %v2530_v30 }
 0x422   : > { %v6938_v47 = vpop.eup %6937  ;;  %6963 = vrcp.f32 %v3289_v38  ;;  %v3290_v48 = vadd.f32 1.0, %v6936_v42  ;;  %v2531_v38 = vsub.f32 0.0, %v739_v26 }
 0x423   : > { %v6940_v53 = vpop.eup %6939  ;;  %6965 = vrcp.f32 %v1754_v43  ;;  %v1755_v54 = vadd.f32 1.0, %v6938_v47  ;;  %v1498_v51 = vmul.f32 1.442695, %v995_v37 }
 0x424   : > { %v6942_v57 = vpop.eup %6941  ;;  %6967 = vrcp.f32 %v3290_v48  ;;  %v3291_v58 = vadd.f32 1.0, %v6940_v53  ;;  %v3034_v52 = vmul.f32 1.442695, %v2531_v38  ;;  %v743_v38 = vld [vmem:[%s7410_s24 + $0x7d8] sm:$0xff] }
 0x425   : > { %v6944_v62 = vpop.eup %6943  ;;  %6969 = vrcp.f32 %v1755_v54 }
 0x426   : > { %v6946_v2 = vpop.eup %6945  ;;  %v4052_v3 = vsub.f32 %v6942_v57, %v6944_v62  ;;  %6971 = vrcp.f32 %v3291_v58 }
 0x427   : > { %v6948_v7 = vpop.eup %6947  ;;  %6973 = vpow2.f32 %v1484_v44  ;;  %v1496_v44 = vmul.f32 1.442695, %v994_v29 }
 0x428   : > { %v6950_v11 = vpop.eup %6949  ;;  %v4308_v12 = vadd.f32 0.5, %v4052_v3  ;;  %v4053_v13 = vsub.f32 %v6946_v2, %v6948_v7  ;;  %6975 = vpow2.f32 %v3020_v59 }
 0x429   : > { %v6952_v17 = vpop.eup %6951  ;;  %6977 = vpow2.f32 %v1486_v63 }
 0x42a   : > { %v6954_v21 = vpop.eup %6953  ;;  %v4564_v22 = vmax.f32 %v4308_v12, 0.0  ;;  %v4309_v23 = vadd.f32 0.5, %v4053_v13  ;;  %v4054_v24 = vsub.f32 %v6950_v11, %v6952_v17  ;;  %6979 = vpow2.f32 %v3022_v4  ;;  %v484_v13 = vld [vmem:[%s7402_s28 + $0x7c0] sm:$0xff] }
 0x42b   : > { %v6956_v27 = vpop.eup %6955  ;;  %6981 = vpow2.f32 %v1488_v5 }
 0x42c   : > { %v6958_v31 = vpop.eup %6957  ;;  %4820 = vst [vmem:[%s7449_s20 + $0x740] sm:$0xff] %v4564_v22  ;;  %v4565_v32 = vmax.f32 %v4309_v23, 0.0  ;;  %v4310_v33 = vadd.f32 0.5, %v4054_v24  ;;  %v4055_v34 = vsub.f32 %v6954_v21, %v6956_v27  ;;  %6983 = vpow2.f32 %v3024_v8  ;;  %v485_v24 = vld [vmem:[%s7402_s28 + $0x7c8] sm:$0xff] }
 0x42d   : > { %v6960_v35 = vpop.eup %6959  ;;  %6985 = vpow2.f32 %v1490_v9  ;;  %v996_v21 = vsub.f32 0.0, %v484_v13  ;;  %v741_v27 = vld [vmem:[%s7410_s24 + $0x7c8] sm:$0xff]  ;;  %v997_v37 = vsub.f32 0.0, %v485_v24 }
 0x42e   : > { %v6962_v39 = vpop.eup %6961  ;;  %4821 = vst [vmem:[%s7449_s20 + $0x748] sm:$0xff] %v4565_v32  ;;  %v4566_v40 = vmax.f32 %v4310_v33, 0.0  ;;  %v4311_v41 = vadd.f32 0.5, %v4055_v34  ;;  %v4056_v42 = vsub.f32 %v6958_v31, %v6960_v35  ;;  %6987 = vpow2.f32 %v3026_v14  ;;  %v742_v32 = vld [vmem:[%s7410_s24 + $0x7d0] sm:$0xff]  ;;  %v487_v33 = vld [vmem:[%s7402_s28 + $0x7d8] sm:$0xff] }
 0x42f   : > { %v6964_v43 = vpop.eup %6963  ;;  %6989 = vpow2.f32 %v1492_v18  ;;  %v2532_v31 = vsub.f32 0.0, %v740_v20 }
 0x430   : > { %v6966_v46 = vpop.eup %6965  ;;  %4822 = vst [vmem:[%s7449_s20 + $0x750] sm:$0xff] %v4566_v40  ;;  %v4567_v47 = vmax.f32 %v4311_v41, 0.0  ;;  %v4312_v48 = vadd.f32 0.5, %v4056_v42  ;;  %v4057_v49 = vsub.f32 %v6962_v39, %v6964_v43  ;;  %6991 = vpow2.f32 %v3028_v19  ;;  %v488_v43 = vld [vmem:[%s7402_s28 + $0x7e0] sm:$0xff] }
 0x431   : > { %v6968_v50 = vpop.eup %6967  ;;  %6993 = vpow2.f32 %v1494_v28  ;;  %v486_v28 = vld [vmem:[%s7402_s28 + $0x7d0] sm:$0xff]  ;;  %v2533_v41 = vsub.f32 0.0, %v741_v27 }
 0x432   : > { %v6970_v53 = vpop.eup %6969  ;;  %4823 = vst [vmem:[%s7449_s20 + $0x758] sm:$0xff] %v4567_v47  ;;  %v4568_v54 = vmax.f32 %v4312_v48, 0.0  ;;  %v4313_v55 = vadd.f32 0.5, %v4057_v49  ;;  %v4058_v56 = vsub.f32 %v6966_v46, %v6968_v50  ;;  %6995 = vpow2.f32 %v3030_v36 }
 0x433   : > { %v6972_v57 = vpop.eup %6971  ;;  %6997 = vpow2.f32 %v1496_v44  ;;  %v1500_v36 = vmul.f32 1.442695, %v996_v21  ;;  %v998_v42 = vsub.f32 0.0, %v486_v28  ;;  %v744_v44 = vld [vmem:[%s7410_s24 + $0x7e0] sm:$0xff]  ;;  %v2534_v47 = vsub.f32 0.0, %v742_v32 }
 0x434   : > { %v6974_v58 = vpop.eup %6973  ;;  %4824 = vst [vmem:[%s7449_s20 + $0x760] sm:$0xff] %v4568_v54  ;;  %v4569_v59 = vmax.f32 %v4313_v55, 0.0  ;;  %v4314_v60 = vadd.f32 0.5, %v4058_v56  ;;  %v4059_v61 = vsub.f32 %v6970_v53, %v6972_v57  ;;  %6999 = vpow2.f32 %v3032_v45  ;;  %v489_v53 = vld [vmem:[%s7402_s28 + $0x7e8] sm:$0xff] }
 0x435   : > { %v6976_v62 = vpop.eup %6975  ;;  %v1756_v63 = vadd.f32 1.0, %v6974_v58  ;;  %7001 = vpow2.f32 %v1498_v51  ;;  %v999_v48 = vsub.f32 0.0, %v487_v33  ;;  %v3036_v51 = vmul.f32 1.442695, %v2532_v31 }
 0x436   : > { %v6978_v0 = vpop.eup %6977  ;;  %4825 = vst [vmem:[%s7449_s20 + $0x768] sm:$0xff] %v4569_v59  ;;  %v4570_v1 = vmax.f32 %v4314_v60, 0.0  ;;  %v4315_v2 = vadd.f32 0.5, %v4059_v61  ;;  %v3292_v3 = vadd.f32 1.0, %v6976_v62  ;;  %7003 = vpow2.f32 %v3034_v52  ;;  %v745_v62 = vld [vmem:[%s7410_s24 + $0x7e8] sm:$0xff] }
 0x437   : > { %v6980_v4 = vpop.eup %6979  ;;  %7005 = vrcp.f32 %v1756_v63  ;;  %v1757_v5 = vadd.f32 1.0, %v6978_v0  ;;  %v2535_v52 = vsub.f32 0.0, %v743_v38  ;;  %v1502_v55 = vmul.f32 1.442695, %v997_v37 }
 0x438   : > { %v6982_v6 = vpop.eup %6981  ;;  %4826 = vst [vmem:[%s7449_s20 + $0x770] sm:$0xff] %v4570_v1  ;;  %v4571_v7 = vmax.f32 %v4315_v2, 0.0  ;;  %7007 = vrcp.f32 %v3292_v3  ;;  %v3293_v8 = vadd.f32 1.0, %v6980_v4  ;;  %v1000_v56 = vsub.f32 0.0, %v488_v43 }
 0x439   : > { %v6984_v9 = vpop.eup %6983  ;;  %7009 = vrcp.f32 %v1757_v5  ;;  %v1758_v10 = vadd.f32 1.0, %v6982_v6  ;;  %v2536_v57 = vsub.f32 0.0, %v744_v44  ;;  %v3038_v60 = vmul.f32 1.442695, %v2533_v41 }
 0x43a   : > { %v6986_v11 = vpop.eup %6985  ;;  %4827 = vst [vmem:[%s7449_s20 + $0x778] sm:$0xff] %v4571_v7  ;;  %7011 = vrcp.f32 %v3293_v8  ;;  %v3294_v12 = vadd.f32 1.0, %v6984_v9  ;;  %v1504_v61 = vmul.f32 1.442695, %v998_v42  ;;  %v3040_v0 = vmul.f32 1.442695, %v2534_v47 }
 0x43b   : > { %v6988_v14 = vpop.eup %6987  ;;  %7013 = vrcp.f32 %v1758_v10  ;;  %v1759_v15 = vadd.f32 1.0, %v6986_v11  ;;  %v1506_v1 = vmul.f32 1.442695, %v999_v48  ;;  %v1001_v2 = vsub.f32 0.0, %v489_v53  ;;  %v490_v7 = vld [vmem:[%s7402_s28 + $0x7f0] sm:$0xff] }
 0x43c   : > { %v6990_v16 = vpop.eup %6989  ;;  %7015 = vrcp.f32 %v3294_v12  ;;  %v3295_v17 = vadd.f32 1.0, %v6988_v14  ;;  %v3042_v6 = vmul.f32 1.442695, %v2535_v52  ;;  %v746_v8 = vld [vmem:[%s7410_s24 + $0x7f0] sm:$0xff]  ;;  %v1508_v10 = vmul.f32 1.442695, %v1000_v56 }
 0x43d   : > { %v6992_v18 = vpop.eup %6991  ;;  %7017 = vrcp.f32 %v1759_v15  ;;  %v1760_v19 = vadd.f32 1.0, %v6990_v16  ;;  %v3044_v11 = vmul.f32 1.442695, %v2536_v57  ;;  %v2537_v12 = vsub.f32 0.0, %v745_v62 }
 0x43e   : > { %v6994_v22 = vpop.eup %6993  ;;  %7019 = vrcp.f32 %v3295_v17  ;;  %v3296_v23 = vadd.f32 1.0, %v6992_v18  ;;  %v491_v17 = vld [vmem:[%s7402_s28 + $0x7f8] sm:$0xff]  ;;  %v1510_v20 = vmul.f32 1.442695, %v1001_v2  ;;  %v1002_v21 = vsub.f32 0.0, %v490_v7 }
 0x43f   : > { %v6996_v25 = vpop.eup %6995  ;;  %7021 = vrcp.f32 %v1760_v19  ;;  %v1761_v26 = vadd.f32 1.0, %v6994_v22  ;;  %v747_v18 = vld [vmem:[%s7410_s24 + $0x7f8] sm:$0xff]  ;;  %v2538_v22 = vsub.f32 0.0, %v746_v8  ;;  %v3046_v28 = vmul.f32 1.442695, %v2537_v12 }
 0x440   : > { %v6998_v29 = vpop.eup %6997  ;;  %7023 = vrcp.f32 %v3296_v23  ;;  %v3297_v30 = vadd.f32 1.0, %v6996_v25 }
 0x441   : > { %v7000_v34 = vpop.eup %6999  ;;  %7025 = vrcp.f32 %v1761_v26  ;;  %v1762_v35 = vadd.f32 1.0, %v6998_v29  ;;  %v1003_v29 = vsub.f32 0.0, %v491_v17  ;;  %v3048_v37 = vmul.f32 1.442695, %v2538_v22 }
 0x442   : > { %v7002_v39 = vpop.eup %7001  ;;  %7027 = vrcp.f32 %v3297_v30  ;;  %v3298_v40 = vadd.f32 1.0, %v7000_v34  ;;  %v2539_v30 = vsub.f32 0.0, %v747_v18 }
 0x443   : > { %v7004_v45 = vpop.eup %7003  ;;  %7029 = vrcp.f32 %v1762_v35  ;;  %v1763_v46 = vadd.f32 1.0, %v7002_v39  ;;  %v1514_v43 = vmul.f32 1.442695, %v1003_v29 }
 0x444   : > { %v7006_v49 = vpop.eup %7005  ;;  %7031 = vrcp.f32 %v3298_v40  ;;  %v3299_v50 = vadd.f32 1.0, %v7004_v45  ;;  %v3050_v44 = vmul.f32 1.442695, %v2539_v30 }
 0x445   : > { %v7008_v54 = vpop.eup %7007  ;;  %7033 = vrcp.f32 %v1763_v46 }
 0x446   : > { %v7010_v58 = vpop.eup %7009  ;;  %v4060_v59 = vsub.f32 %v7006_v49, %v7008_v54  ;;  %7035 = vrcp.f32 %v3299_v50 }
 0x447   : > { %v7012_v63 = vpop.eup %7011  ;;  %7037 = vpow2.f32 %v1500_v36  ;;  %v1512_v36 = vmul.f32 1.442695, %v1002_v21 }
 0x448   : > { %v7014_v3 = vpop.eup %7013  ;;  %v4316_v4 = vadd.f32 0.5, %v4060_v59  ;;  %v4061_v5 = vsub.f32 %v7010_v58, %v7012_v63  ;;  %7039 = vpow2.f32 %v3036_v51 }
 0x449   : > { %v7016_v9 = vpop.eup %7015  ;;  %7041 = vpow2.f32 %v1502_v55 }
 0x44a   : > { %v7018_v13 = vpop.eup %7017  ;;  %v4572_v14 = vmax.f32 %v4316_v4, 0.0  ;;  %v4317_v15 = vadd.f32 0.5, %v4061_v5  ;;  %v4062_v16 = vsub.f32 %v7014_v3, %v7016_v9  ;;  %7043 = vpow2.f32 %v3038_v60 }
 0x44b   : > { %v7020_v19 = vpop.eup %7019  ;;  %7045 = vpow2.f32 %v1504_v61 }
 0x44c   : > { %v7022_v23 = vpop.eup %7021  ;;  %4828 = vst [vmem:[%s7449_s20 + $0x780] sm:$0xff] %v4572_v14  ;;  %v4573_v24 = vmax.f32 %v4317_v15, 0.0  ;;  %v4318_v25 = vadd.f32 0.5, %v4062_v16  ;;  %v4063_v26 = vsub.f32 %v7018_v13, %v7020_v19  ;;  %7047 = vpow2.f32 %v3040_v0 }
 0x44d   : > { %v7024_v27 = vpop.eup %7023  ;;  %7049 = vpow2.f32 %v1506_v1 }
 0x44e   : > { %v7026_v31 = vpop.eup %7025  ;;  %4829 = vst [vmem:[%s7449_s20 + $0x788] sm:$0xff] %v4573_v24  ;;  %v4574_v32 = vmax.f32 %v4318_v25, 0.0  ;;  %v4319_v33 = vadd.f32 0.5, %v4063_v26  ;;  %v4064_v34 = vsub.f32 %v7022_v23, %v7024_v27  ;;  %7051 = vpow2.f32 %v3042_v6 }
 0x44f   : > { %v7028_v35 = vpop.eup %7027  ;;  %7053 = vpow2.f32 %v1508_v10 }
 0x450   : > { %v7030_v38 = vpop.eup %7029  ;;  %4830 = vst [vmem:[%s7449_s20 + $0x790] sm:$0xff] %v4574_v32  ;;  %v4575_v39 = vmax.f32 %v4319_v33, 0.0  ;;  %v4320_v40 = vadd.f32 0.5, %v4064_v34  ;;  %v4065_v41 = vsub.f32 %v7026_v31, %v7028_v35  ;;  %7055 = vpow2.f32 %v3044_v11 }
 0x451   : > { %v7032_v42 = vpop.eup %7031  ;;  %7057 = vpow2.f32 %v1510_v20 }
 0x452   : > { %v7034_v45 = vpop.eup %7033  ;;  %4831 = vst [vmem:[%s7449_s20 + $0x798] sm:$0xff] %v4575_v39  ;;  %v4576_v46 = vmax.f32 %v4320_v40, 0.0  ;;  %v4321_v47 = vadd.f32 0.5, %v4065_v41  ;;  %v4066_v48 = vsub.f32 %v7030_v38, %v7032_v42  ;;  %7059 = vpow2.f32 %v3046_v28 }
 0x453   : > { %v7036_v49 = vpop.eup %7035  ;;  %7061 = vpow2.f32 %v1512_v36 }
 0x454   : > { %v7038_v50 = vpop.eup %7037  ;;  %4832 = vst [vmem:[%s7449_s20 + $0x7a0] sm:$0xff] %v4576_v46  ;;  %v4577_v51 = vmax.f32 %v4321_v47, 0.0  ;;  %v4322_v52 = vadd.f32 0.5, %v4066_v48  ;;  %v4067_v53 = vsub.f32 %v7034_v45, %v7036_v49  ;;  %7063 = vpow2.f32 %v3048_v37 }
 0x455   : > { %v7040_v54 = vpop.eup %7039  ;;  %v1764_v55 = vadd.f32 1.0, %v7038_v50  ;;  %7065 = vpow2.f32 %v1514_v43 }
 0x456   : > { %v7042_v56 = vpop.eup %7041  ;;  %4833 = vst [vmem:[%s7449_s20 + $0x7a8] sm:$0xff] %v4577_v51  ;;  %v4578_v57 = vmax.f32 %v4322_v52, 0.0  ;;  %v4323_v58 = vadd.f32 0.5, %v4067_v53  ;;  %v3300_v59 = vadd.f32 1.0, %v7040_v54  ;;  %7067 = vpow2.f32 %v3050_v44 }
 0x457   : > { %v7044_v60 = vpop.eup %7043  ;;  %7069 = vrcp.f32 %v1764_v55  ;;  %v1765_v61 = vadd.f32 1.0, %v7042_v56 }
 0x458   : > { %v7046_v62 = vpop.eup %7045  ;;  %4834 = vst [vmem:[%s7449_s20 + $0x7b0] sm:$0xff] %v4578_v57  ;;  %v4579_v63 = vmax.f32 %v4323_v58, 0.0  ;;  %7071 = vrcp.f32 %v3300_v59  ;;  %v3301_v0 = vadd.f32 1.0, %v7044_v60 }
 0x459   : > { %v7048_v1 = vpop.eup %7047  ;;  %7073 = vrcp.f32 %v1765_v61  ;;  %v1766_v2 = vadd.f32 1.0, %v7046_v62 }
 0x45a   : > { %v7050_v3 = vpop.eup %7049  ;;  %4835 = vst [vmem:[%s7449_s20 + $0x7b8] sm:$0xff] %v4579_v63  ;;  %7075 = vrcp.f32 %v3301_v0  ;;  %v3302_v4 = vadd.f32 1.0, %v7048_v1 }
 0x45b   : > { %v7052_v5 = vpop.eup %7051  ;;  %7077 = vrcp.f32 %v1766_v2  ;;  %v1767_v6 = vadd.f32 1.0, %v7050_v3 }
 0x45c   : > { %v7054_v7 = vpop.eup %7053  ;;  %7079 = vrcp.f32 %v3302_v4  ;;  %v3303_v8 = vadd.f32 1.0, %v7052_v5 }
 0x45d   : > { %v7056_v9 = vpop.eup %7055  ;;  %7081 = vrcp.f32 %v1767_v6  ;;  %v1768_v10 = vadd.f32 1.0, %v7054_v7 }
 0x45e   : > { %v7058_v11 = vpop.eup %7057  ;;  %7083 = vrcp.f32 %v3303_v8  ;;  %v3304_v12 = vadd.f32 1.0, %v7056_v9 }
 0x45f   : > { %v7060_v13 = vpop.eup %7059  ;;  %7085 = vrcp.f32 %v1768_v10  ;;  %v1769_v14 = vadd.f32 1.0, %v7058_v11 }
 0x460   : > { %v7062_v15 = vpop.eup %7061  ;;  %7087 = vrcp.f32 %v3304_v12  ;;  %v3305_v16 = vadd.f32 1.0, %v7060_v13 }
 0x461   : > { %v7064_v17 = vpop.eup %7063  ;;  %7089 = vrcp.f32 %v1769_v14  ;;  %v1770_v18 = vadd.f32 1.0, %v7062_v15 }
 0x462   : > { %v7066_v19 = vpop.eup %7065  ;;  %7091 = vrcp.f32 %v3305_v16  ;;  %v3306_v20 = vadd.f32 1.0, %v7064_v17 }
 0x463   : > { %v7068_v21 = vpop.eup %7067  ;;  %7093 = vrcp.f32 %v1770_v18  ;;  %v1771_v22 = vadd.f32 1.0, %v7066_v19 }
 0x464   : > { %v7070_v23 = vpop.eup %7069  ;;  %7095 = vrcp.f32 %v3306_v20  ;;  %v3307_v24 = vadd.f32 1.0, %v7068_v21 }
 0x465   : > { %v7072_v25 = vpop.eup %7071  ;;  %7097 = vrcp.f32 %v1771_v22 }
 0x466   : > { %v7074_v26 = vpop.eup %7073  ;;  %v4068_v27 = vsub.f32 %v7070_v23, %v7072_v25  ;;  %7099 = vrcp.f32 %v3307_v24 }
 0x467   : > { %v7076_v28 = vpop.eup %7075 }
 0x468   : > { %v7078_v29 = vpop.eup %7077  ;;  %v4324_v30 = vadd.f32 0.5, %v4068_v27  ;;  %v4069_v31 = vsub.f32 %v7074_v26, %v7076_v28 }
 0x469   : > { %v7080_v32 = vpop.eup %7079 }
 0x46a   : > { %v7082_v33 = vpop.eup %7081  ;;  %v4580_v34 = vmax.f32 %v4324_v30, 0.0  ;;  %v4325_v35 = vadd.f32 0.5, %v4069_v31  ;;  %v4070_v36 = vsub.f32 %v7078_v29, %v7080_v32 }
 0x46b   : > { %v7084_v37 = vpop.eup %7083 }
 0x46c   : > { %v7086_v38 = vpop.eup %7085  ;;  %4836 = vst [vmem:[%s7449_s20 + $0x7c0] sm:$0xff] %v4580_v34  ;;  %v4581_v39 = vmax.f32 %v4325_v35, 0.0  ;;  %v4326_v40 = vadd.f32 0.5, %v4070_v36  ;;  %v4071_v41 = vsub.f32 %v7082_v33, %v7084_v37 }
 0x46d   : > { %v7088_v42 = vpop.eup %7087 }
 0x46e   : > { %v7090_v43 = vpop.eup %7089  ;;  %4837 = vst [vmem:[%s7449_s20 + $0x7c8] sm:$0xff] %v4581_v39  ;;  %v4582_v44 = vmax.f32 %v4326_v40, 0.0  ;;  %v4327_v45 = vadd.f32 0.5, %v4071_v41  ;;  %v4072_v46 = vsub.f32 %v7086_v38, %v7088_v42 }
 0x46f   : > { %v7092_v47 = vpop.eup %7091 }
 0x470   : > { %v7094_v48 = vpop.eup %7093  ;;  %4838 = vst [vmem:[%s7449_s20 + $0x7d0] sm:$0xff] %v4582_v44  ;;  %v4583_v49 = vmax.f32 %v4327_v45, 0.0  ;;  %v4328_v50 = vadd.f32 0.5, %v4072_v46  ;;  %v4073_v51 = vsub.f32 %v7090_v43, %v7092_v47 }
 0x471   : > { %v7096_v52 = vpop.eup %7095 }
 0x472   : > { %v7098_v53 = vpop.eup %7097  ;;  %4839 = vst [vmem:[%s7449_s20 + $0x7d8] sm:$0xff] %v4583_v49  ;;  %v4584_v54 = vmax.f32 %v4328_v50, 0.0  ;;  %v4329_v55 = vadd.f32 0.5, %v4073_v51  ;;  %v4074_v56 = vsub.f32 %v7094_v48, %v7096_v52 }
 0x473   : > { %v7100_v57 = vpop.eup %7099 }
 0x474   : > { %4840 = vst [vmem:[%s7449_s20 + $0x7e0] sm:$0xff] %v4584_v54  ;;  %v4585_v58 = vmax.f32 %v4329_v55, 0.0  ;;  %v4330_v59 = vadd.f32 0.5, %v4074_v56  ;;  %v4075_v60 = vsub.f32 %v7098_v53, %v7100_v57 }
 0x476   : > { %4841 = vst [vmem:[%s7449_s20 + $0x7e8] sm:$0xff] %v4585_v58  ;;  %v4586_v61 = vmax.f32 %v4330_v59, 0.0  ;;  %v4331_v62 = vadd.f32 0.5, %v4075_v60  ;;  %4851 = sbr.rel (!%p8257_p6) target bundleno = 1174 (0x496), region = 40 }
 0x478   : > { %4842 = vst [vmem:[%s7449_s20 + $0x7f0] sm:$0xff] %v4586_v61  ;;  %v4587_v63 = vmax.f32 %v4331_v62, 0.0 }
 0x47a   : > { %4843 = vst [vmem:[%s7449_s20 + $0x7f8] sm:$0xff] %v4587_v63 }
 0x47b   : > { %s8269_s30 = smov (!%p4854_p5, %s4853_s30), 64 }
 0x47c   : > { %s8191_s3 = sshll.u32 %s8269_s30, 9 }
 0x47d   : > { %s4859_s4 = ssub.s32 32768, %s8191_s3 }
 0x47e   : > { %4860 = vsyncadd %s4845_s7, %s4859_s4  ;;  %p4991_p7 = scmp.ne.s32.totalorder %s8191_s3, 0  ;;  %s5006_s21 = sshll.u32 %s7268_s13, 15 }
 0x47f   : > { %s8201_s14 = scalar_lea.hbm %s8251_s2, %s5006_s21  ;;  %s4866_s16 = sshll.u32 %s7449_s20, 4  ;;  %s8204_s16 = int_to_ptr.vmem [resolvable:$true] %s4866_s16 }
 0x480   : > { %s7153_s23 = scalar_lea.vmem %s8204_s16, %s8191_s3  ;;  %s7229_s27 = smov [#allocation7]  }
 0x481   : > { %p7154_p8 = scmp.ne.s32.totalorder %s8204_s16, %s7153_s23  ;;  %s7157_s19 = sshll.u32 %s7229_s27, 4  ;;  %s7158_s19 = int_to_ptr.vmem [resolvable:$false] %s7157_s19 }
 0x482   : > { %s7159_s13 = scalar_lea.vmem %s7158_s19, 65536  ;;  %p7160_p1 = scmp.lt.s32.totalorder %s8204_s16, %s7158_s19 }
 0x483   : > { %p7155_p12 = pnand %p7154_p8, %p4991_p7  ;;  %p7161_p3 = scmp.lt.s32.totalorder %s7159_s13, %s7153_s23 }
 0x485   : > { %p7156_p0 = pneg %p7155_p12  ;;  %p7162_p9 = por %p7161_p3, %p7160_p1 }
 0x487   : > { %p7163_p10 = pnand %p7162_p9, %p7156_p0 }
 0x489   : > { %7166 = shalt.err (!%p7163_p10)
}
 0x48a   : > { %s7167_s6 = scalar_lea.hbm %s8201_s14, %s8191_s3  ;;  %s7171_s17 = scalar_lea.hbm %s8251_s2, 33280 }
 0x48b   : > { %p7168_p11 = scmp.ne.s32.totalorder %s8201_s14, %s7167_s6  ;;  %p7172_p4 = scmp.lt.s32.totalorder %s8201_s14, %s8251_s2 }
 0x48c   : > { %p7173_p6 = scmp.lt.s32.totalorder %s7171_s17, %s7167_s6 }
 0x48d   : > { %p7169_p13 = pnand %p7168_p11, %p4991_p7 }
 0x48e   : > { %p7174_p5 = por %p7173_p6, %p7172_p4 }
 0x48f   : > { %p7170_p2 = pneg %p7169_p13 }
 0x491   : > { %p7175_p8 = pnand %p7174_p5, %p7170_p2 }
 0x493   : > { %7178 = shalt.err (!%p7175_p8)
}
 0x494   : > { %s7230_s25 = smov 512   ;;  %s7231_s30 = smov 32  }
 0x495   : > { %4872 = dma.vmem_to_hbm [thread:$0]  (%p4991_p7), %s8204_s16, %s8191_s3, %s8201_s14, %s4845_s7, %s7230_s25, %s7230_s25, %s7231_s30  }
 0x496 PF: > { %s4881_s4 = sand.u32 1, %s7209_s9   ;;  %p8258_p12 = scmp.ne.s32.totalorder %s8256_s22, 0 }
 0x497   : > { %p8259_p0 = scmp.ge.s32.totalorder %s7221_s12, 2  ;;  %s4882_s21 = scalar_lea.sflag [#allocation4], %s4881_s4 }
 0x499   : > { %p5011_p1 = pnand %p8259_p0, %p8258_p12 }
 0x49b   : > { %p5012_p3 = pneg %p5011_p1 }
 0x49d   : > { %7204 = dma.done.wait (%p5012_p3), %s4882_s21, 32768  }
 0x49e   : > { %7206 = vsyncadd (%p5012_p3), %s4882_s21, 4294934528  ;;  %p18_p9 = scmp.ge.s32.totalorder %s7272_s15, 4   ;;  %s8260_s9 = smov %s7213_s10 }
 0x49f   : > { %s8261_s10 = smov %s7217_s11  ;;  %s8262_s11 = smov %s7284_s18 }
 0x4a0   : > { %s8263_s12 = smov %s7272_s15  ;;  %20 = sbr.rel (!%p18_p9) target bundleno = 7 (0x7), region = 86 }
 0x4a5   :  { %4887 = vsyncpa [#allocation3], 1 }
 0x4a6   :  { %4889 = vsyncpa [#allocation3 + $0x1], 1 }
 0x4a7   :  { %4890 = vsyncpa [#allocation6], 1 }
 0x4a8   :  { %4892 = vsyncpa [#allocation6 + $0x1], 1 }
 0x4a9   :  { %4893 = vsyncpa [#allocation4], 1 }
 0x4aa   :  { %4895 = vsyncpa [#allocation4 + $0x1], 1 }

</bundles_post_ra>
